<compile_context>
chip_gen: v7x
topology: tpu7x:2x2x1
jax: 0.10.0
libtpu: 0.0.40
codegen_flags: <defaults>
</compile_context>

<pallas_src>
import functools
import math

import jax
import jax.numpy as jnp
from jax.experimental import pallas as pl
from jax.experimental.pallas import tpu as pltpu

NEG_INF = -100000000.0


# ----------------------------- in-kernel helpers ----------------------------

def _layer_norm(x, g, b):
    # f32 LayerNorm (eps matches torch default 1e-5).
    mean = jnp.mean(x, axis=-1, keepdims=True)
    var = jnp.mean((x - mean) ** 2, axis=-1, keepdims=True)
    return (x - mean) * jax.lax.rsqrt(var + 1e-5) * g + b


def _mha(q2d, k2d, v2d, mask, wq, wk, wv, wo, *, batch, n_q, n_k, n_heads):
    """Multi-head attention.

    q2d/k2d/v2d: (B*Tq, E) / (B*Tk, E) f32 activations.
    wq/wk/wv:    (E, H*dk=E) bf16 concatenated-head projections.
    wo:          (H*dk=E, E) bf16 concatenated output projection.
    mask:        (B, Tq, Tk) f32; entries > 0 are masked (torch masked_fill).
    Returns (B*Tq, E) f32.
    """
    e = q2d.shape[-1]
    dk = e // n_heads
    norm = 1.0 / math.sqrt(dk)

    q = jnp.dot(q2d.astype(jnp.bfloat16), wq, preferred_element_type=jnp.float32)
    k = jnp.dot(k2d.astype(jnp.bfloat16), wk, preferred_element_type=jnp.float32)
    v = jnp.dot(v2d.astype(jnp.bfloat16), wv, preferred_element_type=jnp.float32)
    q = q.reshape(batch, n_q, e)
    k = k.reshape(batch, n_k, e)
    v = v.reshape(batch, n_k, e)

    heads = []
    for h in range(n_heads):                         # static unroll (scores only)
        qh = q[:, :, h * dk:(h + 1) * dk].astype(jnp.bfloat16)
        kh = k[:, :, h * dk:(h + 1) * dk].astype(jnp.bfloat16)
        vh = v[:, :, h * dk:(h + 1) * dk].astype(jnp.bfloat16)
        s = norm * jnp.einsum('bqd,bkd->bqk', qh, kh,
                              preferred_element_type=jnp.float32)
        s = jnp.where(mask > 0.0, NEG_INF, s)
        s = s - jnp.max(s, axis=-1, keepdims=True)
        p = jnp.exp(s)
        p = p * pl.reciprocal(jnp.sum(p, axis=-1, keepdims=True), approx=True)
        heads.append(jnp.einsum('bqk,bkd->bqd', p.astype(jnp.bfloat16), vh,
                                preferred_element_type=jnp.float32))
    cat = jnp.concatenate(heads, axis=-1).reshape(batch * n_q, e)
    return jnp.dot(cat.astype(jnp.bfloat16), wo, preferred_element_type=jnp.float32)


def _ffn(x2d, w1, b1, w2, b2):
    # Linear(E->512) + ReLU + Linear(512->E); hidden stays on-chip.
    h = jnp.dot(x2d.astype(jnp.bfloat16), w1, preferred_element_type=jnp.float32) + b1
    h = jnp.maximum(h, 0.0)
    return jnp.dot(h.astype(jnp.bfloat16), w2, preferred_element_type=jnp.float32) + b2


# --------------------------- fused encoder kernel ----------------------------

def _encoder_stack_kernel(node_ref, iw_ref, ib_ref, mask_ref,
                          ln1g_ref, ln1b_ref, wq_ref, wk_ref, wv_ref, wo_ref,
                          ln2g_ref, ln2b_ref, w1_ref, b1_ref, w2_ref, b2_ref,
                          x_ref, *, batch, n_nodes, n_heads):
    layer = pl.program_id(0)

    # Layer 0: initial node embedding, written into the resident output block.
    @pl.when(layer == 0)
    def _():
        x_ref[...] = (jnp.dot(node_ref[...], iw_ref[...],
                              preferred_element_type=jnp.float32) + ib_ref[...])

    x = x_ref[...]                              # (B*N, E) f32, resident in VMEM
    mask = mask_ref[...]                        # (B, N, N) f32

    # Pre-norm self-attention block.
    h = _layer_norm(x, ln1g_ref[0], ln1b_ref[0])
    x = x + _mha(h, h, h, mask, wq_ref[0], wk_ref[0], wv_ref[0], wo_ref[0],
                 batch=batch, n_q=n_nodes, n_k=n_nodes, n_heads=n_heads)

    # Pre-norm feed-forward block.
    h = _layer_norm(x, ln2g_ref[0], ln2b_ref[0])
    x = x + _ffn(h, w1_ref[0], b1_ref[0], w2_ref[0], b2_ref[0])

    x_ref[...] = x


def encode_graph(params, node_inputs, node_padding_mask, edge_mask):
    b, n, node_dim = node_inputs.shape
    e, n_heads = params["E"], params["H"]
    enc = params["enc"]
    n_layers = enc["wq"].shape[0]
    ffn_dim = enc["w1"].shape[-1]

    # combined mask = attn_mask + key_padding_mask, masked where > 0
    enc_mask = edge_mask.astype(jnp.float32) + node_padding_mask.astype(jnp.float32)
    node2d = node_inputs.reshape(b * n, node_dim).astype(jnp.float32)

    fixed = lambda ndim: (lambda l: (0,) * ndim)
    per_layer = lambda ndim: (lambda l: (l,) + (0,) * (ndim - 1))

    kernel = functools.partial(_encoder_stack_kernel,
                               batch=b, n_nodes=n, n_heads=n_heads)
    return pl.pallas_call(
        kernel,
        out_shape=jax.ShapeDtypeStruct((b * n, e), jnp.float32),
        grid=(n_layers,),
        in_specs=[
            pl.BlockSpec((b * n, node_dim), fixed(2)),     # node inputs
            pl.BlockSpec((node_dim, e), fixed(2)),         # initial embed W
            pl.BlockSpec((1, e), fixed(2)),                # initial embed b
            pl.BlockSpec((b, n, n), fixed(3)),             # combined mask
            pl.BlockSpec((1, 1, e), per_layer(3)),         # ln1 gamma
            pl.BlockSpec((1, 1, e), per_layer(3)),         # ln1 beta
            pl.BlockSpec((1, e, e), per_layer(3)),         # wq (concat heads)
            pl.BlockSpec((1, e, e), per_layer(3)),         # wk
            pl.BlockSpec((1, e, e), per_layer(3)),         # wv
            pl.BlockSpec((1, e, e), per_layer(3)),         # wo
            pl.BlockSpec((1, 1, e), per_layer(3)),         # ln2 gamma
            pl.BlockSpec((1, 1, e), per_layer(3)),         # ln2 beta
            pl.BlockSpec((1, e, ffn_dim), per_layer(3)),   # ff1 W
            pl.BlockSpec((1, 1, ffn_dim), per_layer(3)),   # ff1 b
            pl.BlockSpec((1, ffn_dim, e), per_layer(3)),   # ff2 W
            pl.BlockSpec((1, 1, e), per_layer(3)),         # ff2 b
        ],
        out_specs=pl.BlockSpec((b * n, e), fixed(2)),      # resident across layers
        compiler_params=pltpu.CompilerParams(dimension_semantics=("arbitrary",)),
    )(node2d, params["init_w"], params["init_b"], enc_mask,
      enc["ln1_g"], enc["ln1_b"], enc["wq"], enc["wk"], enc["wv"], enc["wo"],
      enc["ln2_g"], enc["ln2_b"], enc["w1"], enc["b1"], enc["w2"], enc["b2"])


# -------------------- fused decoder + current + pointer kernel ---------------

def _decoder_pointer_kernel(cur_ref, mem_ref, neigh_ref, kpm_ref, epm_ref,
                            ln1g_ref, ln1b_ref, wq_ref, wk_ref, wv_ref, wo_ref,
                            ln2g_ref, ln2b_ref, w1_ref, b1_ref, w2_ref, b2_ref,
                            curw_ref, curb_ref, pwq_ref, pwk_ref,
                            o_ref, *, batch, n_nodes, n_edges, n_heads):
    e = cur_ref.shape[-1]
    cur = cur_ref[...]                                  # (B, E)
    mem = mem_ref[...]                                  # (B*N, E)

    # DecoderLayer (norm1 applied to BOTH tgt and memory, as in the reference).
    tgt_n = _layer_norm(cur, ln1g_ref[...], ln1b_ref[...])
    mem_n = _layer_norm(mem, ln1g_ref[...], ln1b_ref[...])
    a = _mha(tgt_n, mem_n, mem_n, kpm_ref[...],
             wq_ref[...], wk_ref[...], wv_ref[...], wo_ref[...],
             batch=batch, n_q=1, n_k=n_nodes, n_heads=n_heads)
    h = a + cur
    h1 = h
    hn = _layer_norm(h, ln2g_ref[...], ln2b_ref[...])
    enh = _ffn(hn, w1_ref[...], b1_ref[...], w2_ref[...], b2_ref[...]) + h1   # (B, E)

    # current_embedding(cat(enhanced_current, current))
    cat = jnp.concatenate([enh, cur], axis=-1)                                # (B, 2E)
    cs = jnp.dot(cat.astype(jnp.bfloat16), curw_ref[...],
                 preferred_element_type=jnp.float32) + curb_ref[...]          # (B, E)

    # Single-head pointer: tanh clipping + masked log-softmax.
    qp = jnp.dot(cs.astype(jnp.bfloat16), pwq_ref[...],
                 preferred_element_type=jnp.float32).reshape(batch, 1, e)
    kp = jnp.dot(neigh_ref[...].astype(jnp.bfloat16), pwk_ref[...],
                 preferred_element_type=jnp.float32).reshape(batch, n_edges, e)
    u = (1.0 / math.sqrt(e)) * jnp.einsum(
        'bqd,bkd->bqk', qp.astype(jnp.bfloat16), kp.astype(jnp.bfloat16),
        preferred_element_type=jnp.float32)
    u = 10.0 * jnp.tanh(u)
    u = jnp.where(epm_ref[...] > 0.0, NEG_INF, u)       # robust to any >0 mask value
    u = u - jnp.max(u, axis=-1, keepdims=True)
    logp = u - jnp.log(jnp.sum(jnp.exp(u), axis=-1, keepdims=True))
    o_ref[...] = logp[:, 0, :]                          # (B, K) in one dense store


def decode_and_point(params, enhanced2d, cur2d, neigh2d,
                     node_padding_mask, edge_padding_mask, batch, n_nodes, n_edges):
    e, n_heads = params["E"], params["H"]
    dec = params["dec"]
    ffn_dim = dec["w1"].shape[-1]
    kpm = node_padding_mask.astype(jnp.float32)         # (B, 1, N)
    epm = edge_padding_mask.astype(jnp.float32)         # (B, 1, K)

    spec = lambda shape: pl.BlockSpec(shape, lambda i: (0,) * len(shape))
    kernel = functools.partial(_decoder_pointer_kernel, batch=batch,
                               n_nodes=n_nodes, n_edges=n_edges, n_heads=n_heads)
    return pl.pallas_call(
        kernel,
        out_shape=jax.ShapeDtypeStruct((batch, n_edges), jnp.float32),
        grid=(1,),
        in_specs=[
            spec((batch, e)), spec((batch * n_nodes, e)), spec((batch * n_edges, e)),
            spec((batch, 1, n_nodes)), spec((batch, 1, n_edges)),
            spec((1, e)), spec((1, e)),
            spec((e, e)), spec((e, e)), spec((e, e)), spec((e, e)),
            spec((1, e)), spec((1, e)),
            spec((e, ffn_dim)), spec((1, ffn_dim)), spec((ffn_dim, e)), spec((1, e)),
            spec((2 * e, e)), spec((1, e)),
            spec((e, e)), spec((e, e)),
        ],
        out_specs=spec((batch, n_edges)),
    )(cur2d, enhanced2d, neigh2d, kpm, epm,
      dec["ln1_g"], dec["ln1_b"], dec["wq"], dec["wk"], dec["wv"], dec["wo"],
      dec["ln2_g"], dec["ln2_b"], dec["w1"], dec["b1"], dec["w2"], dec["b2"],
      params["cur_w"], params["cur_b"], params["ptr_wq"], params["ptr_wk"])


# -------------------------- parameters (deterministic) -----------------------

def _uniform(key, shape, scale):
    return jax.random.uniform(key, shape, jnp.float32, -scale, scale)


def _init_mha(key, e, h):
    dk = e // h
    k1, k2, k3, k4 = jax.random.split(key, 4)
    s_k = 1.0 / math.sqrt(dk)
    s_o = 1.0 / math.sqrt(e)
    # torch layout (H, E, dk)/(H, dk, E) -> concatenated (E, E) projections.
    wq = _uniform(k1, (h, e, dk), s_k).transpose(1, 0, 2).reshape(e, e)
    wk = _uniform(k2, (h, e, dk), s_k).transpose(1, 0, 2).reshape(e, e)
    wv = _uniform(k3, (h, e, dk), s_k).transpose(1, 0, 2).reshape(e, e)
    wo = _uniform(k4, (h, dk, e), s_o).reshape(e, e)
    return wq, wk, wv, wo


def _init_layer(key, e, h, ffn_dim):
    km, k1, k2, k3, k4 = jax.random.split(key, 5)
    wq, wk, wv, wo = _init_mha(km, e, h)
    s1 = 1.0 / math.sqrt(e)
    s2 = 1.0 / math.sqrt(ffn_dim)
    return dict(
        ln1_g=jnp.ones((1, e), jnp.float32), ln1_b=jnp.zeros((1, e), jnp.float32),
        wq=wq, wk=wk, wv=wv, wo=wo,
        ln2_g=jnp.ones((1, e), jnp.float32), ln2_b=jnp.zeros((1, e), jnp.float32),
        w1=_uniform(k1, (e, ffn_dim), s1), b1=_uniform(k2, (1, ffn_dim), s1),
        w2=_uniform(k3, (ffn_dim, e), s2), b2=_uniform(k4, (1, e), s2),
    )


_BF16_NAMES = ("wq", "wk", "wv", "wo", "w1", "w2")   # MXU weight operands -> bf16


def init_params(key, node_dim, embedding_dim, n_heads=8, n_enc_layers=6, ffn_dim=512):
    e = embedding_dim
    keys = jax.random.split(key, n_enc_layers + 4)

    enc_layers = [_init_layer(keys[i], e, n_heads, ffn_dim) for i in range(n_enc_layers)]
    enc = {}
    for name in enc_layers[0]:
        stacked = jnp.stack([lp[name] for lp in enc_layers], axis=0)    # (L, ...)
        enc[name] = stacked.astype(jnp.bfloat16) if name in _BF16_NAMES else stacked

    # TODO(synk): fused decoder kernel supports n_dec_layer == 1 (matches module).
    dec_raw = _init_layer(keys[n_enc_layers], e, n_heads, ffn_dim)
    dec = {name: (v.astype(jnp.bfloat16) if name in _BF16_NAMES else v)
           for name, v in dec_raw.items()}

    ki1, ki2 = jax.random.split(keys[n_enc_layers + 1])
    si = 1.0 / math.sqrt(node_dim)
    kc1, kc2 = jax.random.split(keys[n_enc_layers + 2])
    sc = 1.0 / math.sqrt(2 * e)
    kp1, kp2 = jax.random.split(keys[n_enc_layers + 3])
    sp = 1.0 / math.sqrt(e)

    return dict(
        E=e, H=n_heads,
        init_w=_uniform(ki1, (node_dim, e), si),          # tiny Din=4 -> keep f32
        init_b=_uniform(ki2, (1, e), si),
        enc=enc, dec=dec,
        cur_w=_uniform(kc1, (2 * e, e), sc).astype(jnp.bfloat16),
        cur_b=_uniform(kc2, (1, e), sc),
        ptr_wq=_uniform(kp1, (e, e), sp).astype(jnp.bfloat16),
        ptr_wk=_uniform(kp2, (e, e), sp).astype(jnp.bfloat16),
    )


# ------------------------------ forward pass ---------------------------------

def policy_net_forward(params, node_inputs, node_padding_mask, edge_mask,
                       current_index, current_edge, edge_padding_mask):
    b, n, _ = node_inputs.shape
    e = params["E"]
    k = current_edge.shape[1]

    # encode_graph: initial embedding + 6 encoder layers in one kernel
    enhanced2d = encode_graph(params, node_inputs, node_padding_mask, edge_mask)
    enhanced = enhanced2d.reshape(b, n, e)

    # torch.gather equivalents stay as JAX glue between the two kernels
    idx = jnp.broadcast_to(current_index.astype(jnp.int32), (b, 1, e))
    cur = jnp.take_along_axis(enhanced, idx, axis=1)                 # (b, 1, e)
    eidx = jnp.broadcast_to(current_edge.astype(jnp.int32), (b, k, e))
    neigh = jnp.take_along_axis(enhanced, eidx, axis=1)              # (b, k, e)

    # decode_state + output_policy fused in one kernel
    return decode_and_point(params, enhanced2d, cur.reshape(b, e),
                            neigh.reshape(b * k, e),
                            node_padding_mask, edge_padding_mask, b, n, k)


# ---------------------------------- main --------------------------------------

if __name__ == "__main__":
    key = jax.random.PRNGKey(0)
    B, N, node_dim, E, K = 2, 16, 4, 64, 8   # E divisible by 8 heads

    pkey, dkey = jax.random.split(key)
    params = init_params(pkey, node_dim, E)

    keys = jax.random.split(dkey, 3)
    node_inputs = jax.random.normal(keys[0], (B, N, node_dim), jnp.float32)
    node_padding_mask = jnp.zeros((B, 1, N), jnp.int32).at[:, :, N - 2:].set(1)  # last 2 padded
    edge_mask = jnp.zeros((B, N, N), jnp.int32)                                  # no edge masking
    current_index = jax.random.randint(keys[1], (B, 1, 1), 0, N - 2)
    current_edge = jax.random.randint(keys[2], (B, K, 1), 0, N - 2)
    edge_padding_mask = jnp.zeros((B, 1, K), jnp.int32).at[:, :, K - 1:].set(1)  # last neighbor padded

    forward = jax.jit(lambda *inputs: policy_net_forward(params, *inputs))
    logp = forward(node_inputs, node_padding_mask, edge_mask,
                   current_index, current_edge, edge_padding_mask)
    jax.block_until_ready(logp)
    assert logp.shape == (B, K)
    assert bool(jnp.all(jnp.isfinite(logp)))
    print("KERNEL_OK")
</pallas_src>

<mosaic_0001>
module attributes {stable_mosaic.version = 11 : i64} {
  func.func @_encoder_stack_kernel(%arg0: i32, %arg1: memref<32x4xf32, #tpu.memory_space<vmem>>, %arg2: memref<4x64xf32, #tpu.memory_space<vmem>>, %arg3: memref<1x64xf32, #tpu.memory_space<vmem>>, %arg4: memref<2x16x16xf32, #tpu.memory_space<vmem>>, %arg5: memref<1x1x64xf32, #tpu.memory_space<vmem>>, %arg6: memref<1x1x64xf32, #tpu.memory_space<vmem>>, %arg7: memref<1x64x64xbf16, #tpu.memory_space<vmem>>, %arg8: memref<1x64x64xbf16, #tpu.memory_space<vmem>>, %arg9: memref<1x64x64xbf16, #tpu.memory_space<vmem>>, %arg10: memref<1x64x64xbf16, #tpu.memory_space<vmem>>, %arg11: memref<1x1x64xf32, #tpu.memory_space<vmem>>, %arg12: memref<1x1x64xf32, #tpu.memory_space<vmem>>, %arg13: memref<1x64x512xbf16, #tpu.memory_space<vmem>>, %arg14: memref<1x1x512xf32, #tpu.memory_space<vmem>>, %arg15: memref<1x512x64xbf16, #tpu.memory_space<vmem>>, %arg16: memref<1x1x64xf32, #tpu.memory_space<vmem>>, %arg17: memref<32x64xf32, #tpu.memory_space<vmem>>) attributes {dimension_semantics = [#tpu.dimension_semantics<arbitrary>], iteration_bounds = array<i64: 6>, scalar_prefetch = 0 : i64, scratch_operands = 0 : i64, tpu.core_type = #tpu.core_type<tc>, window_params = [{pipeline_mode = #tpu.pipeline_mode<synchronous>, transform_indices = @transform_0, window_bounds = array<i64: 32, 4>}, {pipeline_mode = #tpu.pipeline_mode<synchronous>, transform_indices = @transform_1, window_bounds = array<i64: 4, 64>}, {pipeline_mode = #tpu.pipeline_mode<synchronous>, transform_indices = @transform_2, window_bounds = array<i64: 1, 64>}, {pipeline_mode = #tpu.pipeline_mode<synchronous>, transform_indices = @transform_3, window_bounds = array<i64: 2, 16, 16>}, {transform_indices = @transform_4, window_bounds = array<i64: 1, 1, 64>}, {transform_indices = @transform_5, window_bounds = array<i64: 1, 1, 64>}, {transform_indices = @transform_6, window_bounds = array<i64: 1, 64, 64>}, {transform_indices = @transform_7, window_bounds = array<i64: 1, 64, 64>}, {transform_indices = @transform_8, window_bounds = array<i64: 1, 64, 64>}, {transform_indices = @transform_9, window_bounds = array<i64: 1, 64, 64>}, {transform_indices = @transform_10, window_bounds = array<i64: 1, 1, 64>}, {transform_indices = @transform_11, window_bounds = array<i64: 1, 1, 64>}, {transform_indices = @transform_12, window_bounds = array<i64: 1, 64, 512>}, {transform_indices = @transform_13, window_bounds = array<i64: 1, 1, 512>}, {transform_indices = @transform_14, window_bounds = array<i64: 1, 512, 64>}, {transform_indices = @transform_15, window_bounds = array<i64: 1, 1, 64>}, {pipeline_mode = #tpu.pipeline_mode<synchronous>, transform_indices = @transform_16, window_bounds = array<i64: 32, 64>}]} {
    %c0_i32 = arith.constant 0 : i32
    %0 = arith.cmpi eq, %arg0, %c0_i32 : i32
    %1 = arith.extui %0 : i1 to i32
    %c0_i32_0 = arith.constant 0 : i32
    %2 = arith.cmpi ne, %1, %c0_i32_0 : i32
    scf.if %2 {
      %c0_115 = arith.constant 0 : index
      %c0_116 = arith.constant 0 : index
      %299 = vector.load %arg1[%c0_115, %c0_116] : memref<32x4xf32, #tpu.memory_space<vmem>>, vector<32x4xf32>
      %c0_117 = arith.constant 0 : index
      %c0_118 = arith.constant 0 : index
      %300 = vector.load %arg2[%c0_117, %c0_118] : memref<4x64xf32, #tpu.memory_space<vmem>>, vector<4x64xf32>
      %cst_119 = arith.constant dense<0.000000e+00> : vector<32x64xf32>
      %301 = tpu.matmul %299, %300, %cst_119 {dimension_numbers = #tpu.dot_dimension_numbers<[1], [0], [0], [1], [0, 0, 1, 1], [], []>} : vector<32x4xf32>, vector<4x64xf32>, vector<32x64xf32> -> vector<32x64xf32>
      %c0_120 = arith.constant 0 : index
      %c0_121 = arith.constant 0 : index
      %302 = vector.load %arg3[%c0_120, %c0_121] : memref<1x64xf32, #tpu.memory_space<vmem>>, vector<1x64xf32>
      %303 = vector.broadcast %302 : vector<1x64xf32> to vector<32x64xf32>
      %304 = arith.addf %301, %303 : vector<32x64xf32>
      %c0_122 = arith.constant 0 : index
      %c0_123 = arith.constant 0 : index
      %305 = vector.load %arg17[%c0_122, %c0_123] : memref<32x64xf32, #tpu.memory_space<vmem>>, vector<32x64xf32>
      tpu.vector_store %arg17[%c0_122, %c0_123], %304 {strides = array<i32>} : memref<32x64xf32, #tpu.memory_space<vmem>>, vector<32x64xf32>,
    } else {
    }
    %c0 = arith.constant 0 : index
    %c0_1 = arith.constant 0 : index
    %3 = vector.load %arg17[%c0, %c0_1] : memref<32x64xf32, #tpu.memory_space<vmem>>, vector<32x64xf32>
    %c0_2 = arith.constant 0 : index
    %c0_3 = arith.constant 0 : index
    %c0_4 = arith.constant 0 : index
    %4 = vector.load %arg4[%c0_2, %c0_3, %c0_4] : memref<2x16x16xf32, #tpu.memory_space<vmem>>, vector<2x16x16xf32>
    %c0_5 = arith.constant 0 : index
    %c0_6 = arith.constant 0 : index
    %c0_7 = arith.constant 0 : index
    %5 = vector.load %arg5[%c0_5, %c0_6, %c0_7] : memref<1x1x64xf32, #tpu.memory_space<vmem>>, vector<1x1x64xf32>
    %6 = vector.shape_cast %5 : vector<1x1x64xf32> to vector<1x64xf32>
    %c0_8 = arith.constant 0 : index
    %c0_9 = arith.constant 0 : index
    %c0_10 = arith.constant 0 : index
    %7 = vector.load %arg6[%c0_8, %c0_9, %c0_10] : memref<1x1x64xf32, #tpu.memory_space<vmem>>, vector<1x1x64xf32>
    %8 = vector.shape_cast %7 : vector<1x1x64xf32> to vector<1x64xf32>
    %cst = arith.constant dense<0.000000e+00> : vector<32xf32>
    %9 = vector.multi_reduction <add>, %3, %cst [1] : vector<32x64xf32> to vector<32xf32>
    %10 = vector.shape_cast %9 : vector<32xf32> to vector<32x1xf32>
    %cst_11 = arith.constant 6.400000e+01 : f32
    %11 = vector.broadcast %cst_11 : f32 to vector<32x1xf32>
    %12 = arith.divf %10, %11 : vector<32x1xf32>
    %13 = vector.broadcast %12 : vector<32x1xf32> to vector<32x64xf32>
    %14 = arith.subf %3, %13 : vector<32x64xf32>
    %15 = arith.mulf %14, %14 : vector<32x64xf32>
    %cst_12 = arith.constant dense<0.000000e+00> : vector<32xf32>
    %16 = vector.multi_reduction <add>, %15, %cst_12 [1] : vector<32x64xf32> to vector<32xf32>
    %17 = vector.shape_cast %16 : vector<32xf32> to vector<32x1xf32>
    %cst_13 = arith.constant 6.400000e+01 : f32
    %18 = vector.broadcast %cst_13 : f32 to vector<32x1xf32>
    %19 = arith.divf %17, %18 : vector<32x1xf32>
    %20 = vector.broadcast %12 : vector<32x1xf32> to vector<32x64xf32>
    %21 = arith.subf %3, %20 : vector<32x64xf32>
    %cst_14 = arith.constant 9.99999974E-6 : f32
    %22 = vector.broadcast %cst_14 : f32 to vector<32x1xf32>
    %23 = arith.addf %19, %22 : vector<32x1xf32>
    %24 = math.rsqrt %23 : vector<32x1xf32>
    %25 = vector.broadcast %24 : vector<32x1xf32> to vector<32x64xf32>
    %26 = arith.mulf %21, %25 : vector<32x64xf32>
    %27 = vector.broadcast %6 : vector<1x64xf32> to vector<32x64xf32>
    %28 = arith.mulf %26, %27 : vector<32x64xf32>
    %29 = vector.broadcast %8 : vector<1x64xf32> to vector<32x64xf32>
    %30 = arith.addf %28, %29 : vector<32x64xf32>
    %c0_15 = arith.constant 0 : index
    %c0_16 = arith.constant 0 : index
    %c0_17 = arith.constant 0 : index
    %31 = vector.load %arg7[%c0_15, %c0_16, %c0_17] : memref<1x64x64xbf16, #tpu.memory_space<vmem>>, vector<1x64x64xbf16>
    %32 = vector.shape_cast %31 : vector<1x64x64xbf16> to vector<64x64xbf16>
    %c0_18 = arith.constant 0 : index
    %c0_19 = arith.constant 0 : index
    %c0_20 = arith.constant 0 : index
    %33 = vector.load %arg8[%c0_18, %c0_19, %c0_20] : memref<1x64x64xbf16, #tpu.memory_space<vmem>>, vector<1x64x64xbf16>
    %34 = vector.shape_cast %33 : vector<1x64x64xbf16> to vector<64x64xbf16>
    %c0_21 = arith.constant 0 : index
    %c0_22 = arith.constant 0 : index
    %c0_23 = arith.constant 0 : index
    %35 = vector.load %arg9[%c0_21, %c0_22, %c0_23] : memref<1x64x64xbf16, #tpu.memory_space<vmem>>, vector<1x64x64xbf16>
    %36 = vector.shape_cast %35 : vector<1x64x64xbf16> to vector<64x64xbf16>
    %c0_24 = arith.constant 0 : index
    %c0_25 = arith.constant 0 : index
    %c0_26 = arith.constant 0 : index
    %37 = vector.load %arg10[%c0_24, %c0_25, %c0_26] : memref<1x64x64xbf16, #tpu.memory_space<vmem>>, vector<1x64x64xbf16>
    %38 = vector.shape_cast %37 : vector<1x64x64xbf16> to vector<64x64xbf16>
    %39 = arith.truncf %30 : vector<32x64xf32> to vector<32x64xbf16>
    %cst_27 = arith.constant dense<0.000000e+00> : vector<32x64xf32>
    %40 = tpu.matmul %39, %32, %cst_27 {dimension_numbers = #tpu.dot_dimension_numbers<[1], [0], [0], [1], [0, 0, 1, 1], [], []>} : vector<32x64xbf16>, vector<64x64xbf16>, vector<32x64xf32> -> vector<32x64xf32>
    %41 = arith.truncf %30 : vector<32x64xf32> to vector<32x64xbf16>
    %cst_28 = arith.constant dense<0.000000e+00> : vector<32x64xf32>
    %42 = tpu.matmul %41, %34, %cst_28 {dimension_numbers = #tpu.dot_dimension_numbers<[1], [0], [0], [1], [0, 0, 1, 1], [], []>} : vector<32x64xbf16>, vector<64x64xbf16>, vector<32x64xf32> -> vector<32x64xf32>
    %43 = arith.truncf %30 : vector<32x64xf32> to vector<32x64xbf16>
    %cst_29 = arith.constant dense<0.000000e+00> : vector<32x64xf32>
    %44 = tpu.matmul %43, %36, %cst_29 {dimension_numbers = #tpu.dot_dimension_numbers<[1], [0], [0], [1], [0, 0, 1, 1], [], []>} : vector<32x64xbf16>, vector<64x64xbf16>, vector<32x64xf32> -> vector<32x64xf32>
    %45 = vector.shape_cast %40 : vector<32x64xf32> to vector<2x16x64xf32>
    %46 = vector.shape_cast %42 : vector<32x64xf32> to vector<2x16x64xf32>
    %47 = vector.shape_cast %44 : vector<32x64xf32> to vector<2x16x64xf32>
    %48 = vector.extract_strided_slice %45 {offsets = [0, 0, 0], sizes = [2, 16, 8], strides = [1, 1, 1]} : vector<2x16x64xf32> to vector<2x16x8xf32>
    %49 = arith.truncf %48 : vector<2x16x8xf32> to vector<2x16x8xbf16>
    %50 = vector.extract_strided_slice %46 {offsets = [0, 0, 0], sizes = [2, 16, 8], strides = [1, 1, 1]} : vector<2x16x64xf32> to vector<2x16x8xf32>
    %51 = arith.truncf %50 : vector<2x16x8xf32> to vector<2x16x8xbf16>
    %52 = vector.extract_strided_slice %47 {offsets = [0, 0, 0], sizes = [2, 16, 8], strides = [1, 1, 1]} : vector<2x16x64xf32> to vector<2x16x8xf32>
    %53 = arith.truncf %52 : vector<2x16x8xf32> to vector<2x16x8xbf16>
    "tpu.trace_start"() <{level = 10 : i32, message = "bqd,bkd->bqk"}> : () -> ()
    %cst_30 = arith.constant dense<0.000000e+00> : vector<2x16x16xf32>
    %54 = tpu.matmul %49, %51, %cst_30 {dimension_numbers = #tpu.dot_dimension_numbers<[2], [2], [1], [1], [0, 0, 0, 1, 1, 1], [0], [0]>} : vector<2x16x8xbf16>, vector<2x16x8xbf16>, vector<2x16x16xf32> -> vector<2x16x16xf32>
    "tpu.trace_stop"() : () -> ()
    %cst_31 = arith.constant 0.353553385 : f32
    %55 = vector.broadcast %cst_31 : f32 to vector<2x16x16xf32>
    %56 = arith.mulf %55, %54 : vector<2x16x16xf32>
    %cst_32 = arith.constant 0.000000e+00 : f32
    %57 = vector.broadcast %cst_32 : f32 to vector<2x16x16xf32>
    %58 = arith.cmpf ogt, %4, %57 : vector<2x16x16xf32>
    %cst_33 = arith.constant -1.000000e+08 : f32
    %59 = vector.broadcast %cst_33 : f32 to vector<2x16x16xf32>
    %60 = arith.select %58, %59, %56 : vector<2x16x16xi1>, vector<2x16x16xf32>
    %cst_34 = arith.constant dense<0xFF800000> : vector<2x16xf32>
    %61 = vector.multi_reduction <maximumf>, %60, %cst_34 [2] : vector<2x16x16xf32> to vector<2x16xf32>
    %62 = vector.shape_cast %61 : vector<2x16xf32> to vector<2x16x1xf32>
    %63 = vector.broadcast %62 : vector<2x16x1xf32> to vector<2x16x16xf32>
    %64 = arith.subf %60, %63 : vector<2x16x16xf32>
    %65 = math.exp %64 : vector<2x16x16xf32>
    %cst_35 = arith.constant dense<0.000000e+00> : vector<2x16xf32>
    %66 = vector.multi_reduction <add>, %65, %cst_35 [2] : vector<2x16x16xf32> to vector<2x16xf32>
    %67 = vector.shape_cast %66 : vector<2x16xf32> to vector<2x16x1xf32>
    %68 = tpu.reciprocal %67 {approx = true} : vector<2x16x1xf32> -> vector<2x16x1xf32>
    %69 = vector.broadcast %68 : vector<2x16x1xf32> to vector<2x16x16xf32>
    %70 = arith.mulf %65, %69 : vector<2x16x16xf32>
    %71 = arith.truncf %70 : vector<2x16x16xf32> to vector<2x16x16xbf16>
    "tpu.trace_start"() <{level = 10 : i32, message = "bqk,bkd->bqd"}> : () -> ()
    %cst_36 = arith.constant dense<0.000000e+00> : vector<2x16x8xf32>
    %72 = tpu.matmul %71, %53, %cst_36 {dimension_numbers = #tpu.dot_dimension_numbers<[2], [1], [1], [2], [0, 0, 0, 1, 1, 2], [0], [0]>} : vector<2x16x16xbf16>, vector<2x16x8xbf16>, vector<2x16x8xf32> -> vector<2x16x8xf32>
    "tpu.trace_stop"() : () -> ()
    %73 = vector.extract_strided_slice %45 {offsets = [0, 0, 8], sizes = [2, 16, 8], strides = [1, 1, 1]} : vector<2x16x64xf32> to vector<2x16x8xf32>
    %74 = arith.truncf %73 : vector<2x16x8xf32> to vector<2x16x8xbf16>
    %75 = vector.extract_strided_slice %46 {offsets = [0, 0, 8], sizes = [2, 16, 8], strides = [1, 1, 1]} : vector<2x16x64xf32> to vector<2x16x8xf32>
    %76 = arith.truncf %75 : vector<2x16x8xf32> to vector<2x16x8xbf16>
    %77 = vector.extract_strided_slice %47 {offsets = [0, 0, 8], sizes = [2, 16, 8], strides = [1, 1, 1]} : vector<2x16x64xf32> to vector<2x16x8xf32>
    %78 = arith.truncf %77 : vector<2x16x8xf32> to vector<2x16x8xbf16>
    "tpu.trace_start"() <{level = 10 : i32, message = "bqd,bkd->bqk"}> : () -> ()
    %cst_37 = arith.constant dense<0.000000e+00> : vector<2x16x16xf32>
    %79 = tpu.matmul %74, %76, %cst_37 {dimension_numbers = #tpu.dot_dimension_numbers<[2], [2], [1], [1], [0, 0, 0, 1, 1, 1], [0], [0]>} : vector<2x16x8xbf16>, vector<2x16x8xbf16>, vector<2x16x16xf32> -> vector<2x16x16xf32>
    "tpu.trace_stop"() : () -> ()
    %cst_38 = arith.constant 0.353553385 : f32
    %80 = vector.broadcast %cst_38 : f32 to vector<2x16x16xf32>
    %81 = arith.mulf %80, %79 : vector<2x16x16xf32>
    %cst_39 = arith.constant 0.000000e+00 : f32
    %82 = vector.broadcast %cst_39 : f32 to vector<2x16x16xf32>
    %83 = arith.cmpf ogt, %4, %82 : vector<2x16x16xf32>
    %cst_40 = arith.constant -1.000000e+08 : f32
    %84 = vector.broadcast %cst_40 : f32 to vector<2x16x16xf32>
    %85 = arith.select %83, %84, %81 : vector<2x16x16xi1>, vector<2x16x16xf32>
    %cst_41 = arith.constant dense<0xFF800000> : vector<2x16xf32>
    %86 = vector.multi_reduction <maximumf>, %85, %cst_41 [2] : vector<2x16x16xf32> to vector<2x16xf32>
    %87 = vector.shape_cast %86 : vector<2x16xf32> to vector<2x16x1xf32>
    %88 = vector.broadcast %87 : vector<2x16x1xf32> to vector<2x16x16xf32>
    %89 = arith.subf %85, %88 : vector<2x16x16xf32>
    %90 = math.exp %89 : vector<2x16x16xf32>
    %cst_42 = arith.constant dense<0.000000e+00> : vector<2x16xf32>
    %91 = vector.multi_reduction <add>, %90, %cst_42 [2] : vector<2x16x16xf32> to vector<2x16xf32>
    %92 = vector.shape_cast %91 : vector<2x16xf32> to vector<2x16x1xf32>
    %93 = tpu.reciprocal %92 {approx = true} : vector<2x16x1xf32> -> vector<2x16x1xf32>
    %94 = vector.broadcast %93 : vector<2x16x1xf32> to vector<2x16x16xf32>
    %95 = arith.mulf %90, %94 : vector<2x16x16xf32>
    %96 = arith.truncf %95 : vector<2x16x16xf32> to vector<2x16x16xbf16>
    "tpu.trace_start"() <{level = 10 : i32, message = "bqk,bkd->bqd"}> : () -> ()
    %cst_43 = arith.constant dense<0.000000e+00> : vector<2x16x8xf32>
    %97 = tpu.matmul %96, %78, %cst_43 {dimension_numbers = #tpu.dot_dimension_numbers<[2], [1], [1], [2], [0, 0, 0, 1, 1, 2], [0], [0]>} : vector<2x16x16xbf16>, vector<2x16x8xbf16>, vector<2x16x8xf32> -> vector<2x16x8xf32>
    "tpu.trace_stop"() : () -> ()
    %98 = vector.extract_strided_slice %45 {offsets = [0, 0, 16], sizes = [2, 16, 8], strides = [1, 1, 1]} : vector<2x16x64xf32> to vector<2x16x8xf32>
    %99 = arith.truncf %98 : vector<2x16x8xf32> to vector<2x16x8xbf16>
    %100 = vector.extract_strided_slice %46 {offsets = [0, 0, 16], sizes = [2, 16, 8], strides = [1, 1, 1]} : vector<2x16x64xf32> to vector<2x16x8xf32>
    %101 = arith.truncf %100 : vector<2x16x8xf32> to vector<2x16x8xbf16>
    %102 = vector.extract_strided_slice %47 {offsets = [0, 0, 16], sizes = [2, 16, 8], strides = [1, 1, 1]} : vector<2x16x64xf32> to vector<2x16x8xf32>
    %103 = arith.truncf %102 : vector<2x16x8xf32> to vector<2x16x8xbf16>
    "tpu.trace_start"() <{level = 10 : i32, message = "bqd,bkd->bqk"}> : () -> ()
    %cst_44 = arith.constant dense<0.000000e+00> : vector<2x16x16xf32>
    %104 = tpu.matmul %99, %101, %cst_44 {dimension_numbers = #tpu.dot_dimension_numbers<[2], [2], [1], [1], [0, 0, 0, 1, 1, 1], [0], [0]>} : vector<2x16x8xbf16>, vector<2x16x8xbf16>, vector<2x16x16xf32> -> vector<2x16x16xf32>
    "tpu.trace_stop"() : () -> ()
    %cst_45 = arith.constant 0.353553385 : f32
    %105 = vector.broadcast %cst_45 : f32 to vector<2x16x16xf32>
    %106 = arith.mulf %105, %104 : vector<2x16x16xf32>
    %cst_46 = arith.constant 0.000000e+00 : f32
    %107 = vector.broadcast %cst_46 : f32 to vector<2x16x16xf32>
    %108 = arith.cmpf ogt, %4, %107 : vector<2x16x16xf32>
    %cst_47 = arith.constant -1.000000e+08 : f32
    %109 = vector.broadcast %cst_47 : f32 to vector<2x16x16xf32>
    %110 = arith.select %108, %109, %106 : vector<2x16x16xi1>, vector<2x16x16xf32>
    %cst_48 = arith.constant dense<0xFF800000> : vector<2x16xf32>
    %111 = vector.multi_reduction <maximumf>, %110, %cst_48 [2] : vector<2x16x16xf32> to vector<2x16xf32>
    %112 = vector.shape_cast %111 : vector<2x16xf32> to vector<2x16x1xf32>
    %113 = vector.broadcast %112 : vector<2x16x1xf32> to vector<2x16x16xf32>
    %114 = arith.subf %110, %113 : vector<2x16x16xf32>
    %115 = math.exp %114 : vector<2x16x16xf32>
    %cst_49 = arith.constant dense<0.000000e+00> : vector<2x16xf32>
    %116 = vector.multi_reduction <add>, %115, %cst_49 [2] : vector<2x16x16xf32> to vector<2x16xf32>
    %117 = vector.shape_cast %116 : vector<2x16xf32> to vector<2x16x1xf32>
    %118 = tpu.reciprocal %117 {approx = true} : vector<2x16x1xf32> -> vector<2x16x1xf32>
    %119 = vector.broadcast %118 : vector<2x16x1xf32> to vector<2x16x16xf32>
    %120 = arith.mulf %115, %119 : vector<2x16x16xf32>
    %121 = arith.truncf %120 : vector<2x16x16xf32> to vector<2x16x16xbf16>
    "tpu.trace_start"() <{level = 10 : i32, message = "bqk,bkd->bqd"}> : () -> ()
    %cst_50 = arith.constant dense<0.000000e+00> : vector<2x16x8xf32>
    %122 = tpu.matmul %121, %103, %cst_50 {dimension_numbers = #tpu.dot_dimension_numbers<[2], [1], [1], [2], [0, 0, 0, 1, 1, 2], [0], [0]>} : vector<2x16x16xbf16>, vector<2x16x8xbf16>, vector<2x16x8xf32> -> vector<2x16x8xf32>
    "tpu.trace_stop"() : () -> ()
    %123 = vector.extract_strided_slice %45 {offsets = [0, 0, 24], sizes = [2, 16, 8], strides = [1, 1, 1]} : vector<2x16x64xf32> to vector<2x16x8xf32>
    %124 = arith.truncf %123 : vector<2x16x8xf32> to vector<2x16x8xbf16>
    %125 = vector.extract_strided_slice %46 {offsets = [0, 0, 24], sizes = [2, 16, 8], strides = [1, 1, 1]} : vector<2x16x64xf32> to vector<2x16x8xf32>
    %126 = arith.truncf %125 : vector<2x16x8xf32> to vector<2x16x8xbf16>
    %127 = vector.extract_strided_slice %47 {offsets = [0, 0, 24], sizes = [2, 16, 8], strides = [1, 1, 1]} : vector<2x16x64xf32> to vector<2x16x8xf32>
    %128 = arith.truncf %127 : vector<2x16x8xf32> to vector<2x16x8xbf16>
    "tpu.trace_start"() <{level = 10 : i32, message = "bqd,bkd->bqk"}> : () -> ()
    %cst_51 = arith.constant dense<0.000000e+00> : vector<2x16x16xf32>
    %129 = tpu.matmul %124, %126, %cst_51 {dimension_numbers = #tpu.dot_dimension_numbers<[2], [2], [1], [1], [0, 0, 0, 1, 1, 1], [0], [0]>} : vector<2x16x8xbf16>, vector<2x16x8xbf16>, vector<2x16x16xf32> -> vector<2x16x16xf32>
    "tpu.trace_stop"() : () -> ()
    %cst_52 = arith.constant 0.353553385 : f32
    %130 = vector.broadcast %cst_52 : f32 to vector<2x16x16xf32>
    %131 = arith.mulf %130, %129 : vector<2x16x16xf32>
    %cst_53 = arith.constant 0.000000e+00 : f32
    %132 = vector.broadcast %cst_53 : f32 to vector<2x16x16xf32>
    %133 = arith.cmpf ogt, %4, %132 : vector<2x16x16xf32>
    %cst_54 = arith.constant -1.000000e+08 : f32
    %134 = vector.broadcast %cst_54 : f32 to vector<2x16x16xf32>
    %135 = arith.select %133, %134, %131 : vector<2x16x16xi1>, vector<2x16x16xf32>
    %cst_55 = arith.constant dense<0xFF800000> : vector<2x16xf32>
    %136 = vector.multi_reduction <maximumf>, %135, %cst_55 [2] : vector<2x16x16xf32> to vector<2x16xf32>
    %137 = vector.shape_cast %136 : vector<2x16xf32> to vector<2x16x1xf32>
    %138 = vector.broadcast %137 : vector<2x16x1xf32> to vector<2x16x16xf32>
    %139 = arith.subf %135, %138 : vector<2x16x16xf32>
    %140 = math.exp %139 : vector<2x16x16xf32>
    %cst_56 = arith.constant dense<0.000000e+00> : vector<2x16xf32>
    %141 = vector.multi_reduction <add>, %140, %cst_56 [2] : vector<2x16x16xf32> to vector<2x16xf32>
    %142 = vector.shape_cast %141 : vector<2x16xf32> to vector<2x16x1xf32>
    %143 = tpu.reciprocal %142 {approx = true} : vector<2x16x1xf32> -> vector<2x16x1xf32>
    %144 = vector.broadcast %143 : vector<2x16x1xf32> to vector<2x16x16xf32>
    %145 = arith.mulf %140, %144 : vector<2x16x16xf32>
    %146 = arith.truncf %145 : vector<2x16x16xf32> to vector<2x16x16xbf16>
    "tpu.trace_start"() <{level = 10 : i32, message = "bqk,bkd->bqd"}> : () -> ()
    %cst_57 = arith.constant dense<0.000000e+00> : vector<2x16x8xf32>
    %147 = tpu.matmul %146, %128, %cst_57 {dimension_numbers = #tpu.dot_dimension_numbers<[2], [1], [1], [2], [0, 0, 0, 1, 1, 2], [0], [0]>} : vector<2x16x16xbf16>, vector<2x16x8xbf16>, vector<2x16x8xf32> -> vector<2x16x8xf32>
    "tpu.trace_stop"() : () -> ()
    %148 = vector.extract_strided_slice %45 {offsets = [0, 0, 32], sizes = [2, 16, 8], strides = [1, 1, 1]} : vector<2x16x64xf32> to vector<2x16x8xf32>
    %149 = arith.truncf %148 : vector<2x16x8xf32> to vector<2x16x8xbf16>
    %150 = vector.extract_strided_slice %46 {offsets = [0, 0, 32], sizes = [2, 16, 8], strides = [1, 1, 1]} : vector<2x16x64xf32> to vector<2x16x8xf32>
    %151 = arith.truncf %150 : vector<2x16x8xf32> to vector<2x16x8xbf16>
    %152 = vector.extract_strided_slice %47 {offsets = [0, 0, 32], sizes = [2, 16, 8], strides = [1, 1, 1]} : vector<2x16x64xf32> to vector<2x16x8xf32>
    %153 = arith.truncf %152 : vector<2x16x8xf32> to vector<2x16x8xbf16>
    "tpu.trace_start"() <{level = 10 : i32, message = "bqd,bkd->bqk"}> : () -> ()
    %cst_58 = arith.constant dense<0.000000e+00> : vector<2x16x16xf32>
    %154 = tpu.matmul %149, %151, %cst_58 {dimension_numbers = #tpu.dot_dimension_numbers<[2], [2], [1], [1], [0, 0, 0, 1, 1, 1], [0], [0]>} : vector<2x16x8xbf16>, vector<2x16x8xbf16>, vector<2x16x16xf32> -> vector<2x16x16xf32>
    "tpu.trace_stop"() : () -> ()
    %cst_59 = arith.constant 0.353553385 : f32
    %155 = vector.broadcast %cst_59 : f32 to vector<2x16x16xf32>
    %156 = arith.mulf %155, %154 : vector<2x16x16xf32>
    %cst_60 = arith.constant 0.000000e+00 : f32
    %157 = vector.broadcast %cst_60 : f32 to vector<2x16x16xf32>
    %158 = arith.cmpf ogt, %4, %157 : vector<2x16x16xf32>
    %cst_61 = arith.constant -1.000000e+08 : f32
    %159 = vector.broadcast %cst_61 : f32 to vector<2x16x16xf32>
    %160 = arith.select %158, %159, %156 : vector<2x16x16xi1>, vector<2x16x16xf32>
    %cst_62 = arith.constant dense<0xFF800000> : vector<2x16xf32>
    %161 = vector.multi_reduction <maximumf>, %160, %cst_62 [2] : vector<2x16x16xf32> to vector<2x16xf32>
    %162 = vector.shape_cast %161 : vector<2x16xf32> to vector<2x16x1xf32>
    %163 = vector.broadcast %162 : vector<2x16x1xf32> to vector<2x16x16xf32>
    %164 = arith.subf %160, %163 : vector<2x16x16xf32>
    %165 = math.exp %164 : vector<2x16x16xf32>
    %cst_63 = arith.constant dense<0.000000e+00> : vector<2x16xf32>
    %166 = vector.multi_reduction <add>, %165, %cst_63 [2] : vector<2x16x16xf32> to vector<2x16xf32>
    %167 = vector.shape_cast %166 : vector<2x16xf32> to vector<2x16x1xf32>
    %168 = tpu.reciprocal %167 {approx = true} : vector<2x16x1xf32> -> vector<2x16x1xf32>
    %169 = vector.broadcast %168 : vector<2x16x1xf32> to vector<2x16x16xf32>
    %170 = arith.mulf %165, %169 : vector<2x16x16xf32>
    %171 = arith.truncf %170 : vector<2x16x16xf32> to vector<2x16x16xbf16>
    "tpu.trace_start"() <{level = 10 : i32, message = "bqk,bkd->bqd"}> : () -> ()
    %cst_64 = arith.constant dense<0.000000e+00> : vector<2x16x8xf32>
    %172 = tpu.matmul %171, %153, %cst_64 {dimension_numbers = #tpu.dot_dimension_numbers<[2], [1], [1], [2], [0, 0, 0, 1, 1, 2], [0], [0]>} : vector<2x16x16xbf16>, vector<2x16x8xbf16>, vector<2x16x8xf32> -> vector<2x16x8xf32>
    "tpu.trace_stop"() : () -> ()
    %173 = vector.extract_strided_slice %45 {offsets = [0, 0, 40], sizes = [2, 16, 8], strides = [1, 1, 1]} : vector<2x16x64xf32> to vector<2x16x8xf32>
    %174 = arith.truncf %173 : vector<2x16x8xf32> to vector<2x16x8xbf16>
    %175 = vector.extract_strided_slice %46 {offsets = [0, 0, 40], sizes = [2, 16, 8], strides = [1, 1, 1]} : vector<2x16x64xf32> to vector<2x16x8xf32>
    %176 = arith.truncf %175 : vector<2x16x8xf32> to vector<2x16x8xbf16>
    %177 = vector.extract_strided_slice %47 {offsets = [0, 0, 40], sizes = [2, 16, 8], strides = [1, 1, 1]} : vector<2x16x64xf32> to vector<2x16x8xf32>
    %178 = arith.truncf %177 : vector<2x16x8xf32> to vector<2x16x8xbf16>
    "tpu.trace_start"() <{level = 10 : i32, message = "bqd,bkd->bqk"}> : () -> ()
    %cst_65 = arith.constant dense<0.000000e+00> : vector<2x16x16xf32>
    %179 = tpu.matmul %174, %176, %cst_65 {dimension_numbers = #tpu.dot_dimension_numbers<[2], [2], [1], [1], [0, 0, 0, 1, 1, 1], [0], [0]>} : vector<2x16x8xbf16>, vector<2x16x8xbf16>, vector<2x16x16xf32> -> vector<2x16x16xf32>
    "tpu.trace_stop"() : () -> ()
    %cst_66 = arith.constant 0.353553385 : f32
    %180 = vector.broadcast %cst_66 : f32 to vector<2x16x16xf32>
    %181 = arith.mulf %180, %179 : vector<2x16x16xf32>
    %cst_67 = arith.constant 0.000000e+00 : f32
    %182 = vector.broadcast %cst_67 : f32 to vector<2x16x16xf32>
    %183 = arith.cmpf ogt, %4, %182 : vector<2x16x16xf32>
    %cst_68 = arith.constant -1.000000e+08 : f32
    %184 = vector.broadcast %cst_68 : f32 to vector<2x16x16xf32>
    %185 = arith.select %183, %184, %181 : vector<2x16x16xi1>, vector<2x16x16xf32>
    %cst_69 = arith.constant dense<0xFF800000> : vector<2x16xf32>
    %186 = vector.multi_reduction <maximumf>, %185, %cst_69 [2] : vector<2x16x16xf32> to vector<2x16xf32>
    %187 = vector.shape_cast %186 : vector<2x16xf32> to vector<2x16x1xf32>
    %188 = vector.broadcast %187 : vector<2x16x1xf32> to vector<2x16x16xf32>
    %189 = arith.subf %185, %188 : vector<2x16x16xf32>
    %190 = math.exp %189 : vector<2x16x16xf32>
    %cst_70 = arith.constant dense<0.000000e+00> : vector<2x16xf32>
    %191 = vector.multi_reduction <add>, %190, %cst_70 [2] : vector<2x16x16xf32> to vector<2x16xf32>
    %192 = vector.shape_cast %191 : vector<2x16xf32> to vector<2x16x1xf32>
    %193 = tpu.reciprocal %192 {approx = true} : vector<2x16x1xf32> -> vector<2x16x1xf32>
    %194 = vector.broadcast %193 : vector<2x16x1xf32> to vector<2x16x16xf32>
    %195 = arith.mulf %190, %194 : vector<2x16x16xf32>
    %196 = arith.truncf %195 : vector<2x16x16xf32> to vector<2x16x16xbf16>
    "tpu.trace_start"() <{level = 10 : i32, message = "bqk,bkd->bqd"}> : () -> ()
    %cst_71 = arith.constant dense<0.000000e+00> : vector<2x16x8xf32>
    %197 = tpu.matmul %196, %178, %cst_71 {dimension_numbers = #tpu.dot_dimension_numbers<[2], [1], [1], [2], [0, 0, 0, 1, 1, 2], [0], [0]>} : vector<2x16x16xbf16>, vector<2x16x8xbf16>, vector<2x16x8xf32> -> vector<2x16x8xf32>
    "tpu.trace_stop"() : () -> ()
    %198 = vector.extract_strided_slice %45 {offsets = [0, 0, 48], sizes = [2, 16, 8], strides = [1, 1, 1]} : vector<2x16x64xf32> to vector<2x16x8xf32>
    %199 = arith.truncf %198 : vector<2x16x8xf32> to vector<2x16x8xbf16>
    %200 = vector.extract_strided_slice %46 {offsets = [0, 0, 48], sizes = [2, 16, 8], strides = [1, 1, 1]} : vector<2x16x64xf32> to vector<2x16x8xf32>
    %201 = arith.truncf %200 : vector<2x16x8xf32> to vector<2x16x8xbf16>
    %202 = vector.extract_strided_slice %47 {offsets = [0, 0, 48], sizes = [2, 16, 8], strides = [1, 1, 1]} : vector<2x16x64xf32> to vector<2x16x8xf32>
    %203 = arith.truncf %202 : vector<2x16x8xf32> to vector<2x16x8xbf16>
    "tpu.trace_start"() <{level = 10 : i32, message = "bqd,bkd->bqk"}> : () -> ()
    %cst_72 = arith.constant dense<0.000000e+00> : vector<2x16x16xf32>
    %204 = tpu.matmul %199, %201, %cst_72 {dimension_numbers = #tpu.dot_dimension_numbers<[2], [2], [1], [1], [0, 0, 0, 1, 1, 1], [0], [0]>} : vector<2x16x8xbf16>, vector<2x16x8xbf16>, vector<2x16x16xf32> -> vector<2x16x16xf32>
    "tpu.trace_stop"() : () -> ()
    %cst_73 = arith.constant 0.353553385 : f32
    %205 = vector.broadcast %cst_73 : f32 to vector<2x16x16xf32>
    %206 = arith.mulf %205, %204 : vector<2x16x16xf32>
    %cst_74 = arith.constant 0.000000e+00 : f32
    %207 = vector.broadcast %cst_74 : f32 to vector<2x16x16xf32>
    %208 = arith.cmpf ogt, %4, %207 : vector<2x16x16xf32>
    %cst_75 = arith.constant -1.000000e+08 : f32
    %209 = vector.broadcast %cst_75 : f32 to vector<2x16x16xf32>
    %210 = arith.select %208, %209, %206 : vector<2x16x16xi1>, vector<2x16x16xf32>
    %cst_76 = arith.constant dense<0xFF800000> : vector<2x16xf32>
    %211 = vector.multi_reduction <maximumf>, %210, %cst_76 [2] : vector<2x16x16xf32> to vector<2x16xf32>
    %212 = vector.shape_cast %211 : vector<2x16xf32> to vector<2x16x1xf32>
    %213 = vector.broadcast %212 : vector<2x16x1xf32> to vector<2x16x16xf32>
    %214 = arith.subf %210, %213 : vector<2x16x16xf32>
    %215 = math.exp %214 : vector<2x16x16xf32>
    %cst_77 = arith.constant dense<0.000000e+00> : vector<2x16xf32>
    %216 = vector.multi_reduction <add>, %215, %cst_77 [2] : vector<2x16x16xf32> to vector<2x16xf32>
    %217 = vector.shape_cast %216 : vector<2x16xf32> to vector<2x16x1xf32>
    %218 = tpu.reciprocal %217 {approx = true} : vector<2x16x1xf32> -> vector<2x16x1xf32>
    %219 = vector.broadcast %218 : vector<2x16x1xf32> to vector<2x16x16xf32>
    %220 = arith.mulf %215, %219 : vector<2x16x16xf32>
    %221 = arith.truncf %220 : vector<2x16x16xf32> to vector<2x16x16xbf16>
    "tpu.trace_start"() <{level = 10 : i32, message = "bqk,bkd->bqd"}> : () -> ()
    %cst_78 = arith.constant dense<0.000000e+00> : vector<2x16x8xf32>
    %222 = tpu.matmul %221, %203, %cst_78 {dimension_numbers = #tpu.dot_dimension_numbers<[2], [1], [1], [2], [0, 0, 0, 1, 1, 2], [0], [0]>} : vector<2x16x16xbf16>, vector<2x16x8xbf16>, vector<2x16x8xf32> -> vector<2x16x8xf32>
    "tpu.trace_stop"() : () -> ()
    %223 = vector.extract_strided_slice %45 {offsets = [0, 0, 56], sizes = [2, 16, 8], strides = [1, 1, 1]} : vector<2x16x64xf32> to vector<2x16x8xf32>
    %224 = arith.truncf %223 : vector<2x16x8xf32> to vector<2x16x8xbf16>
    %225 = vector.extract_strided_slice %46 {offsets = [0, 0, 56], sizes = [2, 16, 8], strides = [1, 1, 1]} : vector<2x16x64xf32> to vector<2x16x8xf32>
    %226 = arith.truncf %225 : vector<2x16x8xf32> to vector<2x16x8xbf16>
    %227 = vector.extract_strided_slice %47 {offsets = [0, 0, 56], sizes = [2, 16, 8], strides = [1, 1, 1]} : vector<2x16x64xf32> to vector<2x16x8xf32>
    %228 = arith.truncf %227 : vector<2x16x8xf32> to vector<2x16x8xbf16>
    "tpu.trace_start"() <{level = 10 : i32, message = "bqd,bkd->bqk"}> : () -> ()
    %cst_79 = arith.constant dense<0.000000e+00> : vector<2x16x16xf32>
    %229 = tpu.matmul %224, %226, %cst_79 {dimension_numbers = #tpu.dot_dimension_numbers<[2], [2], [1], [1], [0, 0, 0, 1, 1, 1], [0], [0]>} : vector<2x16x8xbf16>, vector<2x16x8xbf16>, vector<2x16x16xf32> -> vector<2x16x16xf32>
    "tpu.trace_stop"() : () -> ()
    %cst_80 = arith.constant 0.353553385 : f32
    %230 = vector.broadcast %cst_80 : f32 to vector<2x16x16xf32>
    %231 = arith.mulf %230, %229 : vector<2x16x16xf32>
    %cst_81 = arith.constant 0.000000e+00 : f32
    %232 = vector.broadcast %cst_81 : f32 to vector<2x16x16xf32>
    %233 = arith.cmpf ogt, %4, %232 : vector<2x16x16xf32>
    %cst_82 = arith.constant -1.000000e+08 : f32
    %234 = vector.broadcast %cst_82 : f32 to vector<2x16x16xf32>
    %235 = arith.select %233, %234, %231 : vector<2x16x16xi1>, vector<2x16x16xf32>
    %cst_83 = arith.constant dense<0xFF800000> : vector<2x16xf32>
    %236 = vector.multi_reduction <maximumf>, %235, %cst_83 [2] : vector<2x16x16xf32> to vector<2x16xf32>
    %237 = vector.shape_cast %236 : vector<2x16xf32> to vector<2x16x1xf32>
    %238 = vector.broadcast %237 : vector<2x16x1xf32> to vector<2x16x16xf32>
    %239 = arith.subf %235, %238 : vector<2x16x16xf32>
    %240 = math.exp %239 : vector<2x16x16xf32>
    %cst_84 = arith.constant dense<0.000000e+00> : vector<2x16xf32>
    %241 = vector.multi_reduction <add>, %240, %cst_84 [2] : vector<2x16x16xf32> to vector<2x16xf32>
    %242 = vector.shape_cast %241 : vector<2x16xf32> to vector<2x16x1xf32>
    %243 = tpu.reciprocal %242 {approx = true} : vector<2x16x1xf32> -> vector<2x16x1xf32>
    %244 = vector.broadcast %243 : vector<2x16x1xf32> to vector<2x16x16xf32>
    %245 = arith.mulf %240, %244 : vector<2x16x16xf32>
    %246 = arith.truncf %245 : vector<2x16x16xf32> to vector<2x16x16xbf16>
    "tpu.trace_start"() <{level = 10 : i32, message = "bqk,bkd->bqd"}> : () -> ()
    %cst_85 = arith.constant dense<0.000000e+00> : vector<2x16x8xf32>
    %247 = tpu.matmul %246, %228, %cst_85 {dimension_numbers = #tpu.dot_dimension_numbers<[2], [1], [1], [2], [0, 0, 0, 1, 1, 2], [0], [0]>} : vector<2x16x16xbf16>, vector<2x16x8xbf16>, vector<2x16x8xf32> -> vector<2x16x8xf32>
    "tpu.trace_stop"() : () -> ()
    %248 = tpu.concatenate %72, %97, %122, %147, %172, %197, %222, %247 in 2 : vector<2x16x8xf32>, vector<2x16x8xf32>, vector<2x16x8xf32>, vector<2x16x8xf32>, vector<2x16x8xf32>, vector<2x16x8xf32>, vector<2x16x8xf32>, vector<2x16x8xf32> -> vector<2x16x64xf32>
    %249 = vector.shape_cast %248 : vector<2x16x64xf32> to vector<32x64xf32>
    %250 = arith.truncf %249 : vector<32x64xf32> to vector<32x64xbf16>
    %cst_86 = arith.constant dense<0.000000e+00> : vector<32x64xf32>
    %251 = tpu.matmul %250, %38, %cst_86 {dimension_numbers = #tpu.dot_dimension_numbers<[1], [0], [0], [1], [0, 0, 1, 1], [], []>} : vector<32x64xbf16>, vector<64x64xbf16>, vector<32x64xf32> -> vector<32x64xf32>
    %252 = arith.addf %3, %251 : vector<32x64xf32>
    %c0_87 = arith.constant 0 : index
    %c0_88 = arith.constant 0 : index
    %c0_89 = arith.constant 0 : index
    %253 = vector.load %arg11[%c0_87, %c0_88, %c0_89] : memref<1x1x64xf32, #tpu.memory_space<vmem>>, vector<1x1x64xf32>
    %254 = vector.shape_cast %253 : vector<1x1x64xf32> to vector<1x64xf32>
    %c0_90 = arith.constant 0 : index
    %c0_91 = arith.constant 0 : index
    %c0_92 = arith.constant 0 : index
    %255 = vector.load %arg12[%c0_90, %c0_91, %c0_92] : memref<1x1x64xf32, #tpu.memory_space<vmem>>, vector<1x1x64xf32>
    %256 = vector.shape_cast %255 : vector<1x1x64xf32> to vector<1x64xf32>
    %cst_93 = arith.constant dense<0.000000e+00> : vector<32xf32>
    %257 = vector.multi_reduction <add>, %252, %cst_93 [1] : vector<32x64xf32> to vector<32xf32>
    %258 = vector.shape_cast %257 : vector<32xf32> to vector<32x1xf32>
    %cst_94 = arith.constant 6.400000e+01 : f32
    %259 = vector.broadcast %cst_94 : f32 to vector<32x1xf32>
    %260 = arith.divf %258, %259 : vector<32x1xf32>
    %261 = vector.broadcast %260 : vector<32x1xf32> to vector<32x64xf32>
    %262 = arith.subf %252, %261 : vector<32x64xf32>
    %263 = arith.mulf %262, %262 : vector<32x64xf32>
    %cst_95 = arith.constant dense<0.000000e+00> : vector<32xf32>
    %264 = vector.multi_reduction <add>, %263, %cst_95 [1] : vector<32x64xf32> to vector<32xf32>
    %265 = vector.shape_cast %264 : vector<32xf32> to vector<32x1xf32>
    %cst_96 = arith.constant 6.400000e+01 : f32
    %266 = vector.broadcast %cst_96 : f32 to vector<32x1xf32>
    %267 = arith.divf %265, %266 : vector<32x1xf32>
    %268 = vector.broadcast %260 : vector<32x1xf32> to vector<32x64xf32>
    %269 = arith.subf %252, %268 : vector<32x64xf32>
    %cst_97 = arith.constant 9.99999974E-6 : f32
    %270 = vector.broadcast %cst_97 : f32 to vector<32x1xf32>
    %271 = arith.addf %267, %270 : vector<32x1xf32>
    %272 = math.rsqrt %271 : vector<32x1xf32>
    %273 = vector.broadcast %272 : vector<32x1xf32> to vector<32x64xf32>
    %274 = arith.mulf %269, %273 : vector<32x64xf32>
    %275 = vector.broadcast %254 : vector<1x64xf32> to vector<32x64xf32>
    %276 = arith.mulf %274, %275 : vector<32x64xf32>
    %277 = vector.broadcast %256 : vector<1x64xf32> to vector<32x64xf32>
    %278 = arith.addf %276, %277 : vector<32x64xf32>
    %c0_98 = arith.constant 0 : index
    %c0_99 = arith.constant 0 : index
    %c0_100 = arith.constant 0 : index
    %279 = vector.load %arg13[%c0_98, %c0_99, %c0_100] : memref<1x64x512xbf16, #tpu.memory_space<vmem>>, vector<1x64x512xbf16>
    %280 = vector.shape_cast %279 : vector<1x64x512xbf16> to vector<64x512xbf16>
    %c0_101 = arith.constant 0 : index
    %c0_102 = arith.constant 0 : index
    %c0_103 = arith.constant 0 : index
    %281 = vector.load %arg14[%c0_101, %c0_102, %c0_103] : memref<1x1x512xf32, #tpu.memory_space<vmem>>, vector<1x1x512xf32>
    %282 = vector.shape_cast %281 : vector<1x1x512xf32> to vector<1x512xf32>
    %c0_104 = arith.constant 0 : index
    %c0_105 = arith.constant 0 : index
    %c0_106 = arith.constant 0 : index
    %283 = vector.load %arg15[%c0_104, %c0_105, %c0_106] : memref<1x512x64xbf16, #tpu.memory_space<vmem>>, vector<1x512x64xbf16>
    %284 = vector.shape_cast %283 : vector<1x512x64xbf16> to vector<512x64xbf16>
    %c0_107 = arith.constant 0 : index
    %c0_108 = arith.constant 0 : index
    %c0_109 = arith.constant 0 : index
    %285 = vector.load %arg16[%c0_107, %c0_108, %c0_109] : memref<1x1x64xf32, #tpu.memory_space<vmem>>, vector<1x1x64xf32>
    %286 = vector.shape_cast %285 : vector<1x1x64xf32> to vector<1x64xf32>
    %287 = arith.truncf %278 : vector<32x64xf32> to vector<32x64xbf16>
    %cst_110 = arith.constant dense<0.000000e+00> : vector<32x512xf32>
    %288 = tpu.matmul %287, %280, %cst_110 {dimension_numbers = #tpu.dot_dimension_numbers<[1], [0], [0], [1], [0, 0, 1, 1], [], []>} : vector<32x64xbf16>, vector<64x512xbf16>, vector<32x512xf32> -> vector<32x512xf32>
    %289 = vector.broadcast %282 : vector<1x512xf32> to vector<32x512xf32>
    %290 = arith.addf %288, %289 : vector<32x512xf32>
    %cst_111 = arith.constant 0.000000e+00 : f32
    %291 = vector.broadcast %cst_111 : f32 to vector<32x512xf32>
    %292 = arith.maximumf %290, %291 : vector<32x512xf32>
    %293 = arith.truncf %292 : vector<32x512xf32> to vector<32x512xbf16>
    %cst_112 = arith.constant dense<0.000000e+00> : vector<32x64xf32>
    %294 = tpu.matmul %293, %284, %cst_112 {dimension_numbers = #tpu.dot_dimension_numbers<[1], [0], [0], [1], [0, 0, 1, 1], [], []>} : vector<32x512xbf16>, vector<512x64xbf16>, vector<32x64xf32> -> vector<32x64xf32>
    %295 = vector.broadcast %286 : vector<1x64xf32> to vector<32x64xf32>
    %296 = arith.addf %294, %295 : vector<32x64xf32>
    %297 = arith.addf %252, %296 : vector<32x64xf32>
    %c0_113 = arith.constant 0 : index
    %c0_114 = arith.constant 0 : index
    %298 = vector.load %arg17[%c0_113, %c0_114] : memref<32x64xf32, #tpu.memory_space<vmem>>, vector<32x64xf32>
    tpu.vector_store %arg17[%c0_113, %c0_114], %297 {strides = array<i32>} : memref<32x64xf32, #tpu.memory_space<vmem>>, vector<32x64xf32>,
    return
  }
  func.func @transform_0(%arg0: i32) -> (i32, i32) {
    %c0_i32 = arith.constant 0 : i32
    %c0_i32_0 = arith.constant 0 : i32
    %c0_i32_1 = arith.constant 0 : i32
    return %c0_i32, %c0_i32_0 : i32, i32
  }
  func.func @transform_1(%arg0: i32) -> (i32, i32) {
    %c0_i32 = arith.constant 0 : i32
    %c0_i32_0 = arith.constant 0 : i32
    %c0_i32_1 = arith.constant 0 : i32
    return %c0_i32, %c0_i32_0 : i32, i32
  }
  func.func @transform_2(%arg0: i32) -> (i32, i32) {
    %c0_i32 = arith.constant 0 : i32
    %c0_i32_0 = arith.constant 0 : i32
    %c0_i32_1 = arith.constant 0 : i32
    return %c0_i32, %c0_i32_0 : i32, i32
  }
  func.func @transform_3(%arg0: i32) -> (i32, i32, i32) {
    %c0_i32 = arith.constant 0 : i32
    %c0_i32_0 = arith.constant 0 : i32
    %c0_i32_1 = arith.constant 0 : i32
    %c0_i32_2 = arith.constant 0 : i32
    return %c0_i32, %c0_i32_0, %c0_i32_1 : i32, i32, i32
  }
  func.func @transform_4(%arg0: i32) -> (i32, i32, i32) {
    %c0_i32 = arith.constant 0 : i32
    %c0_i32_0 = arith.constant 0 : i32
    %c0_i32_1 = arith.constant 0 : i32
    return %arg0, %c0_i32, %c0_i32_0 : i32, i32, i32
  }
  func.func @transform_5(%arg0: i32) -> (i32, i32, i32) {
    %c0_i32 = arith.constant 0 : i32
    %c0_i32_0 = arith.constant 0 : i32
    %c0_i32_1 = arith.constant 0 : i32
    return %arg0, %c0_i32, %c0_i32_0 : i32, i32, i32
  }
  func.func @transform_6(%arg0: i32) -> (i32, i32, i32) {
    %c0_i32 = arith.constant 0 : i32
    %c0_i32_0 = arith.constant 0 : i32
    %c0_i32_1 = arith.constant 0 : i32
    return %arg0, %c0_i32, %c0_i32_0 : i32, i32, i32
  }
  func.func @transform_7(%arg0: i32) -> (i32, i32, i32) {
    %c0_i32 = arith.constant 0 : i32
    %c0_i32_0 = arith.constant 0 : i32
    %c0_i32_1 = arith.constant 0 : i32
    return %arg0, %c0_i32, %c0_i32_0 : i32, i32, i32
  }
  func.func @transform_8(%arg0: i32) -> (i32, i32, i32) {
    %c0_i32 = arith.constant 0 : i32
    %c0_i32_0 = arith.constant 0 : i32
    %c0_i32_1 = arith.constant 0 : i32
    return %arg0, %c0_i32, %c0_i32_0 : i32, i32, i32
  }
  func.func @transform_9(%arg0: i32) -> (i32, i32, i32) {
    %c0_i32 = arith.constant 0 : i32
    %c0_i32_0 = arith.constant 0 : i32
    %c0_i32_1 = arith.constant 0 : i32
    return %arg0, %c0_i32, %c0_i32_0 : i32, i32, i32
  }
  func.func @transform_10(%arg0: i32) -> (i32, i32, i32) {
    %c0_i32 = arith.constant 0 : i32
    %c0_i32_0 = arith.constant 0 : i32
    %c0_i32_1 = arith.constant 0 : i32
    return %arg0, %c0_i32, %c0_i32_0 : i32, i32, i32
  }
  func.func @transform_11(%arg0: i32) -> (i32, i32, i32) {
    %c0_i32 = arith.constant 0 : i32
    %c0_i32_0 = arith.constant 0 : i32
    %c0_i32_1 = arith.constant 0 : i32
    return %arg0, %c0_i32, %c0_i32_0 : i32, i32, i32
  }
  func.func @transform_12(%arg0: i32) -> (i32, i32, i32) {
    %c0_i32 = arith.constant 0 : i32
    %c0_i32_0 = arith.constant 0 : i32
    %c0_i32_1 = arith.constant 0 : i32
    return %arg0, %c0_i32, %c0_i32_0 : i32, i32, i32
  }
  func.func @transform_13(%arg0: i32) -> (i32, i32, i32) {
    %c0_i32 = arith.constant 0 : i32
    %c0_i32_0 = arith.constant 0 : i32
    %c0_i32_1 = arith.constant 0 : i32
    return %arg0, %c0_i32, %c0_i32_0 : i32, i32, i32
  }
  func.func @transform_14(%arg0: i32) -> (i32, i32, i32) {
    %c0_i32 = arith.constant 0 : i32
    %c0_i32_0 = arith.constant 0 : i32
    %c0_i32_1 = arith.constant 0 : i32
    return %arg0, %c0_i32, %c0_i32_0 : i32, i32, i32
  }
  func.func @transform_15(%arg0: i32) -> (i32, i32, i32) {
    %c0_i32 = arith.constant 0 : i32
    %c0_i32_0 = arith.constant 0 : i32
    %c0_i32_1 = arith.constant 0 : i32
    return %arg0, %c0_i32, %c0_i32_0 : i32, i32, i32
  }
  func.func @transform_16(%arg0: i32) -> (i32, i32) {
    %c0_i32 = arith.constant 0 : i32
    %c0_i32_0 = arith.constant 0 : i32
    %c0_i32_1 = arith.constant 0 : i32
    return %c0_i32, %c0_i32_0 : i32, i32
  }
}

module attributes {stable_mosaic.version = 11 : i64} {
  func.func @_decoder_pointer_kernel(%arg0: i32, %arg1: memref<2x64xf32, #tpu.memory_space<vmem>>, %arg2: memref<32x64xf32, #tpu.memory_space<vmem>>, %arg3: memref<16x64xf32, #tpu.memory_space<vmem>>, %arg4: memref<2x1x16xf32, #tpu.memory_space<vmem>>, %arg5: memref<2x1x8xf32, #tpu.memory_space<vmem>>, %arg6: memref<1x64xf32, #tpu.memory_space<vmem>>, %arg7: memref<1x64xf32, #tpu.memory_space<vmem>>, %arg8: memref<64x64xbf16, #tpu.memory_space<vmem>>, %arg9: memref<64x64xbf16, #tpu.memory_space<vmem>>, %arg10: memref<64x64xbf16, #tpu.memory_space<vmem>>, %arg11: memref<64x64xbf16, #tpu.memory_space<vmem>>, %arg12: memref<1x64xf32, #tpu.memory_space<vmem>>, %arg13: memref<1x64xf32, #tpu.memory_space<vmem>>, %arg14: memref<64x512xbf16, #tpu.memory_space<vmem>>, %arg15: memref<1x512xf32, #tpu.memory_space<vmem>>, %arg16: memref<512x64xbf16, #tpu.memory_space<vmem>>, %arg17: memref<1x64xf32, #tpu.memory_space<vmem>>, %arg18: memref<128x64xbf16, #tpu.memory_space<vmem>>, %arg19: memref<1x64xf32, #tpu.memory_space<vmem>>, %arg20: memref<64x64xbf16, #tpu.memory_space<vmem>>, %arg21: memref<64x64xbf16, #tpu.memory_space<vmem>>, %arg22: memref<2x8xf32, #tpu.memory_space<vmem>>) attributes {dimension_semantics = [#tpu.dimension_semantics<arbitrary>], iteration_bounds = array<i64: 1>, scalar_prefetch = 0 : i64, scratch_operands = 0 : i64, tpu.core_type = #tpu.core_type<tc>, window_params = [{pipeline_mode = #tpu.pipeline_mode<synchronous>, transform_indices = @transform_0, window_bounds = array<i64: 2, 64>}, {pipeline_mode = #tpu.pipeline_mode<synchronous>, transform_indices = @transform_1, window_bounds = array<i64: 32, 64>}, {pipeline_mode = #tpu.pipeline_mode<synchronous>, transform_indices = @transform_2, window_bounds = array<i64: 16, 64>}, {pipeline_mode = #tpu.pipeline_mode<synchronous>, transform_indices = @transform_3, window_bounds = array<i64: 2, 1, 16>}, {pipeline_mode = #tpu.pipeline_mode<synchronous>, transform_indices = @transform_4, window_bounds = array<i64: 2, 1, 8>}, {pipeline_mode = #tpu.pipeline_mode<synchronous>, transform_indices = @transform_5, window_bounds = array<i64: 1, 64>}, {pipeline_mode = #tpu.pipeline_mode<synchronous>, transform_indices = @transform_6, window_bounds = array<i64: 1, 64>}, {pipeline_mode = #tpu.pipeline_mode<synchronous>, transform_indices = @transform_7, window_bounds = array<i64: 64, 64>}, {pipeline_mode = #tpu.pipeline_mode<synchronous>, transform_indices = @transform_8, window_bounds = array<i64: 64, 64>}, {pipeline_mode = #tpu.pipeline_mode<synchronous>, transform_indices = @transform_9, window_bounds = array<i64: 64, 64>}, {pipeline_mode = #tpu.pipeline_mode<synchronous>, transform_indices = @transform_10, window_bounds = array<i64: 64, 64>}, {pipeline_mode = #tpu.pipeline_mode<synchronous>, transform_indices = @transform_11, window_bounds = array<i64: 1, 64>}, {pipeline_mode = #tpu.pipeline_mode<synchronous>, transform_indices = @transform_12, window_bounds = array<i64: 1, 64>}, {pipeline_mode = #tpu.pipeline_mode<synchronous>, transform_indices = @transform_13, window_bounds = array<i64: 64, 512>}, {pipeline_mode = #tpu.pipeline_mode<synchronous>, transform_indices = @transform_14, window_bounds = array<i64: 1, 512>}, {pipeline_mode = #tpu.pipeline_mode<synchronous>, transform_indices = @transform_15, window_bounds = array<i64: 512, 64>}, {pipeline_mode = #tpu.pipeline_mode<synchronous>, transform_indices = @transform_16, window_bounds = array<i64: 1, 64>}, {pipeline_mode = #tpu.pipeline_mode<synchronous>, transform_indices = @transform_17, window_bounds = array<i64: 128, 64>}, {pipeline_mode = #tpu.pipeline_mode<synchronous>, transform_indices = @transform_18, window_bounds = array<i64: 1, 64>}, {pipeline_mode = #tpu.pipeline_mode<synchronous>, transform_indices = @transform_19, window_bounds = array<i64: 64, 64>}, {pipeline_mode = #tpu.pipeline_mode<synchronous>, transform_indices = @transform_20, window_bounds = array<i64: 64, 64>}, {pipeline_mode = #tpu.pipeline_mode<synchronous>, transform_indices = @transform_21, window_bounds = array<i64: 2, 8>}]} {
    %c0 = arith.constant 0 : index
    %c0_0 = arith.constant 0 : index
    %0 = vector.load %arg1[%c0, %c0_0] : memref<2x64xf32, #tpu.memory_space<vmem>>, vector<2x64xf32>
    %c0_1 = arith.constant 0 : index
    %c0_2 = arith.constant 0 : index
    %1 = vector.load %arg2[%c0_1, %c0_2] : memref<32x64xf32, #tpu.memory_space<vmem>>, vector<32x64xf32>
    %c0_3 = arith.constant 0 : index
    %c0_4 = arith.constant 0 : index
    %2 = vector.load %arg6[%c0_3, %c0_4] : memref<1x64xf32, #tpu.memory_space<vmem>>, vector<1x64xf32>
    %c0_5 = arith.constant 0 : index
    %c0_6 = arith.constant 0 : index
    %3 = vector.load %arg7[%c0_5, %c0_6] : memref<1x64xf32, #tpu.memory_space<vmem>>, vector<1x64xf32>
    %cst = arith.constant dense<0.000000e+00> : vector<2xf32>
    %4 = vector.multi_reduction <add>, %0, %cst [1] : vector<2x64xf32> to vector<2xf32>
    %5 = vector.shape_cast %4 : vector<2xf32> to vector<2x1xf32>
    %cst_7 = arith.constant 6.400000e+01 : f32
    %6 = vector.broadcast %cst_7 : f32 to vector<2x1xf32>
    %7 = arith.divf %5, %6 : vector<2x1xf32>
    %8 = vector.broadcast %7 : vector<2x1xf32> to vector<2x64xf32>
    %9 = arith.subf %0, %8 : vector<2x64xf32>
    %10 = arith.mulf %9, %9 : vector<2x64xf32>
    %cst_8 = arith.constant dense<0.000000e+00> : vector<2xf32>
    %11 = vector.multi_reduction <add>, %10, %cst_8 [1] : vector<2x64xf32> to vector<2xf32>
    %12 = vector.shape_cast %11 : vector<2xf32> to vector<2x1xf32>
    %cst_9 = arith.constant 6.400000e+01 : f32
    %13 = vector.broadcast %cst_9 : f32 to vector<2x1xf32>
    %14 = arith.divf %12, %13 : vector<2x1xf32>
    %15 = vector.broadcast %7 : vector<2x1xf32> to vector<2x64xf32>
    %16 = arith.subf %0, %15 : vector<2x64xf32>
    %cst_10 = arith.constant 9.99999974E-6 : f32
    %17 = vector.broadcast %cst_10 : f32 to vector<2x1xf32>
    %18 = arith.addf %14, %17 : vector<2x1xf32>
    %19 = math.rsqrt %18 : vector<2x1xf32>
    %20 = vector.broadcast %19 : vector<2x1xf32> to vector<2x64xf32>
    %21 = arith.mulf %16, %20 : vector<2x64xf32>
    %22 = vector.broadcast %2 : vector<1x64xf32> to vector<2x64xf32>
    %23 = arith.mulf %21, %22 : vector<2x64xf32>
    %24 = vector.broadcast %3 : vector<1x64xf32> to vector<2x64xf32>
    %25 = arith.addf %23, %24 : vector<2x64xf32>
    %c0_11 = arith.constant 0 : index
    %c0_12 = arith.constant 0 : index
    %26 = vector.load %arg6[%c0_11, %c0_12] : memref<1x64xf32, #tpu.memory_space<vmem>>, vector<1x64xf32>
    %c0_13 = arith.constant 0 : index
    %c0_14 = arith.constant 0 : index
    %27 = vector.load %arg7[%c0_13, %c0_14] : memref<1x64xf32, #tpu.memory_space<vmem>>, vector<1x64xf32>
    %cst_15 = arith.constant dense<0.000000e+00> : vector<32xf32>
    %28 = vector.multi_reduction <add>, %1, %cst_15 [1] : vector<32x64xf32> to vector<32xf32>
    %29 = vector.shape_cast %28 : vector<32xf32> to vector<32x1xf32>
    %cst_16 = arith.constant 6.400000e+01 : f32
    %30 = vector.broadcast %cst_16 : f32 to vector<32x1xf32>
    %31 = arith.divf %29, %30 : vector<32x1xf32>
    %32 = vector.broadcast %31 : vector<32x1xf32> to vector<32x64xf32>
    %33 = arith.subf %1, %32 : vector<32x64xf32>
    %34 = arith.mulf %33, %33 : vector<32x64xf32>
    %cst_17 = arith.constant dense<0.000000e+00> : vector<32xf32>
    %35 = vector.multi_reduction <add>, %34, %cst_17 [1] : vector<32x64xf32> to vector<32xf32>
    %36 = vector.shape_cast %35 : vector<32xf32> to vector<32x1xf32>
    %cst_18 = arith.constant 6.400000e+01 : f32
    %37 = vector.broadcast %cst_18 : f32 to vector<32x1xf32>
    %38 = arith.divf %36, %37 : vector<32x1xf32>
    %39 = vector.broadcast %31 : vector<32x1xf32> to vector<32x64xf32>
    %40 = arith.subf %1, %39 : vector<32x64xf32>
    %cst_19 = arith.constant 9.99999974E-6 : f32
    %41 = vector.broadcast %cst_19 : f32 to vector<32x1xf32>
    %42 = arith.addf %38, %41 : vector<32x1xf32>
    %43 = math.rsqrt %42 : vector<32x1xf32>
    %44 = vector.broadcast %43 : vector<32x1xf32> to vector<32x64xf32>
    %45 = arith.mulf %40, %44 : vector<32x64xf32>
    %46 = vector.broadcast %26 : vector<1x64xf32> to vector<32x64xf32>
    %47 = arith.mulf %45, %46 : vector<32x64xf32>
    %48 = vector.broadcast %27 : vector<1x64xf32> to vector<32x64xf32>
    %49 = arith.addf %47, %48 : vector<32x64xf32>
    %c0_20 = arith.constant 0 : index
    %c0_21 = arith.constant 0 : index
    %c0_22 = arith.constant 0 : index
    %50 = vector.load %arg4[%c0_20, %c0_21, %c0_22] : memref<2x1x16xf32, #tpu.memory_space<vmem>>, vector<2x1x16xf32>
    %c0_23 = arith.constant 0 : index
    %c0_24 = arith.constant 0 : index
    %51 = vector.load %arg8[%c0_23, %c0_24] : memref<64x64xbf16, #tpu.memory_space<vmem>>, vector<64x64xbf16>
    %c0_25 = arith.constant 0 : index
    %c0_26 = arith.constant 0 : index
    %52 = vector.load %arg9[%c0_25, %c0_26] : memref<64x64xbf16, #tpu.memory_space<vmem>>, vector<64x64xbf16>
    %c0_27 = arith.constant 0 : index
    %c0_28 = arith.constant 0 : index
    %53 = vector.load %arg10[%c0_27, %c0_28] : memref<64x64xbf16, #tpu.memory_space<vmem>>, vector<64x64xbf16>
    %c0_29 = arith.constant 0 : index
    %c0_30 = arith.constant 0 : index
    %54 = vector.load %arg11[%c0_29, %c0_30] : memref<64x64xbf16, #tpu.memory_space<vmem>>, vector<64x64xbf16>
    %55 = arith.truncf %25 : vector<2x64xf32> to vector<2x64xbf16>
    %cst_31 = arith.constant dense<0.000000e+00> : vector<2x64xf32>
    %56 = tpu.matmul %55, %51, %cst_31 {dimension_numbers = #tpu.dot_dimension_numbers<[1], [0], [0], [1], [0, 0, 1, 1], [], []>} : vector<2x64xbf16>, vector<64x64xbf16>, vector<2x64xf32> -> vector<2x64xf32>
    %57 = arith.truncf %49 : vector<32x64xf32> to vector<32x64xbf16>
    %cst_32 = arith.constant dense<0.000000e+00> : vector<32x64xf32>
    %58 = tpu.matmul %57, %52, %cst_32 {dimension_numbers = #tpu.dot_dimension_numbers<[1], [0], [0], [1], [0, 0, 1, 1], [], []>} : vector<32x64xbf16>, vector<64x64xbf16>, vector<32x64xf32> -> vector<32x64xf32>
    %59 = arith.truncf %49 : vector<32x64xf32> to vector<32x64xbf16>
    %cst_33 = arith.constant dense<0.000000e+00> : vector<32x64xf32>
    %60 = tpu.matmul %59, %53, %cst_33 {dimension_numbers = #tpu.dot_dimension_numbers<[1], [0], [0], [1], [0, 0, 1, 1], [], []>} : vector<32x64xbf16>, vector<64x64xbf16>, vector<32x64xf32> -> vector<32x64xf32>
    %61 = vector.shape_cast %56 : vector<2x64xf32> to vector<2x1x64xf32>
    %62 = vector.shape_cast %58 : vector<32x64xf32> to vector<2x16x64xf32>
    %63 = vector.shape_cast %60 : vector<32x64xf32> to vector<2x16x64xf32>
    %64 = vector.extract_strided_slice %61 {offsets = [0, 0, 0], sizes = [2, 1, 8], strides = [1, 1, 1]} : vector<2x1x64xf32> to vector<2x1x8xf32>
    %65 = arith.truncf %64 : vector<2x1x8xf32> to vector<2x1x8xbf16>
    %66 = vector.extract_strided_slice %62 {offsets = [0, 0, 0], sizes = [2, 16, 8], strides = [1, 1, 1]} : vector<2x16x64xf32> to vector<2x16x8xf32>
    %67 = arith.truncf %66 : vector<2x16x8xf32> to vector<2x16x8xbf16>
    %68 = vector.extract_strided_slice %63 {offsets = [0, 0, 0], sizes = [2, 16, 8], strides = [1, 1, 1]} : vector<2x16x64xf32> to vector<2x16x8xf32>
    %69 = arith.truncf %68 : vector<2x16x8xf32> to vector<2x16x8xbf16>
    "tpu.trace_start"() <{level = 10 : i32, message = "bqd,bkd->bqk"}> : () -> ()
    %cst_34 = arith.constant dense<0.000000e+00> : vector<2x1x16xf32>
    %70 = tpu.matmul %65, %67, %cst_34 {dimension_numbers = #tpu.dot_dimension_numbers<[2], [2], [1], [1], [0, 0, 0, 1, 1, 1], [0], [0]>} : vector<2x1x8xbf16>, vector<2x16x8xbf16>, vector<2x1x16xf32> -> vector<2x1x16xf32>
    "tpu.trace_stop"() : () -> ()
    %cst_35 = arith.constant 0.353553385 : f32
    %71 = vector.broadcast %cst_35 : f32 to vector<2x1x16xf32>
    %72 = arith.mulf %71, %70 : vector<2x1x16xf32>
    %cst_36 = arith.constant 0.000000e+00 : f32
    %73 = vector.broadcast %cst_36 : f32 to vector<2x1x16xf32>
    %74 = arith.cmpf ogt, %50, %73 : vector<2x1x16xf32>
    %cst_37 = arith.constant -1.000000e+08 : f32
    %75 = vector.broadcast %cst_37 : f32 to vector<2x1x16xf32>
    %76 = arith.select %74, %75, %72 : vector<2x1x16xi1>, vector<2x1x16xf32>
    %cst_38 = arith.constant dense<0xFF800000> : vector<2x1xf32>
    %77 = vector.multi_reduction <maximumf>, %76, %cst_38 [2] : vector<2x1x16xf32> to vector<2x1xf32>
    %78 = vector.shape_cast %77 : vector<2x1xf32> to vector<2x1x1xf32>
    %79 = vector.broadcast %78 : vector<2x1x1xf32> to vector<2x1x16xf32>
    %80 = arith.subf %76, %79 : vector<2x1x16xf32>
    %81 = math.exp %80 : vector<2x1x16xf32>
    %cst_39 = arith.constant dense<0.000000e+00> : vector<2x1xf32>
    %82 = vector.multi_reduction <add>, %81, %cst_39 [2] : vector<2x1x16xf32> to vector<2x1xf32>
    %83 = vector.shape_cast %82 : vector<2x1xf32> to vector<2x1x1xf32>
    %84 = tpu.reciprocal %83 {approx = true} : vector<2x1x1xf32> -> vector<2x1x1xf32>
    %85 = vector.broadcast %84 : vector<2x1x1xf32> to vector<2x1x16xf32>
    %86 = arith.mulf %81, %85 : vector<2x1x16xf32>
    %87 = arith.truncf %86 : vector<2x1x16xf32> to vector<2x1x16xbf16>
    "tpu.trace_start"() <{level = 10 : i32, message = "bqk,bkd->bqd"}> : () -> ()
    %cst_40 = arith.constant dense<0.000000e+00> : vector<2x1x8xf32>
    %88 = tpu.matmul %87, %69, %cst_40 {dimension_numbers = #tpu.dot_dimension_numbers<[2], [1], [1], [2], [0, 0, 0, 1, 1, 2], [0], [0]>} : vector<2x1x16xbf16>, vector<2x16x8xbf16>, vector<2x1x8xf32> -> vector<2x1x8xf32>
    "tpu.trace_stop"() : () -> ()
    %89 = vector.extract_strided_slice %61 {offsets = [0, 0, 8], sizes = [2, 1, 8], strides = [1, 1, 1]} : vector<2x1x64xf32> to vector<2x1x8xf32>
    %90 = arith.truncf %89 : vector<2x1x8xf32> to vector<2x1x8xbf16>
    %91 = vector.extract_strided_slice %62 {offsets = [0, 0, 8], sizes = [2, 16, 8], strides = [1, 1, 1]} : vector<2x16x64xf32> to vector<2x16x8xf32>
    %92 = arith.truncf %91 : vector<2x16x8xf32> to vector<2x16x8xbf16>
    %93 = vector.extract_strided_slice %63 {offsets = [0, 0, 8], sizes = [2, 16, 8], strides = [1, 1, 1]} : vector<2x16x64xf32> to vector<2x16x8xf32>
    %94 = arith.truncf %93 : vector<2x16x8xf32> to vector<2x16x8xbf16>
    "tpu.trace_start"() <{level = 10 : i32, message = "bqd,bkd->bqk"}> : () -> ()
    %cst_41 = arith.constant dense<0.000000e+00> : vector<2x1x16xf32>
    %95 = tpu.matmul %90, %92, %cst_41 {dimension_numbers = #tpu.dot_dimension_numbers<[2], [2], [1], [1], [0, 0, 0, 1, 1, 1], [0], [0]>} : vector<2x1x8xbf16>, vector<2x16x8xbf16>, vector<2x1x16xf32> -> vector<2x1x16xf32>
    "tpu.trace_stop"() : () -> ()
    %cst_42 = arith.constant 0.353553385 : f32
    %96 = vector.broadcast %cst_42 : f32 to vector<2x1x16xf32>
    %97 = arith.mulf %96, %95 : vector<2x1x16xf32>
    %cst_43 = arith.constant 0.000000e+00 : f32
    %98 = vector.broadcast %cst_43 : f32 to vector<2x1x16xf32>
    %99 = arith.cmpf ogt, %50, %98 : vector<2x1x16xf32>
    %cst_44 = arith.constant -1.000000e+08 : f32
    %100 = vector.broadcast %cst_44 : f32 to vector<2x1x16xf32>
    %101 = arith.select %99, %100, %97 : vector<2x1x16xi1>, vector<2x1x16xf32>
    %cst_45 = arith.constant dense<0xFF800000> : vector<2x1xf32>
    %102 = vector.multi_reduction <maximumf>, %101, %cst_45 [2] : vector<2x1x16xf32> to vector<2x1xf32>
    %103 = vector.shape_cast %102 : vector<2x1xf32> to vector<2x1x1xf32>
    %104 = vector.broadcast %103 : vector<2x1x1xf32> to vector<2x1x16xf32>
    %105 = arith.subf %101, %104 : vector<2x1x16xf32>
    %106 = math.exp %105 : vector<2x1x16xf32>
    %cst_46 = arith.constant dense<0.000000e+00> : vector<2x1xf32>
    %107 = vector.multi_reduction <add>, %106, %cst_46 [2] : vector<2x1x16xf32> to vector<2x1xf32>
    %108 = vector.shape_cast %107 : vector<2x1xf32> to vector<2x1x1xf32>
    %109 = tpu.reciprocal %108 {approx = true} : vector<2x1x1xf32> -> vector<2x1x1xf32>
    %110 = vector.broadcast %109 : vector<2x1x1xf32> to vector<2x1x16xf32>
    %111 = arith.mulf %106, %110 : vector<2x1x16xf32>
    %112 = arith.truncf %111 : vector<2x1x16xf32> to vector<2x1x16xbf16>
    "tpu.trace_start"() <{level = 10 : i32, message = "bqk,bkd->bqd"}> : () -> ()
    %cst_47 = arith.constant dense<0.000000e+00> : vector<2x1x8xf32>
    %113 = tpu.matmul %112, %94, %cst_47 {dimension_numbers = #tpu.dot_dimension_numbers<[2], [1], [1], [2], [0, 0, 0, 1, 1, 2], [0], [0]>} : vector<2x1x16xbf16>, vector<2x16x8xbf16>, vector<2x1x8xf32> -> vector<2x1x8xf32>
    "tpu.trace_stop"() : () -> ()
    %114 = vector.extract_strided_slice %61 {offsets = [0, 0, 16], sizes = [2, 1, 8], strides = [1, 1, 1]} : vector<2x1x64xf32> to vector<2x1x8xf32>
    %115 = arith.truncf %114 : vector<2x1x8xf32> to vector<2x1x8xbf16>
    %116 = vector.extract_strided_slice %62 {offsets = [0, 0, 16], sizes = [2, 16, 8], strides = [1, 1, 1]} : vector<2x16x64xf32> to vector<2x16x8xf32>
    %117 = arith.truncf %116 : vector<2x16x8xf32> to vector<2x16x8xbf16>
    %118 = vector.extract_strided_slice %63 {offsets = [0, 0, 16], sizes = [2, 16, 8], strides = [1, 1, 1]} : vector<2x16x64xf32> to vector<2x16x8xf32>
    %119 = arith.truncf %118 : vector<2x16x8xf32> to vector<2x16x8xbf16>
    "tpu.trace_start"() <{level = 10 : i32, message = "bqd,bkd->bqk"}> : () -> ()
    %cst_48 = arith.constant dense<0.000000e+00> : vector<2x1x16xf32>
    %120 = tpu.matmul %115, %117, %cst_48 {dimension_numbers = #tpu.dot_dimension_numbers<[2], [2], [1], [1], [0, 0, 0, 1, 1, 1], [0], [0]>} : vector<2x1x8xbf16>, vector<2x16x8xbf16>, vector<2x1x16xf32> -> vector<2x1x16xf32>
    "tpu.trace_stop"() : () -> ()
    %cst_49 = arith.constant 0.353553385 : f32
    %121 = vector.broadcast %cst_49 : f32 to vector<2x1x16xf32>
    %122 = arith.mulf %121, %120 : vector<2x1x16xf32>
    %cst_50 = arith.constant 0.000000e+00 : f32
    %123 = vector.broadcast %cst_50 : f32 to vector<2x1x16xf32>
    %124 = arith.cmpf ogt, %50, %123 : vector<2x1x16xf32>
    %cst_51 = arith.constant -1.000000e+08 : f32
    %125 = vector.broadcast %cst_51 : f32 to vector<2x1x16xf32>
    %126 = arith.select %124, %125, %122 : vector<2x1x16xi1>, vector<2x1x16xf32>
    %cst_52 = arith.constant dense<0xFF800000> : vector<2x1xf32>
    %127 = vector.multi_reduction <maximumf>, %126, %cst_52 [2] : vector<2x1x16xf32> to vector<2x1xf32>
    %128 = vector.shape_cast %127 : vector<2x1xf32> to vector<2x1x1xf32>
    %129 = vector.broadcast %128 : vector<2x1x1xf32> to vector<2x1x16xf32>
    %130 = arith.subf %126, %129 : vector<2x1x16xf32>
    %131 = math.exp %130 : vector<2x1x16xf32>
    %cst_53 = arith.constant dense<0.000000e+00> : vector<2x1xf32>
    %132 = vector.multi_reduction <add>, %131, %cst_53 [2] : vector<2x1x16xf32> to vector<2x1xf32>
    %133 = vector.shape_cast %132 : vector<2x1xf32> to vector<2x1x1xf32>
    %134 = tpu.reciprocal %133 {approx = true} : vector<2x1x1xf32> -> vector<2x1x1xf32>
    %135 = vector.broadcast %134 : vector<2x1x1xf32> to vector<2x1x16xf32>
    %136 = arith.mulf %131, %135 : vector<2x1x16xf32>
    %137 = arith.truncf %136 : vector<2x1x16xf32> to vector<2x1x16xbf16>
    "tpu.trace_start"() <{level = 10 : i32, message = "bqk,bkd->bqd"}> : () -> ()
    %cst_54 = arith.constant dense<0.000000e+00> : vector<2x1x8xf32>
    %138 = tpu.matmul %137, %119, %cst_54 {dimension_numbers = #tpu.dot_dimension_numbers<[2], [1], [1], [2], [0, 0, 0, 1, 1, 2], [0], [0]>} : vector<2x1x16xbf16>, vector<2x16x8xbf16>, vector<2x1x8xf32> -> vector<2x1x8xf32>
    "tpu.trace_stop"() : () -> ()
    %139 = vector.extract_strided_slice %61 {offsets = [0, 0, 24], sizes = [2, 1, 8], strides = [1, 1, 1]} : vector<2x1x64xf32> to vector<2x1x8xf32>
    %140 = arith.truncf %139 : vector<2x1x8xf32> to vector<2x1x8xbf16>
    %141 = vector.extract_strided_slice %62 {offsets = [0, 0, 24], sizes = [2, 16, 8], strides = [1, 1, 1]} : vector<2x16x64xf32> to vector<2x16x8xf32>
    %142 = arith.truncf %141 : vector<2x16x8xf32> to vector<2x16x8xbf16>
    %143 = vector.extract_strided_slice %63 {offsets = [0, 0, 24], sizes = [2, 16, 8], strides = [1, 1, 1]} : vector<2x16x64xf32> to vector<2x16x8xf32>
    %144 = arith.truncf %143 : vector<2x16x8xf32> to vector<2x16x8xbf16>
    "tpu.trace_start"() <{level = 10 : i32, message = "bqd,bkd->bqk"}> : () -> ()
    %cst_55 = arith.constant dense<0.000000e+00> : vector<2x1x16xf32>
    %145 = tpu.matmul %140, %142, %cst_55 {dimension_numbers = #tpu.dot_dimension_numbers<[2], [2], [1], [1], [0, 0, 0, 1, 1, 1], [0], [0]>} : vector<2x1x8xbf16>, vector<2x16x8xbf16>, vector<2x1x16xf32> -> vector<2x1x16xf32>
    "tpu.trace_stop"() : () -> ()
    %cst_56 = arith.constant 0.353553385 : f32
    %146 = vector.broadcast %cst_56 : f32 to vector<2x1x16xf32>
    %147 = arith.mulf %146, %145 : vector<2x1x16xf32>
    %cst_57 = arith.constant 0.000000e+00 : f32
    %148 = vector.broadcast %cst_57 : f32 to vector<2x1x16xf32>
    %149 = arith.cmpf ogt, %50, %148 : vector<2x1x16xf32>
    %cst_58 = arith.constant -1.000000e+08 : f32
    %150 = vector.broadcast %cst_58 : f32 to vector<2x1x16xf32>
    %151 = arith.select %149, %150, %147 : vector<2x1x16xi1>, vector<2x1x16xf32>
    %cst_59 = arith.constant dense<0xFF800000> : vector<2x1xf32>
    %152 = vector.multi_reduction <maximumf>, %151, %cst_59 [2] : vector<2x1x16xf32> to vector<2x1xf32>
    %153 = vector.shape_cast %152 : vector<2x1xf32> to vector<2x1x1xf32>
    %154 = vector.broadcast %153 : vector<2x1x1xf32> to vector<2x1x16xf32>
    %155 = arith.subf %151, %154 : vector<2x1x16xf32>
    %156 = math.exp %155 : vector<2x1x16xf32>
    %cst_60 = arith.constant dense<0.000000e+00> : vector<2x1xf32>
    %157 = vector.multi_reduction <add>, %156, %cst_60 [2] : vector<2x1x16xf32> to vector<2x1xf32>
    %158 = vector.shape_cast %157 : vector<2x1xf32> to vector<2x1x1xf32>
    %159 = tpu.reciprocal %158 {approx = true} : vector<2x1x1xf32> -> vector<2x1x1xf32>
    %160 = vector.broadcast %159 : vector<2x1x1xf32> to vector<2x1x16xf32>
    %161 = arith.mulf %156, %160 : vector<2x1x16xf32>
    %162 = arith.truncf %161 : vector<2x1x16xf32> to vector<2x1x16xbf16>
    "tpu.trace_start"() <{level = 10 : i32, message = "bqk,bkd->bqd"}> : () -> ()
    %cst_61 = arith.constant dense<0.000000e+00> : vector<2x1x8xf32>
    %163 = tpu.matmul %162, %144, %cst_61 {dimension_numbers = #tpu.dot_dimension_numbers<[2], [1], [1], [2], [0, 0, 0, 1, 1, 2], [0], [0]>} : vector<2x1x16xbf16>, vector<2x16x8xbf16>, vector<2x1x8xf32> -> vector<2x1x8xf32>
    "tpu.trace_stop"() : () -> ()
    %164 = vector.extract_strided_slice %61 {offsets = [0, 0, 32], sizes = [2, 1, 8], strides = [1, 1, 1]} : vector<2x1x64xf32> to vector<2x1x8xf32>
    %165 = arith.truncf %164 : vector<2x1x8xf32> to vector<2x1x8xbf16>
    %166 = vector.extract_strided_slice %62 {offsets = [0, 0, 32], sizes = [2, 16, 8], strides = [1, 1, 1]} : vector<2x16x64xf32> to vector<2x16x8xf32>
    %167 = arith.truncf %166 : vector<2x16x8xf32> to vector<2x16x8xbf16>
    %168 = vector.extract_strided_slice %63 {offsets = [0, 0, 32], sizes = [2, 16, 8], strides = [1, 1, 1]} : vector<2x16x64xf32> to vector<2x16x8xf32>
    %169 = arith.truncf %168 : vector<2x16x8xf32> to vector<2x16x8xbf16>
    "tpu.trace_start"() <{level = 10 : i32, message = "bqd,bkd->bqk"}> : () -> ()
    %cst_62 = arith.constant dense<0.000000e+00> : vector<2x1x16xf32>
    %170 = tpu.matmul %165, %167, %cst_62 {dimension_numbers = #tpu.dot_dimension_numbers<[2], [2], [1], [1], [0, 0, 0, 1, 1, 1], [0], [0]>} : vector<2x1x8xbf16>, vector<2x16x8xbf16>, vector<2x1x16xf32> -> vector<2x1x16xf32>
    "tpu.trace_stop"() : () -> ()
    %cst_63 = arith.constant 0.353553385 : f32
    %171 = vector.broadcast %cst_63 : f32 to vector<2x1x16xf32>
    %172 = arith.mulf %171, %170 : vector<2x1x16xf32>
    %cst_64 = arith.constant 0.000000e+00 : f32
    %173 = vector.broadcast %cst_64 : f32 to vector<2x1x16xf32>
    %174 = arith.cmpf ogt, %50, %173 : vector<2x1x16xf32>
    %cst_65 = arith.constant -1.000000e+08 : f32
    %175 = vector.broadcast %cst_65 : f32 to vector<2x1x16xf32>
    %176 = arith.select %174, %175, %172 : vector<2x1x16xi1>, vector<2x1x16xf32>
    %cst_66 = arith.constant dense<0xFF800000> : vector<2x1xf32>
    %177 = vector.multi_reduction <maximumf>, %176, %cst_66 [2] : vector<2x1x16xf32> to vector<2x1xf32>
    %178 = vector.shape_cast %177 : vector<2x1xf32> to vector<2x1x1xf32>
    %179 = vector.broadcast %178 : vector<2x1x1xf32> to vector<2x1x16xf32>
    %180 = arith.subf %176, %179 : vector<2x1x16xf32>
    %181 = math.exp %180 : vector<2x1x16xf32>
    %cst_67 = arith.constant dense<0.000000e+00> : vector<2x1xf32>
    %182 = vector.multi_reduction <add>, %181, %cst_67 [2] : vector<2x1x16xf32> to vector<2x1xf32>
    %183 = vector.shape_cast %182 : vector<2x1xf32> to vector<2x1x1xf32>
    %184 = tpu.reciprocal %183 {approx = true} : vector<2x1x1xf32> -> vector<2x1x1xf32>
    %185 = vector.broadcast %184 : vector<2x1x1xf32> to vector<2x1x16xf32>
    %186 = arith.mulf %181, %185 : vector<2x1x16xf32>
    %187 = arith.truncf %186 : vector<2x1x16xf32> to vector<2x1x16xbf16>
    "tpu.trace_start"() <{level = 10 : i32, message = "bqk,bkd->bqd"}> : () -> ()
    %cst_68 = arith.constant dense<0.000000e+00> : vector<2x1x8xf32>
    %188 = tpu.matmul %187, %169, %cst_68 {dimension_numbers = #tpu.dot_dimension_numbers<[2], [1], [1], [2], [0, 0, 0, 1, 1, 2], [0], [0]>} : vector<2x1x16xbf16>, vector<2x16x8xbf16>, vector<2x1x8xf32> -> vector<2x1x8xf32>
    "tpu.trace_stop"() : () -> ()
    %189 = vector.extract_strided_slice %61 {offsets = [0, 0, 40], sizes = [2, 1, 8], strides = [1, 1, 1]} : vector<2x1x64xf32> to vector<2x1x8xf32>
    %190 = arith.truncf %189 : vector<2x1x8xf32> to vector<2x1x8xbf16>
    %191 = vector.extract_strided_slice %62 {offsets = [0, 0, 40], sizes = [2, 16, 8], strides = [1, 1, 1]} : vector<2x16x64xf32> to vector<2x16x8xf32>
    %192 = arith.truncf %191 : vector<2x16x8xf32> to vector<2x16x8xbf16>
    %193 = vector.extract_strided_slice %63 {offsets = [0, 0, 40], sizes = [2, 16, 8], strides = [1, 1, 1]} : vector<2x16x64xf32> to vector<2x16x8xf32>
    %194 = arith.truncf %193 : vector<2x16x8xf32> to vector<2x16x8xbf16>
    "tpu.trace_start"() <{level = 10 : i32, message = "bqd,bkd->bqk"}> : () -> ()
    %cst_69 = arith.constant dense<0.000000e+00> : vector<2x1x16xf32>
    %195 = tpu.matmul %190, %192, %cst_69 {dimension_numbers = #tpu.dot_dimension_numbers<[2], [2], [1], [1], [0, 0, 0, 1, 1, 1], [0], [0]>} : vector<2x1x8xbf16>, vector<2x16x8xbf16>, vector<2x1x16xf32> -> vector<2x1x16xf32>
    "tpu.trace_stop"() : () -> ()
    %cst_70 = arith.constant 0.353553385 : f32
    %196 = vector.broadcast %cst_70 : f32 to vector<2x1x16xf32>
    %197 = arith.mulf %196, %195 : vector<2x1x16xf32>
    %cst_71 = arith.constant 0.000000e+00 : f32
    %198 = vector.broadcast %cst_71 : f32 to vector<2x1x16xf32>
    %199 = arith.cmpf ogt, %50, %198 : vector<2x1x16xf32>
    %cst_72 = arith.constant -1.000000e+08 : f32
    %200 = vector.broadcast %cst_72 : f32 to vector<2x1x16xf32>
    %201 = arith.select %199, %200, %197 : vector<2x1x16xi1>, vector<2x1x16xf32>
    %cst_73 = arith.constant dense<0xFF800000> : vector<2x1xf32>
    %202 = vector.multi_reduction <maximumf>, %201, %cst_73 [2] : vector<2x1x16xf32> to vector<2x1xf32>
    %203 = vector.shape_cast %202 : vector<2x1xf32> to vector<2x1x1xf32>
    %204 = vector.broadcast %203 : vector<2x1x1xf32> to vector<2x1x16xf32>
    %205 = arith.subf %201, %204 : vector<2x1x16xf32>
    %206 = math.exp %205 : vector<2x1x16xf32>
    %cst_74 = arith.constant dense<0.000000e+00> : vector<2x1xf32>
    %207 = vector.multi_reduction <add>, %206, %cst_74 [2] : vector<2x1x16xf32> to vector<2x1xf32>
    %208 = vector.shape_cast %207 : vector<2x1xf32> to vector<2x1x1xf32>
    %209 = tpu.reciprocal %208 {approx = true} : vector<2x1x1xf32> -> vector<2x1x1xf32>
    %210 = vector.broadcast %209 : vector<2x1x1xf32> to vector<2x1x16xf32>
    %211 = arith.mulf %206, %210 : vector<2x1x16xf32>
    %212 = arith.truncf %211 : vector<2x1x16xf32> to vector<2x1x16xbf16>
    "tpu.trace_start"() <{level = 10 : i32, message = "bqk,bkd->bqd"}> : () -> ()
    %cst_75 = arith.constant dense<0.000000e+00> : vector<2x1x8xf32>
    %213 = tpu.matmul %212, %194, %cst_75 {dimension_numbers = #tpu.dot_dimension_numbers<[2], [1], [1], [2], [0, 0, 0, 1, 1, 2], [0], [0]>} : vector<2x1x16xbf16>, vector<2x16x8xbf16>, vector<2x1x8xf32> -> vector<2x1x8xf32>
    "tpu.trace_stop"() : () -> ()
    %214 = vector.extract_strided_slice %61 {offsets = [0, 0, 48], sizes = [2, 1, 8], strides = [1, 1, 1]} : vector<2x1x64xf32> to vector<2x1x8xf32>
    %215 = arith.truncf %214 : vector<2x1x8xf32> to vector<2x1x8xbf16>
    %216 = vector.extract_strided_slice %62 {offsets = [0, 0, 48], sizes = [2, 16, 8], strides = [1, 1, 1]} : vector<2x16x64xf32> to vector<2x16x8xf32>
    %217 = arith.truncf %216 : vector<2x16x8xf32> to vector<2x16x8xbf16>
    %218 = vector.extract_strided_slice %63 {offsets = [0, 0, 48], sizes = [2, 16, 8], strides = [1, 1, 1]} : vector<2x16x64xf32> to vector<2x16x8xf32>
    %219 = arith.truncf %218 : vector<2x16x8xf32> to vector<2x16x8xbf16>
    "tpu.trace_start"() <{level = 10 : i32, message = "bqd,bkd->bqk"}> : () -> ()
    %cst_76 = arith.constant dense<0.000000e+00> : vector<2x1x16xf32>
    %220 = tpu.matmul %215, %217, %cst_76 {dimension_numbers = #tpu.dot_dimension_numbers<[2], [2], [1], [1], [0, 0, 0, 1, 1, 1], [0], [0]>} : vector<2x1x8xbf16>, vector<2x16x8xbf16>, vector<2x1x16xf32> -> vector<2x1x16xf32>
    "tpu.trace_stop"() : () -> ()
    %cst_77 = arith.constant 0.353553385 : f32
    %221 = vector.broadcast %cst_77 : f32 to vector<2x1x16xf32>
    %222 = arith.mulf %221, %220 : vector<2x1x16xf32>
    %cst_78 = arith.constant 0.000000e+00 : f32
    %223 = vector.broadcast %cst_78 : f32 to vector<2x1x16xf32>
    %224 = arith.cmpf ogt, %50, %223 : vector<2x1x16xf32>
    %cst_79 = arith.constant -1.000000e+08 : f32
    %225 = vector.broadcast %cst_79 : f32 to vector<2x1x16xf32>
    %226 = arith.select %224, %225, %222 : vector<2x1x16xi1>, vector<2x1x16xf32>
    %cst_80 = arith.constant dense<0xFF800000> : vector<2x1xf32>
    %227 = vector.multi_reduction <maximumf>, %226, %cst_80 [2] : vector<2x1x16xf32> to vector<2x1xf32>
    %228 = vector.shape_cast %227 : vector<2x1xf32> to vector<2x1x1xf32>
    %229 = vector.broadcast %228 : vector<2x1x1xf32> to vector<2x1x16xf32>
    %230 = arith.subf %226, %229 : vector<2x1x16xf32>
    %231 = math.exp %230 : vector<2x1x16xf32>
    %cst_81 = arith.constant dense<0.000000e+00> : vector<2x1xf32>
    %232 = vector.multi_reduction <add>, %231, %cst_81 [2] : vector<2x1x16xf32> to vector<2x1xf32>
    %233 = vector.shape_cast %232 : vector<2x1xf32> to vector<2x1x1xf32>
    %234 = tpu.reciprocal %233 {approx = true} : vector<2x1x1xf32> -> vector<2x1x1xf32>
    %235 = vector.broadcast %234 : vector<2x1x1xf32> to vector<2x1x16xf32>
    %236 = arith.mulf %231, %235 : vector<2x1x16xf32>
    %237 = arith.truncf %236 : vector<2x1x16xf32> to vector<2x1x16xbf16>
    "tpu.trace_start"() <{level = 10 : i32, message = "bqk,bkd->bqd"}> : () -> ()
    %cst_82 = arith.constant dense<0.000000e+00> : vector<2x1x8xf32>
    %238 = tpu.matmul %237, %219, %cst_82 {dimension_numbers = #tpu.dot_dimension_numbers<[2], [1], [1], [2], [0, 0, 0, 1, 1, 2], [0], [0]>} : vector<2x1x16xbf16>, vector<2x16x8xbf16>, vector<2x1x8xf32> -> vector<2x1x8xf32>
    "tpu.trace_stop"() : () -> ()
    %239 = vector.extract_strided_slice %61 {offsets = [0, 0, 56], sizes = [2, 1, 8], strides = [1, 1, 1]} : vector<2x1x64xf32> to vector<2x1x8xf32>
    %240 = arith.truncf %239 : vector<2x1x8xf32> to vector<2x1x8xbf16>
    %241 = vector.extract_strided_slice %62 {offsets = [0, 0, 56], sizes = [2, 16, 8], strides = [1, 1, 1]} : vector<2x16x64xf32> to vector<2x16x8xf32>
    %242 = arith.truncf %241 : vector<2x16x8xf32> to vector<2x16x8xbf16>
    %243 = vector.extract_strided_slice %63 {offsets = [0, 0, 56], sizes = [2, 16, 8], strides = [1, 1, 1]} : vector<2x16x64xf32> to vector<2x16x8xf32>
    %244 = arith.truncf %243 : vector<2x16x8xf32> to vector<2x16x8xbf16>
    "tpu.trace_start"() <{level = 10 : i32, message = "bqd,bkd->bqk"}> : () -> ()
    %cst_83 = arith.constant dense<0.000000e+00> : vector<2x1x16xf32>
    %245 = tpu.matmul %240, %242, %cst_83 {dimension_numbers = #tpu.dot_dimension_numbers<[2], [2], [1], [1], [0, 0, 0, 1, 1, 1], [0], [0]>} : vector<2x1x8xbf16>, vector<2x16x8xbf16>, vector<2x1x16xf32> -> vector<2x1x16xf32>
    "tpu.trace_stop"() : () -> ()
    %cst_84 = arith.constant 0.353553385 : f32
    %246 = vector.broadcast %cst_84 : f32 to vector<2x1x16xf32>
    %247 = arith.mulf %246, %245 : vector<2x1x16xf32>
    %cst_85 = arith.constant 0.000000e+00 : f32
    %248 = vector.broadcast %cst_85 : f32 to vector<2x1x16xf32>
    %249 = arith.cmpf ogt, %50, %248 : vector<2x1x16xf32>
    %cst_86 = arith.constant -1.000000e+08 : f32
    %250 = vector.broadcast %cst_86 : f32 to vector<2x1x16xf32>
    %251 = arith.select %249, %250, %247 : vector<2x1x16xi1>, vector<2x1x16xf32>
    %cst_87 = arith.constant dense<0xFF800000> : vector<2x1xf32>
    %252 = vector.multi_reduction <maximumf>, %251, %cst_87 [2] : vector<2x1x16xf32> to vector<2x1xf32>
    %253 = vector.shape_cast %252 : vector<2x1xf32> to vector<2x1x1xf32>
    %254 = vector.broadcast %253 : vector<2x1x1xf32> to vector<2x1x16xf32>
    %255 = arith.subf %251, %254 : vector<2x1x16xf32>
    %256 = math.exp %255 : vector<2x1x16xf32>
    %cst_88 = arith.constant dense<0.000000e+00> : vector<2x1xf32>
    %257 = vector.multi_reduction <add>, %256, %cst_88 [2] : vector<2x1x16xf32> to vector<2x1xf32>
    %258 = vector.shape_cast %257 : vector<2x1xf32> to vector<2x1x1xf32>
    %259 = tpu.reciprocal %258 {approx = true} : vector<2x1x1xf32> -> vector<2x1x1xf32>
    %260 = vector.broadcast %259 : vector<2x1x1xf32> to vector<2x1x16xf32>
    %261 = arith.mulf %256, %260 : vector<2x1x16xf32>
    %262 = arith.truncf %261 : vector<2x1x16xf32> to vector<2x1x16xbf16>
    "tpu.trace_start"() <{level = 10 : i32, message = "bqk,bkd->bqd"}> : () -> ()
    %cst_89 = arith.constant dense<0.000000e+00> : vector<2x1x8xf32>
    %263 = tpu.matmul %262, %244, %cst_89 {dimension_numbers = #tpu.dot_dimension_numbers<[2], [1], [1], [2], [0, 0, 0, 1, 1, 2], [0], [0]>} : vector<2x1x16xbf16>, vector<2x16x8xbf16>, vector<2x1x8xf32> -> vector<2x1x8xf32>
    "tpu.trace_stop"() : () -> ()
    %264 = tpu.concatenate %88, %113, %138, %163, %188, %213, %238, %263 in 2 : vector<2x1x8xf32>, vector<2x1x8xf32>, vector<2x1x8xf32>, vector<2x1x8xf32>, vector<2x1x8xf32>, vector<2x1x8xf32>, vector<2x1x8xf32>, vector<2x1x8xf32> -> vector<2x1x64xf32>
    %265 = vector.shape_cast %264 : vector<2x1x64xf32> to vector<2x64xf32>
    %266 = arith.truncf %265 : vector<2x64xf32> to vector<2x64xbf16>
    %cst_90 = arith.constant dense<0.000000e+00> : vector<2x64xf32>
    %267 = tpu.matmul %266, %54, %cst_90 {dimension_numbers = #tpu.dot_dimension_numbers<[1], [0], [0], [1], [0, 0, 1, 1], [], []>} : vector<2x64xbf16>, vector<64x64xbf16>, vector<2x64xf32> -> vector<2x64xf32>
    %268 = arith.addf %267, %0 : vector<2x64xf32>
    %c0_91 = arith.constant 0 : index
    %c0_92 = arith.constant 0 : index
    %269 = vector.load %arg12[%c0_91, %c0_92] : memref<1x64xf32, #tpu.memory_space<vmem>>, vector<1x64xf32>
    %c0_93 = arith.constant 0 : index
    %c0_94 = arith.constant 0 : index
    %270 = vector.load %arg13[%c0_93, %c0_94] : memref<1x64xf32, #tpu.memory_space<vmem>>, vector<1x64xf32>
    %cst_95 = arith.constant dense<0.000000e+00> : vector<2xf32>
    %271 = vector.multi_reduction <add>, %268, %cst_95 [1] : vector<2x64xf32> to vector<2xf32>
    %272 = vector.shape_cast %271 : vector<2xf32> to vector<2x1xf32>
    %cst_96 = arith.constant 6.400000e+01 : f32
    %273 = vector.broadcast %cst_96 : f32 to vector<2x1xf32>
    %274 = arith.divf %272, %273 : vector<2x1xf32>
    %275 = vector.broadcast %274 : vector<2x1xf32> to vector<2x64xf32>
    %276 = arith.subf %268, %275 : vector<2x64xf32>
    %277 = arith.mulf %276, %276 : vector<2x64xf32>
    %cst_97 = arith.constant dense<0.000000e+00> : vector<2xf32>
    %278 = vector.multi_reduction <add>, %277, %cst_97 [1] : vector<2x64xf32> to vector<2xf32>
    %279 = vector.shape_cast %278 : vector<2xf32> to vector<2x1xf32>
    %cst_98 = arith.constant 6.400000e+01 : f32
    %280 = vector.broadcast %cst_98 : f32 to vector<2x1xf32>
    %281 = arith.divf %279, %280 : vector<2x1xf32>
    %282 = vector.broadcast %274 : vector<2x1xf32> to vector<2x64xf32>
    %283 = arith.subf %268, %282 : vector<2x64xf32>
    %cst_99 = arith.constant 9.99999974E-6 : f32
    %284 = vector.broadcast %cst_99 : f32 to vector<2x1xf32>
    %285 = arith.addf %281, %284 : vector<2x1xf32>
    %286 = math.rsqrt %285 : vector<2x1xf32>
    %287 = vector.broadcast %286 : vector<2x1xf32> to vector<2x64xf32>
    %288 = arith.mulf %283, %287 : vector<2x64xf32>
    %289 = vector.broadcast %269 : vector<1x64xf32> to vector<2x64xf32>
    %290 = arith.mulf %288, %289 : vector<2x64xf32>
    %291 = vector.broadcast %270 : vector<1x64xf32> to vector<2x64xf32>
    %292 = arith.addf %290, %291 : vector<2x64xf32>
    %c0_100 = arith.constant 0 : index
    %c0_101 = arith.constant 0 : index
    %293 = vector.load %arg14[%c0_100, %c0_101] : memref<64x512xbf16, #tpu.memory_space<vmem>>, vector<64x512xbf16>
    %c0_102 = arith.constant 0 : index
    %c0_103 = arith.constant 0 : index
    %294 = vector.load %arg15[%c0_102, %c0_103] : memref<1x512xf32, #tpu.memory_space<vmem>>, vector<1x512xf32>
    %c0_104 = arith.constant 0 : index
    %c0_105 = arith.constant 0 : index
    %295 = vector.load %arg16[%c0_104, %c0_105] : memref<512x64xbf16, #tpu.memory_space<vmem>>, vector<512x64xbf16>
    %c0_106 = arith.constant 0 : index
    %c0_107 = arith.constant 0 : index
    %296 = vector.load %arg17[%c0_106, %c0_107] : memref<1x64xf32, #tpu.memory_space<vmem>>, vector<1x64xf32>
    %297 = arith.truncf %292 : vector<2x64xf32> to vector<2x64xbf16>
    %cst_108 = arith.constant dense<0.000000e+00> : vector<2x512xf32>
    %298 = tpu.matmul %297, %293, %cst_108 {dimension_numbers = #tpu.dot_dimension_numbers<[1], [0], [0], [1], [0, 0, 1, 1], [], []>} : vector<2x64xbf16>, vector<64x512xbf16>, vector<2x512xf32> -> vector<2x512xf32>
    %299 = vector.broadcast %294 : vector<1x512xf32> to vector<2x512xf32>
    %300 = arith.addf %298, %299 : vector<2x512xf32>
    %cst_109 = arith.constant 0.000000e+00 : f32
    %301 = vector.broadcast %cst_109 : f32 to vector<2x512xf32>
    %302 = arith.maximumf %300, %301 : vector<2x512xf32>
    %303 = arith.truncf %302 : vector<2x512xf32> to vector<2x512xbf16>
    %cst_110 = arith.constant dense<0.000000e+00> : vector<2x64xf32>
    %304 = tpu.matmul %303, %295, %cst_110 {dimension_numbers = #tpu.dot_dimension_numbers<[1], [0], [0], [1], [0, 0, 1, 1], [], []>} : vector<2x512xbf16>, vector<512x64xbf16>, vector<2x64xf32> -> vector<2x64xf32>
    %305 = vector.broadcast %296 : vector<1x64xf32> to vector<2x64xf32>
    %306 = arith.addf %304, %305 : vector<2x64xf32>
    %307 = arith.addf %306, %268 : vector<2x64xf32>
    %308 = tpu.concatenate %307, %0 in 1 : vector<2x64xf32>, vector<2x64xf32> -> vector<2x128xf32>
    %309 = arith.truncf %308 : vector<2x128xf32> to vector<2x128xbf16>
    %c0_111 = arith.constant 0 : index
    %c0_112 = arith.constant 0 : index
    %310 = vector.load %arg18[%c0_111, %c0_112] : memref<128x64xbf16, #tpu.memory_space<vmem>>, vector<128x64xbf16>
    %cst_113 = arith.constant dense<0.000000e+00> : vector<2x64xf32>
    %311 = tpu.matmul %309, %310, %cst_113 {dimension_numbers = #tpu.dot_dimension_numbers<[1], [0], [0], [1], [0, 0, 1, 1], [], []>} : vector<2x128xbf16>, vector<128x64xbf16>, vector<2x64xf32> -> vector<2x64xf32>
    %c0_114 = arith.constant 0 : index
    %c0_115 = arith.constant 0 : index
    %312 = vector.load %arg19[%c0_114, %c0_115] : memref<1x64xf32, #tpu.memory_space<vmem>>, vector<1x64xf32>
    %313 = vector.broadcast %312 : vector<1x64xf32> to vector<2x64xf32>
    %314 = arith.addf %311, %313 : vector<2x64xf32>
    %315 = arith.truncf %314 : vector<2x64xf32> to vector<2x64xbf16>
    %c0_116 = arith.constant 0 : index
    %c0_117 = arith.constant 0 : index
    %316 = vector.load %arg20[%c0_116, %c0_117] : memref<64x64xbf16, #tpu.memory_space<vmem>>, vector<64x64xbf16>
    %cst_118 = arith.constant dense<0.000000e+00> : vector<2x64xf32>
    %317 = tpu.matmul %315, %316, %cst_118 {dimension_numbers = #tpu.dot_dimension_numbers<[1], [0], [0], [1], [0, 0, 1, 1], [], []>} : vector<2x64xbf16>, vector<64x64xbf16>, vector<2x64xf32> -> vector<2x64xf32>
    %318 = vector.shape_cast %317 : vector<2x64xf32> to vector<2x1x64xf32>
    %c0_119 = arith.constant 0 : index
    %c0_120 = arith.constant 0 : index
    %319 = vector.load %arg3[%c0_119, %c0_120] : memref<16x64xf32, #tpu.memory_space<vmem>>, vector<16x64xf32>
    %320 = arith.truncf %319 : vector<16x64xf32> to vector<16x64xbf16>
    %c0_121 = arith.constant 0 : index
    %c0_122 = arith.constant 0 : index
    %321 = vector.load %arg21[%c0_121, %c0_122] : memref<64x64xbf16, #tpu.memory_space<vmem>>, vector<64x64xbf16>
    %cst_123 = arith.constant dense<0.000000e+00> : vector<16x64xf32>
    %322 = tpu.matmul %320, %321, %cst_123 {dimension_numbers = #tpu.dot_dimension_numbers<[1], [0], [0], [1], [0, 0, 1, 1], [], []>} : vector<16x64xbf16>, vector<64x64xbf16>, vector<16x64xf32> -> vector<16x64xf32>
    %323 = vector.shape_cast %322 : vector<16x64xf32> to vector<2x8x64xf32>
    %324 = arith.truncf %318 : vector<2x1x64xf32> to vector<2x1x64xbf16>
    %325 = arith.truncf %323 : vector<2x8x64xf32> to vector<2x8x64xbf16>
    "tpu.trace_start"() <{level = 10 : i32, message = "bqd,bkd->bqk"}> : () -> ()
    %cst_124 = arith.constant dense<0.000000e+00> : vector<2x1x8xf32>
    %326 = tpu.matmul %324, %325, %cst_124 {dimension_numbers = #tpu.dot_dimension_numbers<[2], [2], [1], [1], [0, 0, 0, 1, 1, 1], [0], [0]>} : vector<2x1x64xbf16>, vector<2x8x64xbf16>, vector<2x1x8xf32> -> vector<2x1x8xf32>
    "tpu.trace_stop"() : () -> ()
    %cst_125 = arith.constant 1.250000e-01 : f32
    %327 = vector.broadcast %cst_125 : f32 to vector<2x1x8xf32>
    %328 = arith.mulf %327, %326 : vector<2x1x8xf32>
    %329 = math.tanh %328 : vector<2x1x8xf32>
    %cst_126 = arith.constant 1.000000e+01 : f32
    %330 = vector.broadcast %cst_126 : f32 to vector<2x1x8xf32>
    %331 = arith.mulf %330, %329 : vector<2x1x8xf32>
    %c0_127 = arith.constant 0 : index
    %c0_128 = arith.constant 0 : index
    %c0_129 = arith.constant 0 : index
    %332 = vector.load %arg5[%c0_127, %c0_128, %c0_129] : memref<2x1x8xf32, #tpu.memory_space<vmem>>, vector<2x1x8xf32>
    %cst_130 = arith.constant 0.000000e+00 : f32
    %333 = vector.broadcast %cst_130 : f32 to vector<2x1x8xf32>
    %334 = arith.cmpf ogt, %332, %333 : vector<2x1x8xf32>
    %cst_131 = arith.constant -1.000000e+08 : f32
    %335 = vector.broadcast %cst_131 : f32 to vector<2x1x8xf32>
    %336 = arith.select %334, %335, %331 : vector<2x1x8xi1>, vector<2x1x8xf32>
    %cst_132 = arith.constant dense<0xFF800000> : vector<2x1xf32>
    %337 = vector.multi_reduction <maximumf>, %336, %cst_132 [2] : vector<2x1x8xf32> to vector<2x1xf32>
    %338 = vector.shape_cast %337 : vector<2x1xf32> to vector<2x1x1xf32>
    %339 = vector.broadcast %338 : vector<2x1x1xf32> to vector<2x1x8xf32>
    %340 = arith.subf %336, %339 : vector<2x1x8xf32>
    %341 = math.exp %340 : vector<2x1x8xf32>
    %cst_133 = arith.constant dense<0.000000e+00> : vector<2x1xf32>
    %342 = vector.multi_reduction <add>, %341, %cst_133 [2] : vector<2x1x8xf32> to vector<2x1xf32>
    %343 = vector.shape_cast %342 : vector<2x1xf32> to vector<2x1x1xf32>
    %344 = math.log %343 : vector<2x1x1xf32>
    %345 = vector.broadcast %344 : vector<2x1x1xf32> to vector<2x1x8xf32>
    %346 = arith.subf %340, %345 : vector<2x1x8xf32>
    %347 = vector.shape_cast %346 : vector<2x1x8xf32> to vector<2x8xf32>
    %c0_134 = arith.constant 0 : index
    %c0_135 = arith.constant 0 : index
    %348 = vector.load %arg22[%c0_134, %c0_135] : memref<2x8xf32, #tpu.memory_space<vmem>>, vector<2x8xf32>
    tpu.vector_store %arg22[%c0_134, %c0_135], %347 {strides = array<i32>} : memref<2x8xf32, #tpu.memory_space<vmem>>, vector<2x8xf32>,
    return
  }
  func.func @transform_0(%arg0: i32) -> (i32, i32) {
    %c0_i32 = arith.constant 0 : i32
    %c0_i32_0 = arith.constant 0 : i32
    %c0_i32_1 = arith.constant 0 : i32
    return %c0_i32, %c0_i32_0 : i32, i32
  }
  func.func @transform_1(%arg0: i32) -> (i32, i32) {
    %c0_i32 = arith.constant 0 : i32
    %c0_i32_0 = arith.constant 0 : i32
    %c0_i32_1 = arith.constant 0 : i32
    return %c0_i32, %c0_i32_0 : i32, i32
  }
  func.func @transform_2(%arg0: i32) -> (i32, i32) {
    %c0_i32 = arith.constant 0 : i32
    %c0_i32_0 = arith.constant 0 : i32
    %c0_i32_1 = arith.constant 0 : i32
    return %c0_i32, %c0_i32_0 : i32, i32
  }
  func.func @transform_3(%arg0: i32) -> (i32, i32, i32) {
    %c0_i32 = arith.constant 0 : i32
    %c0_i32_0 = arith.constant 0 : i32
    %c0_i32_1 = arith.constant 0 : i32
    %c0_i32_2 = arith.constant 0 : i32
    return %c0_i32, %c0_i32_0, %c0_i32_1 : i32, i32, i32
  }
  func.func @transform_4(%arg0: i32) -> (i32, i32, i32) {
    %c0_i32 = arith.constant 0 : i32
    %c0_i32_0 = arith.constant 0 : i32
    %c0_i32_1 = arith.constant 0 : i32
    %c0_i32_2 = arith.constant 0 : i32
    return %c0_i32, %c0_i32_0, %c0_i32_1 : i32, i32, i32
  }
  func.func @transform_5(%arg0: i32) -> (i32, i32) {
    %c0_i32 = arith.constant 0 : i32
    %c0_i32_0 = arith.constant 0 : i32
    %c0_i32_1 = arith.constant 0 : i32
    return %c0_i32, %c0_i32_0 : i32, i32
  }
  func.func @transform_6(%arg0: i32) -> (i32, i32) {
    %c0_i32 = arith.constant 0 : i32
    %c0_i32_0 = arith.constant 0 : i32
    %c0_i32_1 = arith.constant 0 : i32
    return %c0_i32, %c0_i32_0 : i32, i32
  }
  func.func @transform_7(%arg0: i32) -> (i32, i32) {
    %c0_i32 = arith.constant 0 : i32
    %c0_i32_0 = arith.constant 0 : i32
    %c0_i32_1 = arith.constant 0 : i32
    return %c0_i32, %c0_i32_0 : i32, i32
  }
  func.func @transform_8(%arg0: i32) -> (i32, i32) {
    %c0_i32 = arith.constant 0 : i32
    %c0_i32_0 = arith.constant 0 : i32
    %c0_i32_1 = arith.constant 0 : i32
    return %c0_i32, %c0_i32_0 : i32, i32
  }
  func.func @transform_9(%arg0: i32) -> (i32, i32) {
    %c0_i32 = arith.constant 0 : i32
    %c0_i32_0 = arith.constant 0 : i32
    %c0_i32_1 = arith.constant 0 : i32
    return %c0_i32, %c0_i32_0 : i32, i32
  }
  func.func @transform_10(%arg0: i32) -> (i32, i32) {
    %c0_i32 = arith.constant 0 : i32
    %c0_i32_0 = arith.constant 0 : i32
    %c0_i32_1 = arith.constant 0 : i32
    return %c0_i32, %c0_i32_0 : i32, i32
  }
  func.func @transform_11(%arg0: i32) -> (i32, i32) {
    %c0_i32 = arith.constant 0 : i32
    %c0_i32_0 = arith.constant 0 : i32
    %c0_i32_1 = arith.constant 0 : i32
    return %c0_i32, %c0_i32_0 : i32, i32
  }
  func.func @transform_12(%arg0: i32) -> (i32, i32) {
    %c0_i32 = arith.constant 0 : i32
    %c0_i32_0 = arith.constant 0 : i32
    %c0_i32_1 = arith.constant 0 : i32
    return %c0_i32, %c0_i32_0 : i32, i32
  }
  func.func @transform_13(%arg0: i32) -> (i32, i32) {
    %c0_i32 = arith.constant 0 : i32
    %c0_i32_0 = arith.constant 0 : i32
    %c0_i32_1 = arith.constant 0 : i32
    return %c0_i32, %c0_i32_0 : i32, i32
  }
  func.func @transform_14(%arg0: i32) -> (i32, i32) {
    %c0_i32 = arith.constant 0 : i32
    %c0_i32_0 = arith.constant 0 : i32
    %c0_i32_1 = arith.constant 0 : i32
    return %c0_i32, %c0_i32_0 : i32, i32
  }
  func.func @transform_15(%arg0: i32) -> (i32, i32) {
    %c0_i32 = arith.constant 0 : i32
    %c0_i32_0 = arith.constant 0 : i32
    %c0_i32_1 = arith.constant 0 : i32
    return %c0_i32, %c0_i32_0 : i32, i32
  }
  func.func @transform_16(%arg0: i32) -> (i32, i32) {
    %c0_i32 = arith.constant 0 : i32
    %c0_i32_0 = arith.constant 0 : i32
    %c0_i32_1 = arith.constant 0 : i32
    return %c0_i32, %c0_i32_0 : i32, i32
  }
  func.func @transform_17(%arg0: i32) -> (i32, i32) {
    %c0_i32 = arith.constant 0 : i32
    %c0_i32_0 = arith.constant 0 : i32
    %c0_i32_1 = arith.constant 0 : i32
    return %c0_i32, %c0_i32_0 : i32, i32
  }
  func.func @transform_18(%arg0: i32) -> (i32, i32) {
    %c0_i32 = arith.constant 0 : i32
    %c0_i32_0 = arith.constant 0 : i32
    %c0_i32_1 = arith.constant 0 : i32
    return %c0_i32, %c0_i32_0 : i32, i32
  }
  func.func @transform_19(%arg0: i32) -> (i32, i32) {
    %c0_i32 = arith.constant 0 : i32
    %c0_i32_0 = arith.constant 0 : i32
    %c0_i32_1 = arith.constant 0 : i32
    return %c0_i32, %c0_i32_0 : i32, i32
  }
  func.func @transform_20(%arg0: i32) -> (i32, i32) {
    %c0_i32 = arith.constant 0 : i32
    %c0_i32_0 = arith.constant 0 : i32
    %c0_i32_1 = arith.constant 0 : i32
    return %c0_i32, %c0_i32_0 : i32, i32
  }
  func.func @transform_21(%arg0: i32) -> (i32, i32) {
    %c0_i32 = arith.constant 0 : i32
    %c0_i32_0 = arith.constant 0 : i32
    %c0_i32_1 = arith.constant 0 : i32
    return %c0_i32, %c0_i32_0 : i32, i32
  }
}

</mosaic_0001>

<bundles_post_ra>
// kernel: _lambda_.2
= control target key start
LH: loop header
LB: loop body
LE: loop exit
PB: predicated region body
PF: predicated region fallthrough
CT: control target
= control target key end

     0   :  { %s6511_s0 = inlined_call_operand.vmem [shape: f32[32,4], index: 0, kind: input, shape index: {}]   ;;  %s6512_s1 = inlined_call_operand.vmem [shape: f32[4,64], index: 1, kind: input, shape index: {}]   ;;  %s6513_s2 = inlined_call_operand.vmem [shape: f32[1,64], index: 2, kind: input, shape index: {}]   ;;  %s6514_s3 = inlined_call_operand.vmem [shape: f32[2,16,16], index: 3, kind: input, shape index: {}]   ;;  %s6515_s4 = inlined_call_operand.vmem [shape: f32[6,1,64], index: 4, kind: input, shape index: {}, may-alias: {4,10}]   ;;  %s6516_s5 = inlined_call_operand.vmem [shape: f32[6,1,64], index: 5, kind: input, shape index: {}, may-alias: {5,11}]   ;;  %s6517_s6 = inlined_call_operand.vmem [shape: bf16[6,64,64], index: 6, kind: input, shape index: {}]   ;;  %s6518_s7 = inlined_call_operand.hbm [shape: bf16[6,64,64], index: 7, kind: input, shape index: {}]   ;;  %s6519_s8 = inlined_call_operand.hbm [shape: bf16[6,64,64], index: 8, kind: input, shape index: {}]   ;;  %s6520_s9 = inlined_call_operand.hbm [shape: bf16[6,64,64], index: 9, kind: input, shape index: {}]   ;;  %s6521_s10 = inlined_call_operand.vmem [shape: f32[6,1,64], index: 10, kind: input, shape index: {}, may-alias: {4,10}]   ;;  %s6522_s11 = inlined_call_operand.vmem [shape: f32[6,1,64], index: 11, kind: input, shape index: {}, may-alias: {5,11}]   ;;  %s6523_s12 = inlined_call_operand.vmem [shape: bf16[6,64,512], index: 12, kind: input, shape index: {}]   ;;  %s6524_s13 = inlined_call_operand.vmem [shape: f32[6,1,512], index: 13, kind: input, shape index: {}]   ;;  %s6525_s14 = inlined_call_operand.vmem [shape: bf16[6,512,64], index: 14, kind: input, shape index: {}]   ;;  %s6526_s15 = inlined_call_operand.vmem [shape: f32[6,1,64], index: 15, kind: input, shape index: {}]   ;;  %s6527_s16 = inlined_call_operand.vmem [shape: f32[32,64], index: 16, kind: output, shape index: {}]  }
   0x1   :  { %6541 = sst [smem:[#allocation12_spill]] %s6511_s0 }
   0x2   :  { %6542 = sst [smem:[#allocation13_spill]] %s6512_s1 }
   0x3   :  { %6543 = sst [smem:[#allocation14_spill]] %s6513_s2 }
   0x4   :  { %6544 = sst [smem:[#allocation15_spill]] %s6514_s3 }
   0x5   :  { %6545 = sst [smem:[#allocation16_spill]] %s6517_s6 }
   0x6   :  { %6546 = sst [smem:[#allocation17_spill]] %s6518_s7 }
   0x7   :  { %6547 = sst [smem:[#allocation18_spill]] %s6519_s8 }
   0x8   :  { %6548 = sst [smem:[#allocation19_spill]] %s6520_s9 }
   0x9   :  { %6549 = sst [smem:[#allocation20_spill]] %s6524_s13 }
   0xa   :  { %6550 = sst [smem:[#allocation21_spill]] %s6525_s14 }
   0xb   :  { %6551 = sst [smem:[#allocation22_spill]] %s6526_s15 }
   0xc   :  { %6552 = sst [smem:[#allocation23_spill]] %s6527_s16 }
   0xd   :  { %21 = vsyncpa [#allocation3], 0 }
   0xe   :  { %23 = vsyncpa [#allocation3 + $0x1], 0 }
   0xf   :  { %24 = vsyncpa [#allocation5], 0 }
  0x10   :  { %26 = vsyncpa [#allocation5 + $0x1], 0  ;;  %s5471_s21 = smov 0   ;;  %s5473_s22 = smov 0  }
  0x11   :  { %s5475_s23 = smov 0   ;;  %s5477_s24 = smov 0  }
  0x12 LB: > { %6553 = sst [smem:[#allocation9_spill]] %s5358_s23  ;;  %s5490_s25 = sadd.s32 4294967295, %s5362_s24   ;;  %s5362_s24 = sphi %s5477_s24, %s6585_s24   ;;  %s5358_s23 = sphi %s5475_s23, %s6587_s23   ;;  %s5354_s22 = sphi %s5473_s22, %s6589_s22   ;;  %s5350_s21 = sphi %s5471_s21, %s6588_s21  }
  0x13   : > { %s5493_s26 = sadd.s32 1, %s5362_s24   ;;  %s201_s28 = sadd.s32 1, %s5358_s23 }
  0x14   : > { %6554 = sst [smem:[#allocation10_spill]] %s5493_s26  ;;  %s198_s27 = ssub.s32 %s5362_s24, %s5493_s26 }
  0x15   : > { %p199_p0 = scmp.eq.s32.totalorder %s198_s27, 0  ;;  %p208_p1 = scmp.ne.s32.totalorder %s5358_s23, %s5354_s22 }
  0x16   : > { %p209_p2 = scmp.eq.s32.totalorder %s5362_s24, 0  ;;  %p214_p3 = scmp.ne.s32.totalorder %s5354_s22, %s5350_s21 }
  0x17   : > { %s5503_s29 = scalar_select %p199_p0, %s5358_s23, %s201_s28  }
  0x18   : > { %p210_p4 = por %p209_p2, %p208_p1  ;;  %p215_p5 = scmp.eq.s32.totalorder %s5490_s25, 0 }
  0x19   : > { %6555 = sst [smem:[#allocation11_spill]] %s5503_s29  ;;  %p4892_p6 = scmp.lt.s32.totalorder %s5362_s24, 6 }
  0x1a   : > { %p5507_p7 = por %p215_p5, %p214_p3  ;;  %s6529_s0 = sand.u32 1, %s5358_s23  }
  0x1b   : > { %s5514_s17 = sshll.u32 %s6529_s0, 5  ;;  %s5517_s18 = sshll.u32 %s5362_s24, 9 }
  0x1c   : > { %s6556_s30 = scalar_select %p5507_p7, 1, 0 }
  0x1d   : > { %p5519_p8 = pnand %p4892_p6, %p210_p4  ;;  %s520_s20 = sand.u32 1, %s5362_s24  }
  0x1e   : > { %s6558_s8 = sld [smem:[#allocation18_spill]]  ;;  %s524_s0 = scalar_lea.vmem [#allocation4], %s5514_s17 }
  0x1f   : > { %s531_s29 = sshll.u32 %s524_s0, 4  ;;  %s5535_s26 = scalar_lea.sflag [#allocation5], %s520_s20  ;;  %s5532_s29 = int_to_ptr.vmem [resolvable:$true] %s531_s29 }
  0x20   : > { %p5541_p12 = pneg %p5519_p8 }
  0x24   : > { %s5528_s28 = scalar_lea.hbm %s6558_s8, %s5517_s18  ;;  %s5239_s0 = scalar_lea.hbm %s6558_s8, 3072 }
  0x25   : > { %s5234_s3 = scalar_lea.hbm %s5528_s28, 512  ;;  %p5240_p1 = scmp.lt.u32.totalorder %s5528_s28, %s6558_s8 }
  0x26   : > { %p5235_p11 = scmp.ne.s32.totalorder %s5528_s28, %s5234_s3  ;;  %p5241_p2 = scmp.lt.u32.totalorder %s5239_s0, %s5234_s3 }
  0x27   : > { %p5243_p4 = scmp.lt.u32.totalorder %s5234_s3, %s5528_s28 }
  0x28   : > { %p5237_p13 = pnand %p5541_p12, %p5235_p11  ;;  %p5242_p3 = por %p5241_p2, %p5240_p1 }
  0x2a   : > { %p5238_p0 = pneg %p5237_p13  ;;  %p5244_p5 = por %p5243_p4, %p5242_p3 }
  0x2c   : > { %p5245_p6 = pnand %p5244_p5, %p5238_p0 }
  0x2e   : > { %5248 = shalt.err (!%p5245_p6)
}
  0x2f   : > { %s5249_s20 = scalar_lea.vmem %s5532_s29, 512  ;;  %s5364_s21 = smov [#allocation4]  }
  0x30   : > { %p5250_p11 = scmp.ne.s32.totalorder %s5532_s29, %s5249_s20  ;;  %s5254_s27 = sshll.u32 %s5364_s21, 4  ;;  %s5255_s27 = int_to_ptr.vmem [resolvable:$false] %s5254_s27 }
  0x31   : > { %s5256_s1 = scalar_lea.vmem %s5255_s27, 1024  ;;  %p5257_p10 = scmp.lt.s32.totalorder %s5532_s29, %s5255_s27 }
  0x32   : > { %p5252_p13 = pnand %p5250_p11, %p5541_p12  ;;  %p5258_p7 = scmp.lt.s32.totalorder %s5256_s1, %s5249_s20 }
  0x34   : > { %p5253_p9 = pneg %p5252_p13  ;;  %p5259_p1 = por %p5258_p7, %p5257_p10 }
  0x36   : > { %p5260_p2 = pnand %p5259_p1, %p5253_p9 }
  0x38   : > { %5263 = shalt.err (!%p5260_p2)
}
  0x39   : > { %s6536_s2 = smov 64   ;;  %s6538_s3 = smov 4  }
  0x3a   : > { %4888 = dma.hbm_to_vmem [thread:$0]  (!%p5519_p8), %s5528_s28, 512, %s5532_s29, %s5535_s26, %s6536_s2, %s6536_s2, %s6538_s3  }
  0x3b   : > { %p6560_p7 = scmp.lt.s32.totalorder %s5362_s24, 7  ;;  %p6561_p9 = scmp.ge.s32.totalorder %s5362_s24, 1 }
  0x3c   : > { %s6563_s7 = sld [smem:[#allocation17_spill]]  ;;  %s503_s1 = scalar_lea.vmem [#allocation2], %s5514_s17 }
  0x3d   : > { %p5572_p10 = pnand %p6561_p9, %p6560_p7  ;;  %s510_s8 = sshll.u32 %s503_s1, 4  ;;  %s5583_s8 = int_to_ptr.vmem [resolvable:$true] %s510_s8 }
  0x3e   : > { %s6564_s9 = sld [smem:[#allocation19_spill]]  ;;  %s6565_s2 = sand.u32 1, %s5358_s23  }
  0x3f   : > { %s6562_s0 = scalar_select %p5572_p10, 1, 0 }
  0x40   : > { %s5593_s3 = scalar_lea.sflag [#allocation3], %s6565_s2 }
  0x42   : > { %s5580_s27 = scalar_lea.hbm %s6563_s7, %s5517_s18  ;;  %s5269_s15 = scalar_lea.hbm %s6563_s7, 3072 }
  0x43   : > { %s5264_s14 = scalar_lea.hbm %s5580_s27, 512  ;;  %p5270_p5 = scmp.lt.u32.totalorder %s5580_s27, %s6563_s7 }
  0x44   : > { %s5589_s24 = scalar_lea.hbm %s6564_s9, %s5517_s18  ;;  %p5265_p0 = scmp.ne.s32.totalorder %s5580_s27, %s5264_s14 }
  0x45   : > { %p5271_p6 = scmp.lt.u32.totalorder %s5269_s15, %s5264_s14  ;;  %p5273_p13 = scmp.lt.u32.totalorder %s5264_s14, %s5580_s27 }
  0x46   : > { %p5267_p3 = pnand %p5265_p0, %p5541_p12 }
  0x47   : > { %p5272_p11 = por %p5271_p6, %p5270_p5 }
  0x48   : > { %p5268_p4 = pneg %p5267_p3 }
  0x49   : > { %p5274_p1 = por %p5273_p13, %p5272_p11 }
  0x4b   : > { %p5275_p2 = pnand %p5274_p1, %p5268_p4 }
  0x4d   : > { %5278 = shalt.err (!%p5275_p2)
}
  0x4e   : > { %s5279_s18 = scalar_lea.vmem %s5583_s8, 512  ;;  %s5367_s2 = smov [#allocation2]  }
  0x4f   : > { %p5280_p7 = scmp.ne.s32.totalorder %s5583_s8, %s5279_s18  ;;  %s5284_s29 = sshll.u32 %s5367_s2, 4  ;;  %s5285_s29 = int_to_ptr.vmem [resolvable:$false] %s5284_s29 }
  0x50   : > { %s5286_s13 = scalar_lea.vmem %s5285_s29, 1024  ;;  %p5287_p3 = scmp.lt.s32.totalorder %s5583_s8, %s5285_s29 }
  0x51   : > { %p5282_p9 = pnand %p5280_p7, %p5541_p12  ;;  %p5288_p10 = scmp.lt.s32.totalorder %s5286_s13, %s5279_s18 }
  0x53   : > { %p5283_p0 = pneg %p5282_p9  ;;  %p5289_p5 = por %p5288_p10, %p5287_p3 }
  0x55   : > { %p5290_p6 = pnand %p5289_p5, %p5283_p0 }
  0x57   : > { %5293 = shalt.err (!%p5290_p6)
}
  0x58   : > { %s6566_s14 = smov 4   ;;  %s6567_s15 = smov 64  }
  0x59   : > { %4885 = dma.hbm_to_vmem [thread:$0]  (!%p5519_p8), %s5580_s27, 512, %s5583_s8, %s5593_s3, %s6567_s15, %s6567_s15, %s6566_s14  }
  0x5a   : > { %s545_s28 = scalar_lea.vmem [#allocation6], %s5514_s17  ;;  %s5294_s21 = scalar_lea.hbm %s5589_s24, 512 }
  0x5b   : > { %s552_s20 = sshll.u32 %s545_s28, 4  ;;  %p5295_p10 = scmp.ne.s32.totalorder %s5589_s24, %s5294_s21  ;;  %s5621_s20 = int_to_ptr.vmem [resolvable:$true] %s552_s20 }
  0x5c   : > { %s5299_s2 = scalar_lea.hbm %s6564_s9, 3072  ;;  %p5300_p13 = scmp.lt.u32.totalorder %s5589_s24, %s6564_s9 }
  0x5d   : > { %p5297_p4 = pnand %p5295_p10, %p5541_p12  ;;  %p5301_p1 = scmp.lt.u32.totalorder %s5299_s2, %s5294_s21 }
  0x5e   : > { %p5303_p7 = scmp.lt.u32.totalorder %s5294_s21, %s5589_s24 }
  0x5f   : > { %p5298_p11 = pneg %p5297_p4  ;;  %p5302_p2 = por %p5301_p1, %p5300_p13 }
  0x61   : > { %p5304_p9 = por %p5303_p7, %p5302_p2 }
  0x63   : > { %p5305_p0 = pnand %p5304_p9, %p5298_p11 }
  0x65   : > { %5308 = shalt.err (!%p5305_p0)
}
  0x66   : > { %s5309_s8 = scalar_lea.vmem %s5621_s20, 512  ;;  %s5368_s17 = smov [#allocation6]  }
  0x67   : > { %p5310_p3 = scmp.ne.s32.totalorder %s5621_s20, %s5309_s8  ;;  %s5314_s3 = sshll.u32 %s5368_s17, 4  ;;  %s5315_s3 = int_to_ptr.vmem [resolvable:$false] %s5314_s3 }
  0x68   : > { %s5316_s27 = scalar_lea.vmem %s5315_s3, 1024  ;;  %p5317_p10 = scmp.lt.s32.totalorder %s5621_s20, %s5315_s3 }
  0x69   : > { %p5312_p5 = pnand %p5310_p3, %p5541_p12  ;;  %p5318_p4 = scmp.lt.s32.totalorder %s5316_s27, %s5309_s8 }
  0x6b   : > { %p5313_p6 = pneg %p5312_p5  ;;  %p5319_p13 = por %p5318_p4, %p5317_p10 }
  0x6d   : > { %p5320_p1 = pnand %p5319_p13, %p5313_p6 }
  0x6f   : > { %5323 = shalt.err (!%p5320_p1)
}
  0x70   : > { %4891 = dma.hbm_to_vmem [thread:$0]  (!%p5519_p8), %s5589_s24, 512, %s5621_s20, %s5535_s26, %s6567_s15, %s6567_s15, %s6566_s14  }
  0x71   : > { %p6568_p12 = scmp.ne.s32.totalorder %s6562_s0, 0 }
  0x72   : > { %s607_s16 = sand.u32 (!%p6568_p12), 1, %s5354_s22   ;;  %p6569_p11 = scmp.ne.s32.totalorder (!%p6568_p12), %s6556_s30, 0 }
  0x73   : > { %605 = sbr.rel (%p6568_p12) target bundleno = 6769 (0x1a71), region = 84  ;;  %s4339_s28 = sshll.u32 (!%p6568_p12), %s607_s16, 5 }
  0x74   : > { %s608_s21 = scalar_lea.sflag (!%p6568_p12), [#allocation3], %s607_s16  ;;  %s5651_s1 = scalar_lea.vmem (!%p6568_p12), [#allocation2], %s4339_s28 }
  0x7a   : > { %5341 = dma.done.wait (%p6569_p11), %s608_s21, 512  }
  0x7b   : > { %5343 = vsyncadd (%p6569_p11), %s608_s21, 4294966784  ;;  %s616_s19 = sand.u32 1, %s5490_s25   ;;  %s5658_s26 = scalar_lea.vmem [#allocation4], %s4339_s28 }
  0x7c   : > { %s617_s18 = scalar_lea.sflag [#allocation5], %s616_s19 }
  0x7d   : > { %5345 = dma.done.wait (%p6569_p11), %s617_s18, 1024  }
  0x7e   : > { %5347 = vsyncadd (%p6569_p11), %s617_s18, 4294966272  ;;  %p717_p8 = scmp.lt.s32.totalorder %s5490_s25, 5  ;;  %s6570_s6 = sld [smem:[#allocation16_spill]] }
  0x7f   : > { %s6571_s13 = sld [smem:[#allocation20_spill]]  ;;  %s6572_s27 = sld [smem:[#allocation22_spill]] }
  0x80   : > { %s5666_s0 = scalar_select %p717_p8, %s5490_s25, 5 }
  0x81   : > { %s6573_s19 = sld [smem:[#allocation21_spill]]  ;;  %s5712_s23 = scalar_lea.vmem [#allocation6], %s4339_s28 }
  0x82   : > { %s4474_s29 = sshll.u32 %s5666_s0, 5  ;;  %s4475_s24 = sshll.u32 %s5666_s0, 7 }
  0x83   : > { %s4346_s14 = sshll.u32 %s5666_s0, 2  ;;  %s5695_s30 = scalar_lea.vmem %s6523_s12, %s4475_s24 }
  0x84   : > { %s5684_s16 = scalar_lea.vmem %s6570_s6, %s4474_s29  ;;  %s4476_s17 = sshll.u32 %s5666_s0, 8 }
  0x85   : > { %s5700_s8 = scalar_lea.vmem %s6571_s13, %s4346_s14  ;;  %s750_s6 = scalar_lea.vmem %s6572_s27, %s5666_s0 }
  0x86   : > { %p4349_p2 = scmp.ne.s32.totalorder %s5490_s25, 0 }
  0x87   : > { %s5710_s18 = scalar_lea.vmem %s6573_s19, %s4476_s17  ;;  %s6574_s2 = sld [smem:[#allocation13_spill]] (!%p4349_p2)  ;;  %vm781_vm0 = vcmask (!%p4349_p2), 1043456   ;;  %vm768_vm1 = vcmask (!%p4349_p2), 31744   ;;  %vm870_vm2 = vcmask (!%p4349_p2), 523264  }
  0x88   : > { %755 = sbr.rel (%p4349_p2) target bundleno = 361 (0x169), region = 100  ;;  %s6575_s20 = sld [smem:[#allocation12_spill]] (!%p4349_p2) }
  0x89   : > { %s6576_s21 = sld [smem:[#allocation14_spill]] (!%p4349_p2)  ;;  %s6577_s15 = sld [smem:[#allocation23_spill]] (!%p4349_p2) }
  0x8d   : > { %v760_v0 = vld [vmem:[%s6574_s2] sm:$0xf] (!%p4349_p2) }
  0x8e   : > { %v756_v1 = vld [vmem:[%s6575_s20] sm:$0xff] (!%p4349_p2)  ;;  %v758_v2 = vld [vmem:[%s6575_s20 + $0x10] sm:$0xff] (!%p4349_p2)  ;;  %4626 = vmatprep.subr.msk.mxu0 (!%p4349_p2), %vm781_vm0, %v760_v0  ;;  %4874 = vmatprep.subr.msk.mxu1 (!%p4349_p2), %vm781_vm0, %v760_v0  ;;  %v757_v3 = vld [vmem:[%s6575_s20 + $0x8] sm:$0xff] (!%p4349_p2) }
  0x8f   : > { %v759_v4 = vld [vmem:[%s6575_s20 + $0x18] sm:$0xff]  ;;  %4627 = vmatpush3.msk.msra.mxu0 %vm781_vm0, %v760_v0  ;;  %4875 = vmatpush3.msk.msra.mxu1 %vm781_vm0, %v760_v0  ;;  %v4350_v5 = vld [vmem:[%s6576_s21] ss:$0 sm:$0xff] }
  0x90   : > { %4628 = vmatprep.mubr.msk.f32.mxu0 %vm768_vm1, %v756_v1  ;;  %4631 = vmatprep.mubr.msk.f32.mxu1 %vm768_vm1, %v758_v2 }
  0x91   : > { %4629 = vmatmul.mubr.msk.f32.vlgmr.msra.gmra.mrb[0].mxu0 %vm768_vm1, %v757_v3  ;;  %4632 = vmatmul.mubr.msk.f32.vlgmr.msra.gmra.mrb[0].mxu1 %vm768_vm1, %v759_v4 }
 0x164   : > { %v4630_v6 = vpop.f32.mrb[0].mxu0  ;;  %v4633_v7 = vpop.f32.mrb[0].mxu1 }
 0x165   : > { %v857_v8 = vadd.f32 %v4630_v6, %v4350_v5  ;;  %v867_v9 = vadd.f32 %v4633_v7, %v4350_v5  ;;  %v851_v10 = vpop.f32.mrb[1].mxu0  ;;  %v861_v11 = vpop.f32.mrb[1].mxu1 }
 0x166   : > { %v852_v12 = vadd.f32 %v4350_v5, %v851_v10  ;;  %v862_v13 = vadd.f32 %v4350_v5, %v861_v11 }
 0x167   : > { %872 = vst.msk [vmem:[%s6577_s15 + $0x8] sm:$0xff] %vm870_vm2, %v857_v8  ;;  %874 = vst.msk [vmem:[%s6577_s15 + $0x18] sm:$0xff] %vm870_vm2, %v867_v9 }
 0x168   : > { %871 = vst.msk [vmem:[%s6577_s15] sm:$0xff] %vm870_vm2, %v852_v12  ;;  %873 = vst.msk [vmem:[%s6577_s15 + $0x10] sm:$0xff] %vm870_vm2, %v862_v13 }
 0x169 PF: > { %s6578_s17 = sld [smem:[#allocation23_spill]]  ;;  %vm885_vm3 = vcmask 523264   ;;  %v5014_v42 = vld [vmem:[%s5684_s16] sm:$0xff]   ;;  %v5016_v44 = vld [vmem:[%s5684_s16 + $0x8] sm:$0xff]   ;;  %v5018_v46 = vld [vmem:[%s5684_s16 + $0x10] sm:$0xff]   ;;  %s6579_s2 = scalar_lea.vmem %s6515_s4, %s5666_s0  ;;  %vm5370_vm4 = vmmov 0  }
 0x16a   : > { %v5015_v43 = vld [vmem:[%s5651_s1] sm:$0xff]   ;;  %v5017_v45 = vld [vmem:[%s5651_s1 + $0x8] sm:$0xff]   ;;  %4634 = vmatprep.subr.bf16.mxu0 %v5014_v42  ;;  %v5019_v47 = vld [vmem:[%s5651_s1 + $0x10] sm:$0xff]   ;;  %s6580_s13 = scalar_lea.vmem %s6516_s5, %s5666_s0  ;;  %vm1224_vm5 = vcmask 64512   ;;  %s6581_s9 = sld [smem:[#allocation15_spill]]  ;;  %vm1331_vm7 = vcmask 130048  }
 0x16b   : > { %4646 = vmatprep.subr.bf16.mxu1 %v5015_v43  ;;  %4635 = vmatpush3.bf16.msra.mxu0 %v5014_v42  ;;  %v5020_v48 = vld [vmem:[%s5684_s16 + $0x18] sm:$0xff]   ;;  %v5022_v50 = vld [vmem:[%s5658_s26] sm:$0xff]   ;;  %s5371_s7 = smov 120   ;;  %s5372_s15 = smov 112   ;;  %vm3342_vm11 = vcmask 195584   ;;  %vm3347_vm12 = vcmask 261120  }
 0x16c   : > { %4647 = vmatpush3.bf16.msra.mxu1 %v5015_v43  ;;  %4636 = vmatprep.subr.bf16.mxu0 %v5016_v44  ;;  %v5021_v49 = vld [vmem:[%s5651_s1 + $0x18] sm:$0xff]   ;;  %v4356_v1 = vld [vmem:[%s6579_s2] ss:$0 sm:$0xff]  ;;  %s5373_s1 = smov 104   ;;  %s5374_s16 = smov 96   ;;  %vm3352_vm13 = vcmask 326656  }
 0x16d   : > { %4648 = vmatprep.subr.bf16.mxu1 %v5017_v45  ;;  %v4357_v6 = vld [vmem:[%s6580_s13] ss:$0 sm:$0xff]  ;;  %s5375_s2 = smov 88   ;;  %s5376_s24 = smov 80   ;;  %vm3357_vm14 = vcmask 392192   ;;  %vm3362_vm15 = vcmask 457728  }
 0x16e   : > { %s5377_s14 = smov 72   ;;  %s5378_s13 = smov 8  }
 0x16f   : > { %v875_v14 = vld [vmem:[%s6578_s17] sm:$0xff]  ;;  %v877_v15 = vld [vmem:[%s6578_s17 + $0x10] sm:$0xff]  ;;  %v876_v16 = vld [vmem:[%s6578_s17 + $0x8] sm:$0xff]  ;;  %4637 = vmatpush3.bf16.msra.mxu0 %v5016_v44  ;;  %s5380_s3 = smov 24   ;;  %s5381_s28 = smov 32  }
 0x170   : > { %v886_v17 = vsel %vm885_vm3, %v875_v14, 0.0  ;;  %v892_v18 = vsel %vm885_vm3, %v877_v15, 0.0  ;;  %v889_v19 = vsel %vm885_vm3, %v876_v16, 0.0  ;;  %v878_v20 = vld [vmem:[%s6578_s17 + $0x18] sm:$0xff]  ;;  %4649 = vmatpush3.bf16.msra.mxu1 %v5017_v45  ;;  %4638 = vmatprep.subr.bf16.mxu0 %v5018_v46  ;;  %v5845_v43 = vld [vmem:[%s6581_s9] sm:$0xff]  ;;  %v5850_v44 = vld [vmem:[%s6581_s9 + $0x8] sm:$0xff] }
 0x171   : > { %887 = vadd.xlane.f32.xlu0 %v886_v17  ;;  %893 = vadd.xlane.f32.xlu1 %v892_v18  ;;  %v895_v21 = vsel %vm885_vm3, %v878_v20, 0.0  ;;  %vm1323_vm6 = vcmp.gt.f32.partialorder %v5845_v43, 0.0  ;;  %vm1324_vm8 = vcmp.gt.f32.partialorder %v5850_v44, 0.0  ;;  %s5382_s25 = smov 40   ;;  %s5383_s29 = smov 48  }
 0x172   : > { %4650 = vmatprep.subr.bf16.mxu1 %v5019_v47  ;;  %s5384_s27 = smov 56  }
 0x173   : > { %4639 = vmatpush3.bf16.msra.mxu0 %v5018_v46 }
 0x174   : > { %4651 = vmatpush3.bf16.msra.mxu1 %v5019_v47  ;;  %4640 = vmatprep.subr.bf16.mxu0 %v5020_v48 }
 0x175   : > { %890 = vadd.xlane.f32.xlu0 %v889_v19  ;;  %896 = vadd.xlane.f32.xlu1 %v895_v21  ;;  %v5023_v19 = vld [vmem:[%s5658_s26 + $0x8] sm:$0xff]   ;;  %v5025_v21 = vld [vmem:[%s5658_s26 + $0x18] sm:$0xff]  }
 0x176   : > { %4652 = vmatprep.subr.bf16.mxu1 %v5021_v49 }
 0x177   : > { %4641 = vmatpush3.bf16.msra.mxu0 %v5020_v48 }
 0x178   : > { %4653 = vmatpush3.bf16.msra.mxu1 %v5021_v49  ;;  %4658 = vmatprep.subr.bf16.mxu0 %v5022_v50 }
 0x1fe   : > { %v888_v22 = vpop.xlane.xlu0 %887  ;;  %v894_v23 = vpop.xlane.xlu1 %893 }
 0x1ff   : > { %v899_v24 = vmul.f32 0.015625, %v888_v22  ;;  %v901_v25 = vmul.f32 0.015625, %v894_v23  ;;  %v5369_v22 = vmov 0.0  }
 0x200   : > { %4670 = vmatprep.subr.bf16.mxu1 %v5369_v22 }
 0x201   : > { %v5761_v26 = vsub.f32 %v875_v14, %v899_v24  ;;  %v5763_v27 = vsub.f32 %v877_v15, %v901_v25 }
 0x202   : > { %v891_v28 = vpop.xlane.xlu0 %890  ;;  %v897_v29 = vpop.xlane.xlu1 %896 }
 0x203   : > { %v900_v30 = vmul.f32 0.015625, %v891_v28  ;;  %v902_v31 = vmul.f32 0.015625, %v897_v29  ;;  %v907_v32 = vmul.f32 %v5761_v26, %v5761_v26  ;;  %v909_v33 = vmul.f32 %v5763_v27, %v5763_v27 }
 0x205   : > { %v904_v34 = vsub.f32 %v876_v16, %v900_v30  ;;  %v5769_v35 = vsub.f32 %v878_v20, %v902_v31  ;;  %v911_v36 = vsel %vm885_vm3, %v907_v32, 0.0  ;;  %v917_v37 = vsel %vm885_vm3, %v909_v33, 0.0  ;;  %v5024_v20 = vld [vmem:[%s5658_s26 + $0x10] sm:$0xff]   ;;  %s5379_s26 = smov 16  }
 0x206   : > { %912 = vadd.xlane.f32.xlu0 %v911_v36 }
 0x207   : > { %v908_v38 = vmul.f32 %v904_v34, %v904_v34  ;;  %v910_v39 = vmul.f32 %v5769_v35, %v5769_v35 }
 0x209   : > { %v914_v40 = vsel %vm885_vm3, %v908_v38, 0.0  ;;  %v920_v41 = vsel %vm885_vm3, %v910_v39, 0.0 }
 0x20a   : > { %918 = vadd.xlane.f32.xlu0 %v917_v37  ;;  %915 = vadd.xlane.f32.xlu1 %v914_v40 }
 0x20e   : > { %921 = vadd.xlane.f32.xlu1 %v920_v41 }
 0x293   : > { %v913_v51 = vpop.xlane.xlu0 %912 }
 0x294   : > { %v923_v52 = vmul.f32 0.015625, %v913_v51 }
 0x296   : > { %v927_v53 = vadd.f32 1e-05, %v923_v52 }
 0x297   : > { %v916_v54 = vpop.xlane.xlu1 %915  ;;  %v919_v55 = vpop.xlane.xlu0 %918 }
 0x298   : > { %5086 = vrsqrt.f32 %v927_v53  ;;  %v924_v56 = vmul.f32 0.015625, %v916_v54  ;;  %v925_v57 = vmul.f32 0.015625, %v919_v55  ;;  %v5862_v54 = vld [vmem:[%s6581_s9 + $0x10] sm:$0xff] }
 0x299   : > { %vm1325_vm9 = vcmp.gt.f32.partialorder %v5862_v54, 0.0 }
 0x29a   : > { %v928_v58 = vadd.f32 1e-05, %v924_v56  ;;  %v929_v59 = vadd.f32 1e-05, %v925_v57  ;;  %v5868_v56 = vld [vmem:[%s6581_s9 + $0x18] sm:$0xff] }
 0x29b   : > { %v922_v60 = vpop.xlane.xlu1 %921  ;;  %vm1326_vm10 = vcmp.gt.f32.partialorder %v5868_v56, 0.0 }
 0x29c   : > { %5088 = vrsqrt.f32 %v928_v58  ;;  %v926_v61 = vmul.f32 0.015625, %v922_v60 }
 0x29d   : > { %5090 = vrsqrt.f32 %v929_v59 }
 0x29e   : > { %v930_v62 = vadd.f32 1e-05, %v926_v61 }
 0x2a0   : > { %5092 = vrsqrt.f32 %v930_v62 }
 0x2a2   : > { %v5087_v63 = vpop.eup %5086 }
 0x2a3   : > { %v935_v0 = vmul.f32 %v5087_v63, %v5761_v26 }
 0x2a5   : > { %v945_v5 = vmul.f32 %v4356_v1, %v935_v0 }
 0x2a6   : > { %v5089_v2 = vpop.eup %5088 }
 0x2a7   : > { %v5091_v3 = vpop.eup %5090  ;;  %v936_v4 = vmul.f32 %v5089_v2, %v904_v34  ;;  %v955_v10 = vadd.f32 %v4357_v6, %v945_v5 }
 0x2a8   : > { %v937_v7 = vmul.f32 %v5091_v3, %v5763_v27 }
 0x2a9   : > { %v946_v8 = vmul.f32 %v4356_v1, %v936_v4 }
 0x2aa   : > { %v5093_v9 = vpop.eup %5092  ;;  %v947_v13 = vmul.f32 %v4356_v1, %v937_v7 }
 0x2ab   : > { %v956_v11 = vadd.f32 %v4357_v6, %v946_v8  ;;  %v938_v12 = vmul.f32 %v5093_v9, %v5769_v35 }
 0x2ac   : > { %v957_v16 = vadd.f32 %v4357_v6, %v947_v13 }
 0x2ad   : > { %v991_v14 = vpack.c.bf16 %v956_v11, %v955_v10  ;;  %v948_v15 = vmul.f32 %v4356_v1, %v938_v12 }
 0x2af   : > { %4642 = vmatprep.mubr.msk.bf16.mxu0 %vm885_vm3, %v991_v14  ;;  %4654 = vmatprep.mubr.msk.bf16.mxu1 %vm885_vm3, %v991_v14  ;;  %v958_v17 = vadd.f32 %v4357_v6, %v948_v15 }
 0x2b1   : > { %v992_v18 = vpack.c.bf16 %v958_v17, %v957_v16 }
 0x2b3   : > { %4643 = vmatmul.mubr.msk.bf16.vlgmr.msra.gmra.mrb[0].mxu0 %vm885_vm3, %v992_v18  ;;  %4655 = vmatmul.mubr.msk.bf16.vlgmr.msra.gmra.mrb[0].mxu1 %vm885_vm3, %v992_v18 }
 0x2b4   : > { %4659 = vmatpush3.bf16.msra.mxu0 %v5022_v50  ;;  %4666 = vmatprep.mubr.msk.bf16.mxu0 %vm885_vm3, %v991_v14 }
 0x2b5   : > { %4660 = vmatprep.subr.bf16.mxu0 %v5023_v19  ;;  %4672 = vmatprep.mubr.msk.bf16.mxu1 %vm5370_vm4, %v5369_v22 }
 0x2b8   : > { %4661 = vmatpush3.bf16.msra.mxu0 %v5023_v19 }
 0x2b9   : > { %4662 = vmatprep.subr.bf16.mxu0 %v5024_v20 }
 0x2bc   : > { %4663 = vmatpush3.bf16.msra.mxu0 %v5024_v20 }
 0x2bd   : > { %4664 = vmatprep.subr.bf16.mxu0 %v5025_v21 }
 0x2c0   : > { %4665 = vmatpush3.bf16.msra.mxu0 %v5025_v21 }
 0x2c1   : > { %4694 = vmatprep.subr.bf16.mxu0 %v5369_v22 }
 0x2c3   : > { %4667 = vmatmul.mubr.msk.bf16.vlgmr.msra.gmra.mrb[4].mxu0 %vm885_vm3, %v992_v18 }
 0x2c4   : > { %4696 = vmatprep.mubr.msk.bf16.mxu0 %vm5370_vm4, %v5369_v22 }
 0x386   : > { %v4644_v23 = vpop.f32.mrb[0].mxu0  ;;  %v4656_v24 = vpop.f32.mrb[0].mxu1 }
 0x387   : > { %v1057_v25 = vpop.f32.mrb[1].mxu0  ;;  %v1130_v26 = vpop.f32.mrb[1].mxu1 }
 0x388   : > { %v4645_v27 = vpop.f32.mrb[2].mxu0  ;;  %v4657_v28 = vpop.f32.mrb[2].mxu1 }
 0x389   : > { %v5814_v29 = vpack.c.bf16 %v4645_v27, %v4644_v23  ;;  %v5816_v30 = vpack.c.bf16 %v4657_v28, %v4656_v24  ;;  %v1060_v31 = vpop.f32.mrb[3].mxu0  ;;  %v1133_v32 = vpop.f32.mrb[3].mxu1 }
 0x38a   : > { %v5818_v33 = vpack.c.bf16 %v1060_v31, %v1057_v25  ;;  %v5820_v34 = vpack.c.bf16 %v1133_v32, %v1130_v26 }
 0x38b   : > { %v1276_v36 = vsel %vm1224_vm5, %v5816_v30, 0 }
 0x38c   : > { %v1229_v35 = vsel %vm1224_vm5, %v5820_v34, 0 }
 0x38d   : > { %4671 = vmatpush3.bf16.xpose.msra.mxu1 %v1229_v35 }
 0x38e   : > { %4676 = vmatprep.subr.bf16.mxu1 %v5369_v22 }
 0x394   : > { %4673 = vmatmul.mubr.msk.bf16.vlgmr.msra.gmra.mrb[4].mxu1 %vm1224_vm5, %v5818_v33 }
 0x395   : > { %4677 = vmatpush3.bf16.xpose.msra.mxu1 %v1276_v36  ;;  %4678 = vmatprep.mubr.msk.bf16.mxu1 %vm5370_vm4, %v5369_v22 }
 0x396   : > { %v4668_v37 = vpop.f32.mrb[4].mxu0  ;;  %4682 = vmatprep.subr.bf16.mxu1 %v5369_v22 }
 0x397   : > { %v1203_v38 = vpop.f32.mrb[5].mxu0 }
 0x398   : > { %v4669_v39 = vpop.f32.mrb[6].mxu0 }
 0x399   : > { %v5832_v40 = vpack.c.bf16 %v4669_v39, %v4668_v37  ;;  %v1206_v41 = vpop.f32.mrb[7].mxu0 }
 0x39a   : > { %v5834_v42 = vpack.c.bf16 %v1206_v41, %v1203_v38 }
 0x39c   : > { %4679 = vmatmul.mubr.msk.bf16.vlgmr.msra.gmra.mrb[8].mxu1 %vm1224_vm5, %v5814_v29 }
 0x39d   : > { %4683 = vmatpush3.bf16.msra.mxu1 %v5834_v42  ;;  %4684 = vmatprep.mubr.msk.bf16.mxu1 %vm5370_vm4, %v5369_v22 }
 0x39e   : > { %4688 = vmatprep.subr.bf16.mxu1 %v5369_v22 }
 0x467   : > { %v1265_v45 = vpop.f32.mrb[4].mxu1 }
 0x468   : > { %v1319_v46 = vmul.f32 0.35355338, %v1265_v45  ;;  %v4674_v47 = vpop.f32.mrb[5].mxu1 }
 0x469   : > { %v1268_v48 = vpop.f32.mrb[6].mxu1 }
 0x46a   : > { %v1320_v49 = vmul.f32 0.35355338, %v1268_v48  ;;  %v4675_v50 = vpop.f32.mrb[7].mxu1  ;;  %v1327_v51 = vsel %vm1323_vm6, -1e+08, %v1319_v46 }
 0x46b   : > { %v1332_v52 = vsel %vm1331_vm7, %v1327_v51, -inf }
 0x46c   : > { %1333 = vmax.xlane.f32.xlu0 %v1332_v52  ;;  %v1328_v53 = vsel %vm1324_vm8, -1e+08, %v1320_v49 }
 0x46d   : > { %v1335_v55 = vsel %vm1331_vm7, %v1328_v53, -inf }
 0x46e   : > { %1336 = vmax.xlane.f32.xlu1 %v1335_v55 }
 0x46f   : > { %v1312_v57 = vpop.f32.mrb[8].mxu1 }
 0x470   : > { %v1321_v58 = vmul.f32 0.35355338, %v1312_v57  ;;  %v4680_v59 = vpop.f32.mrb[9].mxu1 }
 0x471   : > { %v1315_v60 = vpop.f32.mrb[10].mxu1 }
 0x472   : > { %v1322_v61 = vmul.f32 0.35355338, %v1315_v60  ;;  %v4681_v62 = vpop.f32.mrb[11].mxu1  ;;  %v1329_v63 = vsel %vm1325_vm9, -1e+08, %v1321_v58 }
 0x473   : > { %v1338_v0 = vsel %vm1331_vm7, %v1329_v63, -inf }
 0x474   : > { %1339 = vmax.xlane.f32.xlu0 %v1338_v0  ;;  %v1330_v1 = vsel %vm1326_vm10, -1e+08, %v1322_v61 }
 0x475   : > { %v1341_v2 = vsel %vm1331_vm7, %v1330_v1, -inf }
 0x476   : > { %1342 = vmax.xlane.f32.xlu1 %v1341_v2 }
 0x4f9   : > { %v1334_v3 = vpop.xlane.xlu0 %1333 }
 0x4fa   : > { %v1344_v4 = vsub.f32 %v1327_v51, %v1334_v3 }
 0x4fb   : > { %v1337_v5 = vpop.xlane.xlu1 %1336 }
 0x4fc   : > { %v1348_v6 = vmul.f32 1.442695, %v1344_v4  ;;  %v1345_v7 = vsub.f32 %v1328_v53, %v1337_v5 }
 0x4fe   : > { %5094 = vpow2.f32 %v1348_v6  ;;  %v1350_v8 = vmul.f32 1.442695, %v1345_v7 }
 0x500   : > { %5096 = vpow2.f32 %v1350_v8 }
 0x501   : > { %v1340_v9 = vpop.xlane.xlu0 %1339 }
 0x502   : > { %v1346_v10 = vsub.f32 %v1329_v63, %v1340_v9 }
 0x503   : > { %v1343_v18 = vpop.xlane.xlu1 %1342 }
 0x504   : > { %v1352_v11 = vmul.f32 1.442695, %v1346_v10  ;;  %v1347_v19 = vsub.f32 %v1330_v1, %v1343_v18 }
 0x506   : > { %5098 = vpow2.f32 %v1352_v11  ;;  %v1354_v20 = vmul.f32 1.442695, %v1347_v19 }
 0x508   : > { %v5095_v12 = vpop.eup %5094  ;;  %5100 = vpow2.f32 %v1354_v20 }
 0x509   : > { %v1356_v13 = vsel %vm1331_vm7, %v5095_v12, 0.0 }
 0x50a   : > { %v5097_v14 = vpop.eup %5096  ;;  %1357 = vadd.xlane.f32.xlu0 %v1356_v13 }
 0x50b   : > { %v1359_v15 = vsel %vm1331_vm7, %v5097_v14, 0.0 }
 0x50c   : > { %1360 = vadd.xlane.f32.xlu1 %v1359_v15 }
 0x510   : > { %v5099_v16 = vpop.eup %5098 }
 0x511   : > { %v1362_v17 = vsel %vm1331_vm7, %v5099_v16, 0.0 }
 0x512   : > { %1363 = vadd.xlane.f32.xlu0 %v1362_v17  ;;  %v5101_v21 = vpop.eup %5100 }
 0x513   : > { %v1365_v23 = vsel %vm1331_vm7, %v5101_v21, 0.0 }
 0x51d   : > { %1523 = vrot.lane.b32.xlu1 %v5816_v30, %s5371_s7 }
 0x528   : > { %1470 = vrot.lane.b32.xlu0 %v5820_v34, %s5371_s7 }
 0x541   : > { %1366 = vadd.xlane.f32.xlu1 %v1365_v23 }
 0x552   : > { %1467 = vrot.lane.b32.xlu1 %v5818_v33, %s5371_s7 }
 0x556   : > { %1520 = vrot.lane.b32.xlu1 %v5814_v29, %s5371_s7 }
 0x597   : > { %v1358_v24 = vpop.xlane.xlu0 %1357 }
 0x598   : > { %5102 = vrcp.f32 %v1358_v24 }
 0x599   : > { %v1361_v25 = vpop.xlane.xlu1 %1360 }
 0x59a   : > { %5104 = vrcp.f32 %v1361_v25 }
 0x59d   : > { %v1524_v38 = vpop.permute.xlu1 %1523 }
 0x59e   : > { %v1529_v50 = vsel %vm1224_vm5, %v1524_v38, 0 }
 0x59f   : > { %v1364_v26 = vpop.xlane.xlu0 %1363 }
 0x5a0   : > { %5106 = vrcp.f32 %v1364_v26 }
 0x5a2   : > { %v5103_v27 = vpop.eup %5102 }
 0x5a3   : > { %v1471_v28 = vpop.permute.xlu0 %1470  ;;  %v1372_v35 = vmul.f32 %v5103_v27, %v5095_v12 }
 0x5a4   : > { %v5105_v31 = vpop.eup %5104  ;;  %v1476_v32 = vsel %vm1224_vm5, %v1471_v28, 0 }
 0x5a5   : > { %v1373_v36 = vmul.f32 %v5105_v31, %v5097_v14  ;;  %4695 = vmatpush3.bf16.xpose.msra.mxu0 %v1476_v32 }
 0x5a6   : > { %4706 = vmatprep.subr.bf16.mxu0 %v5369_v22 }
 0x5a7   : > { %v1376_v37 = vpack.c.bf16 %v1373_v36, %v1372_v35 }
 0x5a9   : > { %4685 = vmatmul.mubr.msk.bf16.vlgmr.msra.gmra.mrb[12].mxu1 %vm1331_vm7, %v1376_v37 }
 0x5aa   : > { %4689 = vmatpush3.bf16.msra.mxu1 %v5832_v40  ;;  %4690 = vmatprep.mubr.msk.bf16.mxu1 %vm5370_vm4, %v5369_v22  ;;  %v5107_v45 = vpop.eup %5106 }
 0x5ab   : > { %4700 = vmatprep.subr.bf16.mxu1 %v5369_v22  ;;  %v1374_v47 = vmul.f32 %v5107_v45, %v5099_v16 }
 0x5ce   : > { %v1367_v39 = vpop.xlane.xlu1 %1366 }
 0x5cf   : > { %5108 = vrcp.f32 %v1367_v39 }
 0x5d2   : > { %v1468_v41 = vpop.permute.xlu1 %1467 }
 0x5d3   : > { %4697 = vmatmul.mubr.msk.bf16.vlgmr.msra.gmra.mrb[8].mxu0 %vm1224_vm5, %v1468_v41 }
 0x5d4   : > { %4708 = vmatprep.mubr.msk.bf16.mxu0 %vm5370_vm4, %v5369_v22 }
 0x5d6   : > { %v1521_v51 = vpop.permute.xlu1 %1520 }
 0x5d9   : > { %v5109_v46 = vpop.eup %5108 }
 0x5da   : > { %v1375_v48 = vmul.f32 %v5109_v46, %v5101_v21 }
 0x5dc   : > { %v1377_v49 = vpack.c.bf16 %v1375_v48, %v1374_v47 }
 0x5de   : > { %4691 = vmatmul.mubr.msk.bf16.vlgmr.msra.gmra.mrb[16].mxu1 %vm1331_vm7, %v1377_v49 }
 0x5df   : > { %4701 = vmatpush3.bf16.xpose.msra.mxu1 %v1529_v50  ;;  %4702 = vmatprep.mubr.msk.bf16.mxu1 %vm5370_vm4, %v5369_v22 }
 0x5e0   : > { %4712 = vmatprep.subr.bf16.mxu1 %v5369_v22 }
 0x5e6   : > { %4703 = vmatmul.mubr.msk.bf16.vlgmr.msra.gmra.mrb[20].mxu1 %vm1224_vm5, %v1521_v51 }
 0x5e7   : > { %4714 = vmatprep.mubr.msk.bf16.mxu1 %vm5370_vm4, %v5369_v22 }
 0x67c   : > { %v5908_v52 = vpop.f32.mrb[12].mxu1 }
 0x67d   : > { %v4686_v53 = vpop.f32.mrb[13].mxu1 }
 0x67e   : > { %v5910_v55 = vpop.f32.mrb[14].mxu1 }
 0x67f   : > { %v4687_v57 = vpop.f32.mrb[15].mxu1 }
 0x6a6   : > { %v1512_v58 = vpop.f32.mrb[8].mxu0 }
 0x6a7   : > { %v1572_v59 = vmul.f32 0.35355338, %v1512_v58  ;;  %v4698_v60 = vpop.f32.mrb[9].mxu0 }
 0x6a8   : > { %v1515_v61 = vpop.f32.mrb[10].mxu0 }
 0x6a9   : > { %v1573_v62 = vmul.f32 0.35355338, %v1515_v61  ;;  %v4699_v63 = vpop.f32.mrb[11].mxu0  ;;  %v1576_v0 = vsel %vm1323_vm6, -1e+08, %v1572_v59 }
 0x6aa   : > { %v1580_v1 = vsel %vm1331_vm7, %v1576_v0, -inf }
 0x6ab   : > { %1581 = vmax.xlane.f32.xlu0 %v1580_v1  ;;  %v1577_v2 = vsel %vm1324_vm8, -1e+08, %v1573_v62 }
 0x6ac   : > { %v1583_v3 = vsel %vm1331_vm7, %v1577_v2, -inf }
 0x6ad   : > { %1584 = vmax.xlane.f32.xlu1 %v1583_v3 }
 0x6b1   : > { %v5918_v4 = vpop.f32.mrb[16].mxu1 }
 0x6b2   : > { %v4692_v5 = vpop.f32.mrb[17].mxu1 }
 0x6b3   : > { %v5920_v6 = vpop.f32.mrb[18].mxu1 }
 0x6b4   : > { %v4693_v7 = vpop.f32.mrb[19].mxu1 }
 0x6b9   : > { %v1565_v8 = vpop.f32.mrb[20].mxu1 }
 0x6ba   : > { %v1574_v9 = vmul.f32 0.35355338, %v1565_v8  ;;  %v4704_v10 = vpop.f32.mrb[21].mxu1 }
 0x6bb   : > { %v1568_v11 = vpop.f32.mrb[22].mxu1 }
 0x6bc   : > { %v1575_v12 = vmul.f32 0.35355338, %v1568_v11  ;;  %v4705_v13 = vpop.f32.mrb[23].mxu1  ;;  %v1578_v14 = vsel %vm1325_vm9, -1e+08, %v1574_v9 }
 0x6bd   : > { %v1586_v15 = vsel %vm1331_vm7, %v1578_v14, -inf }
 0x6be   : > { %1587 = vmax.xlane.f32.xlu0 %v1586_v15  ;;  %v1579_v16 = vsel %vm1326_vm10, -1e+08, %v1575_v12 }
 0x6bf   : > { %v1589_v17 = vsel %vm1331_vm7, %v1579_v16, -inf }
 0x6c2   : > { %1590 = vmax.xlane.f32.xlu0 %v1589_v17 }
 0x738   : > { %v1582_v18 = vpop.xlane.xlu0 %1581 }
 0x739   : > { %v1592_v19 = vsub.f32 %v1576_v0, %v1582_v18 }
 0x73a   : > { %v1585_v20 = vpop.xlane.xlu1 %1584 }
 0x73b   : > { %v1596_v21 = vmul.f32 1.442695, %v1592_v19  ;;  %v1593_v23 = vsub.f32 %v1577_v2, %v1585_v20 }
 0x73d   : > { %5110 = vpow2.f32 %v1596_v21  ;;  %v1598_v24 = vmul.f32 1.442695, %v1593_v23 }
 0x73f   : > { %5112 = vpow2.f32 %v1598_v24 }
 0x747   : > { %v5111_v25 = vpop.eup %5110 }
 0x748   : > { %v1604_v26 = vsel %vm1331_vm7, %v5111_v25, 0.0 }
 0x749   : > { %v5113_v27 = vpop.eup %5112  ;;  %1605 = vadd.xlane.f32.xlu0 %v1604_v26 }
 0x74a   : > { %v1607_v28 = vsel %vm1331_vm7, %v5113_v27, 0.0 }
 0x74b   : > { %1608 = vadd.xlane.f32.xlu1 %v1607_v28  ;;  %v1588_v31 = vpop.xlane.xlu0 %1587 }
 0x74c   : > { %v1594_v32 = vsub.f32 %v1578_v14, %v1588_v31 }
 0x74e   : > { %v1600_v35 = vmul.f32 1.442695, %v1594_v32 }
 0x74f   : > { %v1591_v38 = vpop.xlane.xlu0 %1590 }
 0x750   : > { %5114 = vpow2.f32 %v1600_v35  ;;  %v1595_v39 = vsub.f32 %v1579_v16, %v1591_v38 }
 0x752   : > { %v1602_v41 = vmul.f32 1.442695, %v1595_v39 }
 0x754   : > { %5116 = vpow2.f32 %v1602_v41 }
 0x75a   : > { %v5115_v36 = vpop.eup %5114 }
 0x75b   : > { %v1610_v37 = vsel %vm1331_vm7, %v5115_v36, 0.0 }
 0x75c   : > { %1675 = vrot.lane.b32.xlu1 %v5832_v40, %s5371_s7  ;;  %1611 = vadd.xlane.f32.xlu0 %v1610_v37 }
 0x75e   : > { %v5117_v45 = vpop.eup %5116 }
 0x75f   : > { %v1613_v46 = vsel %vm1331_vm7, %v5117_v45, 0.0 }
 0x760   : > { %1724 = vrot.lane.b32.xlu1 %v5820_v34, %s5372_s15 }
 0x772   : > { %1627 = vrot.lane.b32.xlu0 %v5834_v42, %s5371_s7 }
 0x776   : > { %1722 = vrot.lane.b32.xlu0 %v5818_v33, %s5372_s15 }
 0x784   : > { %1614 = vadd.xlane.f32.xlu1 %v1613_v46 }
 0x795   : > { %1775 = vrot.lane.b32.xlu1 %v5816_v30, %s5372_s15 }
 0x799   : > { %1773 = vrot.lane.b32.xlu1 %v5814_v29, %s5372_s15 }
 0x7d6   : > { %v1606_v49 = vpop.xlane.xlu0 %1605 }
 0x7d8   : > { %v1609_v47 = vpop.xlane.xlu1 %1608 }
 0x7d9   : > { %5118 = vrcp.f32 %v1609_v47 }
 0x7da   : > { %5120 = vrcp.f32 %v1606_v49 }
 0x7dc   : > { %v1676_v48 = vpop.permute.xlu1 %1675 }
 0x7dd   : > { %4713 = vmatpush3.bf16.msra.mxu1 %v1676_v48 }
 0x7de   : > { %4724 = vmatprep.subr.bf16.mxu1 %v5369_v22 }
 0x7e0   : > { %v1725_v61 = vpop.permute.xlu1 %1724 }
 0x7e1   : > { %v1730_v62 = vsel %vm1224_vm5, %v1725_v61, 0 }
 0x7e3   : > { %v5119_v50 = vpop.eup %5118 }
 0x7e4   : > { %v5121_v53 = vpop.eup %5120  ;;  %v1621_v57 = vmul.f32 %v5119_v50, %v5113_v27 }
 0x7e5   : > { %v1620_v58 = vmul.f32 %v5121_v53, %v5111_v25 }
 0x7e7   : > { %v1624_v60 = vpack.c.bf16 %v1621_v57, %v1620_v58 }
 0x7e9   : > { %v1612_v51 = vpop.xlane.xlu0 %1611 }
 0x7ea   : > { %5122 = vrcp.f32 %v1612_v51 }
 0x7ed   : > { %v1628_v59 = vpop.permute.xlu0 %1627 }
 0x7ee   : > { %4707 = vmatpush3.bf16.msra.mxu0 %v1628_v59 }
 0x7ef   : > { %4718 = vmatprep.subr.bf16.mxu0 %v5369_v22 }
 0x7f1   : > { %4709 = vmatmul.mubr.msk.bf16.vlgmr.msra.gmra.mrb[12].mxu0 %vm1331_vm7, %v1624_v60  ;;  %v1723_v63 = vpop.permute.xlu0 %1722 }
 0x7f2   : > { %4720 = vmatprep.mubr.msk.bf16.mxu0 %vm5370_vm4, %v5369_v22 }
 0x7f4   : > { %v5123_v1 = vpop.eup %5122 }
 0x7f5   : > { %v1622_v3 = vmul.f32 %v5123_v1, %v5115_v36 }
 0x7f7   : > { %4719 = vmatpush3.bf16.xpose.msra.mxu0 %v1730_v62 }
 0x7f8   : > { %4730 = vmatprep.subr.bf16.mxu0 %v5369_v22 }
 0x7fe   : > { %4721 = vmatmul.mubr.msk.bf16.vlgmr.msra.gmra.mrb[16].mxu0 %vm1224_vm5, %v1723_v63 }
 0x7ff   : > { %4732 = vmatprep.mubr.msk.bf16.mxu0 %vm5370_vm4, %v5369_v22 }
 0x811   : > { %v1615_v0 = vpop.xlane.xlu1 %1614 }
 0x812   : > { %5124 = vrcp.f32 %v1615_v0 }
 0x815   : > { %v1776_v7 = vpop.permute.xlu1 %1775 }
 0x816   : > { %v1781_v9 = vsel %vm1224_vm5, %v1776_v7, 0 }
 0x819   : > { %v1774_v10 = vpop.permute.xlu1 %1773 }
 0x81c   : > { %v5125_v2 = vpop.eup %5124 }
 0x81d   : > { %v1623_v5 = vmul.f32 %v5125_v2, %v5117_v45 }
 0x81f   : > { %v1625_v8 = vpack.c.bf16 %v1623_v5, %v1622_v3 }
 0x821   : > { %4715 = vmatmul.mubr.msk.bf16.vlgmr.msra.gmra.mrb[24].mxu1 %vm1331_vm7, %v1625_v8 }
 0x822   : > { %4725 = vmatpush3.bf16.xpose.msra.mxu1 %v1781_v9  ;;  %4726 = vmatprep.mubr.msk.bf16.mxu1 %vm5370_vm4, %v5369_v22 }
 0x823   : > { %4736 = vmatprep.subr.bf16.mxu1 %v5369_v22 }
 0x829   : > { %4727 = vmatmul.mubr.msk.bf16.vlgmr.msra.gmra.mrb[28].mxu1 %vm1224_vm5, %v1774_v10 }
 0x82a   : > { %4738 = vmatprep.mubr.msk.bf16.mxu1 %vm5370_vm4, %v5369_v22 }
 0x8c4   : > { %v5962_v11 = vpop.f32.mrb[12].mxu0 }
 0x8c5   : > { %v4710_v12 = vpop.f32.mrb[13].mxu0 }
 0x8c6   : > { %v5964_v13 = vpop.f32.mrb[14].mxu0 }
 0x8c7   : > { %v4944_v14 = vpack.i.bf16 %v5964_v13, %v5962_v11  ;;  %v4711_v15 = vpop.f32.mrb[15].mxu0 }
 0x8d1   : > { %v1766_v16 = vpop.f32.mrb[16].mxu0 }
 0x8d2   : > { %v1824_v17 = vmul.f32 0.35355338, %v1766_v16  ;;  %v4722_v18 = vpop.f32.mrb[17].mxu0 }
 0x8d3   : > { %v1769_v19 = vpop.f32.mrb[18].mxu0 }
 0x8d4   : > { %v1825_v20 = vmul.f32 0.35355338, %v1769_v19  ;;  %v4723_v21 = vpop.f32.mrb[19].mxu0  ;;  %v1828_v23 = vsel %vm1323_vm6, -1e+08, %v1824_v17 }
 0x8d5   : > { %v1832_v24 = vsel %vm1331_vm7, %v1828_v23, -inf }
 0x8d6   : > { %1833 = vmax.xlane.f32.xlu0 %v1832_v24  ;;  %v1829_v25 = vsel %vm1324_vm8, -1e+08, %v1825_v20 }
 0x8d7   : > { %v1835_v26 = vsel %vm1331_vm7, %v1829_v25, -inf }
 0x8d8   : > { %1836 = vmax.xlane.f32.xlu1 %v1835_v26 }
 0x8f4   : > { %v5974_v27 = vpop.f32.mrb[24].mxu1 }
 0x8f5   : > { %v4716_v28 = vpop.f32.mrb[25].mxu1 }
 0x8f6   : > { %v5976_v31 = vpop.f32.mrb[26].mxu1 }
 0x8f7   : > { %v4949_v32 = vpack.i.bf16 %v5976_v31, %v5974_v27  ;;  %v4717_v35 = vpop.f32.mrb[27].mxu1 }
 0x8fc   : > { %v1817_v36 = vpop.f32.mrb[28].mxu1 }
 0x8fd   : > { %v1826_v37 = vmul.f32 0.35355338, %v1817_v36  ;;  %v4728_v38 = vpop.f32.mrb[29].mxu1 }
 0x8fe   : > { %v1820_v39 = vpop.f32.mrb[30].mxu1 }
 0x8ff   : > { %v1827_v41 = vmul.f32 0.35355338, %v1820_v39  ;;  %v4729_v45 = vpop.f32.mrb[31].mxu1  ;;  %v1830_v46 = vsel %vm1325_vm9, -1e+08, %v1826_v37 }
 0x900   : > { %v1838_v47 = vsel %vm1331_vm7, %v1830_v46, -inf }
 0x901   : > { %1839 = vmax.xlane.f32.xlu0 %v1838_v47  ;;  %v1831_v48 = vsel %vm1326_vm10, -1e+08, %v1827_v41 }
 0x902   : > { %v1841_v49 = vsel %vm1331_vm7, %v1831_v48, -inf }
 0x905   : > { %1842 = vmax.xlane.f32.xlu0 %v1841_v49 }
 0x963   : > { %v1834_v50 = vpop.xlane.xlu0 %1833 }
 0x964   : > { %v1844_v51 = vsub.f32 %v1828_v23, %v1834_v50 }
 0x965   : > { %v1837_v53 = vpop.xlane.xlu1 %1836 }
 0x966   : > { %v1848_v57 = vmul.f32 1.442695, %v1844_v51  ;;  %v1845_v58 = vsub.f32 %v1829_v25, %v1837_v53 }
 0x968   : > { %5126 = vpow2.f32 %v1848_v57  ;;  %v1850_v59 = vmul.f32 1.442695, %v1845_v58 }
 0x96a   : > { %5128 = vpow2.f32 %v1850_v59 }
 0x972   : > { %v5127_v60 = vpop.eup %5126 }
 0x973   : > { %v1856_v61 = vsel %vm1331_vm7, %v5127_v60, 0.0 }
 0x974   : > { %v5129_v62 = vpop.eup %5128  ;;  %1857 = vadd.xlane.f32.xlu0 %v1856_v61 }
 0x975   : > { %v1859_v63 = vsel %vm1331_vm7, %v5129_v62, 0.0 }
 0x976   : > { %1860 = vadd.xlane.f32.xlu1 %v1859_v63 }
 0x987   : > { %1925 = vrot.lane.b32.xlu1 %v5832_v40, %s5372_s15 }
 0x98b   : > { %1974 = vrot.lane.b32.xlu1 %v5820_v34, %s5373_s1 }
 0x98e   : > { %v1840_v0 = vpop.xlane.xlu0 %1839 }
 0x98f   : > { %v1846_v1 = vsub.f32 %v1830_v46, %v1840_v0 }
 0x991   : > { %v1852_v2 = vmul.f32 1.442695, %v1846_v1 }
 0x992   : > { %v1843_v3 = vpop.xlane.xlu0 %1842 }
 0x993   : > { %5130 = vpow2.f32 %v1852_v2  ;;  %v1847_v5 = vsub.f32 %v1831_v48, %v1843_v3 }
 0x995   : > { %v1854_v8 = vmul.f32 1.442695, %v1847_v5 }
 0x997   : > { %5132 = vpow2.f32 %v1854_v8 }
 0x99d   : > { %v5131_v7 = vpop.eup %5130 }
 0x99e   : > { %v1862_v9 = vsel %vm1331_vm7, %v5131_v7, 0.0 }
 0x99f   : > { %1863 = vadd.xlane.f32.xlu0 %v1862_v9 }
 0x9a1   : > { %v5133_v10 = vpop.eup %5132 }
 0x9a2   : > { %v1865_v12 = vsel %vm1331_vm7, %v5133_v10, 0.0 }
 0x9af   : > { %1866 = vadd.xlane.f32.xlu1 %v1865_v12 }
 0x9b5   : > { %1878 = vrot.lane.b32.xlu0 %v5834_v42, %s5372_s15 }
 0x9b9   : > { %1972 = vrot.lane.b32.xlu0 %v5818_v33, %s5373_s1 }
 0x9c0   : > { %2025 = vrot.lane.b32.xlu1 %v5816_v30, %s5373_s1 }
 0x9c4   : > { %2023 = vrot.lane.b32.xlu1 %v5814_v29, %s5373_s1 }
 0xa01   : > { %v1858_v17 = vpop.xlane.xlu0 %1857 }
 0xa03   : > { %v1861_v15 = vpop.xlane.xlu1 %1860 }
 0xa04   : > { %5134 = vrcp.f32 %v1861_v15 }
 0xa05   : > { %5136 = vrcp.f32 %v1858_v17 }
 0xa07   : > { %v1926_v16 = vpop.permute.xlu1 %1925 }
 0xa08   : > { %4737 = vmatpush3.bf16.msra.mxu1 %v1926_v16 }
 0xa09   : > { %4748 = vmatprep.subr.bf16.mxu1 %v5369_v22 }
 0xa0b   : > { %v1975_v26 = vpop.permute.xlu1 %1974 }
 0xa0c   : > { %v1980_v28 = vsel %vm1224_vm5, %v1975_v26, 0 }
 0xa0e   : > { %v5135_v18 = vpop.eup %5134 }
 0xa0f   : > { %v5137_v20 = vpop.eup %5136  ;;  %v1873_v21 = vmul.f32 %v5135_v18, %v5129_v62 }
 0xa10   : > { %v1872_v23 = vmul.f32 %v5137_v20, %v5127_v60 }
 0xa12   : > { %v1876_v25 = vpack.c.bf16 %v1873_v21, %v1872_v23 }
 0xa2c   : > { %v1864_v19 = vpop.xlane.xlu0 %1863 }
 0xa2d   : > { %5138 = vrcp.f32 %v1864_v19 }
 0xa30   : > { %v1879_v24 = vpop.permute.xlu0 %1878 }
 0xa31   : > { %4731 = vmatpush3.bf16.msra.mxu0 %v1879_v24 }
 0xa32   : > { %4742 = vmatprep.subr.bf16.mxu0 %v5369_v22 }
 0xa34   : > { %4733 = vmatmul.mubr.msk.bf16.vlgmr.msra.gmra.mrb[20].mxu0 %vm1331_vm7, %v1876_v25  ;;  %v1973_v36 = vpop.permute.xlu0 %1972 }
 0xa35   : > { %4744 = vmatprep.mubr.msk.bf16.mxu0 %vm5370_vm4, %v5369_v22 }
 0xa37   : > { %v5139_v37 = vpop.eup %5138 }
 0xa38   : > { %v1874_v39 = vmul.f32 %v5139_v37, %v5131_v7 }
 0xa3a   : > { %4743 = vmatpush3.bf16.xpose.msra.mxu0 %v1980_v28 }
 0xa3b   : > { %4754 = vmatprep.subr.bf16.mxu0 %v5369_v22 }
 0xa3c   : > { %v1867_v35 = vpop.xlane.xlu1 %1866 }
 0xa3d   : > { %5140 = vrcp.f32 %v1867_v35 }
 0xa40   : > { %v2026_v45 = vpop.permute.xlu1 %2025 }
 0xa41   : > { %4745 = vmatmul.mubr.msk.bf16.vlgmr.msra.gmra.mrb[24].mxu0 %vm1224_vm5, %v1973_v36  ;;  %v2031_v47 = vsel %vm1224_vm5, %v2026_v45, 0 }
 0xa42   : > { %4756 = vmatprep.mubr.msk.bf16.mxu0 %vm5370_vm4, %v5369_v22 }
 0xa44   : > { %v2024_v48 = vpop.permute.xlu1 %2023 }
 0xa47   : > { %v5141_v38 = vpop.eup %5140 }
 0xa48   : > { %v1875_v41 = vmul.f32 %v5141_v38, %v5133_v10 }
 0xa4a   : > { %v1877_v46 = vpack.c.bf16 %v1875_v41, %v1874_v39 }
 0xa4c   : > { %4739 = vmatmul.mubr.msk.bf16.vlgmr.msra.gmra.mrb[32].mxu1 %vm1331_vm7, %v1877_v46 }
 0xa4d   : > { %4749 = vmatpush3.bf16.xpose.msra.mxu1 %v2031_v47  ;;  %4750 = vmatprep.mubr.msk.bf16.mxu1 %vm5370_vm4, %v5369_v22 }
 0xa4e   : > { %4760 = vmatprep.subr.bf16.mxu1 %v5369_v22 }
 0xa54   : > { %4751 = vmatmul.mubr.msk.bf16.vlgmr.msra.gmra.mrb[36].mxu1 %vm1224_vm5, %v2024_v48 }
 0xa55   : > { %4762 = vmatprep.mubr.msk.bf16.mxu1 %vm5370_vm4, %v5369_v22 }
 0xb07   : > { %v6020_v49 = vpop.f32.mrb[20].mxu0 }
 0xb08   : > { %v4734_v50 = vpop.f32.mrb[21].mxu0 }
 0xb09   : > { %v6022_v51 = vpop.f32.mrb[22].mxu0 }
 0xb0a   : > { %v4954_v53 = vpack.i.bf16 %v6022_v51, %v6020_v49  ;;  %v4735_v57 = vpop.f32.mrb[23].mxu0 }
 0xb14   : > { %v2016_v58 = vpop.f32.mrb[24].mxu0 }
 0xb15   : > { %v2074_v59 = vmul.f32 0.35355338, %v2016_v58  ;;  %v4746_v60 = vpop.f32.mrb[25].mxu0 }
 0xb16   : > { %v2019_v61 = vpop.f32.mrb[26].mxu0 }
 0xb17   : > { %v2075_v62 = vmul.f32 0.35355338, %v2019_v61  ;;  %v4747_v63 = vpop.f32.mrb[27].mxu0  ;;  %v2078_v0 = vsel %vm1323_vm6, -1e+08, %v2074_v59 }
 0xb18   : > { %v2082_v1 = vsel %vm1331_vm7, %v2078_v0, -inf }
 0xb19   : > { %2083 = vmax.xlane.f32.xlu0 %v2082_v1  ;;  %v2079_v2 = vsel %vm1324_vm8, -1e+08, %v2075_v62 }
 0xb1a   : > { %v2085_v3 = vsel %vm1331_vm7, %v2079_v2, -inf }
 0xb1b   : > { %2086 = vmax.xlane.f32.xlu1 %v2085_v3 }
 0xb1f   : > { %v6032_v5 = vpop.f32.mrb[32].mxu1 }
 0xb20   : > { %v4740_v7 = vpop.f32.mrb[33].mxu1 }
 0xb21   : > { %v6034_v8 = vpop.f32.mrb[34].mxu1 }
 0xb22   : > { %v4959_v9 = vpack.i.bf16 %v6034_v8, %v6032_v5  ;;  %v4741_v10 = vpop.f32.mrb[35].mxu1 }
 0xb27   : > { %v2067_v12 = vpop.f32.mrb[36].mxu1 }
 0xb28   : > { %v2076_v15 = vmul.f32 0.35355338, %v2067_v12  ;;  %v4752_v16 = vpop.f32.mrb[37].mxu1 }
 0xb29   : > { %v2070_v17 = vpop.f32.mrb[38].mxu1 }
 0xb2a   : > { %v2077_v18 = vmul.f32 0.35355338, %v2070_v17  ;;  %v4753_v19 = vpop.f32.mrb[39].mxu1  ;;  %v2080_v20 = vsel %vm1325_vm9, -1e+08, %v2076_v15 }
 0xb2b   : > { %v2088_v21 = vsel %vm1331_vm7, %v2080_v20, -inf }
 0xb2c   : > { %2089 = vmax.xlane.f32.xlu0 %v2088_v21  ;;  %v2081_v23 = vsel %vm1326_vm10, -1e+08, %v2077_v18 }
 0xb2d   : > { %v2091_v24 = vsel %vm1331_vm7, %v2081_v23, -inf }
 0xb30   : > { %2092 = vmax.xlane.f32.xlu0 %v2091_v24 }
 0xba6   : > { %v2084_v25 = vpop.xlane.xlu0 %2083 }
 0xba7   : > { %v2094_v26 = vsub.f32 %v2078_v0, %v2084_v25 }
 0xba8   : > { %v2087_v28 = vpop.xlane.xlu1 %2086 }
 0xba9   : > { %v2098_v35 = vmul.f32 1.442695, %v2094_v26  ;;  %v2095_v36 = vsub.f32 %v2079_v2, %v2087_v28 }
 0xbab   : > { %5142 = vpow2.f32 %v2098_v35  ;;  %v2100_v37 = vmul.f32 1.442695, %v2095_v36 }
 0xbad   : > { %5144 = vpow2.f32 %v2100_v37 }
 0xbb5   : > { %v5143_v38 = vpop.eup %5142 }
 0xbb6   : > { %v2106_v39 = vsel %vm1331_vm7, %v5143_v38, 0.0 }
 0xbb7   : > { %v5145_v41 = vpop.eup %5144  ;;  %2107 = vadd.xlane.f32.xlu0 %v2106_v39 }
 0xbb8   : > { %v2109_v45 = vsel %vm1331_vm7, %v5145_v41, 0.0 }
 0xbb9   : > { %2110 = vadd.xlane.f32.xlu1 %v2109_v45  ;;  %v2090_v46 = vpop.xlane.xlu0 %2089 }
 0xbba   : > { %v2096_v47 = vsub.f32 %v2080_v20, %v2090_v46 }
 0xbbc   : > { %v2102_v48 = vmul.f32 1.442695, %v2096_v47 }
 0xbbd   : > { %v2093_v58 = vpop.xlane.xlu0 %2092 }
 0xbbe   : > { %5146 = vpow2.f32 %v2102_v48  ;;  %v2097_v59 = vsub.f32 %v2081_v23, %v2093_v58 }
 0xbc0   : > { %v2104_v60 = vmul.f32 1.442695, %v2097_v59 }
 0xbc2   : > { %5148 = vpow2.f32 %v2104_v60 }
 0xbc8   : > { %v5147_v50 = vpop.eup %5146 }
 0xbc9   : > { %v2112_v57 = vsel %vm1331_vm7, %v5147_v50, 0.0 }
 0xbca   : > { %2175 = vrot.lane.b32.xlu1 %v5832_v40, %s5373_s1  ;;  %2113 = vadd.xlane.f32.xlu0 %v2112_v57 }
 0xbcc   : > { %v5149_v61 = vpop.eup %5148 }
 0xbcd   : > { %v2115_v62 = vsel %vm1331_vm7, %v5149_v61, 0.0 }
 0xbce   : > { %2224 = vrot.lane.b32.xlu1 %v5820_v34, %s5374_s16 }
 0xbe0   : > { %2128 = vrot.lane.b32.xlu0 %v5834_v42, %s5373_s1 }
 0xbe4   : > { %2222 = vrot.lane.b32.xlu0 %v5818_v33, %s5374_s16 }
 0xbf2   : > { %2116 = vadd.xlane.f32.xlu1 %v2115_v62 }
 0xc03   : > { %2275 = vrot.lane.b32.xlu1 %v5816_v30, %s5374_s16 }
 0xc07   : > { %2273 = vrot.lane.b32.xlu1 %v5814_v29, %s5374_s16 }
 0xc44   : > { %v2108_v1 = vpop.xlane.xlu0 %2107 }
 0xc46   : > { %v2111_v63 = vpop.xlane.xlu1 %2110 }
 0xc47   : > { %5150 = vrcp.f32 %v2111_v63 }
 0xc48   : > { %5152 = vrcp.f32 %v2108_v1 }
 0xc4a   : > { %v2176_v0 = vpop.permute.xlu1 %2175 }
 0xc4b   : > { %4761 = vmatpush3.bf16.msra.mxu1 %v2176_v0 }
 0xc4c   : > { %4772 = vmatprep.subr.bf16.mxu1 %v5369_v22 }
 0xc4e   : > { %v2225_v17 = vpop.permute.xlu1 %2224 }
 0xc4f   : > { %v2230_v18 = vsel %vm1224_vm5, %v2225_v17, 0 }
 0xc51   : > { %v5151_v2 = vpop.eup %5150 }
 0xc52   : > { %v5153_v7 = vpop.eup %5152  ;;  %v2123_v10 = vmul.f32 %v5151_v2, %v5145_v41 }
 0xc53   : > { %v2122_v12 = vmul.f32 %v5153_v7, %v5143_v38 }
 0xc55   : > { %v2126_v16 = vpack.c.bf16 %v2123_v10, %v2122_v12 }
 0xc57   : > { %v2114_v3 = vpop.xlane.xlu0 %2113 }
 0xc58   : > { %5154 = vrcp.f32 %v2114_v3 }
 0xc5b   : > { %v2129_v15 = vpop.permute.xlu0 %2128 }
 0xc5c   : > { %4755 = vmatpush3.bf16.msra.mxu0 %v2129_v15 }
 0xc5d   : > { %4766 = vmatprep.subr.bf16.mxu0 %v5369_v22 }
 0xc5f   : > { %4757 = vmatmul.mubr.msk.bf16.vlgmr.msra.gmra.mrb[28].mxu0 %vm1331_vm7, %v2126_v16  ;;  %v2223_v19 = vpop.permute.xlu0 %2222 }
 0xc60   : > { %4768 = vmatprep.mubr.msk.bf16.mxu0 %vm5370_vm4, %v5369_v22 }
 0xc62   : > { %v5155_v21 = vpop.eup %5154 }
 0xc63   : > { %v2124_v24 = vmul.f32 %v5155_v21, %v5147_v50 }
 0xc65   : > { %4767 = vmatpush3.bf16.xpose.msra.mxu0 %v2230_v18 }
 0xc66   : > { %4778 = vmatprep.subr.bf16.mxu0 %v5369_v22 }
 0xc6c   : > { %4769 = vmatmul.mubr.msk.bf16.vlgmr.msra.gmra.mrb[32].mxu0 %vm1224_vm5, %v2223_v19 }
 0xc6d   : > { %4780 = vmatprep.mubr.msk.bf16.mxu0 %vm5370_vm4, %v5369_v22 }
 0xc7f   : > { %v2117_v20 = vpop.xlane.xlu1 %2116 }
 0xc80   : > { %5156 = vrcp.f32 %v2117_v20 }
 0xc83   : > { %v2276_v26 = vpop.permute.xlu1 %2275 }
 0xc84   : > { %v2281_v35 = vsel %vm1224_vm5, %v2276_v26, 0 }
 0xc87   : > { %v2274_v36 = vpop.permute.xlu1 %2273 }
 0xc8a   : > { %v5157_v23 = vpop.eup %5156 }
 0xc8b   : > { %v2125_v25 = vmul.f32 %v5157_v23, %v5149_v61 }
 0xc8d   : > { %v2127_v28 = vpack.c.bf16 %v2125_v25, %v2124_v24 }
 0xc8f   : > { %4763 = vmatmul.mubr.msk.bf16.vlgmr.msra.gmra.mrb[40].mxu1 %vm1331_vm7, %v2127_v28 }
 0xc90   : > { %4773 = vmatpush3.bf16.xpose.msra.mxu1 %v2281_v35  ;;  %4774 = vmatprep.mubr.msk.bf16.mxu1 %vm5370_vm4, %v5369_v22 }
 0xc91   : > { %4784 = vmatprep.subr.bf16.mxu1 %v5369_v22 }
 0xc97   : > { %4775 = vmatmul.mubr.msk.bf16.vlgmr.msra.gmra.mrb[44].mxu1 %vm1224_vm5, %v2274_v36 }
 0xc98   : > { %4786 = vmatprep.mubr.msk.bf16.mxu1 %vm5370_vm4, %v5369_v22 }
 0xd32   : > { %v6078_v37 = vpop.f32.mrb[28].mxu0 }
 0xd33   : > { %v4758_v38 = vpop.f32.mrb[29].mxu0 }
 0xd34   : > { %v6080_v39 = vpop.f32.mrb[30].mxu0 }
 0xd35   : > { %v4964_v41 = vpack.i.bf16 %v6080_v39, %v6078_v37  ;;  %v4759_v45 = vpop.f32.mrb[31].mxu0 }
 0xd3f   : > { %v2266_v46 = vpop.f32.mrb[32].mxu0 }
 0xd40   : > { %v2324_v47 = vmul.f32 0.35355338, %v2266_v46  ;;  %v4770_v48 = vpop.f32.mrb[33].mxu0 }
 0xd41   : > { %v2269_v50 = vpop.f32.mrb[34].mxu0 }
 0xd42   : > { %v2325_v57 = vmul.f32 0.35355338, %v2269_v50  ;;  %v4771_v58 = vpop.f32.mrb[35].mxu0  ;;  %v2328_v59 = vsel %vm1323_vm6, -1e+08, %v2324_v47 }
 0xd43   : > { %v2332_v60 = vsel %vm1331_vm7, %v2328_v59, -inf }
 0xd44   : > { %2333 = vmax.xlane.f32.xlu0 %v2332_v60  ;;  %v2329_v61 = vsel %vm1324_vm8, -1e+08, %v2325_v57 }
 0xd45   : > { %v2335_v62 = vsel %vm1331_vm7, %v2329_v61, -inf }
 0xd46   : > { %2336 = vmax.xlane.f32.xlu1 %v2335_v62 }
 0xd62   : > { %v6090_v63 = vpop.f32.mrb[40].mxu1 }
 0xd63   : > { %v4764_v0 = vpop.f32.mrb[41].mxu1 }
 0xd64   : > { %v6092_v1 = vpop.f32.mrb[42].mxu1 }
 0xd65   : > { %v4969_v2 = vpack.i.bf16 %v6092_v1, %v6090_v63  ;;  %v4765_v3 = vpop.f32.mrb[43].mxu1  ;;  %v5027_v63 = vld [vmem:[%s5712_s23 + $0x8] sm:$0xff]   ;;  %v5028_v1 = vld [vmem:[%s5712_s23 + $0x10] sm:$0xff]  }
 0xd6a   : > { %v2317_v7 = vpop.f32.mrb[44].mxu1 }
 0xd6b   : > { %v2326_v10 = vmul.f32 0.35355338, %v2317_v7  ;;  %v4776_v12 = vpop.f32.mrb[45].mxu1 }
 0xd6c   : > { %v2320_v15 = vpop.f32.mrb[46].mxu1 }
 0xd6d   : > { %v2327_v16 = vmul.f32 0.35355338, %v2320_v15  ;;  %v4777_v17 = vpop.f32.mrb[47].mxu1  ;;  %v2330_v18 = vsel %vm1325_vm9, -1e+08, %v2326_v10 }
 0xd6e   : > { %v2338_v19 = vsel %vm1331_vm7, %v2330_v18, -inf }
 0xd6f   : > { %2339 = vmax.xlane.f32.xlu0 %v2338_v19  ;;  %v2331_v20 = vsel %vm1326_vm10, -1e+08, %v2327_v16 }
 0xd70   : > { %v2341_v21 = vsel %vm1331_vm7, %v2331_v20, -inf }
 0xd73   : > { %2342 = vmax.xlane.f32.xlu0 %v2341_v21 }
 0xdd1   : > { %v2334_v23 = vpop.xlane.xlu0 %2333 }
 0xdd2   : > { %v2344_v24 = vsub.f32 %v2328_v59, %v2334_v23 }
 0xdd3   : > { %v2337_v25 = vpop.xlane.xlu1 %2336 }
 0xdd4   : > { %v2348_v26 = vmul.f32 1.442695, %v2344_v24  ;;  %v2345_v28 = vsub.f32 %v2329_v61, %v2337_v25 }
 0xdd6   : > { %5158 = vpow2.f32 %v2348_v26  ;;  %v2350_v35 = vmul.f32 1.442695, %v2345_v28 }
 0xdd8   : > { %5160 = vpow2.f32 %v2350_v35 }
 0xde0   : > { %v5159_v36 = vpop.eup %5158 }
 0xde1   : > { %v2356_v38 = vsel %vm1331_vm7, %v5159_v36, 0.0 }
 0xde2   : > { %v5161_v45 = vpop.eup %5160  ;;  %2357 = vadd.xlane.f32.xlu0 %v2356_v38 }
 0xde3   : > { %v2359_v46 = vsel %vm1331_vm7, %v5161_v45, 0.0 }
 0xde4   : > { %2360 = vadd.xlane.f32.xlu1 %v2359_v46 }
 0xdf5   : > { %2425 = vrot.lane.b32.xlu1 %v5832_v40, %s5374_s16 }
 0xdf9   : > { %2474 = vrot.lane.b32.xlu1 %v5820_v34, %s5375_s2 }
 0xdfc   : > { %v2340_v47 = vpop.xlane.xlu0 %2339 }
 0xdfd   : > { %v2346_v48 = vsub.f32 %v2330_v18, %v2340_v47 }
 0xdff   : > { %v2352_v50 = vmul.f32 1.442695, %v2346_v48 }
 0xe00   : > { %v2343_v57 = vpop.xlane.xlu0 %2342 }
 0xe01   : > { %5162 = vpow2.f32 %v2352_v50  ;;  %v2347_v58 = vsub.f32 %v2331_v20, %v2343_v57 }
 0xe03   : > { %v2354_v60 = vmul.f32 1.442695, %v2347_v58 }
 0xe05   : > { %5164 = vpow2.f32 %v2354_v60 }
 0xe0b   : > { %v5163_v59 = vpop.eup %5162 }
 0xe0c   : > { %v2362_v61 = vsel %vm1331_vm7, %v5163_v59, 0.0 }
 0xe0d   : > { %2363 = vadd.xlane.f32.xlu0 %v2362_v61 }
 0xe0f   : > { %v5165_v62 = vpop.eup %5164 }
 0xe10   : > { %v2365_v0 = vsel %vm1331_vm7, %v5165_v62, 0.0 }
 0xe1d   : > { %2366 = vadd.xlane.f32.xlu1 %v2365_v0 }
 0xe23   : > { %2378 = vrot.lane.b32.xlu0 %v5834_v42, %s5374_s16 }
 0xe27   : > { %2472 = vrot.lane.b32.xlu0 %v5818_v33, %s5375_s2 }
 0xe2e   : > { %2525 = vrot.lane.b32.xlu1 %v5816_v30, %s5375_s2 }
 0xe32   : > { %2523 = vrot.lane.b32.xlu1 %v5814_v29, %s5375_s2 }
 0xe6f   : > { %v2358_v10 = vpop.xlane.xlu0 %2357 }
 0xe71   : > { %v2361_v3 = vpop.xlane.xlu1 %2360 }
 0xe72   : > { %5166 = vrcp.f32 %v2361_v3 }
 0xe73   : > { %5168 = vrcp.f32 %v2358_v10 }
 0xe75   : > { %v2426_v7 = vpop.permute.xlu1 %2425 }
 0xe76   : > { %4785 = vmatpush3.bf16.msra.mxu1 %v2426_v7 }
 0xe77   : > { %4796 = vmatprep.subr.bf16.mxu1 %v5369_v22 }
 0xe79   : > { %v2475_v21 = vpop.permute.xlu1 %2474 }
 0xe7a   : > { %v2480_v23 = vsel %vm1224_vm5, %v2475_v21, 0 }
 0xe7c   : > { %v5167_v12 = vpop.eup %5166 }
 0xe7d   : > { %v5169_v16 = vpop.eup %5168  ;;  %v2373_v17 = vmul.f32 %v5167_v12, %v5161_v45 }
 0xe7e   : > { %v2372_v18 = vmul.f32 %v5169_v16, %v5159_v36 }
 0xe80   : > { %v2376_v20 = vpack.c.bf16 %v2373_v17, %v2372_v18 }
 0xe9a   : > { %v2364_v15 = vpop.xlane.xlu0 %2363 }
 0xe9b   : > { %5170 = vrcp.f32 %v2364_v15 }
 0xe9e   : > { %v2379_v19 = vpop.permute.xlu0 %2378 }
 0xe9f   : > { %4779 = vmatpush3.bf16.msra.mxu0 %v2379_v19 }
 0xea0   : > { %4790 = vmatprep.subr.bf16.mxu0 %v5369_v22 }
 0xea2   : > { %4781 = vmatmul.mubr.msk.bf16.vlgmr.msra.gmra.mrb[36].mxu0 %vm1331_vm7, %v2376_v20  ;;  %v2473_v25 = vpop.permute.xlu0 %2472 }
 0xea3   : > { %4792 = vmatprep.mubr.msk.bf16.mxu0 %vm5370_vm4, %v5369_v22 }
 0xea5   : > { %v5171_v26 = vpop.eup %5170 }
 0xea6   : > { %v2374_v35 = vmul.f32 %v5171_v26, %v5163_v59 }
 0xea8   : > { %4791 = vmatpush3.bf16.xpose.msra.mxu0 %v2480_v23 }
 0xea9   : > { %4802 = vmatprep.subr.bf16.mxu0 %v5369_v22 }
 0xeaa   : > { %v2367_v24 = vpop.xlane.xlu1 %2366 }
 0xeab   : > { %5172 = vrcp.f32 %v2367_v24 }
 0xeae   : > { %v2526_v38 = vpop.permute.xlu1 %2525 }
 0xeaf   : > { %4793 = vmatmul.mubr.msk.bf16.vlgmr.msra.gmra.mrb[40].mxu0 %vm1224_vm5, %v2473_v25  ;;  %v2531_v46 = vsel %vm1224_vm5, %v2526_v38, 0 }
 0xeb0   : > { %4804 = vmatprep.mubr.msk.bf16.mxu0 %vm5370_vm4, %v5369_v22 }
 0xeb2   : > { %v2524_v47 = vpop.permute.xlu1 %2523 }
 0xeb5   : > { %v5173_v28 = vpop.eup %5172 }
 0xeb6   : > { %v2375_v36 = vmul.f32 %v5173_v28, %v5165_v62 }
 0xeb8   : > { %v2377_v45 = vpack.c.bf16 %v2375_v36, %v2374_v35 }
 0xeba   : > { %4787 = vmatmul.mubr.msk.bf16.vlgmr.msra.gmra.mrb[48].mxu1 %vm1331_vm7, %v2377_v45 }
 0xebb   : > { %4797 = vmatpush3.bf16.xpose.msra.mxu1 %v2531_v46  ;;  %4798 = vmatprep.mubr.msk.bf16.mxu1 %vm5370_vm4, %v5369_v22 }
 0xebc   : > { %4808 = vmatprep.subr.bf16.mxu1 %v5369_v22 }
 0xec2   : > { %4799 = vmatmul.mubr.msk.bf16.vlgmr.msra.gmra.mrb[52].mxu1 %vm1224_vm5, %v2524_v47 }
 0xec3   : > { %4810 = vmatprep.mubr.msk.bf16.mxu1 %vm5370_vm4, %v5369_v22 }
 0xf75   : > { %v6136_v48 = vpop.f32.mrb[36].mxu0 }
 0xf76   : > { %v4782_v50 = vpop.f32.mrb[37].mxu0 }
 0xf77   : > { %v6138_v57 = vpop.f32.mrb[38].mxu0 }
 0xf78   : > { %v4974_v58 = vpack.i.bf16 %v6138_v57, %v6136_v48  ;;  %v4783_v59 = vpop.f32.mrb[39].mxu0 }
 0xf82   : > { %v2516_v60 = vpop.f32.mrb[40].mxu0 }
 0xf83   : > { %v2574_v61 = vmul.f32 0.35355338, %v2516_v60  ;;  %v4794_v62 = vpop.f32.mrb[41].mxu0 }
 0xf84   : > { %v2519_v0 = vpop.f32.mrb[42].mxu0 }
 0xf85   : > { %v2575_v3 = vmul.f32 0.35355338, %v2519_v0  ;;  %v4795_v7 = vpop.f32.mrb[43].mxu0  ;;  %v2578_v10 = vsel %vm1323_vm6, -1e+08, %v2574_v61 }
 0xf86   : > { %v2582_v12 = vsel %vm1331_vm7, %v2578_v10, -inf }
 0xf87   : > { %2583 = vmax.xlane.f32.xlu0 %v2582_v12  ;;  %v2579_v15 = vsel %vm1324_vm8, -1e+08, %v2575_v3 }
 0xf88   : > { %v2585_v16 = vsel %vm1331_vm7, %v2579_v15, -inf }
 0xf89   : > { %2586 = vmax.xlane.f32.xlu1 %v2585_v16 }
 0xf8d   : > { %v6148_v17 = vpop.f32.mrb[48].mxu1 }
 0xf8e   : > { %v4788_v18 = vpop.f32.mrb[49].mxu1 }
 0xf8f   : > { %v6150_v19 = vpop.f32.mrb[50].mxu1 }
 0xf90   : > { %v4979_v20 = vpack.i.bf16 %v6150_v19, %v6148_v17  ;;  %v4789_v21 = vpop.f32.mrb[51].mxu1  ;;  %v5029_v19 = vld [vmem:[%s5712_s23 + $0x18] sm:$0xff]  }
 0xf95   : > { %v2567_v23 = vpop.f32.mrb[52].mxu1 }
 0xf96   : > { %v2576_v24 = vmul.f32 0.35355338, %v2567_v23  ;;  %v4800_v25 = vpop.f32.mrb[53].mxu1 }
 0xf97   : > { %v2570_v26 = vpop.f32.mrb[54].mxu1 }
 0xf98   : > { %v2577_v28 = vmul.f32 0.35355338, %v2570_v26  ;;  %v4801_v35 = vpop.f32.mrb[55].mxu1  ;;  %v2580_v36 = vsel %vm1325_vm9, -1e+08, %v2576_v24 }
 0xf99   : > { %v2588_v38 = vsel %vm1331_vm7, %v2580_v36, -inf }
 0xf9a   : > { %2589 = vmax.xlane.f32.xlu0 %v2588_v38  ;;  %v2581_v45 = vsel %vm1326_vm10, -1e+08, %v2577_v28 }
 0xf9b   : > { %v2591_v46 = vsel %vm1331_vm7, %v2581_v45, -inf }
 0xf9e   : > { %2592 = vmax.xlane.f32.xlu0 %v2591_v46 }
0x1014   : > { %v2584_v47 = vpop.xlane.xlu0 %2583 }
0x1015   : > { %v2594_v50 = vsub.f32 %v2578_v10, %v2584_v47 }
0x1016   : > { %v2587_v59 = vpop.xlane.xlu1 %2586 }
0x1017   : > { %v2598_v60 = vmul.f32 1.442695, %v2594_v50  ;;  %v2595_v61 = vsub.f32 %v2579_v15, %v2587_v59 }
0x1019   : > { %5174 = vpow2.f32 %v2598_v60  ;;  %v2600_v62 = vmul.f32 1.442695, %v2595_v61 }
0x101b   : > { %5176 = vpow2.f32 %v2600_v62 }
0x1023   : > { %v5175_v0 = vpop.eup %5174 }
0x1024   : > { %v2606_v3 = vsel %vm1331_vm7, %v5175_v0, 0.0 }
0x1025   : > { %v5177_v7 = vpop.eup %5176  ;;  %2607 = vadd.xlane.f32.xlu0 %v2606_v3 }
0x1026   : > { %v2609_v12 = vsel %vm1331_vm7, %v5177_v7, 0.0 }
0x1027   : > { %2610 = vadd.xlane.f32.xlu1 %v2609_v12  ;;  %v2590_v16 = vpop.xlane.xlu0 %2589 }
0x1028   : > { %v2596_v18 = vsub.f32 %v2580_v36, %v2590_v16 }
0x102a   : > { %v2602_v21 = vmul.f32 1.442695, %v2596_v18 }
0x102b   : > { %v2593_v15 = vpop.xlane.xlu0 %2592 }
0x102c   : > { %5178 = vpow2.f32 %v2602_v21  ;;  %v2597_v24 = vsub.f32 %v2581_v45, %v2593_v15 }
0x102e   : > { %v2604_v25 = vmul.f32 1.442695, %v2597_v24 }
0x1030   : > { %5180 = vpow2.f32 %v2604_v25 }
0x1036   : > { %v5179_v23 = vpop.eup %5178 }
0x1037   : > { %v2612_v10 = vsel %vm1331_vm7, %v5179_v23, 0.0 }
0x1038   : > { %2675 = vrot.lane.b32.xlu1 %v5832_v40, %s5375_s2  ;;  %2613 = vadd.xlane.f32.xlu0 %v2612_v10 }
0x103a   : > { %v5181_v26 = vpop.eup %5180 }
0x103b   : > { %v2615_v28 = vsel %vm1331_vm7, %v5181_v26, 0.0 }
0x103c   : > { %2724 = vrot.lane.b32.xlu1 %v5820_v34, %s5376_s24 }
0x104e   : > { %2628 = vrot.lane.b32.xlu0 %v5834_v42, %s5375_s2 }
0x1052   : > { %2722 = vrot.lane.b32.xlu0 %v5818_v33, %s5376_s24 }
0x1060   : > { %2616 = vadd.xlane.f32.xlu1 %v2615_v28 }
0x1071   : > { %2775 = vrot.lane.b32.xlu1 %v5816_v30, %s5376_s24 }
0x1075   : > { %2773 = vrot.lane.b32.xlu1 %v5814_v29, %s5376_s24 }
0x10b2   : > { %v2608_v38 = vpop.xlane.xlu0 %2607 }
0x10b4   : > { %v2611_v35 = vpop.xlane.xlu1 %2610 }
0x10b5   : > { %5182 = vrcp.f32 %v2611_v35 }
0x10b6   : > { %5184 = vrcp.f32 %v2608_v38 }
0x10b8   : > { %v2676_v36 = vpop.permute.xlu1 %2675 }
0x10b9   : > { %4809 = vmatpush3.bf16.msra.mxu1 %v2676_v36 }
0x10ba   : > { %4820 = vmatprep.subr.bf16.mxu1 %v5369_v22 }
0x10bc   : > { %v2725_v62 = vpop.permute.xlu1 %2724 }
0x10bd   : > { %v2730_v3 = vsel %vm1224_vm5, %v2725_v62, 0 }
0x10bf   : > { %v5183_v45 = vpop.eup %5182 }
0x10c0   : > { %v5185_v47 = vpop.eup %5184  ;;  %v2623_v50 = vmul.f32 %v5183_v45, %v5177_v7 }
0x10c1   : > { %v2622_v59 = vmul.f32 %v5185_v47, %v5175_v0 }
0x10c3   : > { %v2626_v61 = vpack.c.bf16 %v2623_v50, %v2622_v59 }
0x10c5   : > { %v2614_v46 = vpop.xlane.xlu0 %2613 }
0x10c6   : > { %5186 = vrcp.f32 %v2614_v46 }
0x10c9   : > { %v2629_v60 = vpop.permute.xlu0 %2628 }
0x10ca   : > { %4803 = vmatpush3.bf16.msra.mxu0 %v2629_v60 }
0x10cb   : > { %4814 = vmatprep.subr.bf16.mxu0 %v5369_v22 }
0x10cd   : > { %4805 = vmatmul.mubr.msk.bf16.vlgmr.msra.gmra.mrb[44].mxu0 %vm1331_vm7, %v2626_v61  ;;  %v2723_v12 = vpop.permute.xlu0 %2722 }
0x10ce   : > { %4816 = vmatprep.mubr.msk.bf16.mxu0 %vm5370_vm4, %v5369_v22 }
0x10d0   : > { %v5187_v7 = vpop.eup %5186 }
0x10d1   : > { %v2624_v18 = vmul.f32 %v5187_v7, %v5179_v23 }
0x10d3   : > { %4815 = vmatpush3.bf16.xpose.msra.mxu0 %v2730_v3 }
0x10d4   : > { %4826 = vmatprep.subr.bf16.mxu0 %v5369_v22 }
0x10da   : > { %4817 = vmatmul.mubr.msk.bf16.vlgmr.msra.gmra.mrb[48].mxu0 %vm1224_vm5, %v2723_v12 }
0x10db   : > { %4828 = vmatprep.mubr.msk.bf16.mxu0 %vm5370_vm4, %v5369_v22 }
0x10ed   : > { %v2617_v0 = vpop.xlane.xlu1 %2616 }
0x10ee   : > { %5188 = vrcp.f32 %v2617_v0 }
0x10f1   : > { %v2776_v10 = vpop.permute.xlu1 %2775 }
0x10f2   : > { %v2781_v24 = vsel %vm1224_vm5, %v2776_v10, 0 }
0x10f5   : > { %v2774_v25 = vpop.permute.xlu1 %2773 }
0x10f8   : > { %v5189_v16 = vpop.eup %5188 }
0x10f9   : > { %v2625_v21 = vmul.f32 %v5189_v16, %v5181_v26 }
0x10fb   : > { %v2627_v15 = vpack.c.bf16 %v2625_v21, %v2624_v18 }
0x10fd   : > { %4811 = vmatmul.mubr.msk.bf16.vlgmr.msra.gmra.mrb[56].mxu1 %vm1331_vm7, %v2627_v15 }
0x10fe   : > { %4821 = vmatpush3.bf16.xpose.msra.mxu1 %v2781_v24  ;;  %4822 = vmatprep.mubr.msk.bf16.mxu1 %vm5370_vm4, %v5369_v22 }
0x10ff   : > { %4832 = vmatprep.subr.bf16.mxu1 %v5369_v22 }
0x1105   : > { %4823 = vmatmul.mubr.msk.bf16.vlgmr.msra.gmra.mrb[60].mxu1 %vm1224_vm5, %v2774_v25 }
0x1106   : > { %4834 = vmatprep.mubr.msk.bf16.mxu1 %vm5370_vm4, %v5369_v22 }
0x11a0   : > { %v6194_v23 = vpop.f32.mrb[44].mxu0 }
0x11a1   : > { %v4806_v26 = vpop.f32.mrb[45].mxu0 }
0x11a2   : > { %v6196_v28 = vpop.f32.mrb[46].mxu0 }
0x11a3   : > { %v4984_v35 = vpack.i.bf16 %v6196_v28, %v6194_v23  ;;  %v4807_v36 = vpop.f32.mrb[47].mxu0 }
0x11ad   : > { %v2766_v38 = vpop.f32.mrb[48].mxu0 }
0x11ae   : > { %v2824_v45 = vmul.f32 0.35355338, %v2766_v38  ;;  %v4818_v46 = vpop.f32.mrb[49].mxu0 }
0x11af   : > { %v2769_v47 = vpop.f32.mrb[50].mxu0 }
0x11b0   : > { %v2825_v50 = vmul.f32 0.35355338, %v2769_v47  ;;  %v4819_v59 = vpop.f32.mrb[51].mxu0  ;;  %v2828_v60 = vsel %vm1323_vm6, -1e+08, %v2824_v45 }
0x11b1   : > { %v2832_v61 = vsel %vm1331_vm7, %v2828_v60, -inf }
0x11b2   : > { %2833 = vmax.xlane.f32.xlu0 %v2832_v61  ;;  %v2829_v62 = vsel %vm1324_vm8, -1e+08, %v2825_v50 }
0x11b3   : > { %v2835_v3 = vsel %vm1331_vm7, %v2829_v62, -inf }
0x11b4   : > { %2836 = vmax.xlane.f32.xlu1 %v2835_v3 }
0x11d0   : > { %v6206_v12 = vpop.f32.mrb[56].mxu1 }
0x11d1   : > { %v4812_v0 = vpop.f32.mrb[57].mxu1 }
0x11d2   : > { %v6208_v7 = vpop.f32.mrb[58].mxu1 }
0x11d3   : > { %v4989_v16 = vpack.i.bf16 %v6208_v7, %v6206_v12  ;;  %v4813_v18 = vpop.f32.mrb[59].mxu1 }
0x11d8   : > { %v2817_v21 = vpop.f32.mrb[60].mxu1 }
0x11d9   : > { %v2826_v10 = vmul.f32 0.35355338, %v2817_v21  ;;  %v4824_v15 = vpop.f32.mrb[61].mxu1 }
0x11da   : > { %v2820_v24 = vpop.f32.mrb[62].mxu1 }
0x11db   : > { %v2827_v25 = vmul.f32 0.35355338, %v2820_v24  ;;  %v4825_v26 = vpop.f32.mrb[63].mxu1  ;;  %v2830_v36 = vsel %vm1325_vm9, -1e+08, %v2826_v10 }
0x11dc   : > { %v2838_v38 = vsel %vm1331_vm7, %v2830_v36, -inf }
0x11dd   : > { %2839 = vmax.xlane.f32.xlu0 %v2838_v38  ;;  %v2831_v45 = vsel %vm1326_vm10, -1e+08, %v2827_v25 }
0x11de   : > { %v2841_v46 = vsel %vm1331_vm7, %v2831_v45, -inf }
0x11e1   : > { %2842 = vmax.xlane.f32.xlu0 %v2841_v46 }
0x123f   : > { %v2834_v47 = vpop.xlane.xlu0 %2833 }
0x1240   : > { %v2844_v50 = vsub.f32 %v2828_v60, %v2834_v47 }
0x1241   : > { %v2837_v59 = vpop.xlane.xlu1 %2836 }
0x1242   : > { %v2848_v61 = vmul.f32 1.442695, %v2844_v50  ;;  %v2845_v3 = vsub.f32 %v2829_v62, %v2837_v59 }
0x1244   : > { %5190 = vpow2.f32 %v2848_v61  ;;  %v2850_v0 = vmul.f32 1.442695, %v2845_v3 }
0x1246   : > { %5192 = vpow2.f32 %v2850_v0 }
0x124e   : > { %v5191_v18 = vpop.eup %5190 }
0x124f   : > { %v2856_v21 = vsel %vm1331_vm7, %v5191_v18, 0.0 }
0x1250   : > { %v5193_v10 = vpop.eup %5192  ;;  %2857 = vadd.xlane.f32.xlu0 %v2856_v21 }
0x1251   : > { %v2859_v15 = vsel %vm1331_vm7, %v5193_v10, 0.0 }
0x1252   : > { %2860 = vadd.xlane.f32.xlu1 %v2859_v15 }
0x1263   : > { %2925 = vrot.lane.b32.xlu1 %v5832_v40, %s5376_s24 }
0x1267   : > { %2974 = vrot.lane.b32.xlu1 %v5820_v34, %s5377_s14 }
0x126a   : > { %v2840_v60 = vpop.xlane.xlu0 %2839 }
0x126b   : > { %v2846_v62 = vsub.f32 %v2830_v36, %v2840_v60 }
0x126d   : > { %v2852_v24 = vmul.f32 1.442695, %v2846_v62 }
0x126e   : > { %v2843_v25 = vpop.xlane.xlu0 %2842 }
0x126f   : > { %5194 = vpow2.f32 %v2852_v24  ;;  %v2847_v26 = vsub.f32 %v2831_v45, %v2843_v25 }
0x1271   : > { %v2854_v46 = vmul.f32 1.442695, %v2847_v26 }
0x1273   : > { %5196 = vpow2.f32 %v2854_v46 }
0x1279   : > { %v5195_v38 = vpop.eup %5194 }
0x127a   : > { %v2862_v47 = vsel %vm1331_vm7, %v5195_v38, 0.0 }
0x127b   : > { %2863 = vadd.xlane.f32.xlu0 %v2862_v47 }
0x127d   : > { %v5197_v50 = vpop.eup %5196 }
0x127e   : > { %v2865_v59 = vsel %vm1331_vm7, %v5197_v50, 0.0 }
0x128b   : > { %2866 = vadd.xlane.f32.xlu1 %v2865_v59 }
0x1291   : > { %2878 = vrot.lane.b32.xlu0 %v5834_v42, %s5376_s24 }
0x1295   : > { %2972 = vrot.lane.b32.xlu0 %v5818_v33, %s5377_s14 }
0x129c   : > { %3025 = vrot.lane.b32.xlu1 %v5816_v30, %s5377_s14 }
0x12a0   : > { %3023 = vrot.lane.b32.xlu1 %v5814_v29, %s5377_s14 }
0x12dd   : > { %v2858_v45 = vpop.xlane.xlu0 %2857 }
0x12df   : > { %v2861_v34 = vpop.xlane.xlu1 %2860 }
0x12e0   : > { %5198 = vrcp.f32 %v2861_v34 }
0x12e1   : > { %5200 = vrcp.f32 %v2858_v45 }
0x12e3   : > { %v2926_v36 = vpop.permute.xlu1 %2925 }
0x12e4   : > { %4833 = vmatpush3.bf16.msra.mxu1 %v2926_v36 }
0x12e5   : > { %4844 = vmatprep.subr.bf16.mxu1 %v5369_v22 }
0x12e7   : > { %v2975_v29 = vpop.permute.xlu1 %2974 }
0x12e8   : > { %v2980_v30 = vsel %vm1224_vm5, %v2975_v29, 0 }
0x12ea   : > { %v5199_v61 = vpop.eup %5198 }
0x12eb   : > { %v5201_v0 = vpop.eup %5200  ;;  %v2873_v21 = vmul.f32 %v5199_v61, %v5193_v10 }
0x12ec   : > { %v2872_v15 = vmul.f32 %v5201_v0, %v5191_v18 }
0x12ee   : > { %v2876_v60 = vpack.c.bf16 %v2873_v21, %v2872_v15 }
0x1308   : > { %v2864_v3 = vpop.xlane.xlu0 %2863 }
0x1309   : > { %5202 = vrcp.f32 %v2864_v3 }
0x130c   : > { %v2879_v33 = vpop.permute.xlu0 %2878 }
0x130d   : > { %4827 = vmatpush3.bf16.msra.mxu0 %v2879_v33 }
0x130e   : > { %4838 = vmatprep.subr.bf16.mxu0 %v5369_v22 }
0x1310   : > { %4829 = vmatmul.mubr.msk.bf16.vlgmr.msra.gmra.mrb[52].mxu0 %vm1331_vm7, %v2876_v60  ;;  %v2973_v18 = vpop.permute.xlu0 %2972 }
0x1311   : > { %4840 = vmatprep.mubr.msk.bf16.mxu0 %vm5370_vm4, %v5369_v22 }
0x1313   : > { %v5203_v10 = vpop.eup %5202 }
0x1314   : > { %v2874_v25 = vmul.f32 %v5203_v10, %v5195_v38 }
0x1316   : > { %4839 = vmatpush3.bf16.xpose.msra.mxu0 %v2980_v30 }
0x1317   : > { %4850 = vmatprep.subr.bf16.mxu0 %v5369_v22 }
0x1318   : > { %v2867_v62 = vpop.xlane.xlu1 %2866 }
0x1319   : > { %5204 = vrcp.f32 %v2867_v62 }
0x131c   : > { %v3026_v46 = vpop.permute.xlu1 %3025 }
0x131d   : > { %4841 = vmatmul.mubr.msk.bf16.vlgmr.msra.gmra.mrb[56].mxu0 %vm1224_vm5, %v2973_v18  ;;  %v3031_v59 = vsel %vm1224_vm5, %v3026_v46, 0 }
0x131e   : > { %4852 = vmatprep.mubr.msk.bf16.mxu0 %vm5370_vm4, %v5369_v22 }
0x1320   : > { %v3024_v34 = vpop.permute.xlu1 %3023 }
0x1323   : > { %v5205_v24 = vpop.eup %5204 }
0x1324   : > { %v2875_v26 = vmul.f32 %v5205_v24, %v5197_v50 }
0x1326   : > { %v2877_v47 = vpack.c.bf16 %v2875_v26, %v2874_v25 }
0x1328   : > { %4835 = vmatmul.mubr.msk.bf16.vlgmr.msra.gmra.mrb[64].mxu1 %vm1331_vm7, %v2877_v47 }
0x1329   : > { %4845 = vmatpush3.bf16.xpose.msra.mxu1 %v3031_v59  ;;  %4846 = vmatprep.mubr.msk.bf16.mxu1 %vm5370_vm4, %v5369_v22 }
0x132a   : > { %4856 = vmatprep.subr.bf16.mxu1 %v5369_v22 }
0x1330   : > { %4847 = vmatmul.mubr.msk.bf16.vlgmr.msra.gmra.mrb[68].mxu1 %vm1224_vm5, %v3024_v34 }
0x1331   : > { %4858 = vmatprep.mubr.msk.bf16.mxu1 %vm5370_vm4, %v5369_v22 }
0x13e3   : > { %v6252_v38 = vpop.f32.mrb[52].mxu0 }
0x13e4   : > { %v4830_v50 = vpop.f32.mrb[53].mxu0 }
0x13e5   : > { %v6254_v36 = vpop.f32.mrb[54].mxu0 }
0x13e6   : > { %v4994_v45 = vpack.i.bf16 %v6254_v36, %v6252_v38  ;;  %v4831_v61 = vpop.f32.mrb[55].mxu0 }
0x13f0   : > { %v3016_v3 = vpop.f32.mrb[56].mxu0 }
0x13f1   : > { %v3074_v0 = vmul.f32 0.35355338, %v3016_v3  ;;  %v4842_v21 = vpop.f32.mrb[57].mxu0 }
0x13f2   : > { %v3019_v15 = vpop.f32.mrb[58].mxu0 }
0x13f3   : > { %v3078_v33 = vsel %vm1323_vm6, -1e+08, %v3074_v0  ;;  %v3075_v60 = vmul.f32 0.35355338, %v3019_v15  ;;  %v4843_v29 = vpop.f32.mrb[59].mxu0 }
0x13f4   : > { %v3082_v22 = vsel %vm1331_vm7, %v3078_v33, -inf }
0x13f5   : > { %v3079_v30 = vsel %vm1324_vm8, -1e+08, %v3075_v60  ;;  %3083 = vmax.xlane.f32.xlu0 %v3082_v22 }
0x13f6   : > { %v3085_v62 = vsel %vm1331_vm7, %v3079_v30, -inf }
0x13f7   : > { %3086 = vmax.xlane.f32.xlu1 %v3085_v62 }
0x13fb   : > { %v6264_v18 = vpop.f32.mrb[64].mxu1 }
0x13fc   : > { %v4836_v10 = vpop.f32.mrb[65].mxu1 }
0x13fd   : > { %v2968_v24 = vpop.f32.mrb[66].mxu1 }
0x13fe   : > { %v4999_v25 = vpack.i.bf16 %v2968_v24, %v6264_v18  ;;  %v4837_v26 = vpop.f32.mrb[67].mxu1 }
0x1403   : > { %v3067_v43 = vpop.f32.mrb[68].mxu1 }
0x1404   : > { %v3076_v46 = vmul.f32 0.35355338, %v3067_v43  ;;  %v4848_v47 = vpop.f32.mrb[69].mxu1 }
0x1405   : > { %v3070_v59 = vpop.f32.mrb[70].mxu1 }
0x1406   : > { %v3080_v34 = vsel %vm1325_vm9, -1e+08, %v3076_v46  ;;  %v3077_v44 = vmul.f32 0.35355338, %v3070_v59  ;;  %v4849_v50 = vpop.f32.mrb[71].mxu1 }
0x1407   : > { %v3088_v61 = vsel %vm1331_vm7, %v3080_v34, -inf }
0x1408   : > { %v3081_v3 = vsel %vm1326_vm10, -1e+08, %v3077_v44  ;;  %3089 = vmax.xlane.f32.xlu0 %v3088_v61 }
0x1409   : > { %v3091_v0 = vsel %vm1331_vm7, %v3081_v3, -inf }
0x140c   : > { %3092 = vmax.xlane.f32.xlu0 %v3091_v0 }
0x1482   : > { %v3084_v21 = vpop.xlane.xlu0 %3083 }
0x1483   : > { %v3094_v15 = vsub.f32 %v3078_v33, %v3084_v21 }
0x1484   : > { %v3087_v60 = vpop.xlane.xlu1 %3086 }
0x1485   : > { %v3098_v29 = vmul.f32 1.442695, %v3094_v15  ;;  %v3095_v22 = vsub.f32 %v3079_v30, %v3087_v60 }
0x1487   : > { %5206 = vpow2.f32 %v3098_v29  ;;  %v3100_v62 = vmul.f32 1.442695, %v3095_v22 }
0x1489   : > { %5208 = vpow2.f32 %v3100_v62 }
0x1491   : > { %v5207_v54 = vpop.eup %5206 }
0x1492   : > { %v3106_v18 = vsel %vm1331_vm7, %v5207_v54, 0.0 }
0x1493   : > { %v5209_v10 = vpop.eup %5208  ;;  %3107 = vadd.xlane.f32.xlu0 %v3106_v18 }
0x1494   : > { %v3109_v56 = vsel %vm1331_vm7, %v5209_v10, 0.0 }
0x1495   : > { %3110 = vadd.xlane.f32.xlu1 %v3109_v56  ;;  %v3090_v24 = vpop.xlane.xlu0 %3089 }
0x1496   : > { %v3096_v26 = vsub.f32 %v3080_v34, %v3090_v24 }
0x1498   : > { %v3102_v43 = vmul.f32 1.442695, %v3096_v26 }
0x1499   : > { %v3093_v46 = vpop.xlane.xlu0 %3092 }
0x149a   : > { %5210 = vpow2.f32 %v3102_v43  ;;  %v3097_v33 = vsub.f32 %v3081_v3, %v3093_v46 }
0x149c   : > { %v3104_v47 = vmul.f32 1.442695, %v3097_v33 }
0x149e   : > { %5212 = vpow2.f32 %v3104_v47 }
0x14a4   : > { %v5211_v30 = vpop.eup %5210 }
0x14a5   : > { %v3112_v59 = vsel %vm1331_vm7, %v5211_v30, 0.0 }
0x14a6   : > { %3113 = vadd.xlane.f32.xlu0 %v3112_v59 }
0x14a8   : > { %v5213_v44 = vpop.eup %5212 }
0x14a9   : > { %v3115_v50 = vsel %vm1331_vm7, %v5213_v44, 0.0 }
0x14aa   : > { %3116 = vadd.xlane.f32.xlu1 %v3115_v50 }
0x14bb   : > { %3175 = vrot.lane.b32.xlu1 %v5832_v40, %s5377_s14 }
0x14bc   : > { %3128 = vrot.lane.b32.xlu0 %v5834_v42, %s5377_s14  ;;  %s6582_s14 = scalar_lea.vmem %s6521_s10, %s5666_s0 }
0x14bf   : > { %4945 = vrot.lane.b32.xlu1 %v4944_v14, %s5378_s13 }
0x14c0   : > { %4955 = vrot.lane.b32.xlu0 %v4954_v53, %s5379_s26 }
0x14c3   : > { %4950 = vrot.lane.b32.xlu1 %v4949_v32, %s5378_s13 }
0x14c4   : > { %4965 = vrot.lane.b32.xlu0 %v4964_v41, %s5380_s3  ;;  %v5026_v41 = vld [vmem:[%s5712_s23] sm:$0xff]  }
0x14c7   : > { %4960 = vrot.lane.b32.xlu1 %v4959_v9, %s5379_s26 }
0x14c8   : > { %4975 = vrot.lane.b32.xlu0 %v4974_v58, %s5381_s28 }
0x14cb   : > { %4970 = vrot.lane.b32.xlu1 %v4969_v2, %s5380_s3  ;;  %s6583_s3 = scalar_lea.vmem %s6522_s11, %s5666_s0 }
0x14cc   : > { %4985 = vrot.lane.b32.xlu0 %v4984_v35, %s5382_s25 }
0x14cf   : > { %4980 = vrot.lane.b32.xlu1 %v4979_v20, %s5381_s28 }
0x14d0   : > { %4995 = vrot.lane.b32.xlu0 %v4994_v45, %s5383_s29 }
0x14d3   : > { %4990 = vrot.lane.b32.xlu1 %v4989_v16, %s5382_s25 }
0x14d7   : > { %5000 = vrot.lane.b32.xlu1 %v4999_v25, %s5383_s29 }
0x1520   : > { %v3108_v42 = vpop.xlane.xlu0 %3107 }
0x1522   : > { %v3111_v40 = vpop.xlane.xlu1 %3110 }
0x1523   : > { %5214 = vrcp.f32 %v3111_v40 }
0x1524   : > { %5216 = vrcp.f32 %v3108_v42 }
0x152d   : > { %v5215_v11 = vpop.eup %5214 }
0x152e   : > { %v5217_v14 = vpop.eup %5216  ;;  %v3123_v27 = vmul.f32 %v5215_v11, %v5209_v10 }
0x152f   : > { %v3122_v31 = vmul.f32 %v5217_v14, %v5207_v54 }
0x1531   : > { %v3126_v51 = vpack.c.bf16 %v3123_v27, %v3122_v31 }
0x1533   : > { %v3114_v13 = vpop.xlane.xlu0 %3113 }
0x1534   : > { %5218 = vrcp.f32 %v3114_v13 }
0x1537   : > { %v3117_v32 = vpop.xlane.xlu1 %3116  ;;  %v3129_v49 = vpop.permute.xlu0 %3128 }
0x1538   : > { %5220 = vrcp.f32 %v3117_v32  ;;  %4851 = vmatpush3.bf16.msra.mxu0 %v3129_v49 }
0x1539   : > { %4862 = vmatprep.subr.bf16.mxu0 %v5026_v41 }
0x153b   : > { %v3176_v53 = vpop.permute.xlu1 %3175  ;;  %4853 = vmatmul.mubr.msk.bf16.vlgmr.msra.gmra.mrb[60].mxu0 %vm1331_vm7, %v3126_v51  ;;  %v4956_v7 = vpop.permute.xlu0 %4955 }
0x153c   : > { %4857 = vmatpush3.bf16.msra.mxu1 %v3176_v53  ;;  %4863 = vmatpush3.bf16.msra.mxu0 %v5026_v41  ;;  %v4958_v60 = vunpack.i.h.bf16 %v4956_v7  ;;  %v4957_v29 = vunpack.i.l.bf16 %v4956_v7 }
0x153d   : > { %4864 = vmatprep.subr.bf16.mxu0 %v5027_v63 }
0x153e   : > { %v5219_v5 = vpop.eup %5218 }
0x153f   : > { %v3124_v9 = vmul.f32 %v5219_v5, %v5211_v30  ;;  %v4946_v16 = vpop.permute.xlu1 %4945  ;;  %v4966_v38 = vpop.permute.xlu0 %4965 }
0x1540   : > { %4865 = vmatpush3.bf16.msra.mxu0 %v5027_v63  ;;  %v4948_v34 = vunpack.i.h.bf16 %v4946_v16  ;;  %v4947_v61 = vunpack.i.l.bf16 %v4946_v16  ;;  %v4968_v54 = vunpack.i.h.bf16 %v4966_v38  ;;  %v4967_v18 = vunpack.i.l.bf16 %v4966_v38 }
0x1541   : > { %4866 = vmatprep.subr.bf16.mxu0 %v5028_v1 }
0x1542   : > { %v5221_v8 = vpop.eup %5220  ;;  %v3335_v21 = vsel %vm1224_vm5, %v5910_v55, %v4948_v34  ;;  %v3334_v15 = vsel %vm1224_vm5, %v5908_v52, %v4947_v61 }
0x1543   : > { %v3125_v37 = vmul.f32 %v5221_v8, %v5213_v44  ;;  %v4951_v36 = vpop.permute.xlu1 %4950  ;;  %v4976_v45 = vpop.permute.xlu0 %4975  ;;  %v3338_v22 = vsel %vm1331_vm7, %v3334_v15, %v4957_v29  ;;  %v3339_v62 = vsel %vm1331_vm7, %v3335_v21, %v4958_v60  ;;  %v5230_v21 = vld [vmem:[%s6578_s17] sm:$0xff] }
0x1544   : > { %4867 = vmatpush3.bf16.msra.mxu0 %v5028_v1  ;;  %v4978_v24 = vunpack.i.h.bf16 %v4976_v45  ;;  %v4977_v26 = vunpack.i.l.bf16 %v4976_v45  ;;  %v3343_v43 = vsel %vm3342_vm11, %v3338_v22, %v4967_v18  ;;  %v3344_v55 = vsel %vm3342_vm11, %v3339_v62, %v4968_v54  ;;  %v5231_v22 = vld [vmem:[%s6578_s17 + $0x10] sm:$0xff]  ;;  %v5232_v54 = vld [vmem:[%s6578_s17 + $0x8] sm:$0xff] }
0x1545   : > { %v3127_v39 = vpack.c.bf16 %v3125_v37, %v3124_v9  ;;  %4868 = vmatprep.subr.bf16.mxu0 %v5029_v19  ;;  %v4953_v51 = vunpack.i.h.bf16 %v4951_v36  ;;  %v4952_v53 = vunpack.i.l.bf16 %v4951_v36 }
0x1546   : > { %v3348_v30 = vsel %vm3347_vm12, %v3343_v43, %v4977_v26  ;;  %v3349_v59 = vsel %vm3347_vm12, %v3344_v55, %v4978_v24  ;;  %v5233_v24 = vld [vmem:[%s6578_s17 + $0x18] sm:$0xff] }
0x1547   : > { %4859 = vmatmul.mubr.msk.bf16.vlgmr.msra.gmra.mrb[72].mxu1 %vm1331_vm7, %v3127_v39  ;;  %v4961_v25 = vpop.permute.xlu1 %4960  ;;  %v4986_v3 = vpop.permute.xlu0 %4985  ;;  %v3337_v1 = vsel %vm1224_vm5, %v5920_v6, %v4953_v51 }
0x1548   : > { %4869 = vmatpush3.bf16.msra.mxu0 %v5029_v19  ;;  %v4988_v46 = vunpack.i.h.bf16 %v4986_v3  ;;  %v4987_v52 = vunpack.i.l.bf16 %v4986_v3  ;;  %v4963_v5 = vunpack.i.h.bf16 %v4961_v25  ;;  %v4962_v8 = vunpack.i.l.bf16 %v4961_v25 }
0x154a   : > { %v3353_v50 = vsel %vm3352_vm13, %v3348_v30, %v4987_v52  ;;  %v3354_v40 = vsel %vm3352_vm13, %v3349_v59, %v4988_v46 }
0x154b   : > { %v4971_v0 = vpop.permute.xlu1 %4970  ;;  %v4996_v10 = vpop.permute.xlu0 %4995 }
0x154c   : > { %v4998_v33 = vunpack.i.h.bf16 %v4996_v10  ;;  %v4997_v47 = vunpack.i.l.bf16 %v4996_v10  ;;  %v4973_v9 = vunpack.i.h.bf16 %v4971_v0  ;;  %v4972_v37 = vunpack.i.l.bf16 %v4971_v0 }
0x154e   : > { %v3358_v14 = vsel %vm3357_vm14, %v3353_v50, %v4997_v47  ;;  %v3359_v27 = vsel %vm3357_vm14, %v3354_v40, %v4998_v33 }
0x154f   : > { %v4981_v56 = vpop.permute.xlu1 %4980 }
0x1550   : > { %v4983_v41 = vunpack.i.h.bf16 %v4981_v56  ;;  %v4982_v63 = vunpack.i.l.bf16 %v4981_v56 }
0x1553   : > { %v4991_v42 = vpop.permute.xlu1 %4990 }
0x1557   : > { %v5001_v39 = vpop.permute.xlu1 %5000 }
0x1558   : > { %v5003_v19 = vunpack.i.h.bf16 %v5001_v39 }
0x160e   : > { %v3168_v2 = vpop.f32.mrb[60].mxu0 }
0x160f   : > { %v4854_v48 = vpop.f32.mrb[61].mxu0 }
0x1610   : > { %v3171_v57 = vpop.f32.mrb[62].mxu0  ;;  %v4993_v48 = vunpack.i.h.bf16 %v4991_v42 }
0x1611   : > { %v5004_v58 = vpack.i.bf16 %v3171_v57, %v3168_v2  ;;  %v4855_v17 = vpop.f32.mrb[63].mxu0  ;;  %v3336_v2 = vsel %vm1224_vm5, %v5918_v4, %v4952_v53  ;;  %v4992_v57 = vunpack.i.l.bf16 %v4991_v42 }
0x1612   : > { %v3341_v17 = vsel %vm1331_vm7, %v3337_v1, %v4963_v5  ;;  %v5036_v1 = vld [vmem:[%s5695_s30 + $0x20] ss:$16 sps:$4 sm:$0xff]  }
0x1613   : > { %5005 = vrot.lane.b32.xlu0 %v5004_v58, %s5384_s27  ;;  %v3340_v58 = vsel %vm1331_vm7, %v3336_v2, %v4962_v8  ;;  %v5032_v8 = vld [vmem:[%s5695_s30 + $0x4] ss:$16 sps:$4 sm:$0xff]   ;;  %v5039_v2 = vld [vmem:[%s5695_s30 + $0x28] ss:$16 sps:$4 sm:$0xff]  }
0x1614   : > { %3717 = vmatprep.subr.bf16.mxu1 %v5032_v8  ;;  %v5065_v8 = vld [vmem:[%s5710_s18 + $0x90] sm:$0xff]  }
0x161a   : > { %v3215_v20 = vpop.f32.mrb[72].mxu1 }
0x161b   : > { %v4860_v23 = vpop.f32.mrb[73].mxu1 }
0x161c   : > { %v3218_v28 = vpop.f32.mrb[74].mxu1  ;;  %v3345_v23 = vsel %vm3342_vm11, %v3340_v58, %v4972_v37  ;;  %v5030_v37 = vld [vmem:[%s5695_s30] ss:$16 sps:$4 sm:$0xff]  }
0x161d   : > { %v5009_v35 = vpack.i.bf16 %v3218_v28, %v3215_v20  ;;  %v4861_v12 = vpop.f32.mrb[75].mxu1  ;;  %v5002_v20 = vunpack.i.l.bf16 %v5001_v39  ;;  %v3346_v28 = vsel %vm3342_vm11, %v3341_v17, %v4973_v9  ;;  %v5035_v9 = vld [vmem:[%s5695_s30 + $0xc] ss:$16 sps:$4 sm:$0xff]   ;;  %v5033_v39 = vld [vmem:[%s5695_s30 + $0x8] ss:$16 sps:$4 sm:$0xff]   ;;  %3718 = vmatpush1.bf16.msra.mxu1 %v5030_v37 }
0x161e   : > { %v3351_v12 = vsel %vm3347_vm12, %v3346_v28, %v4983_v41  ;;  %3770 = vmatprep.subr.bf16.mxu0 %v5035_v9  ;;  %v5038_v41 = vld [vmem:[%s5695_s30 + $0x24] ss:$16 sps:$4 sm:$0xff]   ;;  %v5042_v58 = vld [vmem:[%s5695_s30 + $0x40] ss:$16 sps:$4 sm:$0xff]   ;;  %v5045_v17 = vld [vmem:[%s5695_s30 + $0x48] ss:$16 sps:$4 sm:$0xff]  }
0x161f   : > { %5010 = vrot.lane.b32.xlu1 %v5009_v35, %s5384_s27  ;;  %v3350_v35 = vsel %vm3347_vm12, %v3345_v23, %v4982_v63  ;;  %v3356_v4 = vsel %vm3352_vm13, %v3351_v12, %v4993_v48  ;;  %v5041_v63 = vld [vmem:[%s5695_s30 + $0x2c] ss:$16 sps:$4 sm:$0xff]   ;;  %3719 = vmatprep.subr.bf16.mxu1 %v5038_v41  ;;  %v5044_v48 = vld [vmem:[%s5695_s30 + $0x44] ss:$16 sps:$4 sm:$0xff]   ;;  %v5048_v23 = vld [vmem:[%s5695_s30 + $0x60] ss:$16 sps:$4 sm:$0xff]  }
0x1620   : > { %v3355_v7 = vsel %vm3352_vm13, %v3350_v35, %v4992_v57  ;;  %v3361_v45 = vsel %vm3357_vm14, %v3356_v4, %v5003_v19  ;;  %v5047_v57 = vld [vmem:[%s5695_s30 + $0x4c] ss:$16 sps:$4 sm:$0xff]   ;;  %v5050_v19 = vld [vmem:[%s5695_s30 + $0x64] ss:$16 sps:$4 sm:$0xff]   ;;  %v5051_v28 = vld [vmem:[%s5695_s30 + $0x68] ss:$16 sps:$4 sm:$0xff]  }
0x1621   : > { %v3360_v36 = vsel %vm3357_vm14, %v3355_v7, %v5002_v20  ;;  %3720 = vmatpush1.bf16.msra.mxu1 %v5036_v1  ;;  %v5053_v20 = vld [vmem:[%s5695_s30 + $0x6c] ss:$16 sps:$4 sm:$0xff]   ;;  %v5385_v35 = vmov 0   ;;  %v5054_v12 = vld [vmem:[%s5710_s18 + $0x40] sm:$0xff]  }
0x1622   : > { %3721 = vmatprep.subr.bf16.mxu1 %v5044_v48  ;;  %3749 = vmatprep.mubr.bf16.mxu1 %v5385_v35  ;;  %v5066_v9 = vld [vmem:[%s5710_s18 + $0x58] sm:$0xff]   ;;  %v5071_v1 = vld [vmem:[%s5710_s18 + $0xe0] sm:$0xff]  }
0x1623   : > { %v5067_v37 = vld [vmem:[%s5710_s18 + $0xd8] sm:$0xff]   ;;  %v5073_v48 = vld [vmem:[%s5710_s18 + $0xa0] sm:$0xff]  }
0x1624   : > { %v5069_v41 = vld [vmem:[%s5710_s18 + $0x98] sm:$0xff]  }
0x1625   : > { %3722 = vmatpush1.bf16.msra.mxu1 %v5042_v58  ;;  %v5075_v58 = vld [vmem:[%s5710_s18 + $0xe8] sm:$0xff]  }
0x1626   : > { %3723 = vmatprep.subr.bf16.mxu1 %v5050_v19  ;;  %v5077_v19 = vld [vmem:[%s5710_s18 + $0xa8] sm:$0xff]  }
0x1629   : > { %3724 = vmatpush1.bf16.msra.mxu1 %v5048_v23  ;;  %v5079_v23 = vld [vmem:[%s5710_s18 + $0xf0] sm:$0xff]  }
0x162a   : > { %4570 = vmatprep.subr.bf16.mxu1 %v5054_v12  ;;  %v5082_v12 = vld [vmem:[%s5710_s18 + $0x78] sm:$0xff]  }
0x1685   : > { %v5006_v44 = vpop.permute.xlu0 %5005 }
0x1686   : > { %v5008_v11 = vunpack.i.h.bf16 %v5006_v44  ;;  %v5007_v13 = vunpack.i.l.bf16 %v5006_v44 }
0x1688   : > { %v3363_v31 = vsel %vm3362_vm15, %v3358_v14, %v5007_v13  ;;  %v3364_v32 = vsel %vm3362_vm15, %v3359_v27, %v5008_v11 }
0x1689   : > { %v3367_v49 = vpack.c.bf16 %v3364_v32, %v3363_v31 }
0x168b   : > { %4870 = vmatprep.mubr.msk.bf16.mxu0 %vm885_vm3, %v3367_v49 }
0x1691   : > { %v5011_v6 = vpop.permute.xlu1 %5010 }
0x1692   : > { %v5013_v16 = vunpack.i.h.bf16 %v5011_v6  ;;  %v5012_v38 = vunpack.i.l.bf16 %v5011_v6  ;;  %v5055_v6 = vld [vmem:[%s5710_s18 + $0xc0] sm:$0xff]  }
0x1694   : > { %v3366_v25 = vsel %vm3362_vm15, %v3361_v45, %v5013_v16  ;;  %v3365_v34 = vsel %vm3362_vm15, %v3360_v36, %v5012_v38 }
0x1695   : > { %v3368_v61 = vpack.c.bf16 %v3366_v25, %v3365_v34 }
0x1697   : > { %4871 = vmatmul.mubr.msk.bf16.vlgmr.msra.gmra.mrb[64].mxu0 %vm885_vm3, %v3368_v61 }
0x1698   : > { %3771 = vmatpush1.bf16.msra.mxu0 %v5033_v39  ;;  %3802 = vmatprep.mubr.bf16.mxu0 %v5385_v35  ;;  %v5068_v39 = vld [vmem:[%s5710_s18 + $0x18] sm:$0xff]  }
0x1699   : > { %3772 = vmatprep.subr.bf16.mxu0 %v5041_v63  ;;  %v5070_v63 = vld [vmem:[%s5710_s18 + $0x60] sm:$0xff]  }
0x169c   : > { %3773 = vmatpush1.bf16.msra.mxu0 %v5039_v2  ;;  %v5072_v2 = vld [vmem:[%s5710_s18 + $0x20] sm:$0xff]  }
0x169d   : > { %3774 = vmatprep.subr.bf16.mxu0 %v5047_v57  ;;  %v5074_v57 = vld [vmem:[%s5710_s18 + $0x68] sm:$0xff]  }
0x16a0   : > { %3775 = vmatpush1.bf16.msra.mxu0 %v5045_v17  ;;  %v5076_v17 = vld [vmem:[%s5710_s18 + $0x28] sm:$0xff]  }
0x16a1   : > { %3776 = vmatprep.subr.bf16.mxu0 %v5053_v20  ;;  %v5078_v20 = vld [vmem:[%s5710_s18 + $0x70] sm:$0xff]  }
0x16a4   : > { %3777 = vmatpush1.bf16.msra.mxu0 %v5051_v28  ;;  %v5080_v28 = vld [vmem:[%s5710_s18 + $0x30] sm:$0xff]  }
0x16a5   : > { %4598 = vmatprep.subr.bf16.mxu0 %v5055_v6  ;;  %v5083_v6 = vld [vmem:[%s5710_s18 + $0xf8] sm:$0xff]  }
0x176a   : > { %v4872_v3 = vpop.f32.mrb[64].mxu0 }
0x176b   : > { %v3433_v0 = vpop.f32.mrb[65].mxu0  ;;  %v6362_v62 = vadd.f32 %v5231_v22, %v4872_v3 }
0x176c   : > { %v6357_v15 = vadd.f32 %v5230_v21, %v3433_v0  ;;  %v4873_v60 = vpop.f32.mrb[66].mxu0 }
0x176d   : > { %v3436_v29 = vpop.f32.mrb[67].mxu0  ;;  %v6376_v26 = vadd.f32 %v5233_v24, %v4873_v60  ;;  %v3460_v43 = vsel %vm885_vm3, %v6362_v62, 0.0 }
0x176e   : > { %v6367_v18 = vadd.f32 %v5232_v54, %v3436_v29  ;;  %v3454_v10 = vsel %vm885_vm3, %v6357_v15, 0.0  ;;  %v4414_v29 = vld [vmem:[%s6582_s14] ss:$0 sm:$0xff] }
0x176f   : > { %3455 = vadd.xlane.f32.xlu0 %v3454_v10  ;;  %v3463_v55 = vsel %vm885_vm3, %v6376_v26, 0.0 }
0x1770   : > { %v3457_v56 = vsel %vm885_vm3, %v6367_v18, 0.0 }
0x1771   : > { %3458 = vadd.xlane.f32.xlu1 %v3457_v56 }
0x1773   : > { %3461 = vadd.xlane.f32.xlu0 %v3460_v43  ;;  %v4415_v43 = vld [vmem:[%s6583_s3] ss:$0 sm:$0xff] }
0x1777   : > { %3464 = vadd.xlane.f32.xlu0 %v3463_v55 }
0x17fc   : > { %v3456_v46 = vpop.xlane.xlu0 %3455 }
0x17fd   : > { %v3466_v52 = vmul.f32 0.015625, %v3456_v46 }
0x17fe   : > { %v3459_v33 = vpop.xlane.xlu1 %3458 }
0x17ff   : > { %v6383_v47 = vsub.f32 %v6357_v15, %v3466_v52  ;;  %v3467_v30 = vmul.f32 0.015625, %v3459_v33 }
0x1800   : > { %v3462_v59 = vpop.xlane.xlu0 %3461 }
0x1801   : > { %v6386_v44 = vsub.f32 %v6367_v18, %v3467_v30  ;;  %v3468_v50 = vmul.f32 0.015625, %v3462_v59  ;;  %v3474_v40 = vmul.f32 %v6383_v47, %v6383_v47 }
0x1803   : > { %v6391_v42 = vsub.f32 %v6362_v62, %v3468_v50  ;;  %v3478_v11 = vsel %vm885_vm3, %v3474_v40, 0.0  ;;  %v3475_v13 = vmul.f32 %v6386_v44, %v6386_v44  ;;  %v5056_v50 = vld [vmem:[%s5710_s18] sm:$0xff]  }
0x1804   : > { %3479 = vadd.xlane.f32.xlu0 %v3478_v11  ;;  %v3465_v14 = vpop.xlane.xlu0 %3464  ;;  %v5057_v40 = vld [vmem:[%s5710_s18 + $0x80] sm:$0xff]   ;;  %v5059_v11 = vld [vmem:[%s5710_s18 + $0xc8] sm:$0xff]  }
0x1805   : > { %v3469_v27 = vmul.f32 0.015625, %v3465_v14  ;;  %v3481_v31 = vsel %vm885_vm3, %v3475_v13, 0.0  ;;  %v3476_v32 = vmul.f32 %v6391_v42, %v6391_v42 }
0x1806   : > { %3482 = vadd.xlane.f32.xlu1 %v3481_v31  ;;  %v5061_v31 = vld [vmem:[%s5710_s18 + $0x88] sm:$0xff]  }
0x1807   : > { %v6400_v49 = vsub.f32 %v6376_v26, %v3469_v27  ;;  %v3484_v51 = vsel %vm885_vm3, %v3476_v32, 0.0  ;;  %v5060_v27 = vld [vmem:[%s5710_s18 + $0x8] sm:$0xff]   ;;  %v5062_v32 = vld [vmem:[%s5710_s18 + $0x50] sm:$0xff]  }
0x1808   : > { %3485 = vadd.xlane.f32.xlu0 %v3484_v51 }
0x1809   : > { %v3477_v53 = vmul.f32 %v6400_v49, %v6400_v49 }
0x180b   : > { %v3487_v5 = vsel %vm885_vm3, %v3477_v53, 0.0 }
0x180c   : > { %3488 = vadd.xlane.f32.xlu1 %v3487_v5  ;;  %v5064_v5 = vld [vmem:[%s5710_s18 + $0x10] sm:$0xff]  }
0x1891   : > { %v3480_v7 = vpop.xlane.xlu0 %3479 }
0x1892   : > { %v3490_v4 = vmul.f32 0.015625, %v3480_v7  ;;  %v5084_v7 = vld [vmem:[%s5710_s18 + $0x38] sm:$0xff]  }
0x1893   : > { %v3483_v16 = vpop.xlane.xlu1 %3482 }
0x1894   : > { %v3494_v38 = vadd.f32 1e-05, %v3490_v4  ;;  %v3491_v36 = vmul.f32 0.015625, %v3483_v16  ;;  %v5085_v4 = vld [vmem:[%s5710_s18 + $0xb8] sm:$0xff]   ;;  %v3611_v16 = vlaneseq }
0x1895   : > { %v3486_v45 = vpop.xlane.xlu0 %3485 }
0x1896   : > { %5222 = vrsqrt.f32 %v3494_v38  ;;  %v3495_v25 = vadd.f32 1e-05, %v3491_v36  ;;  %v3492_v34 = vmul.f32 0.015625, %v3486_v45  ;;  %v3612_v38 = vshrl.u32 %v3611_v16, 7 }
0x1898   : > { %5224 = vrsqrt.f32 %v3495_v25  ;;  %v3496_v61 = vadd.f32 1e-05, %v3492_v34  ;;  %v3613_v36 = vsub.s32 0, %v3612_v38  ;;  %v3621_v45 = vsub.s32 2, %v3612_v38  ;;  %v3542_v25 = vld [vmem:[%s5700_s8] sm:$0xf] }
0x1899   : > { %v3489_v3 = vpop.xlane.xlu1 %3488  ;;  %v3617_v34 = vsub.s32 1, %v3612_v38 }
0x189a   : > { %5226 = vrsqrt.f32 %v3496_v61  ;;  %v3493_v0 = vmul.f32 0.015625, %v3489_v3  ;;  %v3625_v61 = vsub.s32 3, %v3612_v38  ;;  %v3614_v3 = vrot.slane %v3542_v25, %v3613_v36 }
0x189c   : > { %v3497_v21 = vadd.f32 1e-05, %v3493_v0  ;;  %v3622_v0 = vrot.slane %v3542_v25, %v3621_v45 }
0x189e   : > { %5228 = vrsqrt.f32 %v3497_v21  ;;  %v3618_v21 = vrot.slane %v3542_v25, %v3617_v34 }
0x18a0   : > { %v5223_v60 = vpop.eup %5222 }
0x18a1   : > { %v3502_v22 = vmul.f32 %v5223_v60, %v6383_v47  ;;  %v3626_v60 = vrot.slane %v3542_v25, %v3625_v61 }
0x18a2   : > { %v5225_v54 = vpop.eup %5224 }
0x18a3   : > { %v3512_v10 = vmul.f32 %v4414_v29, %v3502_v22  ;;  %v3503_v56 = vmul.f32 %v5225_v54, %v6386_v44  ;;  %v5058_v44 = vld [vmem:[%s5710_s18 + $0x48] sm:$0xff]  }
0x18a4   : > { %v5227_v24 = vpop.eup %5226 }
0x18a5   : > { %v3513_v55 = vmul.f32 %v4414_v29, %v3503_v56  ;;  %v3504_v46 = vmul.f32 %v5227_v24, %v6391_v42  ;;  %v3522_v52 = vadd.f32 %v4415_v43, %v3512_v10 }
0x18a7   : > { %v3523_v33 = vadd.f32 %v4415_v43, %v3513_v55  ;;  %v3514_v13 = vmul.f32 %v4414_v29, %v3504_v46 }
0x18a8   : > { %v5229_v30 = vpop.eup %5228 }
0x18a9   : > { %v3505_v47 = vmul.f32 %v5229_v30, %v6400_v49  ;;  %v3608_v59 = vpack.c.bf16 %v3523_v33, %v3522_v52  ;;  %v5063_v49 = vld [vmem:[%s5710_s18 + $0xd0] sm:$0xff]   ;;  %v3524_v51 = vadd.f32 %v4415_v43, %v3514_v13 }
0x18ab   : > { %4432 = vmatmul.mubr.msk.bf16.vlgmr.msra.gmra.mrb[76].mxu1 %vm885_vm3, %v3608_v59  ;;  %4434 = vmatmul.mubr.msk.bf16.vlgmr.msra.gmra.mrb[68].mxu0 %vm885_vm3, %v3608_v59  ;;  %v3515_v42 = vmul.f32 %v4414_v29, %v3505_v47 }
0x18ac   : > { %3759 = vmatprep.mubr.bf16.mxu1 %v5385_v35  ;;  %3812 = vmatprep.mubr.bf16.mxu0 %v5385_v35  ;;  %v5081_v35 = vld [vmem:[%s5710_s18 + $0xb0] sm:$0xff]  }
0x18ad   : > { %v3525_v14 = vadd.f32 %v4415_v43, %v3515_v42  ;;  %4571 = vmatpush3.bf16.msra.mxu1 %v5056_v50  ;;  %4599 = vmatpush3.bf16.msra.mxu0 %v5057_v40 }
0x18ae   : > { %4572 = vmatprep.subr.bf16.mxu1 %v5058_v44  ;;  %4600 = vmatprep.subr.bf16.mxu0 %v5059_v11 }
0x18af   : > { %v3609_v53 = vpack.c.bf16 %v3525_v14, %v3524_v51 }
0x18b1   : > { %4573 = vmatpush3.bf16.msra.mxu1 %v5060_v27  ;;  %4601 = vmatpush3.bf16.msra.mxu0 %v5061_v31 }
0x18b2   : > { %4574 = vmatprep.subr.bf16.mxu1 %v5062_v32  ;;  %4602 = vmatprep.subr.bf16.mxu0 %v5063_v49 }
0x18b3   : > { %4433 = vmatmul.mubr.msk.bf16.gmra.mrb[80].mxu1 %vm885_vm3, %v3609_v53  ;;  %4435 = vmatmul.mubr.msk.bf16.gmra.mrb[72].mxu0 %vm885_vm3, %v3609_v53 }
0x18b5   : > { %4575 = vmatpush3.bf16.msra.mxu1 %v5064_v5  ;;  %4603 = vmatpush3.bf16.msra.mxu0 %v5065_v8 }
0x18b6   : > { %4576 = vmatprep.subr.bf16.mxu1 %v5066_v9  ;;  %4604 = vmatprep.subr.bf16.mxu0 %v5067_v37 }
0x18b9   : > { %4577 = vmatpush3.bf16.msra.mxu1 %v5068_v39  ;;  %4605 = vmatpush3.bf16.msra.mxu0 %v5069_v41 }
0x18ba   : > { %4578 = vmatprep.subr.bf16.mxu1 %v5070_v63  ;;  %4606 = vmatprep.subr.bf16.mxu0 %v5071_v1 }
0x18bd   : > { %4579 = vmatpush3.bf16.msra.mxu1 %v5072_v2  ;;  %4607 = vmatpush3.bf16.msra.mxu0 %v5073_v48 }
0x18be   : > { %4580 = vmatprep.subr.bf16.mxu1 %v5074_v57  ;;  %4608 = vmatprep.subr.bf16.mxu0 %v5075_v58 }
0x18c1   : > { %4581 = vmatpush3.bf16.msra.mxu1 %v5076_v17  ;;  %4609 = vmatpush3.bf16.msra.mxu0 %v5077_v19 }
0x18c2   : > { %4582 = vmatprep.subr.bf16.mxu1 %v5078_v20  ;;  %4610 = vmatprep.subr.bf16.mxu0 %v5079_v23 }
0x18c5   : > { %4583 = vmatpush3.bf16.msra.mxu1 %v5080_v28  ;;  %4611 = vmatpush3.bf16.msra.mxu0 %v5081_v35 }
0x18c6   : > { %4584 = vmatprep.subr.bf16.mxu1 %v5082_v12  ;;  %4612 = vmatprep.subr.bf16.mxu0 %v5083_v6 }
0x18c9   : > { %4585 = vmatpush3.bf16.msra.mxu1 %v5084_v7  ;;  %4613 = vmatpush3.bf16.msra.mxu0 %v5085_v4 }
0x197e   : > { %v3751_v29 = vpop.f32.mrb[76].mxu1  ;;  %v3804_v22 = vpop.f32.mrb[68].mxu0 }
0x197f   : > { %v3752_v54 = vadd.f32 %v3751_v29, %v3614_v3  ;;  %v3805_v10 = vadd.f32 %v3804_v22, %v3622_v0  ;;  %v3753_v56 = vpop.f32.mrb[77].mxu1  ;;  %v3806_v24 = vpop.f32.mrb[69].mxu0 }
0x1980   : > { %v3754_v43 = vadd.f32 %v3753_v56, %v3618_v21  ;;  %v3807_v55 = vadd.f32 %v3806_v24, %v3626_v60  ;;  %v3755_v46 = vpop.f32.mrb[78].mxu1  ;;  %v3808_v52 = vpop.f32.mrb[70].mxu0 }
0x1981   : > { %v3756_v33 = vadd.f32 %v3755_v46, %v3614_v3  ;;  %v3809_v30 = vadd.f32 %v3808_v52, %v3622_v0  ;;  %v3757_v47 = vpop.f32.mrb[79].mxu1  ;;  %v3810_v59 = vpop.f32.mrb[71].mxu0  ;;  %v3823_v44 = vmax.f32 %v3752_v54, 0.0  ;;  %v3825_v11 = vmax.f32 %v3805_v10, 0.0 }
0x1982   : > { %v3758_v50 = vadd.f32 %v3757_v47, %v3618_v21  ;;  %v3811_v40 = vadd.f32 %v3810_v59, %v3626_v60  ;;  %v3824_v14 = vmax.f32 %v3754_v43, 0.0  ;;  %v3826_v27 = vmax.f32 %v3807_v55, 0.0 }
0x1983   : > { %v3827_v13 = vmax.f32 %v3756_v33, 0.0  ;;  %v3829_v42 = vmax.f32 %v3809_v30, 0.0 }
0x1984   : > { %v3828_v31 = vmax.f32 %v3758_v50, 0.0  ;;  %v3830_v32 = vmax.f32 %v3811_v40, 0.0 }
0x1985   : > { %v3839_v49 = vpack.c.bf16 %v3827_v13, %v3823_v44  ;;  %v3841_v51 = vpack.c.bf16 %v3829_v42, %v3825_v11 }
0x1986   : > { %v3840_v53 = vpack.c.bf16 %v3828_v31, %v3824_v14  ;;  %v3842_v5 = vpack.c.bf16 %v3830_v32, %v3826_v27  ;;  %v3761_v8 = vpop.f32.mrb[80].mxu1  ;;  %v3814_v9 = vpop.f32.mrb[72].mxu0 }
0x1987   : > { %v3762_v37 = vadd.f32 %v3761_v8, %v3614_v3  ;;  %v3815_v39 = vadd.f32 %v3814_v9, %v3622_v0  ;;  %v3763_v41 = vpop.f32.mrb[81].mxu1  ;;  %v3816_v63 = vpop.f32.mrb[73].mxu0 }
0x1988   : > { %v3764_v1 = vadd.f32 %v3763_v41, %v3618_v21  ;;  %v3817_v2 = vadd.f32 %v3816_v63, %v3626_v60  ;;  %v3765_v48 = vpop.f32.mrb[82].mxu1  ;;  %v3818_v57 = vpop.f32.mrb[74].mxu0  ;;  %4077 = vmatprep.mubr.bf16.mxu1 %v3840_v53  ;;  %4126 = vmatprep.mubr.bf16.mxu0 %v3842_v5 }
0x1989   : > { %v3766_v58 = vadd.f32 %v3765_v48, %v3614_v3  ;;  %v3819_v17 = vadd.f32 %v3818_v57, %v3622_v0  ;;  %v3767_v19 = vpop.f32.mrb[83].mxu1  ;;  %v3820_v20 = vpop.f32.mrb[75].mxu0  ;;  %4078 = vmatmul.mubr.bf16.vlgmr.msra.gmra.mrb[84].mxu1 %v3839_v49  ;;  %4127 = vmatmul.mubr.bf16.vlgmr.msra.gmra.mrb[76].mxu0 %v3841_v51  ;;  %v3831_v35 = vmax.f32 %v3762_v37, 0.0  ;;  %v3833_v12 = vmax.f32 %v3815_v39, 0.0 }
0x198a   : > { %v3768_v23 = vadd.f32 %v3767_v19, %v3618_v21  ;;  %v3821_v28 = vadd.f32 %v3820_v20, %v3626_v60  ;;  %v3832_v4 = vmax.f32 %v3764_v1, 0.0  ;;  %v3834_v16 = vmax.f32 %v3817_v2, 0.0  ;;  %v4436_v21 = vld [vmem:[%s750_s6] ss:$0 sm:$0xff] }
0x198b   : > { %v3835_v6 = vmax.f32 %v3766_v58, 0.0  ;;  %v3837_v7 = vmax.f32 %v3819_v17, 0.0 }
0x198c   : > { %v3836_v38 = vmax.f32 %v3768_v23, 0.0  ;;  %v3838_v36 = vmax.f32 %v3821_v28, 0.0 }
0x198d   : > { %v3843_v45 = vpack.c.bf16 %v3835_v6, %v3831_v35  ;;  %v3845_v25 = vpack.c.bf16 %v3837_v7, %v3833_v12 }
0x198e   : > { %v3844_v34 = vpack.c.bf16 %v3836_v38, %v3832_v4  ;;  %v3846_v61 = vpack.c.bf16 %v3838_v36, %v3834_v16 }
0x1990   : > { %4085 = vmatprep.mubr.bf16.mxu1 %v3844_v34  ;;  %4134 = vmatprep.mubr.bf16.mxu0 %v3846_v61 }
0x1991   : > { %4086 = vmatmul.mubr.bf16.gmra.mrb[88].mxu1 %v3843_v45  ;;  %4135 = vmatmul.mubr.bf16.gmra.mrb[80].mxu0 %v3845_v25 }
0x1a5c   : > { %v4586_v3 = vpop.f32.mrb[84].mxu1  ;;  %v4614_v0 = vpop.f32.mrb[76].mxu0 }
0x1a5d   : > { %v4587_v60 = vpop.f32.mrb[85].mxu1  ;;  %v4615_v29 = vpop.f32.mrb[77].mxu0 }
0x1a5e   : > { %v4588_v22 = vadd.f32 %v4587_v60, %v4586_v3  ;;  %v4616_v54 = vadd.f32 %v4615_v29, %v4614_v0  ;;  %v4589_v10 = vpop.f32.mrb[86].mxu1  ;;  %v4617_v56 = vpop.f32.mrb[78].mxu0 }
0x1a5f   : > { %v4590_v24 = vpop.f32.mrb[87].mxu1  ;;  %v4618_v43 = vpop.f32.mrb[79].mxu0 }
0x1a60   : > { %v4080_v55 = vadd.f32 %v4588_v22, %v4436_v21  ;;  %v4591_v46 = vadd.f32 %v4590_v24, %v4589_v10  ;;  %v4619_v52 = vadd.f32 %v4618_v43, %v4617_v56 }
0x1a62   : > { %v4129_v33 = vadd.f32 %v4616_v54, %v4080_v55  ;;  %v4083_v30 = vadd.f32 %v4591_v46, %v4436_v21 }
0x1a64   : > { %v4143_v47 = vadd.f32 %v4129_v33, %v6357_v15  ;;  %v4132_v59 = vadd.f32 %v4619_v52, %v4083_v30  ;;  %v4592_v50 = vpop.f32.mrb[88].mxu1  ;;  %v4620_v40 = vpop.f32.mrb[80].mxu0 }
0x1a65   : > { %v4593_v44 = vpop.f32.mrb[89].mxu1  ;;  %v4621_v11 = vpop.f32.mrb[81].mxu0 }
0x1a66   : > { %4147 = vst.msk [vmem:[%s6578_s17] sm:$0xff] %vm885_vm3, %v4143_v47  ;;  %v4144_v13 = vadd.f32 %v4132_v59, %v6367_v18  ;;  %v4594_v42 = vadd.f32 %v4593_v44, %v4592_v50  ;;  %v4622_v14 = vadd.f32 %v4621_v11, %v4620_v40  ;;  %v4595_v27 = vpop.f32.mrb[90].mxu1  ;;  %v4623_v31 = vpop.f32.mrb[82].mxu0 }
0x1a67   : > { %v4596_v32 = vpop.f32.mrb[91].mxu1  ;;  %v4624_v49 = vpop.f32.mrb[83].mxu0 }
0x1a68   : > { %4148 = vst.msk [vmem:[%s6578_s17 + $0x8] sm:$0xff] %vm885_vm3, %v4144_v13  ;;  %v4088_v15 = vadd.f32 %v4594_v42, %v4436_v21  ;;  %v4597_v51 = vadd.f32 %v4596_v32, %v4595_v27  ;;  %v4625_v53 = vadd.f32 %v4624_v49, %v4623_v31 }
0x1a6a   : > { %v4137_v5 = vadd.f32 %v4622_v14, %v4088_v15  ;;  %v4091_v8 = vadd.f32 %v4597_v51, %v4436_v21 }
0x1a6c   : > { %v4145_v9 = vadd.f32 %v4137_v5, %v6362_v62  ;;  %v4140_v37 = vadd.f32 %v4625_v53, %v4091_v8 }
0x1a6e   : > { %4149 = vst.msk [vmem:[%s6578_s17 + $0x10] sm:$0xff] %vm885_vm3, %v4145_v9  ;;  %v4146_v18 = vadd.f32 %v4140_v37, %v6376_v26 }
0x1a70   : > { %4150 = vst.msk [vmem:[%s6578_s17 + $0x18] sm:$0xff] %vm885_vm3, %v4146_v18 }
0x1a71 PF: > { %s6585_s24 = sld [smem:[#allocation10_spill]]  ;;  %s6586_s7 = sld [smem:[#allocation9_spill]] }
0x1a72   : > { %s6587_s23 = sld [smem:[#allocation11_spill]]  ;;  %s6588_s21 = smov %s5354_s22 }
0x1a77   : > { %p29_p7 = scmp.ge.s32.totalorder %s6585_s24, 8   ;;  %s6589_s22 = smov %s6586_s7 }
0x1a79   :  { %31 = sbr.rel (!%p29_p7) target bundleno = 18 (0x12), region = 175 }
0x1a80   :  { %4162 = vsyncpa [#allocation3], 1 }
0x1a81   :  { %4164 = vsyncpa [#allocation3 + $0x1], 1 }
0x1a82   :  { %4165 = vsyncpa [#allocation5], 1 }
0x1a83   :  { %4167 = vsyncpa [#allocation5 + $0x1], 1 }

// kernel: _lambda_.3
= control target key start
LH: loop header
LB: loop body
LE: loop exit
PB: predicated region body
PF: predicated region fallthrough
CT: control target
= control target key end

     0   :  { %s5174_s0 = inlined_call_operand.vmem [shape: f32[2,64], index: 0, kind: input, shape index: {}]   ;;  %s5175_s1 = inlined_call_operand.vmem [shape: f32[32,64], index: 1, kind: input, shape index: {}]   ;;  %s5176_s2 = inlined_call_operand.vmem [shape: f32[16,64], index: 2, kind: input, shape index: {}]   ;;  %s5177_s3 = inlined_call_operand.vmem [shape: f32[2,1,16], index: 3, kind: input, shape index: {}]   ;;  %s5178_s4 = inlined_call_operand.vmem [shape: f32[2,1,8], index: 4, kind: input, shape index: {}]   ;;  %s5179_s5 = inlined_call_operand.vmem [shape: f32[1,64], index: 5, kind: input, shape index: {}, may-alias: {5,11}]   ;;  %s5180_s6 = inlined_call_operand.vmem [shape: f32[1,64], index: 6, kind: input, shape index: {}, may-alias: {6,12}]   ;;  %s5181_s7 = inlined_call_operand.vmem [shape: bf16[64,64], index: 7, kind: input, shape index: {}]   ;;  %s5182_s8 = inlined_call_operand.vmem [shape: bf16[64,64], index: 8, kind: input, shape index: {}]   ;;  %s5183_s9 = inlined_call_operand.vmem [shape: bf16[64,64], index: 9, kind: input, shape index: {}]   ;;  %s5184_s10 = inlined_call_operand.vmem [shape: bf16[64,64], index: 10, kind: input, shape index: {}]   ;;  %s5185_s11 = inlined_call_operand.vmem [shape: f32[1,64], index: 11, kind: input, shape index: {}, may-alias: {5,11}]   ;;  %s5186_s12 = inlined_call_operand.vmem [shape: f32[1,64], index: 12, kind: input, shape index: {}, may-alias: {6,12}]   ;;  %s5187_s13 = inlined_call_operand.vmem [shape: bf16[64,512], index: 13, kind: input, shape index: {}]   ;;  %s5188_s14 = inlined_call_operand.vmem [shape: f32[1,512], index: 14, kind: input, shape index: {}]   ;;  %s5189_s15 = inlined_call_operand.vmem [shape: bf16[512,64], index: 15, kind: input, shape index: {}]   ;;  %s5190_s16 = inlined_call_operand.vmem [shape: f32[1,64], index: 16, kind: input, shape index: {}]   ;;  %s5191_s17 = inlined_call_operand.vmem [shape: bf16[128,64], index: 17, kind: input, shape index: {}]   ;;  %s5192_s18 = inlined_call_operand.vmem [shape: f32[1,64], index: 18, kind: input, shape index: {}]   ;;  %s5193_s19 = inlined_call_operand.vmem [shape: bf16[64,64], index: 19, kind: input, shape index: {}]   ;;  %s5194_s20 = inlined_call_operand.vmem [shape: bf16[64,64], index: 20, kind: input, shape index: {}]   ;;  %s5195_s21 = inlined_call_operand.hbm [shape: f32[2,8], index: 21, kind: output, shape index: {}]  }
   0x1   :  { %5201 = sst [smem:[#allocation5_spill]] %s5174_s0 }
   0x2   :  { %5202 = sst [smem:[#allocation6_spill]] %s5175_s1 }
   0x3   :  { %5203 = sst [smem:[#allocation7_spill]] %s5176_s2 }
   0x4   :  { %5204 = sst [smem:[#allocation8_spill]] %s5177_s3 }
   0x5   :  { %5205 = sst [smem:[#allocation9_spill]] %s5178_s4 }
   0x6   :  { %5206 = sst [smem:[#allocation10_spill]] %s5179_s5 }
   0x7   :  { %s5207_s26 = sld [smem:[#allocation6_spill]]  ;;  %vm106_vm0 = vcmask 523264   ;;  %vm77_vm1 = vcmask 517120   ;;  %s5208_s22 = sld [smem:[#allocation5_spill]] }
   0xd   :  { %v71_v0 = vld [vmem:[%s5207_s26] sm:$0xff]  ;;  %v73_v1 = vld [vmem:[%s5207_s26 + $0x10] sm:$0xff]  ;;  %v72_v2 = vld [vmem:[%s5207_s26 + $0x8] sm:$0xff] }
   0xe   :  { %v107_v3 = vsel %vm106_vm0, %v71_v0, 0.0  ;;  %v113_v4 = vsel %vm106_vm0, %v73_v1, 0.0  ;;  %v110_v5 = vsel %vm106_vm0, %v72_v2, 0.0  ;;  %v74_v6 = vld [vmem:[%s5207_s26 + $0x18] sm:$0xff]  ;;  %v70_v7 = vld [vmem:[%s5208_s22] sm:$0x3] }
   0xf   :  { %108 = vadd.xlane.f32.xlu0 %v107_v3  ;;  %114 = vadd.xlane.f32.xlu1 %v113_v4  ;;  %v116_v8 = vsel %vm106_vm0, %v74_v6, 0.0  ;;  %v78_v9 = vsel %vm77_vm1, %v70_v7, 0.0 }
  0x13   :  { %111 = vadd.xlane.f32.xlu0 %v110_v5  ;;  %117 = vadd.xlane.f32.xlu1 %v116_v8 }
  0x17   :  { %79 = vadd.xlane.f32.xlu0 %v78_v9 }
  0x18   :  { %26 = vsyncpa [#allocation3], 0  ;;  %v4041_v35 = vld [vmem:[%s5181_s7] sm:$0xff]   ;;  %v4242_v37 = vmov 0.0   ;;  %v4043_v38 = vld [vmem:[%s5181_s7 + $0x8] sm:$0xff]   ;;  %vm4243_vm2 = vmmov 0  }
  0x19   :  { %v4042_v36 = vld [vmem:[%s5182_s8] sm:$0xff]   ;;  %3695 = vmatprep.subr.bf16.mxu0 %v4242_v37  ;;  %v4044_v39 = vld [vmem:[%s5182_s8 + $0x8] sm:$0xff]   ;;  %v4045_v40 = vld [vmem:[%s5181_s7 + $0x10] sm:$0xff]   ;;  %3703 = vmatprep.mubr.msk.bf16.mxu0 %vm4243_vm2, %v4242_v37  ;;  %s5209_s25 = sld [smem:[#allocation10_spill]]  ;;  %vm454_vm3 = vcmask 64512   ;;  %s5210_s5 = sld [smem:[#allocation8_spill]] }
  0x1a   :  { %3696 = vmatpush3.bf16.msra.mxu0 %v4041_v35  ;;  %3707 = vmatprep.subr.bf16.mxu1 %v4042_v36  ;;  %v4046_v41 = vld [vmem:[%s5182_s8 + $0x10] sm:$0xff]   ;;  %v4047_v42 = vld [vmem:[%s5181_s7 + $0x18] sm:$0xff]   ;;  %v4049_v44 = vld [vmem:[%s5183_s9] sm:$0xff]   ;;  %vm553_vm5 = vcmask 122880   ;;  %s4245_s24 = smov 120   ;;  %vm578_vm7 = vcmask 130048  }
  0x1b   :  { %3708 = vmatpush3.bf16.msra.mxu1 %v4042_v36  ;;  %3697 = vmatprep.subr.bf16.mxu0 %v4242_v37  ;;  %v4048_v43 = vld [vmem:[%s5182_s8 + $0x18] sm:$0xff]   ;;  %v3413_v4 = vld [vmem:[%s5180_s6] ss:$0 sm:$0xff]  ;;  %s4246_s2 = smov 112   ;;  %s4247_s7 = smov 104   ;;  %vm2271_vm8 = vcmask 195584  }
  0x1c   :  { %3709 = vmatprep.subr.bf16.mxu1 %v4044_v39  ;;  %s4248_s8 = smov 96   ;;  %s4250_s26 = smov 80   ;;  %vm2274_vm9 = vcmask 261120   ;;  %vm2277_vm10 = vcmask 326656   ;;  %vm2280_vm11 = vcmask 392192   ;;  %vm2283_vm12 = vcmask 457728  }
  0x1d   :  { %s4251_s27 = smov 72   ;;  %s4252_s6 = smov 8   ;;  %vm2293_vm13 = vcmask 1041409   ;;  %vm3353_vm15 = vcmask 57344  }
  0x1e   :  { %3698 = vmatpush3.bf16.msra.mxu0 %v4043_v38  ;;  %s4253_s3 = smov 16   ;;  %s4254_s28 = smov 32  }
  0x1f   :  { %3710 = vmatpush3.bf16.msra.mxu1 %v4044_v39  ;;  %3699 = vmatprep.subr.bf16.mxu0 %v4242_v37  ;;  %v3412_v62 = vld [vmem:[%s5209_s25] ss:$0 sm:$0xff]  ;;  %s4249_s25 = smov 88   ;;  %s4255_s29 = smov 48  }
  0x20   :  { %3711 = vmatprep.subr.bf16.mxu1 %v4046_v41  ;;  %s4256_s0 = smov 24   ;;  %s4257_s4 = smov 40  }
  0x22   :  { %3700 = vmatpush3.bf16.msra.mxu0 %v4045_v40 }
  0x23   :  { %3712 = vmatpush3.bf16.msra.mxu1 %v4046_v41  ;;  %3701 = vmatprep.subr.bf16.mxu0 %v4242_v37 }
  0x24   :  { %3713 = vmatprep.subr.bf16.mxu1 %v4048_v43 }
  0x26   :  { %3702 = vmatpush3.bf16.msra.mxu0 %v4047_v42 }
  0x27   :  { %3714 = vmatpush3.bf16.msra.mxu1 %v4048_v43  ;;  %3719 = vmatprep.subr.bf16.mxu0 %v4049_v44 }
  0x28   :  { %3731 = vmatprep.subr.bf16.mxu1 %v4242_v37 }
  0x9c   :  { %v109_v10 = vpop.xlane.xlu0 %108  ;;  %v115_v11 = vpop.xlane.xlu1 %114 }
  0x9d   :  { %v119_v12 = vmul.f32 0.015625, %v109_v10  ;;  %v121_v13 = vmul.f32 0.015625, %v115_v11 }
  0x9f   :  { %v4392_v14 = vsub.f32 %v71_v0, %v119_v12  ;;  %v4394_v15 = vsub.f32 %v73_v1, %v121_v13 }
  0xa0   :  { %v112_v16 = vpop.xlane.xlu0 %111  ;;  %v118_v17 = vpop.xlane.xlu1 %117 }
  0xa1   :  { %v120_v18 = vmul.f32 0.015625, %v112_v16  ;;  %v122_v19 = vmul.f32 0.015625, %v118_v17  ;;  %v127_v20 = vmul.f32 %v4392_v14, %v4392_v14  ;;  %v129_v21 = vmul.f32 %v4394_v15, %v4394_v15 }
  0xa3   :  { %v4400_v22 = vsub.f32 %v72_v2, %v120_v18  ;;  %v4402_v23 = vsub.f32 %v74_v6, %v122_v19  ;;  %v131_v24 = vsel %vm106_vm0, %v127_v20, 0.0  ;;  %v137_v27 = vsel %vm106_vm0, %v129_v21, 0.0  ;;  %v4050_v20 = vld [vmem:[%s5183_s9 + $0x8] sm:$0xff]  }
  0xa4   :  { %132 = vadd.xlane.f32.xlu1 %v131_v24  ;;  %v80_v25 = vpop.xlane.xlu0 %79  ;;  %v4244_v24 = vmov 1966171168  }
  0xa5   :  { %v82_v26 = vmul.f32 0.015625, %v80_v25  ;;  %v128_v28 = vmul.f32 %v4400_v22, %v4400_v22  ;;  %v130_v29 = vmul.f32 %v4402_v23, %v4402_v23  ;;  %v425_v25 = vunpack.c.l.s4 %v4244_v24 }
  0xa7   :  { %v4410_v30 = vsub.f32 %v70_v7, %v82_v26  ;;  %v134_v31 = vsel %vm106_vm0, %v128_v28, 0.0  ;;  %v140_v32 = vsel %vm106_vm0, %v130_v29, 0.0  ;;  %v427_v26 = vlaneseq }
  0xa8   :  { %138 = vadd.xlane.f32.xlu1 %v137_v27  ;;  %135 = vadd.xlane.f32.xlu0 %v134_v31  ;;  %v426_v27 = vunpack.c.0.s8 %v425_v25 }
  0xa9   :  { %v84_v33 = vmul.f32 %v4410_v30, %v4410_v30  ;;  %v4481_v28 = vshrl.u32 %v427_v26, 7 }
  0xab   :  { %v85_v34 = vsel %vm77_vm1, %v84_v33, 0.0 }
  0xac   :  { %141 = vadd.xlane.f32.xlu0 %v140_v32  ;;  %86 = vadd.xlane.f32.xlu1 %v85_v34 }
 0x131   :  { %v133_v45 = vpop.xlane.xlu1 %132 }
 0x132   :  { %v143_v46 = vmul.f32 0.015625, %v133_v45 }
 0x134   :  { %v147_v47 = vadd.f32 1e-05, %v143_v46 }
 0x135   :  { %v139_v48 = vpop.xlane.xlu1 %138  ;;  %v136_v49 = vpop.xlane.xlu0 %135 }
 0x136   :  { %4129 = vrsqrt.f32 %v147_v47  ;;  %v145_v50 = vmul.f32 0.015625, %v139_v48  ;;  %v144_v51 = vmul.f32 0.015625, %v136_v49 }
 0x138   :  { %v149_v52 = vadd.f32 1e-05, %v145_v50  ;;  %v148_v53 = vadd.f32 1e-05, %v144_v51 }
 0x139   :  { %v87_v54 = vpop.xlane.xlu1 %86  ;;  %v142_v55 = vpop.xlane.xlu0 %141 }
 0x13a   :  { %4131 = vrsqrt.f32 %v149_v52  ;;  %v88_v56 = vmul.f32 0.015625, %v87_v54  ;;  %v146_v57 = vmul.f32 0.015625, %v142_v55  ;;  %v4522_v55 = vld [vmem:[%s5210_s5] sm:$0x1] }
 0x13b   :  { %4133 = vrsqrt.f32 %v148_v53  ;;  %vm549_vm4 = vcmp.gt.f32.partialorder %v4522_v55, 0.0 }
 0x13c   :  { %v89_v58 = vadd.f32 1e-05, %v88_v56  ;;  %v150_v59 = vadd.f32 1e-05, %v146_v57 }
 0x13e   :  { %4135 = vrsqrt.f32 %v89_v58 }
 0x13f   :  { %4137 = vrsqrt.f32 %v150_v59 }
 0x140   :  { %v4130_v60 = vpop.eup %4129 }
 0x141   :  { %v155_v61 = vmul.f32 %v4130_v60, %v4392_v14 }
 0x143   :  { %v159_v3 = vmul.f32 %v3412_v62, %v155_v61 }
 0x144   :  { %v4132_v63 = vpop.eup %4131 }
 0x145   :  { %v4134_v0 = vpop.eup %4133  ;;  %v157_v1 = vmul.f32 %v4132_v63, %v4394_v15  ;;  %v163_v10 = vadd.f32 %v3413_v4, %v159_v3  ;;  %v4531_v63 = vld [vmem:[%s5210_s5 + $0x1] sm:$0x1]  ;;  %s4260_s5 = smov 64  }
 0x146   :  { %v156_v2 = vmul.f32 %v4134_v0, %v4400_v22  ;;  %v4051_v22 = vld [vmem:[%s5183_s9 + $0x10] sm:$0xff]   ;;  %vm550_vm6 = vcmp.gt.f32.partialorder %v4531_v63, 0.0 }
 0x147   :  { %v161_v12 = vmul.f32 %v3412_v62, %v157_v1 }
 0x148   :  { %v4136_v5 = vpop.eup %4135  ;;  %v160_v6 = vmul.f32 %v3412_v62, %v156_v2 }
 0x149   :  { %v4138_v7 = vpop.eup %4137  ;;  %v91_v8 = vmul.f32 %v4136_v5, %v4410_v30  ;;  %v165_v17 = vadd.f32 %v3413_v4, %v161_v12  ;;  %v4484_v30 = vsub.s32 %v426_v27, %v4481_v28 }
 0x14a   :  { %v158_v9 = vmul.f32 %v4138_v7, %v4402_v23  ;;  %v164_v11 = vadd.f32 %v3413_v4, %v160_v6  ;;  %v4052_v23 = vld [vmem:[%s5183_s9 + $0x18] sm:$0xff]  }
 0x14b   :  { %v98_v13 = vmul.f32 %v3412_v62, %v91_v8 }
 0x14c   :  { %v269_v14 = vpack.c.bf16 %v164_v11, %v163_v10  ;;  %v162_v15 = vmul.f32 %v3412_v62, %v158_v9 }
 0x14d   :  { %v105_v16 = vadd.f32 %v3413_v4, %v98_v13 }
 0x14e   :  { %3715 = vmatprep.mubr.msk.bf16.mxu1 %vm106_vm0, %v269_v14  ;;  %v166_v18 = vadd.f32 %v3413_v4, %v162_v15 }
 0x14f   :  { %v201_v19 = vpack.c.bf16 %v105_v16, %v105_v16 }
 0x150   :  { %v270_v21 = vpack.c.bf16 %v166_v18, %v165_v17 }
 0x151   :  { %3704 = vmatmul.mubr.msk.bf16.vlgmr.msra.gmra.mrb[0].mxu0 %vm106_vm0, %v201_v19 }
 0x152   :  { %3716 = vmatmul.mubr.msk.bf16.vlgmr.msra.gmra.mrb[0].mxu1 %vm106_vm0, %v270_v21  ;;  %3720 = vmatpush3.bf16.msra.mxu0 %v4049_v44 }
 0x153   :  { %3727 = vmatprep.mubr.msk.bf16.mxu0 %vm106_vm0, %v269_v14  ;;  %3721 = vmatprep.subr.bf16.mxu0 %v4050_v20 }
 0x154   :  { %3733 = vmatprep.mubr.msk.bf16.mxu1 %vm4243_vm2, %v4242_v37 }
 0x156   :  { %3722 = vmatpush3.bf16.msra.mxu0 %v4050_v20 }
 0x157   :  { %3723 = vmatprep.subr.bf16.mxu0 %v4051_v22 }
 0x15a   :  { %3724 = vmatpush3.bf16.msra.mxu0 %v4051_v22 }
 0x15b   :  { %3725 = vmatprep.subr.bf16.mxu0 %v4052_v23 }
 0x15e   :  { %3726 = vmatpush3.bf16.msra.mxu0 %v4052_v23 }
 0x15f   :  { %3743 = vmatprep.subr.bf16.mxu0 %v4242_v37 }
 0x161   :  { %3728 = vmatmul.mubr.msk.bf16.vlgmr.msra.gmra.mrb[4].mxu0 %vm106_vm0, %v270_v21 }
 0x162   :  { %3745 = vmatprep.mubr.msk.bf16.mxu0 %vm4243_vm2, %v4242_v37 }
 0x224   :  { %v263_v29 = vpop.f32.mrb[0].mxu0 }
 0x225   :  { %v3717_v31 = vpop.f32.mrb[0].mxu1  ;;  %v3705_v32 = vpop.f32.mrb[1].mxu0  ;;  %v430_v40 = vrot.slane %v263_v29, %v4484_v30 }
 0x226   :  { %v335_v33 = vpop.f32.mrb[1].mxu1  ;;  %v266_v34 = vpop.f32.mrb[2].mxu0 }
 0x227   :  { %v3718_v35 = vpop.f32.mrb[2].mxu1  ;;  %v3706_v36 = vpop.f32.mrb[3].mxu0  ;;  %v438_v43 = vrot.slane %v430_v40, %v4484_v30  ;;  %v431_v44 = vcombine.high %v430_v40, %v430_v40 }
 0x228   :  { %v4486_v38 = vpack.c.bf16 %v3718_v35, %v3717_v31  ;;  %v338_v39 = vpop.f32.mrb[3].mxu1 }
 0x229   :  { %v4489_v41 = vpack.c.bf16 %v338_v39, %v335_v33  ;;  %v4495_v45 = vpack.c.bf16 %v438_v43, %v438_v43  ;;  %v445_v48 = vrot.slane %v431_v44, %v4484_v30 }
 0x22a   :  { %v505_v46 = vsel %vm454_vm3, %v4486_v38, 0 }
 0x22b   :  { %v459_v42 = vsel %vm454_vm3, %v4489_v41, 0  ;;  %v4509_v54 = vpack.c.bf16 %v445_v48, %v445_v48 }
 0x22c   :  { %3732 = vmatpush3.bf16.xpose.msra.mxu1 %v459_v42 }
 0x22d   :  { %3737 = vmatprep.subr.bf16.mxu1 %v4242_v37 }
 0x233   :  { %3734 = vmatmul.mubr.msk.bf16.vlgmr.msra.gmra.mrb[4].mxu1 %vm454_vm3, %v4495_v45 }
 0x234   :  { %v3729_v47 = vpop.f32.mrb[4].mxu0  ;;  %3738 = vmatpush3.bf16.xpose.msra.mxu1 %v505_v46  ;;  %3739 = vmatprep.mubr.msk.bf16.mxu1 %vm4243_vm2, %v4242_v37 }
 0x235   :  { %v408_v49 = vpop.f32.mrb[5].mxu0  ;;  %3749 = vmatprep.subr.bf16.mxu1 %v4242_v37 }
 0x236   :  { %v3730_v50 = vpop.f32.mrb[6].mxu0 }
 0x237   :  { %v4505_v51 = vpack.c.bf16 %v3730_v50, %v3729_v47  ;;  %v411_v52 = vpop.f32.mrb[7].mxu0 }
 0x238   :  { %v4507_v53 = vpack.c.bf16 %v411_v52, %v408_v49 }
 0x23a   :  { %3744 = vmatpush3.bf16.msra.mxu0 %v4507_v53 }
 0x23b   :  { %3740 = vmatmul.mubr.msk.bf16.vlgmr.msra.gmra.mrb[8].mxu1 %vm454_vm3, %v4509_v54  ;;  %3755 = vmatprep.subr.bf16.mxu0 %v4242_v37 }
 0x23c   :  { %3750 = vmatpush3.bf16.msra.mxu1 %v4505_v51  ;;  %3751 = vmatprep.mubr.msk.bf16.mxu1 %vm4243_vm2, %v4242_v37 }
 0x23d   :  { %3761 = vmatprep.subr.bf16.mxu1 %v4242_v37 }
 0x306   :  { %v495_v56 = vpop.f32.mrb[4].mxu1 }
 0x307   :  { %v547_v57 = vmul.f32 0.35355338, %v495_v56  ;;  %v3735_v58 = vpop.f32.mrb[5].mxu1 }
 0x308   :  { %v498_v59 = vpop.f32.mrb[6].mxu1 }
 0x309   :  { %v3736_v60 = vpop.f32.mrb[7].mxu1  ;;  %v551_v61 = vsel %vm549_vm4, -1e+08, %v547_v57 }
 0x30a   :  { %v554_v62 = vsel %vm553_vm5, %v551_v61, -inf }
 0x30b   :  { %555 = vmax.xlane.f32.xlu1 %v554_v62 }
 0x30e   :  { %v541_v0 = vpop.f32.mrb[8].mxu1 }
 0x30f   :  { %v548_v1 = vmul.f32 0.35355338, %v541_v0  ;;  %v3741_v2 = vpop.f32.mrb[9].mxu1 }
 0x310   :  { %v544_v3 = vpop.f32.mrb[10].mxu1 }
 0x311   :  { %v3742_v4 = vpop.f32.mrb[11].mxu1  ;;  %v552_v5 = vsel %vm550_vm6, -1e+08, %v548_v1 }
 0x312   :  { %v557_v6 = vsel %vm553_vm5, %v552_v5, -inf }
 0x313   :  { %558 = vmax.xlane.f32.xlu0 %v557_v6 }
 0x398   :  { %v556_v7 = vpop.xlane.xlu1 %555 }
 0x399   :  { %v560_v8 = vsub.f32 %v551_v61, %v556_v7 }
 0x39b   :  { %v562_v9 = vmul.f32 1.442695, %v560_v8 }
 0x39d   :  { %4139 = vpow2.f32 %v562_v9 }
 0x3a0   :  { %v559_v10 = vpop.xlane.xlu0 %558 }
 0x3a1   :  { %v561_v11 = vsub.f32 %v552_v5, %v559_v10 }
 0x3a3   :  { %v564_v12 = vmul.f32 1.442695, %v561_v11 }
 0x3a5   :  { %4141 = vpow2.f32 %v564_v12 }
 0x3a7   :  { %v4140_v13 = vpop.eup %4139 }
 0x3a8   :  { %v566_v14 = vsel %vm553_vm5, %v4140_v13, 0.0 }
 0x3a9   :  { %567 = vadd.xlane.f32.xlu1 %v566_v14 }
 0x3af   :  { %v4142_v15 = vpop.eup %4141 }
 0x3b0   :  { %v569_v16 = vsel %vm553_vm5, %v4142_v15, 0.0 }
 0x3b1   :  { %570 = vadd.xlane.f32.xlu0 %v569_v16 }
 0x3ba   :  { %669 = vrot.lane.b32.xlu1 %v4489_v41, %s4245_s24 }
 0x3be   :  { %718 = vrot.lane.b32.xlu1 %v4509_v54, %s4245_s24 }
 0x3c2   :  { %666 = vrot.lane.b32.xlu1 %v4495_v45, %s4245_s24 }
 0x3c7   :  { %721 = vrot.lane.b32.xlu0 %v4486_v38, %s4245_s24 }
 0x436   :  { %v568_v17 = vpop.xlane.xlu1 %567 }
 0x437   :  { %4143 = vrcp.f32 %v568_v17 }
 0x43a   :  { %v670_v20 = vpop.permute.xlu1 %669 }
 0x43b   :  { %v675_v23 = vsel %vm454_vm3, %v670_v20, 0 }
 0x43e   :  { %v571_v18 = vpop.xlane.xlu0 %570  ;;  %v719_v24 = vpop.permute.xlu1 %718 }
 0x43f   :  { %4145 = vrcp.f32 %v571_v18 }
 0x441   :  { %v4144_v19 = vpop.eup %4143 }
 0x442   :  { %v574_v21 = vmul.f32 %v4144_v19, %v4140_v13  ;;  %v722_v27 = vpop.permute.xlu0 %721  ;;  %v667_v31 = vpop.permute.xlu1 %666 }
 0x443   :  { %v727_v32 = vsel %vm454_vm3, %v722_v27, 0 }
 0x444   :  { %v576_v22 = vpack.c.bf16 %v574_v21, %v574_v21 }
 0x446   :  { %3746 = vmatmul.mubr.msk.bf16.vlgmr.msra.gmra.mrb[8].mxu0 %vm578_vm7, %v576_v22 }
 0x447   :  { %3756 = vmatpush3.bf16.xpose.msra.mxu0 %v675_v23  ;;  %3757 = vmatprep.mubr.msk.bf16.mxu0 %vm4243_vm2, %v4242_v37 }
 0x448   :  { %3767 = vmatprep.subr.bf16.mxu0 %v4242_v37 }
 0x449   :  { %v4146_v25 = vpop.eup %4145 }
 0x44a   :  { %v575_v26 = vmul.f32 %v4146_v25, %v4142_v15 }
 0x44c   :  { %v577_v29 = vpack.c.bf16 %v575_v26, %v575_v26 }
 0x44e   :  { %3752 = vmatmul.mubr.msk.bf16.vlgmr.msra.gmra.mrb[12].mxu1 %vm578_vm7, %v577_v29  ;;  %3758 = vmatmul.mubr.msk.bf16.vlgmr.msra.gmra.mrb[12].mxu0 %vm454_vm3, %v667_v31 }
 0x44f   :  { %3762 = vmatpush3.bf16.xpose.msra.mxu1 %v727_v32  ;;  %3763 = vmatprep.mubr.msk.bf16.mxu1 %vm4243_vm2, %v4242_v37 }
 0x450   :  { %3773 = vmatprep.subr.bf16.mxu1 %v4242_v37  ;;  %3769 = vmatprep.mubr.msk.bf16.mxu0 %vm4243_vm2, %v4242_v37 }
 0x456   :  { %3764 = vmatmul.mubr.msk.bf16.vlgmr.msra.gmra.mrb[16].mxu1 %vm454_vm3, %v719_v24 }
 0x457   :  { %3775 = vmatprep.mubr.msk.bf16.mxu1 %vm4243_vm2, %v4242_v37 }
 0x519   :  { %v4563_v33 = vpop.f32.mrb[8].mxu0 }
 0x51a   :  { %v3747_v34 = vpop.f32.mrb[9].mxu0 }
 0x51b   :  { %v619_v35 = vpop.f32.mrb[10].mxu0 }
 0x51c   :  { %v3748_v36 = vpop.f32.mrb[11].mxu0 }
 0x521   :  { %v4565_v39 = vpop.f32.mrb[12].mxu1  ;;  %v711_v40 = vpop.f32.mrb[12].mxu0 }
 0x522   :  { %v769_v42 = vmul.f32 0.35355338, %v711_v40  ;;  %v3753_v43 = vpop.f32.mrb[13].mxu1  ;;  %v3759_v44 = vpop.f32.mrb[13].mxu0 }
 0x523   :  { %v662_v46 = vpop.f32.mrb[14].mxu1  ;;  %v714_v47 = vpop.f32.mrb[14].mxu0 }
 0x524   :  { %v3754_v48 = vpop.f32.mrb[15].mxu1  ;;  %v3760_v49 = vpop.f32.mrb[15].mxu0  ;;  %v771_v50 = vsel %vm549_vm4, -1e+08, %v769_v42 }
 0x525   :  { %v773_v52 = vsel %vm553_vm5, %v771_v50, -inf }
 0x526   :  { %774 = vmax.xlane.f32.xlu1 %v773_v52 }
 0x529   :  { %v763_v56 = vpop.f32.mrb[16].mxu1 }
 0x52a   :  { %v770_v57 = vmul.f32 0.35355338, %v763_v56  ;;  %v3765_v58 = vpop.f32.mrb[17].mxu1 }
 0x52b   :  { %v766_v59 = vpop.f32.mrb[18].mxu1 }
 0x52c   :  { %v3766_v60 = vpop.f32.mrb[19].mxu1  ;;  %v772_v61 = vsel %vm550_vm6, -1e+08, %v770_v57 }
 0x52d   :  { %v776_v62 = vsel %vm553_vm5, %v772_v61, -inf }
 0x52e   :  { %777 = vmax.xlane.f32.xlu0 %v776_v62 }
 0x537   :  { %798 = vrot.lane.b32.xlu1 %v4507_v53, %s4245_s24 }
 0x53b   :  { %943 = vrot.lane.b32.xlu1 %v4486_v38, %s4246_s2 }
 0x53f   :  { %893 = vrot.lane.b32.xlu1 %v4489_v41, %s4246_s2 }
 0x543   :  { %891 = vrot.lane.b32.xlu1 %v4495_v45, %s4246_s2 }
 0x5b3   :  { %v775_v0 = vpop.xlane.xlu1 %774 }
 0x5b4   :  { %v779_v1 = vsub.f32 %v771_v50, %v775_v0 }
 0x5b6   :  { %v781_v2 = vmul.f32 1.442695, %v779_v1 }
 0x5b7   :  { %v799_v3 = vpop.permute.xlu1 %798 }
 0x5b8   :  { %4147 = vpow2.f32 %v781_v2  ;;  %3768 = vmatpush3.bf16.msra.mxu0 %v799_v3 }
 0x5b9   :  { %3779 = vmatprep.subr.bf16.mxu0 %v4242_v37 }
 0x5bb   :  { %v778_v4 = vpop.xlane.xlu0 %777  ;;  %v944_v12 = vpop.permute.xlu1 %943 }
 0x5bc   :  { %v780_v5 = vsub.f32 %v772_v61, %v778_v4  ;;  %v949_v24 = vsel %vm454_vm3, %v944_v12, 0 }
 0x5be   :  { %v783_v6 = vmul.f32 1.442695, %v780_v5 }
 0x5bf   :  { %v894_v17 = vpop.permute.xlu1 %893 }
 0x5c0   :  { %4149 = vpow2.f32 %v783_v6  ;;  %v899_v19 = vsel %vm454_vm3, %v894_v17, 0 }
 0x5c2   :  { %v4148_v7 = vpop.eup %4147 }
 0x5c3   :  { %v785_v8 = vsel %vm553_vm5, %v4148_v7, 0.0  ;;  %v892_v23 = vpop.permute.xlu1 %891 }
 0x5c4   :  { %786 = vadd.xlane.f32.xlu0 %v785_v8 }
 0x5ca   :  { %v4150_v9 = vpop.eup %4149 }
 0x5cb   :  { %v788_v10 = vsel %vm553_vm5, %v4150_v9, 0.0 }
 0x5cc   :  { %789 = vadd.xlane.f32.xlu0 %v788_v10 }
 0x5e2   :  { %845 = vrot.lane.b32.xlu0 %v4505_v51, %s4245_s24 }
 0x5e6   :  { %941 = vrot.lane.b32.xlu0 %v4509_v54, %s4246_s2 }
 0x651   :  { %v787_v11 = vpop.xlane.xlu0 %786 }
 0x652   :  { %4151 = vrcp.f32 %v787_v11 }
 0x659   :  { %v790_v13 = vpop.xlane.xlu0 %789 }
 0x65a   :  { %4153 = vrcp.f32 %v790_v13 }
 0x65c   :  { %v4152_v14 = vpop.eup %4151 }
 0x65d   :  { %v793_v15 = vmul.f32 %v4152_v14, %v4148_v7  ;;  %v846_v16 = vpop.permute.xlu0 %845 }
 0x65e   :  { %3774 = vmatpush3.bf16.msra.mxu1 %v846_v16 }
 0x65f   :  { %v795_v18 = vpack.c.bf16 %v793_v15, %v793_v15  ;;  %3785 = vmatprep.subr.bf16.mxu1 %v4242_v37 }
 0x661   :  { %3770 = vmatmul.mubr.msk.bf16.vlgmr.msra.gmra.mrb[16].mxu0 %vm578_vm7, %v795_v18  ;;  %v942_v25 = vpop.permute.xlu0 %941 }
 0x662   :  { %3780 = vmatpush3.bf16.xpose.msra.mxu0 %v899_v19  ;;  %3781 = vmatprep.mubr.msk.bf16.mxu0 %vm4243_vm2, %v4242_v37 }
 0x663   :  { %3791 = vmatprep.subr.bf16.mxu0 %v4242_v37 }
 0x664   :  { %v4154_v20 = vpop.eup %4153 }
 0x665   :  { %v794_v21 = vmul.f32 %v4154_v20, %v4150_v9 }
 0x667   :  { %v796_v22 = vpack.c.bf16 %v794_v21, %v794_v21 }
 0x669   :  { %3776 = vmatmul.mubr.msk.bf16.vlgmr.msra.gmra.mrb[20].mxu1 %vm578_vm7, %v796_v22  ;;  %3782 = vmatmul.mubr.msk.bf16.vlgmr.msra.gmra.mrb[20].mxu0 %vm454_vm3, %v892_v23 }
 0x66a   :  { %3786 = vmatpush3.bf16.xpose.msra.mxu1 %v949_v24  ;;  %3787 = vmatprep.mubr.msk.bf16.mxu1 %vm4243_vm2, %v4242_v37 }
 0x66b   :  { %3797 = vmatprep.subr.bf16.mxu1 %v4242_v37  ;;  %3793 = vmatprep.mubr.msk.bf16.mxu0 %vm4243_vm2, %v4242_v37 }
 0x671   :  { %3788 = vmatmul.mubr.msk.bf16.vlgmr.msra.gmra.mrb[24].mxu1 %vm454_vm3, %v942_v25 }
 0x672   :  { %3799 = vmatprep.mubr.msk.bf16.mxu1 %vm4243_vm2, %v4242_v37 }
 0x734   :  { %v4605_v26 = vpop.f32.mrb[16].mxu0 }
 0x735   :  { %v3771_v27 = vpop.f32.mrb[17].mxu0 }
 0x736   :  { %v841_v29 = vpop.f32.mrb[18].mxu0 }
 0x737   :  { %v3772_v31 = vpop.f32.mrb[19].mxu0 }
 0x73c   :  { %v4607_v32 = vpop.f32.mrb[20].mxu1  ;;  %v935_v34 = vpop.f32.mrb[20].mxu0 }
 0x73d   :  { %v4011_v35 = vpack.i.bf16 %v4605_v26, %v4607_v32  ;;  %v991_v36 = vmul.f32 0.35355338, %v935_v34  ;;  %v3777_v40 = vpop.f32.mrb[21].mxu1  ;;  %v3783_v42 = vpop.f32.mrb[21].mxu0 }
 0x73e   :  { %v888_v43 = vpop.f32.mrb[22].mxu1  ;;  %v938_v44 = vpop.f32.mrb[22].mxu0 }
 0x73f   :  { %v3778_v46 = vpop.f32.mrb[23].mxu1  ;;  %v3784_v47 = vpop.f32.mrb[23].mxu0  ;;  %v993_v48 = vsel %vm549_vm4, -1e+08, %v991_v36 }
 0x740   :  { %v995_v49 = vsel %vm553_vm5, %v993_v48, -inf }
 0x741   :  { %996 = vmax.xlane.f32.xlu1 %v995_v49 }
 0x744   :  { %v985_v50 = vpop.f32.mrb[24].mxu1 }
 0x745   :  { %v992_v52 = vmul.f32 0.35355338, %v985_v50  ;;  %v3789_v56 = vpop.f32.mrb[25].mxu1 }
 0x746   :  { %v988_v57 = vpop.f32.mrb[26].mxu1 }
 0x747   :  { %v3790_v58 = vpop.f32.mrb[27].mxu1  ;;  %v994_v59 = vsel %vm550_vm6, -1e+08, %v992_v52 }
 0x748   :  { %v998_v60 = vsel %vm553_vm5, %v994_v59, -inf }
 0x749   :  { %999 = vmax.xlane.f32.xlu0 %v998_v60 }
 0x752   :  { %1019 = vrot.lane.b32.xlu1 %v4507_v53, %s4246_s2 }
 0x756   :  { %1163 = vrot.lane.b32.xlu1 %v4486_v38, %s4247_s7 }
 0x75a   :  { %1113 = vrot.lane.b32.xlu1 %v4489_v41, %s4247_s7 }
 0x75e   :  { %1111 = vrot.lane.b32.xlu1 %v4495_v45, %s4247_s7 }
 0x7ce   :  { %v997_v61 = vpop.xlane.xlu1 %996 }
 0x7cf   :  { %v1001_v62 = vsub.f32 %v993_v48, %v997_v61 }
 0x7d1   :  { %v1003_v0 = vmul.f32 1.442695, %v1001_v62 }
 0x7d2   :  { %v1020_v1 = vpop.permute.xlu1 %1019 }
 0x7d3   :  { %4155 = vpow2.f32 %v1003_v0  ;;  %3792 = vmatpush3.bf16.msra.mxu0 %v1020_v1 }
 0x7d4   :  { %3803 = vmatprep.subr.bf16.mxu0 %v4242_v37 }
 0x7d6   :  { %v1000_v2 = vpop.xlane.xlu0 %999  ;;  %v1164_v10 = vpop.permute.xlu1 %1163 }
 0x7d7   :  { %v1002_v3 = vsub.f32 %v994_v59, %v1000_v2  ;;  %v1169_v22 = vsel %vm454_vm3, %v1164_v10, 0 }
 0x7d9   :  { %v1005_v4 = vmul.f32 1.442695, %v1002_v3 }
 0x7da   :  { %v1114_v15 = vpop.permute.xlu1 %1113 }
 0x7db   :  { %4157 = vpow2.f32 %v1005_v4  ;;  %v1119_v17 = vsel %vm454_vm3, %v1114_v15, 0 }
 0x7dd   :  { %v4156_v5 = vpop.eup %4155 }
 0x7de   :  { %v1007_v6 = vsel %vm553_vm5, %v4156_v5, 0.0  ;;  %v1112_v21 = vpop.permute.xlu1 %1111 }
 0x7df   :  { %1008 = vadd.xlane.f32.xlu0 %v1007_v6 }
 0x7e5   :  { %v4158_v7 = vpop.eup %4157 }
 0x7e6   :  { %v1010_v8 = vsel %vm553_vm5, %v4158_v7, 0.0 }
 0x7e7   :  { %1011 = vadd.xlane.f32.xlu0 %v1010_v8 }
 0x7fd   :  { %1065 = vrot.lane.b32.xlu0 %v4505_v51, %s4246_s2  ;;  %s4258_s2 = smov 56  }
 0x801   :  { %1161 = vrot.lane.b32.xlu0 %v4509_v54, %s4247_s7 }
 0x86c   :  { %v1009_v9 = vpop.xlane.xlu0 %1008 }
 0x86d   :  { %4159 = vrcp.f32 %v1009_v9 }
 0x874   :  { %v1012_v11 = vpop.xlane.xlu0 %1011 }
 0x875   :  { %4161 = vrcp.f32 %v1012_v11 }
 0x877   :  { %v4160_v12 = vpop.eup %4159 }
 0x878   :  { %v1015_v13 = vmul.f32 %v4160_v12, %v4156_v5  ;;  %v1066_v14 = vpop.permute.xlu0 %1065 }
 0x879   :  { %3798 = vmatpush3.bf16.msra.mxu1 %v1066_v14 }
 0x87a   :  { %v1017_v16 = vpack.c.bf16 %v1015_v13, %v1015_v13  ;;  %3809 = vmatprep.subr.bf16.mxu1 %v4242_v37 }
 0x87c   :  { %3794 = vmatmul.mubr.msk.bf16.vlgmr.msra.gmra.mrb[24].mxu0 %vm578_vm7, %v1017_v16  ;;  %v1162_v23 = vpop.permute.xlu0 %1161 }
 0x87d   :  { %3804 = vmatpush3.bf16.xpose.msra.mxu0 %v1119_v17  ;;  %3805 = vmatprep.mubr.msk.bf16.mxu0 %vm4243_vm2, %v4242_v37 }
 0x87e   :  { %3815 = vmatprep.subr.bf16.mxu0 %v4242_v37 }
 0x87f   :  { %v4162_v18 = vpop.eup %4161 }
 0x880   :  { %v1016_v19 = vmul.f32 %v4162_v18, %v4158_v7 }
 0x882   :  { %v1018_v20 = vpack.c.bf16 %v1016_v19, %v1016_v19 }
 0x884   :  { %3800 = vmatmul.mubr.msk.bf16.vlgmr.msra.gmra.mrb[28].mxu1 %vm578_vm7, %v1018_v20  ;;  %3806 = vmatmul.mubr.msk.bf16.vlgmr.msra.gmra.mrb[28].mxu0 %vm454_vm3, %v1112_v21 }
 0x885   :  { %3810 = vmatpush3.bf16.xpose.msra.mxu1 %v1169_v22  ;;  %3811 = vmatprep.mubr.msk.bf16.mxu1 %vm4243_vm2, %v4242_v37 }
 0x886   :  { %3821 = vmatprep.subr.bf16.mxu1 %v4242_v37  ;;  %3817 = vmatprep.mubr.msk.bf16.mxu0 %vm4243_vm2, %v4242_v37 }
 0x88c   :  { %3812 = vmatmul.mubr.msk.bf16.vlgmr.msra.gmra.mrb[32].mxu1 %vm454_vm3, %v1162_v23 }
 0x88d   :  { %3823 = vmatprep.mubr.msk.bf16.mxu1 %vm4243_vm2, %v4242_v37 }
 0x94f   :  { %v4649_v24 = vpop.f32.mrb[24].mxu0 }
 0x950   :  { %v3795_v25 = vpop.f32.mrb[25].mxu0 }
 0x951   :  { %v1062_v27 = vpop.f32.mrb[26].mxu0 }
 0x952   :  { %v3796_v29 = vpop.f32.mrb[27].mxu0 }
 0x957   :  { %v4651_v31 = vpop.f32.mrb[28].mxu1  ;;  %v1155_v34 = vpop.f32.mrb[28].mxu0 }
 0x958   :  { %v4016_v36 = vpack.i.bf16 %v4649_v24, %v4651_v31  ;;  %v1211_v40 = vmul.f32 0.35355338, %v1155_v34  ;;  %v3801_v42 = vpop.f32.mrb[29].mxu1  ;;  %v3807_v43 = vpop.f32.mrb[29].mxu0 }
 0x959   :  { %v1108_v44 = vpop.f32.mrb[30].mxu1  ;;  %v1158_v46 = vpop.f32.mrb[30].mxu0 }
 0x95a   :  { %v3802_v47 = vpop.f32.mrb[31].mxu1  ;;  %v3808_v48 = vpop.f32.mrb[31].mxu0  ;;  %v1213_v49 = vsel %vm549_vm4, -1e+08, %v1211_v40 }
 0x95b   :  { %v1215_v50 = vsel %vm553_vm5, %v1213_v49, -inf }
 0x95c   :  { %1216 = vmax.xlane.f32.xlu1 %v1215_v50 }
 0x95f   :  { %v1205_v52 = vpop.f32.mrb[32].mxu1 }
 0x960   :  { %v1212_v56 = vmul.f32 0.35355338, %v1205_v52  ;;  %v3813_v57 = vpop.f32.mrb[33].mxu1 }
 0x961   :  { %v1208_v58 = vpop.f32.mrb[34].mxu1 }
 0x962   :  { %v3814_v59 = vpop.f32.mrb[35].mxu1  ;;  %v1214_v60 = vsel %vm550_vm6, -1e+08, %v1212_v56 }
 0x963   :  { %v1218_v61 = vsel %vm553_vm5, %v1214_v60, -inf }
 0x964   :  { %1219 = vmax.xlane.f32.xlu0 %v1218_v61 }
 0x96d   :  { %1239 = vrot.lane.b32.xlu1 %v4507_v53, %s4247_s7 }
 0x971   :  { %1383 = vrot.lane.b32.xlu1 %v4486_v38, %s4248_s8 }
 0x975   :  { %1333 = vrot.lane.b32.xlu1 %v4489_v41, %s4248_s8 }
 0x979   :  { %1331 = vrot.lane.b32.xlu1 %v4495_v45, %s4248_s8 }
 0x9e9   :  { %v1217_v62 = vpop.xlane.xlu1 %1216 }
 0x9ea   :  { %v1221_v0 = vsub.f32 %v1213_v49, %v1217_v62 }
 0x9ec   :  { %v1223_v1 = vmul.f32 1.442695, %v1221_v0 }
 0x9ed   :  { %v1240_v2 = vpop.permute.xlu1 %1239 }
 0x9ee   :  { %4163 = vpow2.f32 %v1223_v1  ;;  %3816 = vmatpush3.bf16.msra.mxu0 %v1240_v2 }
 0x9ef   :  { %3827 = vmatprep.subr.bf16.mxu0 %v4242_v37 }
 0x9f1   :  { %v1220_v3 = vpop.xlane.xlu0 %1219  ;;  %v1384_v11 = vpop.permute.xlu1 %1383 }
 0x9f2   :  { %v1222_v4 = vsub.f32 %v1214_v60, %v1220_v3  ;;  %v1389_v23 = vsel %vm454_vm3, %v1384_v11, 0 }
 0x9f4   :  { %v1225_v5 = vmul.f32 1.442695, %v1222_v4 }
 0x9f5   :  { %v1334_v16 = vpop.permute.xlu1 %1333 }
 0x9f6   :  { %4165 = vpow2.f32 %v1225_v5  ;;  %v1339_v18 = vsel %vm454_vm3, %v1334_v16, 0 }
 0x9f8   :  { %v4164_v6 = vpop.eup %4163 }
 0x9f9   :  { %v1227_v7 = vsel %vm553_vm5, %v4164_v6, 0.0  ;;  %v1332_v22 = vpop.permute.xlu1 %1331 }
 0x9fa   :  { %1228 = vadd.xlane.f32.xlu0 %v1227_v7 }
 0xa00   :  { %v4166_v8 = vpop.eup %4165 }
 0xa01   :  { %v1230_v9 = vsel %vm553_vm5, %v4166_v8, 0.0 }
 0xa02   :  { %1231 = vadd.xlane.f32.xlu0 %v1230_v9 }
 0xa18   :  { %1285 = vrot.lane.b32.xlu0 %v4505_v51, %s4247_s7 }
 0xa1c   :  { %1381 = vrot.lane.b32.xlu0 %v4509_v54, %s4248_s8 }
 0xa87   :  { %v1229_v10 = vpop.xlane.xlu0 %1228 }
 0xa88   :  { %4167 = vrcp.f32 %v1229_v10 }
 0xa8f   :  { %v1232_v12 = vpop.xlane.xlu0 %1231 }
 0xa90   :  { %4169 = vrcp.f32 %v1232_v12 }
 0xa92   :  { %v4168_v13 = vpop.eup %4167 }
 0xa93   :  { %v1235_v14 = vmul.f32 %v4168_v13, %v4164_v6  ;;  %v1286_v15 = vpop.permute.xlu0 %1285 }
 0xa94   :  { %3822 = vmatpush3.bf16.msra.mxu1 %v1286_v15 }
 0xa95   :  { %v1237_v17 = vpack.c.bf16 %v1235_v14, %v1235_v14  ;;  %3833 = vmatprep.subr.bf16.mxu1 %v4242_v37 }
 0xa97   :  { %3818 = vmatmul.mubr.msk.bf16.vlgmr.msra.gmra.mrb[32].mxu0 %vm578_vm7, %v1237_v17  ;;  %v1382_v25 = vpop.permute.xlu0 %1381 }
 0xa98   :  { %3828 = vmatpush3.bf16.xpose.msra.mxu0 %v1339_v18  ;;  %3829 = vmatprep.mubr.msk.bf16.mxu0 %vm4243_vm2, %v4242_v37 }
 0xa99   :  { %3839 = vmatprep.subr.bf16.mxu0 %v4242_v37 }
 0xa9a   :  { %v4170_v19 = vpop.eup %4169 }
 0xa9b   :  { %v1236_v20 = vmul.f32 %v4170_v19, %v4166_v8 }
 0xa9d   :  { %v1238_v21 = vpack.c.bf16 %v1236_v20, %v1236_v20 }
 0xa9f   :  { %3824 = vmatmul.mubr.msk.bf16.vlgmr.msra.gmra.mrb[36].mxu1 %vm578_vm7, %v1238_v21  ;;  %3830 = vmatmul.mubr.msk.bf16.vlgmr.msra.gmra.mrb[36].mxu0 %vm454_vm3, %v1332_v22 }
 0xaa0   :  { %3834 = vmatpush3.bf16.xpose.msra.mxu1 %v1389_v23  ;;  %3835 = vmatprep.mubr.msk.bf16.mxu1 %vm4243_vm2, %v4242_v37 }
 0xaa1   :  { %3845 = vmatprep.subr.bf16.mxu1 %v4242_v37  ;;  %3841 = vmatprep.mubr.msk.bf16.mxu0 %vm4243_vm2, %v4242_v37 }
 0xaa7   :  { %3836 = vmatmul.mubr.msk.bf16.vlgmr.msra.gmra.mrb[40].mxu1 %vm454_vm3, %v1382_v25 }
 0xaa8   :  { %3847 = vmatprep.mubr.msk.bf16.mxu1 %vm4243_vm2, %v4242_v37 }
 0xb6a   :  { %v4693_v27 = vpop.f32.mrb[32].mxu0 }
 0xb6b   :  { %v3819_v29 = vpop.f32.mrb[33].mxu0 }
 0xb6c   :  { %v1282_v34 = vpop.f32.mrb[34].mxu0 }
 0xb6d   :  { %v3820_v40 = vpop.f32.mrb[35].mxu0 }
 0xb72   :  { %v4695_v42 = vpop.f32.mrb[36].mxu1  ;;  %v1375_v43 = vpop.f32.mrb[36].mxu0 }
 0xb73   :  { %v4021_v44 = vpack.i.bf16 %v4693_v27, %v4695_v42  ;;  %v1431_v46 = vmul.f32 0.35355338, %v1375_v43  ;;  %v3825_v47 = vpop.f32.mrb[37].mxu1  ;;  %v3831_v48 = vpop.f32.mrb[37].mxu0 }
 0xb74   :  { %v1328_v49 = vpop.f32.mrb[38].mxu1  ;;  %v1378_v50 = vpop.f32.mrb[38].mxu0 }
 0xb75   :  { %v3826_v52 = vpop.f32.mrb[39].mxu1  ;;  %v3832_v56 = vpop.f32.mrb[39].mxu0  ;;  %v1433_v57 = vsel %vm549_vm4, -1e+08, %v1431_v46 }
 0xb76   :  { %v1435_v58 = vsel %vm553_vm5, %v1433_v57, -inf }
 0xb77   :  { %1436 = vmax.xlane.f32.xlu1 %v1435_v58 }
 0xb7a   :  { %v1425_v59 = vpop.f32.mrb[40].mxu1 }
 0xb7b   :  { %v1432_v60 = vmul.f32 0.35355338, %v1425_v59  ;;  %v3837_v61 = vpop.f32.mrb[41].mxu1 }
 0xb7c   :  { %v1428_v62 = vpop.f32.mrb[42].mxu1 }
 0xb7d   :  { %v3838_v0 = vpop.f32.mrb[43].mxu1  ;;  %v1434_v1 = vsel %vm550_vm6, -1e+08, %v1432_v60 }
 0xb7e   :  { %v1438_v2 = vsel %vm553_vm5, %v1434_v1, -inf }
 0xb7f   :  { %1439 = vmax.xlane.f32.xlu0 %v1438_v2 }
 0xb88   :  { %1459 = vrot.lane.b32.xlu1 %v4507_v53, %s4248_s8 }
 0xb8c   :  { %1603 = vrot.lane.b32.xlu1 %v4486_v38, %s4249_s25 }
 0xb90   :  { %1553 = vrot.lane.b32.xlu1 %v4489_v41, %s4249_s25 }
 0xb94   :  { %1551 = vrot.lane.b32.xlu1 %v4495_v45, %s4249_s25 }
 0xc04   :  { %v1437_v3 = vpop.xlane.xlu1 %1436 }
 0xc05   :  { %v1441_v4 = vsub.f32 %v1433_v57, %v1437_v3 }
 0xc07   :  { %v1443_v5 = vmul.f32 1.442695, %v1441_v4 }
 0xc08   :  { %v1460_v6 = vpop.permute.xlu1 %1459 }
 0xc09   :  { %4171 = vpow2.f32 %v1443_v5  ;;  %3840 = vmatpush3.bf16.msra.mxu0 %v1460_v6 }
 0xc0a   :  { %3851 = vmatprep.subr.bf16.mxu0 %v4242_v37 }
 0xc0c   :  { %v1440_v7 = vpop.xlane.xlu0 %1439  ;;  %v1604_v15 = vpop.permute.xlu1 %1603 }
 0xc0d   :  { %v1442_v8 = vsub.f32 %v1434_v1, %v1440_v7  ;;  %v1609_v40 = vsel %vm454_vm3, %v1604_v15, 0 }
 0xc0f   :  { %v1445_v9 = vmul.f32 1.442695, %v1442_v8 }
 0xc10   :  { %v1554_v20 = vpop.permute.xlu1 %1553 }
 0xc11   :  { %4173 = vpow2.f32 %v1445_v9  ;;  %v1559_v22 = vsel %vm454_vm3, %v1554_v20, 0 }
 0xc13   :  { %v4172_v10 = vpop.eup %4171 }
 0xc14   :  { %v1447_v11 = vsel %vm553_vm5, %v4172_v10, 0.0  ;;  %v1552_v34 = vpop.permute.xlu1 %1551 }
 0xc15   :  { %1448 = vadd.xlane.f32.xlu0 %v1447_v11 }
 0xc1b   :  { %v4174_v12 = vpop.eup %4173 }
 0xc1c   :  { %v1450_v13 = vsel %vm553_vm5, %v4174_v12, 0.0 }
 0xc1d   :  { %1451 = vadd.xlane.f32.xlu0 %v1450_v13 }
 0xc33   :  { %1505 = vrot.lane.b32.xlu0 %v4505_v51, %s4248_s8 }
 0xc37   :  { %1601 = vrot.lane.b32.xlu0 %v4509_v54, %s4249_s25 }
 0xca2   :  { %v1449_v14 = vpop.xlane.xlu0 %1448 }
 0xca3   :  { %4175 = vrcp.f32 %v1449_v14 }
 0xcaa   :  { %v1452_v16 = vpop.xlane.xlu0 %1451 }
 0xcab   :  { %4177 = vrcp.f32 %v1452_v16 }
 0xcad   :  { %v4176_v17 = vpop.eup %4175 }
 0xcae   :  { %v1455_v18 = vmul.f32 %v4176_v17, %v4172_v10  ;;  %v1506_v19 = vpop.permute.xlu0 %1505 }
 0xcaf   :  { %3846 = vmatpush3.bf16.msra.mxu1 %v1506_v19 }
 0xcb0   :  { %v1457_v21 = vpack.c.bf16 %v1455_v18, %v1455_v18  ;;  %3857 = vmatprep.subr.bf16.mxu1 %v4242_v37 }
 0xcb2   :  { %3842 = vmatmul.mubr.msk.bf16.vlgmr.msra.gmra.mrb[40].mxu0 %vm578_vm7, %v1457_v21  ;;  %v1602_v43 = vpop.permute.xlu0 %1601 }
 0xcb3   :  { %3852 = vmatpush3.bf16.xpose.msra.mxu0 %v1559_v22  ;;  %3853 = vmatprep.mubr.msk.bf16.mxu0 %vm4243_vm2, %v4242_v37 }
 0xcb4   :  { %3863 = vmatprep.subr.bf16.mxu0 %v4242_v37 }
 0xcb5   :  { %v4178_v23 = vpop.eup %4177 }
 0xcb6   :  { %v1456_v25 = vmul.f32 %v4178_v23, %v4174_v12 }
 0xcb8   :  { %v1458_v29 = vpack.c.bf16 %v1456_v25, %v1456_v25 }
 0xcba   :  { %3848 = vmatmul.mubr.msk.bf16.vlgmr.msra.gmra.mrb[44].mxu1 %vm578_vm7, %v1458_v29  ;;  %3854 = vmatmul.mubr.msk.bf16.vlgmr.msra.gmra.mrb[44].mxu0 %vm454_vm3, %v1552_v34 }
 0xcbb   :  { %3858 = vmatpush3.bf16.xpose.msra.mxu1 %v1609_v40  ;;  %3859 = vmatprep.mubr.msk.bf16.mxu1 %vm4243_vm2, %v4242_v37 }
 0xcbc   :  { %3869 = vmatprep.subr.bf16.mxu1 %v4242_v37  ;;  %3865 = vmatprep.mubr.msk.bf16.mxu0 %vm4243_vm2, %v4242_v37 }
 0xcc2   :  { %3860 = vmatmul.mubr.msk.bf16.vlgmr.msra.gmra.mrb[48].mxu1 %vm454_vm3, %v1602_v43 }
 0xcc3   :  { %3871 = vmatprep.mubr.msk.bf16.mxu1 %vm4243_vm2, %v4242_v37 }
 0xd85   :  { %v4737_v46 = vpop.f32.mrb[40].mxu0 }
 0xd86   :  { %v3843_v47 = vpop.f32.mrb[41].mxu0 }
 0xd87   :  { %v1502_v48 = vpop.f32.mrb[42].mxu0 }
 0xd88   :  { %v3844_v49 = vpop.f32.mrb[43].mxu0 }
 0xd8d   :  { %v4739_v50 = vpop.f32.mrb[44].mxu1  ;;  %v1595_v52 = vpop.f32.mrb[44].mxu0 }
 0xd8e   :  { %v4026_v56 = vpack.i.bf16 %v4737_v46, %v4739_v50  ;;  %v1651_v57 = vmul.f32 0.35355338, %v1595_v52  ;;  %v3849_v58 = vpop.f32.mrb[45].mxu1  ;;  %v3855_v59 = vpop.f32.mrb[45].mxu0 }
 0xd8f   :  { %v1548_v60 = vpop.f32.mrb[46].mxu1  ;;  %v1598_v61 = vpop.f32.mrb[46].mxu0 }
 0xd90   :  { %v3850_v62 = vpop.f32.mrb[47].mxu1  ;;  %v3856_v0 = vpop.f32.mrb[47].mxu0  ;;  %v1653_v1 = vsel %vm549_vm4, -1e+08, %v1651_v57 }
 0xd91   :  { %v1655_v2 = vsel %vm553_vm5, %v1653_v1, -inf }
 0xd92   :  { %1656 = vmax.xlane.f32.xlu1 %v1655_v2 }
 0xd95   :  { %v1645_v3 = vpop.f32.mrb[48].mxu1 }
 0xd96   :  { %v1652_v4 = vmul.f32 0.35355338, %v1645_v3  ;;  %v3861_v5 = vpop.f32.mrb[49].mxu1 }
 0xd97   :  { %v1648_v6 = vpop.f32.mrb[50].mxu1 }
 0xd98   :  { %v3862_v7 = vpop.f32.mrb[51].mxu1  ;;  %v1654_v8 = vsel %vm550_vm6, -1e+08, %v1652_v4 }
 0xd99   :  { %v1658_v9 = vsel %vm553_vm5, %v1654_v8, -inf }
 0xd9a   :  { %1659 = vmax.xlane.f32.xlu0 %v1658_v9 }
 0xda3   :  { %1679 = vrot.lane.b32.xlu1 %v4507_v53, %s4249_s25 }
 0xda7   :  { %1823 = vrot.lane.b32.xlu1 %v4486_v38, %s4250_s26 }
 0xdab   :  { %1773 = vrot.lane.b32.xlu1 %v4489_v41, %s4250_s26 }
 0xdaf   :  { %1771 = vrot.lane.b32.xlu1 %v4495_v45, %s4250_s26 }
 0xe1f   :  { %v1657_v10 = vpop.xlane.xlu1 %1656 }
 0xe20   :  { %v1661_v11 = vsub.f32 %v1653_v1, %v1657_v10 }
 0xe22   :  { %v1663_v12 = vmul.f32 1.442695, %v1661_v11 }
 0xe23   :  { %v1680_v13 = vpop.permute.xlu1 %1679 }
 0xe24   :  { %4179 = vpow2.f32 %v1663_v12  ;;  %3864 = vmatpush3.bf16.msra.mxu0 %v1680_v13 }
 0xe25   :  { %3875 = vmatprep.subr.bf16.mxu0 %v4242_v37 }
 0xe27   :  { %v1660_v14 = vpop.xlane.xlu0 %1659  ;;  %v1824_v22 = vpop.permute.xlu1 %1823 }
 0xe28   :  { %v1662_v15 = vsub.f32 %v1654_v8, %v1660_v14  ;;  %v1829_v58 = vsel %vm454_vm3, %v1824_v22, 0 }
 0xe2a   :  { %v1665_v16 = vmul.f32 1.442695, %v1662_v15 }
 0xe2b   :  { %v1774_v40 = vpop.permute.xlu1 %1773 }
 0xe2c   :  { %4181 = vpow2.f32 %v1665_v16  ;;  %v1779_v47 = vsel %vm454_vm3, %v1774_v40, 0 }
 0xe2e   :  { %v4180_v17 = vpop.eup %4179 }
 0xe2f   :  { %v1667_v18 = vsel %vm553_vm5, %v4180_v17, 0.0  ;;  %v1772_v57 = vpop.permute.xlu1 %1771 }
 0xe30   :  { %1668 = vadd.xlane.f32.xlu0 %v1667_v18 }
 0xe36   :  { %v4182_v19 = vpop.eup %4181 }
 0xe37   :  { %v1670_v20 = vsel %vm553_vm5, %v4182_v19, 0.0 }
 0xe38   :  { %1671 = vadd.xlane.f32.xlu0 %v1670_v20 }
 0xe4e   :  { %1725 = vrot.lane.b32.xlu0 %v4505_v51, %s4249_s25 }
 0xe52   :  { %1821 = vrot.lane.b32.xlu0 %v4509_v54, %s4250_s26 }
 0xebd   :  { %v1669_v21 = vpop.xlane.xlu0 %1668 }
 0xebe   :  { %4183 = vrcp.f32 %v1669_v21 }
 0xec5   :  { %v1672_v23 = vpop.xlane.xlu0 %1671 }
 0xec6   :  { %4185 = vrcp.f32 %v1672_v23 }
 0xec8   :  { %v4184_v25 = vpop.eup %4183 }
 0xec9   :  { %v1675_v29 = vmul.f32 %v4184_v25, %v4180_v17  ;;  %v1726_v34 = vpop.permute.xlu0 %1725 }
 0xeca   :  { %3870 = vmatpush3.bf16.msra.mxu1 %v1726_v34 }
 0xecb   :  { %v1677_v43 = vpack.c.bf16 %v1675_v29, %v1675_v29  ;;  %3881 = vmatprep.subr.bf16.mxu1 %v4242_v37 }
 0xecd   :  { %3866 = vmatmul.mubr.msk.bf16.vlgmr.msra.gmra.mrb[48].mxu0 %vm578_vm7, %v1677_v43  ;;  %v1822_v59 = vpop.permute.xlu0 %1821 }
 0xece   :  { %3876 = vmatpush3.bf16.xpose.msra.mxu0 %v1779_v47  ;;  %3877 = vmatprep.mubr.msk.bf16.mxu0 %vm4243_vm2, %v4242_v37 }
 0xecf   :  { %3887 = vmatprep.subr.bf16.mxu0 %v4242_v37 }
 0xed0   :  { %v4186_v48 = vpop.eup %4185 }
 0xed1   :  { %v1676_v49 = vmul.f32 %v4186_v48, %v4182_v19 }
 0xed3   :  { %v1678_v52 = vpack.c.bf16 %v1676_v49, %v1676_v49 }
 0xed5   :  { %3872 = vmatmul.mubr.msk.bf16.vlgmr.msra.gmra.mrb[52].mxu1 %vm578_vm7, %v1678_v52  ;;  %3878 = vmatmul.mubr.msk.bf16.vlgmr.msra.gmra.mrb[52].mxu0 %vm454_vm3, %v1772_v57 }
 0xed6   :  { %3882 = vmatpush3.bf16.xpose.msra.mxu1 %v1829_v58  ;;  %3883 = vmatprep.mubr.msk.bf16.mxu1 %vm4243_vm2, %v4242_v37 }
 0xed7   :  { %3893 = vmatprep.subr.bf16.mxu1 %v4242_v37  ;;  %3889 = vmatprep.mubr.msk.bf16.mxu0 %vm4243_vm2, %v4242_v37 }
 0xedd   :  { %3884 = vmatmul.mubr.msk.bf16.vlgmr.msra.gmra.mrb[56].mxu1 %vm454_vm3, %v1822_v59 }
 0xede   :  { %3895 = vmatprep.mubr.msk.bf16.mxu1 %vm4243_vm2, %v4242_v37 }
 0xfa0   :  { %v4781_v60 = vpop.f32.mrb[48].mxu0 }
 0xfa1   :  { %v3867_v61 = vpop.f32.mrb[49].mxu0 }
 0xfa2   :  { %v1722_v62 = vpop.f32.mrb[50].mxu0 }
 0xfa3   :  { %v3868_v0 = vpop.f32.mrb[51].mxu0 }
 0xfa8   :  { %v4783_v1 = vpop.f32.mrb[52].mxu1  ;;  %v1815_v2 = vpop.f32.mrb[52].mxu0 }
 0xfa9   :  { %v4031_v3 = vpack.i.bf16 %v4781_v60, %v4783_v1  ;;  %v1871_v4 = vmul.f32 0.35355338, %v1815_v2  ;;  %v3873_v5 = vpop.f32.mrb[53].mxu1  ;;  %v3879_v6 = vpop.f32.mrb[53].mxu0  ;;  %v4054_v60 = vld [vmem:[%s5184_s10 + $0x8] sm:$0xff]   ;;  %v4055_v1 = vld [vmem:[%s5184_s10 + $0x10] sm:$0xff]  }
 0xfaa   :  { %v1768_v7 = vpop.f32.mrb[54].mxu1  ;;  %v1818_v8 = vpop.f32.mrb[54].mxu0 }
 0xfab   :  { %v3874_v9 = vpop.f32.mrb[55].mxu1  ;;  %v3880_v10 = vpop.f32.mrb[55].mxu0  ;;  %v1873_v11 = vsel %vm549_vm4, -1e+08, %v1871_v4 }
 0xfac   :  { %v1875_v12 = vsel %vm553_vm5, %v1873_v11, -inf }
 0xfad   :  { %1876 = vmax.xlane.f32.xlu1 %v1875_v12 }
 0xfb0   :  { %v1865_v13 = vpop.f32.mrb[56].mxu1 }
 0xfb1   :  { %v1872_v14 = vmul.f32 0.35355338, %v1865_v13  ;;  %v3885_v15 = vpop.f32.mrb[57].mxu1 }
 0xfb2   :  { %v1868_v16 = vpop.f32.mrb[58].mxu1 }
 0xfb3   :  { %v3886_v17 = vpop.f32.mrb[59].mxu1  ;;  %v1874_v18 = vsel %vm550_vm6, -1e+08, %v1872_v14 }
 0xfb4   :  { %v1878_v19 = vsel %vm553_vm5, %v1874_v18, -inf }
 0xfb5   :  { %1879 = vmax.xlane.f32.xlu0 %v1878_v19 }
 0xfbe   :  { %1899 = vrot.lane.b32.xlu1 %v4507_v53, %s4250_s26 }
 0xfc2   :  { %2043 = vrot.lane.b32.xlu1 %v4486_v38, %s4251_s27 }
 0xfc6   :  { %1993 = vrot.lane.b32.xlu1 %v4489_v41, %s4251_s27 }
 0xfca   :  { %1991 = vrot.lane.b32.xlu1 %v4495_v45, %s4251_s27 }
0x103a   :  { %v1877_v20 = vpop.xlane.xlu1 %1876 }
0x103b   :  { %v1881_v21 = vsub.f32 %v1873_v11, %v1877_v20 }
0x103d   :  { %v1883_v22 = vmul.f32 1.442695, %v1881_v21 }
0x103e   :  { %v1900_v23 = vpop.permute.xlu1 %1899 }
0x103f   :  { %4187 = vpow2.f32 %v1883_v22  ;;  %3888 = vmatpush3.bf16.msra.mxu0 %v1900_v23 }
0x1040   :  { %3899 = vmatprep.subr.bf16.mxu0 %v4242_v37 }
0x1042   :  { %v1880_v25 = vpop.xlane.xlu0 %1879  ;;  %v2044_v47 = vpop.permute.xlu1 %2043 }
0x1043   :  { %v1882_v29 = vsub.f32 %v1874_v18, %v1880_v25  ;;  %v2049_v4 = vsel %vm454_vm3, %v2044_v47, 0 }
0x1045   :  { %v1885_v34 = vmul.f32 1.442695, %v1882_v29 }
0x1046   :  { %v1994_v58 = vpop.permute.xlu1 %1993 }
0x1047   :  { %4189 = vpow2.f32 %v1885_v34  ;;  %v1999_v61 = vsel %vm454_vm3, %v1994_v58, 0 }
0x1049   :  { %v4188_v40 = vpop.eup %4187 }
0x104a   :  { %v1887_v38 = vsel %vm553_vm5, %v4188_v40, 0.0  ;;  %v1992_v2 = vpop.permute.xlu1 %1991 }
0x104b   :  { %1888 = vadd.xlane.f32.xlu0 %v1887_v38 }
0x1051   :  { %v4190_v41 = vpop.eup %4189 }
0x1052   :  { %v1890_v43 = vsel %vm553_vm5, %v4190_v41, 0.0 }
0x1053   :  { %1891 = vadd.xlane.f32.xlu0 %v1890_v43 }
0x1069   :  { %1945 = vrot.lane.b32.xlu0 %v4505_v51, %s4250_s26 }
0x106d   :  { %2041 = vrot.lane.b32.xlu0 %v4509_v54, %s4251_s27 }
0x10d8   :  { %v1889_v45 = vpop.xlane.xlu0 %1888 }
0x10d9   :  { %4191 = vrcp.f32 %v1889_v45 }
0x10e0   :  { %v1892_v48 = vpop.xlane.xlu0 %1891 }
0x10e1   :  { %4193 = vrcp.f32 %v1892_v48 }
0x10e3   :  { %v4192_v49 = vpop.eup %4191 }
0x10e4   :  { %v1895_v52 = vmul.f32 %v4192_v49, %v4188_v40  ;;  %v1946_v57 = vpop.permute.xlu0 %1945 }
0x10e5   :  { %3894 = vmatpush3.bf16.msra.mxu1 %v1946_v57  ;;  %v4056_v57 = vld [vmem:[%s5184_s10 + $0x18] sm:$0xff]  }
0x10e6   :  { %v1897_v59 = vpack.c.bf16 %v1895_v52, %v1895_v52  ;;  %3905 = vmatprep.subr.bf16.mxu1 %v4242_v37 }
0x10e8   :  { %3890 = vmatmul.mubr.msk.bf16.vlgmr.msra.gmra.mrb[56].mxu0 %vm578_vm7, %v1897_v59  ;;  %v2042_v5 = vpop.permute.xlu0 %2041 }
0x10e9   :  { %3900 = vmatpush3.bf16.xpose.msra.mxu0 %v1999_v61  ;;  %3901 = vmatprep.mubr.msk.bf16.mxu0 %vm4243_vm2, %v4242_v37 }
0x10ea   :  { %3911 = vmatprep.subr.bf16.mxu0 %v4242_v37 }
0x10eb   :  { %v4194_v54 = vpop.eup %4193 }
0x10ec   :  { %v1896_v62 = vmul.f32 %v4194_v54, %v4190_v41 }
0x10ee   :  { %v1898_v0 = vpack.c.bf16 %v1896_v62, %v1896_v62 }
0x10f0   :  { %3896 = vmatmul.mubr.msk.bf16.vlgmr.msra.gmra.mrb[60].mxu1 %vm578_vm7, %v1898_v0  ;;  %3902 = vmatmul.mubr.msk.bf16.vlgmr.msra.gmra.mrb[60].mxu0 %vm454_vm3, %v1992_v2 }
0x10f1   :  { %3906 = vmatpush3.bf16.xpose.msra.mxu1 %v2049_v4  ;;  %3907 = vmatprep.mubr.msk.bf16.mxu1 %vm4243_vm2, %v4242_v37 }
0x10f2   :  { %3917 = vmatprep.subr.bf16.mxu1 %v4242_v37  ;;  %3913 = vmatprep.mubr.msk.bf16.mxu0 %vm4243_vm2, %v4242_v37 }
0x10f8   :  { %3908 = vmatmul.mubr.msk.bf16.vlgmr.msra.gmra.mrb[64].mxu1 %vm454_vm3, %v2042_v5 }
0x10f9   :  { %3919 = vmatprep.mubr.msk.bf16.mxu1 %vm4243_vm2, %v4242_v37 }
0x11bb   :  { %v1939_v6 = vpop.f32.mrb[56].mxu0 }
0x11bc   :  { %v3891_v7 = vpop.f32.mrb[57].mxu0 }
0x11bd   :  { %v1942_v8 = vpop.f32.mrb[58].mxu0 }
0x11be   :  { %v3892_v9 = vpop.f32.mrb[59].mxu0 }
0x11c3   :  { %v1985_v10 = vpop.f32.mrb[60].mxu1  ;;  %v2035_v11 = vpop.f32.mrb[60].mxu0 }
0x11c4   :  { %v4036_v12 = vpack.i.bf16 %v1939_v6, %v1985_v10  ;;  %v2091_v13 = vmul.f32 0.35355338, %v2035_v11  ;;  %v3897_v14 = vpop.f32.mrb[61].mxu1  ;;  %v3903_v15 = vpop.f32.mrb[61].mxu0 }
0x11c5   :  { %v1988_v16 = vpop.f32.mrb[62].mxu1  ;;  %v2038_v17 = vpop.f32.mrb[62].mxu0 }
0x11c6   :  { %v3898_v18 = vpop.f32.mrb[63].mxu1  ;;  %v3904_v19 = vpop.f32.mrb[63].mxu0  ;;  %v2093_v20 = vsel %vm549_vm4, -1e+08, %v2091_v13 }
0x11c7   :  { %v2095_v21 = vsel %vm553_vm5, %v2093_v20, -inf }
0x11c8   :  { %2096 = vmax.xlane.f32.xlu1 %v2095_v21 }
0x11cb   :  { %v2085_v22 = vpop.f32.mrb[64].mxu1 }
0x11cc   :  { %v2092_v23 = vmul.f32 0.35355338, %v2085_v22  ;;  %v3909_v25 = vpop.f32.mrb[65].mxu1 }
0x11cd   :  { %v2088_v29 = vpop.f32.mrb[66].mxu1 }
0x11ce   :  { %v3910_v34 = vpop.f32.mrb[67].mxu1  ;;  %v2094_v40 = vsel %vm550_vm6, -1e+08, %v2092_v23 }
0x11cf   :  { %v2098_v38 = vsel %vm553_vm5, %v2094_v40, -inf }
0x11d0   :  { %2099 = vmax.xlane.f32.xlu0 %v2098_v38 }
0x11d9   :  { %2119 = vrot.lane.b32.xlu1 %v4507_v53, %s4251_s27 }
0x11dd   :  { %4012 = vrot.lane.b32.xlu1 %v4011_v35, %s4252_s6 }
0x11e1   :  { %4017 = vrot.lane.b32.xlu1 %v4016_v36, %s4253_s3  ;;  %s5212_s3 = sld [smem:[#allocation9_spill]] }
0x11e5   :  { %4027 = vrot.lane.b32.xlu1 %v4026_v56, %s4254_s28 }
0x11e9   :  { %4037 = vrot.lane.b32.xlu1 %v4036_v12, %s4255_s29 }
0x1255   :  { %v2097_v55 = vpop.xlane.xlu1 %2096 }
0x1256   :  { %v2101_v63 = vsub.f32 %v2093_v20, %v2097_v55 }
0x1258   :  { %v2103_v53 = vmul.f32 1.442695, %v2101_v63 }
0x1259   :  { %v2120_v41 = vpop.permute.xlu1 %2119 }
0x125a   :  { %4195 = vpow2.f32 %v2103_v53  ;;  %3912 = vmatpush3.bf16.msra.mxu0 %v2120_v41 }
0x125b   :  { %3923 = vmatprep.subr.bf16.mxu0 %v4242_v37 }
0x125d   :  { %v2100_v26 = vpop.xlane.xlu0 %2099  ;;  %v4013_v0 = vpop.permute.xlu1 %4012 }
0x125e   :  { %v2102_v32 = vsub.f32 %v2094_v40, %v2100_v26  ;;  %v4015_v5 = vunpack.i.h.bf16 %v4013_v0  ;;  %v4014_v8 = vunpack.i.l.bf16 %v4013_v0  ;;  %v4071_v0 = vld [vmem:[%s5187_s13 + $0x44] ss:$16 sps:$4 sm:$0xff]  }
0x1260   :  { %v2105_v35 = vmul.f32 1.442695, %v2102_v32  ;;  %v2267_v12 = vsel %vm454_vm3, %v4563_v33, %v4015_v5  ;;  %v2268_v15 = vsel %vm454_vm3, %v4565_v39, %v4014_v8  ;;  %v4072_v5 = vld [vmem:[%s5187_s13 + $0x48] ss:$16 sps:$4 sm:$0xff]   ;;  %v4075_v8 = vld [vmem:[%s5187_s13 + $0x60] ss:$16 sps:$4 sm:$0xff]  }
0x1261   :  { %v4018_v2 = vpop.permute.xlu1 %4017 }
0x1262   :  { %4197 = vpow2.f32 %v2105_v35  ;;  %v4020_v6 = vunpack.i.h.bf16 %v4018_v2  ;;  %v4019_v10 = vunpack.i.l.bf16 %v4018_v2  ;;  %v4074_v2 = vld [vmem:[%s5187_s13 + $0x4c] ss:$16 sps:$4 sm:$0xff]  }
0x1264   :  { %v4196_v24 = vpop.eup %4195  ;;  %v2269_v14 = vsel %vm578_vm7, %v2267_v12, %v4020_v6  ;;  %v2270_v18 = vsel %vm578_vm7, %v2268_v15, %v4019_v10  ;;  %v4077_v6 = vld [vmem:[%s5187_s13 + $0x64] ss:$16 sps:$4 sm:$0xff]   ;;  %v4259_v10 = vmov 0  }
0x1265   :  { %v2107_v31 = vsel %vm553_vm5, %v4196_v24, 0.0  ;;  %v4028_v7 = vpop.permute.xlu1 %4027  ;;  %v4082_v12 = vld [vmem:[%s5189_s15 + $0xc0] sm:$0xff]  }
0x1266   :  { %2108 = vadd.xlane.f32.xlu0 %v2107_v31  ;;  %v4030_v19 = vunpack.i.h.bf16 %v4028_v7  ;;  %v4029_v23 = vunpack.i.l.bf16 %v4028_v7  ;;  %v4080_v7 = vld [vmem:[%s5187_s13 + $0x6c] ss:$16 sps:$4 sm:$0xff]  }
0x1269   :  { %v4038_v20 = vpop.permute.xlu1 %4037 }
0x126a   :  { %v4040_v29 = vunpack.i.h.bf16 %v4038_v20  ;;  %v4039_v39 = vunpack.i.l.bf16 %v4038_v20 }
0x126c   :  { %v4198_v36 = vpop.eup %4197 }
0x126d   :  { %v2110_v46 = vsel %vm553_vm5, %v4198_v36, 0.0 }
0x126e   :  { %2111 = vadd.xlane.f32.xlu0 %v2110_v46 }
0x1284   :  { %2165 = vrot.lane.b32.xlu0 %v4505_v51, %s4251_s27 }
0x1288   :  { %4022 = vrot.lane.b32.xlu0 %v4021_v44, %s4256_s0  ;;  %v4053_v44 = vld [vmem:[%s5184_s10] sm:$0xff]  }
0x128c   :  { %4032 = vrot.lane.b32.xlu0 %v4031_v3, %s4257_s4 }
0x12f3   :  { %v2109_v50 = vpop.xlane.xlu0 %2108 }
0x12f4   :  { %4199 = vrcp.f32 %v2109_v50 }
0x12fb   :  { %v2112_v56 = vpop.xlane.xlu0 %2111 }
0x12fc   :  { %4201 = vrcp.f32 %v2112_v56 }
0x12fe   :  { %v4200_v43 = vpop.eup %4199 }
0x12ff   :  { %v2115_v45 = vmul.f32 %v4200_v43, %v4196_v24  ;;  %v2166_v47 = vpop.permute.xlu0 %2165  ;;  %v4882_v43 = vld [vmem:[%s5208_s22] sm:$0x3]  ;;  %s5211_s22 = sld [smem:[#allocation7_spill]] }
0x1300   :  { %3918 = vmatpush3.bf16.msra.mxu1 %v2166_v47 }
0x1301   :  { %v2117_v48 = vpack.c.bf16 %v2115_v45, %v2115_v45 }
0x1303   :  { %3914 = vmatmul.mubr.msk.bf16.vlgmr.msra.gmra.mrb[64].mxu0 %vm578_vm7, %v2117_v48  ;;  %v4023_v4 = vpop.permute.xlu0 %4022 }
0x1304   :  { %3931 = vmatprep.mubr.msk.bf16.mxu0 %vm4243_vm2, %v4242_v37  ;;  %3924 = vmatpush3.bf16.msra.mxu0 %v4053_v44  ;;  %v4025_v9 = vunpack.i.h.bf16 %v4023_v4  ;;  %v4024_v13 = vunpack.i.l.bf16 %v4023_v4  ;;  %v4069_v4 = vld [vmem:[%s5187_s13 + $0x40] ss:$16 sps:$4 sm:$0xff]  }
0x1305   :  { %3925 = vmatprep.subr.bf16.mxu0 %v4242_v37 }
0x1306   :  { %v4202_v51 = vpop.eup %4201  ;;  %v2272_v16 = vsel %vm2271_vm8, %v2269_v14, %v4025_v9  ;;  %v2273_v21 = vsel %vm2271_vm8, %v2270_v18, %v4024_v13  ;;  %v4078_v9 = vld [vmem:[%s5187_s13 + $0x68] ss:$16 sps:$4 sm:$0xff]  }
0x1307   :  { %v2116_v27 = vmul.f32 %v4202_v51, %v4198_v36  ;;  %v4033_v11 = vpop.permute.xlu0 %4032  ;;  %v2275_v25 = vsel %vm2274_vm9, %v2272_v16, %v4030_v19  ;;  %v2276_v40 = vsel %vm2274_vm9, %v2273_v21, %v4029_v23  ;;  %v3469_v19 = vld [vmem:[%s5186_s12] ss:$0 sm:$0xff]  ;;  %s4261_s12 = smov [#allocation2]  }
0x1308   :  { %3926 = vmatpush3.bf16.msra.mxu0 %v4054_v60  ;;  %v4035_v17 = vunpack.i.h.bf16 %v4033_v11  ;;  %v4034_v22 = vunpack.i.l.bf16 %v4033_v11  ;;  %v4081_v11 = vld [vmem:[%s5189_s15 + $0x40] sm:$0xff]   ;;  %s3404_s29 = sshll.u32 %s4261_s12, 4  ;;  %s3405_s29 = int_to_ptr.vmem [resolvable:$true] %s3404_s29 }
0x1309   :  { %v2118_v42 = vpack.c.bf16 %v2116_v27, %v2116_v27  ;;  %3927 = vmatprep.subr.bf16.mxu0 %v4242_v37  ;;  %v4084_v23 = vld [vmem:[%s5189_s15 + $0x80] sm:$0xff]   ;;  %s4218_s0 = scalar_lea.vmem %s3405_s29, 32  ;;  %p4223_p1 = scmp.lt.s32.totalorder %s3405_s29, %s3405_s29 }
0x130a   :  { %v2278_v33 = vsel %vm2277_vm10, %v2275_v25, %v4035_v17  ;;  %v2279_v38 = vsel %vm2277_vm10, %v2276_v40, %v4034_v22  ;;  %v3468_v17 = vld [vmem:[%s5185_s11] ss:$0 sm:$0xff]  ;;  %v4088_v40 = vld [vmem:[%s5189_s15 + $0x88] sm:$0xff]   ;;  %p4219_p0 = scmp.ne.s32.totalorder %s3405_s29, %s4218_s0  ;;  %p4224_p2 = scmp.lt.s32.totalorder %s4218_s0, %s4218_s0 }
0x130b   :  { %3920 = vmatmul.mubr.msk.bf16.vlgmr.msra.gmra.mrb[68].mxu1 %vm578_vm7, %v2118_v42  ;;  %v2281_v55 = vsel %vm2280_vm11, %v2278_v33, %v4040_v29  ;;  %v2282_v53 = vsel %vm2280_vm11, %v2279_v38, %v4039_v39  ;;  %v4083_v22 = vld [vmem:[%s5189_s15] sm:$0xff]   ;;  %v4085_v33 = vld [vmem:[%s5189_s15 + $0x48] sm:$0xff]   ;;  %v4089_v38 = vld [vmem:[%s5189_s15 + $0x50] sm:$0xff]  }
0x130c   :  { %3928 = vmatpush3.bf16.msra.mxu0 %v4055_v1  ;;  %2611 = vmatprep.mubr.bf16.mxu1 %v4259_v10  ;;  %v4086_v29 = vld [vmem:[%s5189_s15 + $0xc8] sm:$0xff]   ;;  %v4090_v39 = vld [vmem:[%s5189_s15 + $0xd0] sm:$0xff]   ;;  %p4225_p3 = por %p4224_p2, %p4223_p1 }
0x130d   :  { %3929 = vmatprep.subr.bf16.mxu0 %v4242_v37 }
0x130e   :  { %p4226_p4 = pnand %p4225_p3, %p4219_p0 }
0x1310   :  { %3930 = vmatpush3.bf16.msra.mxu0 %v4056_v57  ;;  %v4057_v57 = vld [vmem:[%s5187_s13] ss:$16 sps:$4 sm:$0xff]  }
0x13d6   :  { %v2159_v3 = vpop.f32.mrb[64].mxu0 }
0x13d7   :  { %2261 = vrot.lane.b32.xlu1 %v2159_v3, %s4258_s2  ;;  %v3915_v49 = vpop.f32.mrb[65].mxu0 }
0x13d8   :  { %v2162_v52 = vpop.f32.mrb[66].mxu0  ;;  %v4059_v49 = vld [vmem:[%s5187_s13 + $0x4] ss:$16 sps:$4 sm:$0xff]  }
0x13d9   :  { %v3916_v58 = vpop.f32.mrb[67].mxu0  ;;  %v4062_v52 = vld [vmem:[%s5187_s13 + $0xc] ss:$16 sps:$4 sm:$0xff]   ;;  %2579 = vmatprep.subr.bf16.mxu1 %v4059_v49  ;;  %v2478_v49 = vsub.s32 0, %v4481_v28 }
0x13da   :  { %v4060_v58 = vld [vmem:[%s5187_s13 + $0x8] ss:$16 sps:$4 sm:$0xff]   ;;  %2620 = vmatprep.subr.bf16.mxu0 %v4062_v52  ;;  %2580 = vmatpush1.bf16.msra.mxu1 %v4057_v57  ;;  %v2486_v52 = vsub.s32 2, %v4481_v28  ;;  %v2408_v57 = vld [vmem:[%s5188_s14] sm:$0xf] }
0x13de   :  { %v2205_v59 = vpop.f32.mrb[68].mxu1 }
0x13df   :  { %2263 = vrot.lane.b32.xlu0 %v2205_v59, %s4258_s2  ;;  %v3921_v61 = vpop.f32.mrb[69].mxu1  ;;  %v4065_v59 = vld [vmem:[%s5187_s13 + $0x24] ss:$16 sps:$4 sm:$0xff]  }
0x13e0   :  { %v2208_v54 = vpop.f32.mrb[70].mxu1  ;;  %v4068_v61 = vld [vmem:[%s5187_s13 + $0x2c] ss:$16 sps:$4 sm:$0xff]   ;;  %2581 = vmatprep.subr.bf16.mxu1 %v4065_v59  ;;  %v2490_v59 = vsub.s32 3, %v4481_v28 }
0x13e1   :  { %v3922_v62 = vpop.f32.mrb[71].mxu1  ;;  %v4063_v54 = vld [vmem:[%s5187_s13 + $0x20] ss:$16 sps:$4 sm:$0xff]  }
0x13e2   :  { %v4066_v62 = vld [vmem:[%s5187_s13 + $0x28] ss:$16 sps:$4 sm:$0xff]   ;;  %2582 = vmatpush1.bf16.msra.mxu1 %v4063_v54  ;;  %v2487_v54 = vrot.slane %v2408_v57, %v2486_v52  ;;  %v4125_v52 = vld [vmem:[%s5194_s20] sm:$0xff]  }
0x13e3   :  { %2583 = vmatprep.subr.bf16.mxu1 %v4071_v0  ;;  %v2491_v0 = vrot.slane %v2408_v57, %v2490_v59  ;;  %v4126_v59 = vld [vmem:[%s5194_s20 + $0x8] sm:$0xff]  }
0x13e6   :  { %2584 = vmatpush1.bf16.msra.mxu1 %v4069_v4 }
0x13e7   :  { %2585 = vmatprep.subr.bf16.mxu1 %v4077_v6 }
0x13ea   :  { %2586 = vmatpush1.bf16.msra.mxu1 %v4075_v8 }
0x13eb   :  { %3628 = vmatprep.subr.bf16.mxu1 %v4081_v11 }
0x1449   :  { %v2262_v34 = vpop.permute.xlu1 %2261 }
0x144a   :  { %v2284_v63 = vsel %vm2283_vm12, %v2281_v55, %v2262_v34  ;;  %v4087_v34 = vld [vmem:[%s5189_s15 + $0x8] sm:$0xff]   ;;  %v4091_v55 = vld [vmem:[%s5189_s15 + $0x10] sm:$0xff]  }
0x144b   :  { %v2286_v32 = vpack.c.bf16 %v2284_v63, %v2284_v63  ;;  %v4092_v63 = vld [vmem:[%s5189_s15 + $0x90] sm:$0xff]  }
0x144d   :  { %v2290_v31 = vunpack.c.l.b16 %v2286_v32  ;;  %v4096_v32 = vld [vmem:[%s5189_s15 + $0x98] sm:$0xff]  }
0x1451   :  { %v2264_v41 = vpop.permute.xlu0 %2263 }
0x1452   :  { %v2285_v26 = vsel %vm2283_vm12, %v2282_v53, %v2264_v41  ;;  %v4093_v53 = vld [vmem:[%s5189_s15 + $0x58] sm:$0xff]  }
0x1453   :  { %v2287_v35 = vpack.c.bf16 %v2285_v26, %v2285_v26  ;;  %v4094_v41 = vld [vmem:[%s5189_s15 + $0xd8] sm:$0xff]  }
0x1454   :  { %v4095_v26 = vld [vmem:[%s5189_s15 + $0x18] sm:$0xff]  }
0x1455   :  { %v2291_v24 = vunpack.c.l.b16 %v2287_v35  ;;  %v4097_v35 = vld [vmem:[%s5189_s15 + $0x60] sm:$0xff]  }
0x1457   :  { %v2292_v36 = vrot.slane %v2291_v24, 7  ;;  %v4098_v24 = vld [vmem:[%s5189_s15 + $0xe0] sm:$0xff]  }
0x1459   :  { %v2294_v46 = vsel %vm2293_vm13, %v2292_v36, %v2290_v31  ;;  %v4099_v31 = vld [vmem:[%s5189_s15 + $0x20] sm:$0xff]  }
0x145a   :  { %v2295_v50 = vpack.c.b16 %v2294_v46, %v2294_v46  ;;  %v4100_v36 = vld [vmem:[%s5189_s15 + $0xa0] sm:$0xff]   ;;  %v4101_v46 = vld [vmem:[%s5189_s15 + $0x68] sm:$0xff]  }
0x145c   :  { %3932 = vmatmul.mubr.msk.bf16.vlgmr.msra.gmra.mrb[68].mxu0 %vm106_vm0, %v2295_v50  ;;  %v4102_v50 = vld [vmem:[%s5189_s15 + $0xe8] sm:$0xff]  }
0x145d   :  { %2621 = vmatpush1.bf16.msra.mxu0 %v4060_v58  ;;  %2652 = vmatprep.mubr.bf16.mxu0 %v4259_v10  ;;  %v2482_v58 = vsub.s32 1, %v4481_v28 }
0x145e   :  { %2622 = vmatprep.subr.bf16.mxu0 %v4068_v61  ;;  %v2479_v61 = vrot.slane %v2408_v57, %v2478_v49 }
0x1461   :  { %2623 = vmatpush1.bf16.msra.mxu0 %v4066_v62  ;;  %v2483_v62 = vrot.slane %v2408_v57, %v2482_v58 }
0x1462   :  { %2624 = vmatprep.subr.bf16.mxu0 %v4074_v2 }
0x1465   :  { %2625 = vmatpush1.bf16.msra.mxu0 %v4072_v5 }
0x1466   :  { %2626 = vmatprep.subr.bf16.mxu0 %v4080_v7 }
0x1469   :  { %2627 = vmatpush1.bf16.msra.mxu0 %v4078_v9 }
0x146a   :  { %3650 = vmatprep.subr.bf16.mxu0 %v4082_v12 }
0x152f   :  { %v2357_v56 = vpop.f32.mrb[68].mxu0 }
0x1530   :  { %v4885_v45 = vadd.f32 %v4882_v43, %v2357_v56  ;;  %v3933_v47 = vpop.f32.mrb[69].mxu0  ;;  %v4103_v56 = vld [vmem:[%s5189_s15 + $0x28] sm:$0xff]  }
0x1531   :  { %v2360_v48 = vpop.f32.mrb[70].mxu0  ;;  %v4104_v47 = vld [vmem:[%s5189_s15 + $0xa8] sm:$0xff]  }
0x1532   :  { %v3934_v51 = vpop.f32.mrb[71].mxu0  ;;  %v2365_v27 = vsel %vm77_vm1, %v4885_v45, 0.0  ;;  %v4105_v48 = vld [vmem:[%s5189_s15 + $0x70] sm:$0xff]  }
0x1533   :  { %2366 = vadd.xlane.f32.xlu0 %v2365_v27  ;;  %v4106_v51 = vld [vmem:[%s5189_s15 + $0xf0] sm:$0xff]  }
0x1534   :  { %v4107_v27 = vld [vmem:[%s5189_s15 + $0x30] sm:$0xff]  }
0x1549   :  { %2949 = vrot.lane.b32.xlu0 %v4882_v43, %s4260_s5 }
0x15c0   :  { %v2367_v42 = vpop.xlane.xlu0 %2366 }
0x15c1   :  { %v2368_v44 = vmul.f32 0.015625, %v2367_v42  ;;  %v4108_v42 = vld [vmem:[%s5189_s15 + $0xb0] sm:$0xff]  }
0x15c3   :  { %v2369_v60 = vsub.f32 %v4885_v45, %v2368_v44  ;;  %v4109_v44 = vld [vmem:[%s5189_s15 + $0x78] sm:$0xff]  }
0x15c5   :  { %v2370_v1 = vmul.f32 %v2369_v60, %v2369_v60 }
0x15c7   :  { %v2371_v3 = vsel %vm77_vm1, %v2370_v1, 0.0  ;;  %v4111_v1 = vld [vmem:[%s5189_s15 + $0x38] sm:$0xff]   ;;  %vm3396_vm1 = vcmask 58368  }
0x15c8   :  { %2372 = vadd.xlane.f32.xlu1 %v2371_v3  ;;  %v4112_v3 = vld [vmem:[%s5189_s15 + $0xb8] sm:$0xff]  }
0x1655   :  { %v2373_v13 = vpop.xlane.xlu1 %2372 }
0x1656   :  { %v2374_v14 = vmul.f32 0.015625, %v2373_v13 }
0x1658   :  { %v2375_v15 = vadd.f32 1e-05, %v2374_v14 }
0x165a   :  { %4203 = vrsqrt.f32 %v2375_v15 }
0x1664   :  { %v4204_v16 = vpop.eup %4203 }
0x1665   :  { %v2377_v18 = vmul.f32 %v4204_v16, %v2369_v60  ;;  %v4110_v60 = vld [vmem:[%s5189_s15 + $0xf8] sm:$0xff]  }
0x1667   :  { %v2384_v20 = vmul.f32 %v3468_v17, %v2377_v18 }
0x1669   :  { %v2391_v21 = vadd.f32 %v3469_v19, %v2384_v20  ;;  %v4113_v19 = vld [vmem:[%s5191_s17] sm:$0xff]  }
0x166b   :  { %v2474_v25 = vpack.c.bf16 %v2391_v21, %v2391_v21 }
0x166d   :  { %3486 = vmatmul.mubr.msk.bf16.vlgmr.msra.gmra.mrb[72].mxu1 %vm106_vm0, %v2474_v25  ;;  %3487 = vmatmul.mubr.msk.bf16.vlgmr.msra.gmra.mrb[72].mxu0 %vm106_vm0, %v2474_v25  ;;  %v4116_v25 = vld [vmem:[%s5191_s17 + $0x18] sm:$0xff]  }
0x166e   :  { %3629 = vmatpush3.bf16.msra.mxu1 %v4083_v22  ;;  %3651 = vmatpush3.bf16.msra.mxu0 %v4084_v23  ;;  %v4114_v22 = vld [vmem:[%s5191_s17 + $0x8] sm:$0xff]   ;;  %v4115_v23 = vld [vmem:[%s5191_s17 + $0x10] sm:$0xff]  }
0x166f   :  { %3630 = vmatprep.subr.bf16.mxu1 %v4085_v33  ;;  %3652 = vmatprep.subr.bf16.mxu0 %v4086_v29  ;;  %v4117_v33 = vld [vmem:[%s5191_s17 + $0x20] sm:$0xff]   ;;  %v4118_v29 = vld [vmem:[%s5191_s17 + $0x28] sm:$0xff]  }
0x1672   :  { %3631 = vmatpush3.bf16.msra.mxu1 %v4087_v34  ;;  %3653 = vmatpush3.bf16.msra.mxu0 %v4088_v40  ;;  %v4119_v34 = vld [vmem:[%s5191_s17 + $0x30] sm:$0xff]   ;;  %v4120_v40 = vld [vmem:[%s5191_s17 + $0x38] sm:$0xff]  }
0x1673   :  { %3632 = vmatprep.subr.bf16.mxu1 %v4089_v38  ;;  %3654 = vmatprep.subr.bf16.mxu0 %v4090_v39  ;;  %v4121_v38 = vld [vmem:[%s5193_s19] sm:$0xff]   ;;  %v4122_v39 = vld [vmem:[%s5193_s19 + $0x8] sm:$0xff]  }
0x1676   :  { %3633 = vmatpush3.bf16.msra.mxu1 %v4091_v55  ;;  %3655 = vmatpush3.bf16.msra.mxu0 %v4092_v63  ;;  %v4123_v55 = vld [vmem:[%s5193_s19 + $0x10] sm:$0xff]  }
0x1677   :  { %3634 = vmatprep.subr.bf16.mxu1 %v4093_v53  ;;  %3656 = vmatprep.subr.bf16.mxu0 %v4094_v41  ;;  %v3488_v41 = vld [vmem:[%s5190_s16] ss:$0 sm:$0xff] }
0x167a   :  { %3635 = vmatpush3.bf16.msra.mxu1 %v4095_v26  ;;  %3657 = vmatpush3.bf16.msra.mxu0 %v4096_v32 }
0x167b   :  { %3636 = vmatprep.subr.bf16.mxu1 %v4097_v35  ;;  %3658 = vmatprep.subr.bf16.mxu0 %v4098_v24 }
0x167e   :  { %3637 = vmatpush3.bf16.msra.mxu1 %v4099_v31  ;;  %3659 = vmatpush3.bf16.msra.mxu0 %v4100_v36 }
0x167f   :  { %3638 = vmatprep.subr.bf16.mxu1 %v4101_v46  ;;  %3660 = vmatprep.subr.bf16.mxu0 %v4102_v50 }
0x1682   :  { %3639 = vmatpush3.bf16.msra.mxu1 %v4103_v56  ;;  %3661 = vmatpush3.bf16.msra.mxu0 %v4104_v47 }
0x1683   :  { %3640 = vmatprep.subr.bf16.mxu1 %v4105_v48  ;;  %3662 = vmatprep.subr.bf16.mxu0 %v4106_v51  ;;  %v2950_v48 = vpop.permute.xlu0 %2949 }
0x1686   :  { %3641 = vmatpush3.bf16.msra.mxu1 %v4107_v27  ;;  %3663 = vmatpush3.bf16.msra.mxu0 %v4108_v42 }
0x1687   :  { %3642 = vmatprep.subr.bf16.mxu1 %v4109_v44  ;;  %3664 = vmatprep.subr.bf16.mxu0 %v4110_v60  ;;  %v4124_v44 = vld [vmem:[%s5193_s19 + $0x18] sm:$0xff]   ;;  %v3521_v60 = vld [vmem:[%s5192_s18] ss:$0 sm:$0xff] }
0x168a   :  { %3643 = vmatpush3.bf16.msra.mxu1 %v4111_v1  ;;  %3665 = vmatpush3.bf16.msra.mxu0 %v4112_v3 }
0x168b   :  { %3935 = vmatprep.subr.bf16.mxu1 %v4242_v37  ;;  %3955 = vmatprep.subr.bf16.mxu0 %v4242_v37 }
0x1740   :  { %v2613_v2 = vpop.f32.mrb[72].mxu1  ;;  %v2654_v4 = vpop.f32.mrb[72].mxu0 }
0x1741   :  { %v2614_v5 = vadd.f32 %v2613_v2, %v2479_v61  ;;  %v2655_v43 = vadd.f32 %v2654_v4, %v2487_v54  ;;  %v2615_v6 = vpop.f32.mrb[73].mxu1  ;;  %v2656_v7 = vpop.f32.mrb[73].mxu0  ;;  %v4127_v61 = vld [vmem:[%s5194_s20 + $0x10] sm:$0xff]   ;;  %v4128_v54 = vld [vmem:[%s5194_s20 + $0x18] sm:$0xff]  }
0x1742   :  { %v2616_v8 = vadd.f32 %v2615_v6, %v2483_v62  ;;  %v2657_v9 = vadd.f32 %v2656_v7, %v2491_v0  ;;  %v2617_v10 = vpop.f32.mrb[74].mxu1  ;;  %v2658_v11 = vpop.f32.mrb[74].mxu0  ;;  %v3166_v62 = vld [vmem:[%s5211_s22] sm:$0xff]  ;;  %v3167_v0 = vld [vmem:[%s5211_s22 + $0x8] sm:$0xff] }
0x1743   :  { %v2661_v12 = vmax.f32 %v2614_v5, 0.0  ;;  %v2663_v13 = vmax.f32 %v2655_v43, 0.0  ;;  %v2618_v14 = vpop.f32.mrb[75].mxu1  ;;  %v2659_v15 = vpop.f32.mrb[75].mxu0  ;;  %v3168_v2 = vpack.c.bf16 %v3167_v0, %v3166_v62 }
0x1744   :  { %v2662_v16 = vmax.f32 %v2616_v8, 0.0  ;;  %v2664_v28 = vmax.f32 %v2657_v9, 0.0 }
0x1745   :  { %v2665_v20 = vpack.c.bf16 %v2661_v12, %v2661_v12  ;;  %v2667_v21 = vpack.c.bf16 %v2663_v13, %v2663_v13 }
0x1746   :  { %v2666_v17 = vpack.c.bf16 %v2662_v16, %v2662_v16  ;;  %v2668_v18 = vpack.c.bf16 %v2664_v28, %v2664_v28 }
0x1748   :  { %2899 = vmatprep.mubr.bf16.mxu1 %v2666_v17  ;;  %2939 = vmatprep.mubr.bf16.mxu0 %v2668_v18 }
0x1749   :  { %2900 = vmatmul.mubr.bf16.vlgmr.msra.gmra.mrb[76].mxu1 %v2665_v20  ;;  %2940 = vmatmul.mubr.bf16.vlgmr.msra.gmra.mrb[76].mxu0 %v2667_v21 }
0x174a   :  { %3936 = vmatpush3.bf16.msra.mxu1 %v4113_v19  ;;  %3951 = vmatprep.mubr.msk.bf16.mxu1 %vm4243_vm2, %v4242_v37 }
0x174b   :  { %3937 = vmatprep.subr.bf16.mxu1 %v4242_v37  ;;  %3963 = vmatprep.mubr.msk.bf16.mxu0 %vm4243_vm2, %v4242_v37 }
0x174c   :  { %3956 = vmatpush3.bf16.msra.mxu0 %v4121_v38  ;;  %v3347_v38 = vld [vmem:[%s5212_s3] sm:$0x1] }
0x174d   :  { %3957 = vmatprep.subr.bf16.mxu0 %v4242_v37  ;;  %vm3349_vm14 = vcmp.gt.f32.partialorder %v3347_v38, 0.0 }
0x174e   :  { %3938 = vmatpush3.bf16.msra.mxu1 %v4114_v22 }
0x174f   :  { %3939 = vmatprep.subr.bf16.mxu1 %v4242_v37 }
0x1750   :  { %3958 = vmatpush3.bf16.msra.mxu0 %v4122_v39 }
0x1751   :  { %3959 = vmatprep.subr.bf16.mxu0 %v4242_v37 }
0x1752   :  { %3940 = vmatpush3.bf16.msra.mxu1 %v4115_v23 }
0x1753   :  { %3941 = vmatprep.subr.bf16.mxu1 %v4242_v37 }
0x1754   :  { %3960 = vmatpush3.bf16.msra.mxu0 %v4123_v55 }
0x1755   :  { %3961 = vmatprep.subr.bf16.mxu0 %v4242_v37 }
0x1756   :  { %3942 = vmatpush3.bf16.msra.mxu1 %v4116_v25 }
0x1757   :  { %3943 = vmatprep.subr.bf16.mxu1 %v4242_v37 }
0x1758   :  { %3962 = vmatpush3.bf16.msra.mxu0 %v4124_v44 }
0x1759   :  { %3967 = vmatprep.subr.bf16.mxu0 %v4242_v37 }
0x175a   :  { %3944 = vmatpush3.bf16.msra.mxu1 %v4117_v33 }
0x175b   :  { %3945 = vmatprep.subr.bf16.mxu1 %v4242_v37 }
0x175e   :  { %3946 = vmatpush3.bf16.msra.mxu1 %v4118_v29 }
0x175f   :  { %3947 = vmatprep.subr.bf16.mxu1 %v4242_v37 }
0x1762   :  { %3948 = vmatpush3.bf16.msra.mxu1 %v4119_v34 }
0x1763   :  { %3949 = vmatprep.subr.bf16.mxu1 %v4242_v37 }
0x1766   :  { %3950 = vmatpush3.bf16.msra.mxu1 %v4120_v40 }
0x1767   :  { %3979 = vmatprep.subr.bf16.mxu1 %v4242_v37 }
0x181c   :  { %v3644_v63 = vpop.f32.mrb[76].mxu1  ;;  %v3666_v53 = vpop.f32.mrb[76].mxu0 }
0x181d   :  { %v3645_v26 = vpop.f32.mrb[77].mxu1  ;;  %v3667_v32 = vpop.f32.mrb[77].mxu0 }
0x181e   :  { %v3646_v35 = vadd.f32 %v3645_v26, %v3644_v63  ;;  %v3668_v24 = vadd.f32 %v3667_v32, %v3666_v53  ;;  %v3647_v31 = vpop.f32.mrb[78].mxu1  ;;  %v3669_v36 = vpop.f32.mrb[78].mxu0 }
0x181f   :  { %v3648_v46 = vpop.f32.mrb[79].mxu1  ;;  %v3670_v50 = vpop.f32.mrb[79].mxu0 }
0x1820   :  { %v2902_v56 = vadd.f32 %v3646_v35, %v3488_v41  ;;  %v3348_v41 = vld [vmem:[%s5212_s3 + $0x1] sm:$0x1] }
0x1822   :  { %v2942_v47 = vadd.f32 %v3668_v24, %v2902_v56 }
0x1824   :  { %v2947_v51 = vadd.f32 %v2942_v47, %v4885_v45 }
0x1826   :  { %v2952_v27 = vsel %vm106_vm0, %v2947_v51, %v2950_v48 }
0x1827   :  { %v2953_v42 = vpack.c.bf16 %v2952_v27, %v2952_v27 }
0x1829   :  { %3952 = vmatmul.mubr.bf16.vlgmr.msra.gmra.mrb[80].mxu1 %v2953_v42 }
0x182a   :  { %3981 = vmatprep.mubr.msk.bf16.mxu1 %vm4243_vm2, %v4242_v37 }
0x18fc   :  { %v3059_v1 = vpop.f32.mrb[80].mxu1 }
0x18fd   :  { %v3060_v45 = vadd.f32 %v3521_v60, %v3059_v1  ;;  %v3953_v3 = vpop.f32.mrb[81].mxu1 }
0x18fe   :  { %v3062_v49 = vpop.f32.mrb[82].mxu1 }
0x18ff   :  { %v3065_v57 = vpack.c.bf16 %v3060_v45, %v3060_v45  ;;  %v3954_v58 = vpop.f32.mrb[83].mxu1 }
0x1901   :  { %3964 = vmatmul.mubr.msk.bf16.vlgmr.msra.gmra.mrb[80].mxu0 %vm106_vm0, %v3065_v57 }
0x1902   :  { %3968 = vmatpush3.bf16.msra.mxu0 %v4125_v52  ;;  %3975 = vmatprep.mubr.msk.bf16.mxu0 %vm4243_vm2, %v4242_v37 }
0x1903   :  { %3969 = vmatprep.subr.bf16.mxu0 %v4242_v37 }
0x1906   :  { %3970 = vmatpush3.bf16.msra.mxu0 %v4126_v59 }
0x1907   :  { %3971 = vmatprep.subr.bf16.mxu0 %v4242_v37 }
0x190a   :  { %3972 = vmatpush3.bf16.msra.mxu0 %v4127_v61 }
0x190b   :  { %3973 = vmatprep.subr.bf16.mxu0 %v4242_v37 }
0x190e   :  { %3974 = vmatpush3.bf16.msra.mxu0 %v4128_v54 }
0x1911   :  { %3976 = vmatmul.mubr.msk.bf16.vlgmr.msra.gmra.mrb[84].mxu0 %vm106_vm0, %v3168_v2 }
0x19d4   :  { %v3135_v4 = vpop.f32.mrb[80].mxu0 }
0x19d5   :  { %v3965_v5 = vpop.f32.mrb[81].mxu0  ;;  %v3148_v8 = vrot.slane %v3135_v4, %v4484_v30 }
0x19d6   :  { %v3138_v43 = vpop.f32.mrb[82].mxu0 }
0x19d7   :  { %v3966_v6 = vpop.f32.mrb[83].mxu0  ;;  %v3156_v14 = vrot.slane %v3148_v8, %v4484_v30  ;;  %v3149_v16 = vcombine.high %v3148_v8, %v3148_v8 }
0x19d9   :  { %v3245_v28 = vpack.c.bf16 %v3156_v14, %v3156_v14  ;;  %v3163_v18 = vrot.slane %v3149_v16, %v4484_v30 }
0x19db   :  { %v3246_v19 = vpack.c.bf16 %v3163_v18, %v3163_v18 }
0x19e4   :  { %v3238_v7 = vpop.f32.mrb[84].mxu0 }
0x19e5   :  { %v3247_v9 = vpack.c.bf16 %v3238_v7, %v3238_v7  ;;  %v3977_v10 = vpop.f32.mrb[85].mxu0 }
0x19e6   :  { %v3241_v11 = vpop.f32.mrb[86].mxu0 }
0x19e7   :  { %v3253_v12 = vsel %vm106_vm0, %v3247_v9, 0  ;;  %v3978_v13 = vpop.f32.mrb[87].mxu0  ;;  %v3248_v15 = vpack.c.bf16 %v3241_v11, %v3241_v11 }
0x19e8   :  { %3980 = vmatpush3.bf16.xpose.msra.mxu1 %v3253_v12 }
0x19e9   :  { %3985 = vmatprep.subr.bf16.mxu1 %v4242_v37  ;;  %v3299_v17 = vsel %vm106_vm0, %v3248_v15, 0 }
0x19ef   :  { %3982 = vmatmul.mubr.msk.bf16.vlgmr.msra.gmra.mrb[84].mxu1 %vm106_vm0, %v3245_v28 }
0x19f0   :  { %3986 = vmatpush3.bf16.xpose.msra.mxu1 %v3299_v17  ;;  %3987 = vmatprep.mubr.msk.bf16.mxu1 %vm4243_vm2, %v4242_v37 }
0x19f7   :  { %3988 = vmatmul.mubr.msk.bf16.vlgmr.msra.gmra.mrb[88].mxu1 %vm106_vm0, %v3246_v19  ;;  %vm3350_vm0 = vcmp.gt.f32.partialorder %v3348_v41, 0.0 }
0x1ac2   :  { %v3289_v20 = vpop.f32.mrb[84].mxu1 }
0x1ac3   :  { %v3341_v21 = vmul.f32 0.125, %v3289_v20  ;;  %v3983_v22 = vpop.f32.mrb[85].mxu1 }
0x1ac4   :  { %v3292_v23 = vpop.f32.mrb[86].mxu1 }
0x1ac5   :  { %4205 = vtanh.f32 %v3341_v21  ;;  %v3984_v25 = vpop.f32.mrb[87].mxu1 }
0x1aca   :  { %v3335_v33 = vpop.f32.mrb[88].mxu1 }
0x1acb   :  { %v3342_v29 = vmul.f32 0.125, %v3335_v33  ;;  %v3989_v34 = vpop.f32.mrb[89].mxu1 }
0x1acc   :  { %v3338_v40 = vpop.f32.mrb[90].mxu1 }
0x1acd   :  { %4207 = vtanh.f32 %v3342_v29  ;;  %v3990_v37 = vpop.f32.mrb[91].mxu1 }
0x1acf   :  { %v4206_v39 = vpop.eup %4205 }
0x1ad0   :  { %v3345_v55 = vmul.f32 10.0, %v4206_v39 }
0x1ad2   :  { %v3351_v63 = vsel %vm3349_vm14, -1e+08, %v3345_v55 }
0x1ad3   :  { %v3354_v53 = vsel %vm3353_vm15, %v3351_v63, -inf }
0x1ad4   :  { %3355 = vmax.xlane.f32.xlu1 %v3354_v53 }
0x1ad7   :  { %v4208_v26 = vpop.eup %4207 }
0x1ad8   :  { %v3346_v32 = vmul.f32 10.0, %v4208_v26 }
0x1ada   :  { %v3352_v35 = vsel %vm3350_vm0, -1e+08, %v3346_v32 }
0x1adb   :  { %v3357_v24 = vsel %vm3353_vm15, %v3352_v35, -inf }
0x1adc   :  { %3358 = vmax.xlane.f32.xlu1 %v3357_v24 }
0x1b61   :  { %v3356_v31 = vpop.xlane.xlu1 %3355 }
0x1b62   :  { %v3360_v36 = vsub.f32 %v3351_v63, %v3356_v31 }
0x1b64   :  { %v3362_v46 = vmul.f32 1.442695, %v3360_v36 }
0x1b66   :  { %4209 = vpow2.f32 %v3362_v46 }
0x1b69   :  { %v3359_v50 = vpop.xlane.xlu1 %3358 }
0x1b6a   :  { %v3361_v56 = vsub.f32 %v3352_v35, %v3359_v50 }
0x1b6c   :  { %v3364_v47 = vmul.f32 1.442695, %v3361_v56 }
0x1b6e   :  { %4211 = vpow2.f32 %v3364_v47 }
0x1b70   :  { %v4210_v48 = vpop.eup %4209 }
0x1b71   :  { %v3366_v51 = vsel %vm3353_vm15, %v4210_v48, 0.0 }
0x1b72   :  { %3367 = vadd.xlane.f32.xlu1 %v3366_v51 }
0x1b78   :  { %v4212_v27 = vpop.eup %4211 }
0x1b79   :  { %v3369_v42 = vsel %vm3353_vm15, %v4212_v27, 0.0 }
0x1b7a   :  { %3370 = vadd.xlane.f32.xlu1 %v3369_v42 }
0x1bff   :  { %v3368_v44 = vpop.xlane.xlu1 %3367 }
0x1c00   :  { %4213 = vlog2.f32 %v3368_v44 }
0x1c07   :  { %v3371_v60 = vpop.xlane.xlu1 %3370 }
0x1c08   :  { %4215 = vlog2.f32 %v3371_v60 }
0x1c0a   :  { %v4214_v1 = vpop.eup %4213 }
0x1c0b   :  { %v3373_v45 = vmul.f32 0.6931472, %v4214_v1 }
0x1c0d   :  { %v3376_v52 = vsub.f32 %v3360_v36, %v3373_v45 }
0x1c12   :  { %v4216_v3 = vpop.eup %4215 }
0x1c13   :  { %v3375_v49 = vmul.f32 0.6931472, %v4216_v3 }
0x1c15   :  { %v3377_v57 = vsub.f32 %v3361_v56, %v3375_v49 }
0x1c17   :  { %v3380_v58 = vcombine.low %v3376_v52, %v3377_v57 }
0x1c19   :  { %v3387_v59 = vrot.slane %v3380_v58, %v4484_v30 }
0x1c1b   :  { %v3394_v61 = vrot.slane %v3387_v59, %v4484_v30 }
0x1c1d   :  { %3397 = vst.msk [vmem:[#allocation2] sm:$0x3] %vm3396_vm1, %v3394_v61 }
0x1c1e   :  { %4229 = shalt.err (!%p4226_p4)
}
0x1c1f   :  { %s4230_s30 = scalar_lea.hbm %s5195_s21, 32 }
0x1c20   :  { %p4231_p5 = scmp.ne.s32.totalorder %s5195_s21, %s4230_s30  ;;  %p4234_p6 = scmp.lt.u32.totalorder %s4230_s30, %s5195_s21 }
0x1c22   :  { %p4236_p7 = pnand %p4234_p6, %p4231_p5 }
0x1c24   :  { %4239 = shalt.err (!%p4236_p7)
}
0x1c25   :  { %3407 = dma.vmem_to_hbm [thread:$0]  %s3405_s29, 32, %s5195_s21, [#allocation3]  }
0x1c26   :  { %4240 = dma.done.wait [#allocation3], 32  }
0x1c27   :  { %4241 = vsyncadd [#allocation3], 4294967264 }
0x1c28   :  { %3411 = vsyncpa [#allocation3], 1 }

</bundles_post_ra>
